<compile_context>
chip_gen: v7x
topology: tpu7x:2x2x1
jax: 0.10.0
libtpu: 0.0.40
codegen_flags: <defaults>
</compile_context>

<pallas_src>
import functools
import math

import jax
import jax.numpy as jnp
from jax.experimental import pallas as pl
from jax.experimental.pallas import tpu as pltpu


# ----------------------------------------------------------------------------
# Fused Pallas kernel: one batch element per grid step.
# ----------------------------------------------------------------------------
def _paa_fused_kernel(gam_ref, x_ref,
                      w0_ref, b0_ref, w1_ref, b1_ref, w2_ref, b2_ref,
                      wqkv_h_ref, bqkv_h_ref, wqkv_w_ref, bqkv_w_ref,
                      w3_ref, b3_ref,
                      o_ref,
                      pad1_ref, pad2_ref, pad3_ref, im2col_ref, yf_ref,
                      *, S, Cin, C, Cq, r):
    bf16 = jnp.bfloat16
    HW = S * S
    p1 = r // 2

    # Zero the padded-conv scratch every step (scratch persists across grid steps and is
    # core-local when the batch axis is sharded across TensorCores on v7x).
    pad1_ref[...] = jnp.zeros(pad1_ref.shape, jnp.float32)
    pad2_ref[...] = jnp.zeros(pad2_ref.shape, jnp.float32)
    pad3_ref[...] = jnp.zeros(pad3_ref.shape, jnp.float32)

    def dense(lhs_bf16, w_ref_, b_ref_):
        # bf16 MXU operands, f32 accumulation + f32 (BN-folded) bias.
        return (jnp.dot(lhs_bf16, w_ref_[...], preferred_element_type=jnp.float32)
                + b_ref_[...])

    # ---- conv0 : 1x1 ---------------------------------------------------------------
    y0 = dense(x_ref[0].reshape(HW, Cin).astype(bf16), w0_ref, b0_ref)      # (HW, C) f32

    # ---- conv1 : (1, r) along W, 'same' --------------------------------------------
    pad1_ref[:, p1:p1 + S, :] = y0.reshape(S, S, C)
    for t in range(r):                                   # im2col: K-concat of taps
        im2col_ref[:, t * C:(t + 1) * C] = pad1_ref[:, t:t + S, :].reshape(HW, C)
    y1 = dense(im2col_ref[:, :r * C].astype(bf16), w1_ref, b1_ref)          # single dot, K=r*C

    # ---- conv2 : (r, 1) along H, 'same' --------------------------------------------
    pad2_ref[p1:p1 + S, :, :] = y1.reshape(S, S, C)
    for t in range(r):
        im2col_ref[:, t * C:(t + 1) * C] = pad2_ref[t:t + S, :, :].reshape(HW, C)
    y = dense(im2col_ref[:, :r * C].astype(bf16), w2_ref, b2_ref)           # (HW, C) f32

    # ---- lane-dense transposed slab for attention:  yf[w, h*C + c] = y[h, w, c] -----
    for h in range(S):
        yf_ref[:, h * C:(h + 1) * C] = y[h * S:(h + 1) * S, :]
    yf = yf_ref[...]                                                        # (S, S*C) f32
    yf_bf = yf.astype(bf16)

    scale = float(Cq * S) ** -0.5            # N = (C//8) * H, applied to BOTH q and k
    nq = S * Cq

    def attention(wqkv_ref, bqkv_ref, gamma):
        # Fused q|k|v 1x1 convs: one (S, S*C) @ (S*C, S*(2Cq+C)) matmul (block-diag weights).
        qkv = dense(yf_bf, wqkv_ref, bqkv_ref)                              # (S, 2*nq + S*C)
        q2 = qkv[:, :nq] * scale                                            # (S, S*Cq)
        k2 = qkv[:, nq:2 * nq] * scale
        vf = qkv[:, 2 * nq:].astype(bf16)                                   # (S, S*C)
        logits = jax.lax.dot_general(                                       # q2 @ k2.T
            q2, k2, (((1,), (1,)), ((), ())),
            preferred_element_type=jnp.float32)                             # (S, S)
        logits = logits - jnp.max(logits, axis=-1, keepdims=True)
        e = jnp.exp(logits)
        att = e * pl.reciprocal(jnp.sum(e, axis=-1, keepdims=True), approx=True)
        out = jnp.dot(att.astype(bf16), vf, preferred_element_type=jnp.float32)
        return gamma * out + yf                                             # residual, f32

    hx = attention(wqkv_h_ref, bqkv_h_ref, gam_ref[0])
    wx = attention(wqkv_w_ref, bqkv_w_ref, gam_ref[1])
    sf = hx + wx                                                            # (S, S*C), flat

    # ---- conv3 : 3x3, dilation r, 'same' --------------------------------------------
    # scatter the flat slab back to spatial (H, W, C) inside the zero-padded scratch
    for h in range(S):
        pad3_ref[r + h, r:r + S, :] = sf[:, h * C:(h + 1) * C]
    for idx in range(9):
        i, j = idx // 3, idx % 3
        im2col_ref[:, idx * C:(idx + 1) * C] = (
            pad3_ref[i * r:i * r + S, j * r:j * r + S, :].reshape(HW, C))
    y3 = dense(im2col_ref[...].astype(bf16), w3_ref, b3_ref)                # (HW, C) f32

    # ---- lane-dense output store:  o[w, h*C + c] = y3[h*S + w, c] --------------------
    for h in range(S):
        o_ref[0, :, h * C:(h + 1) * C] = y3[h * S:(h + 1) * S, :].astype(o_ref.dtype)


# ----------------------------------------------------------------------------
# Wrapper
# ----------------------------------------------------------------------------
def paa_kernel_forward(x_nchw, params, receptive_size):
    r = int(receptive_size)
    B, Cin, H, W = x_nchw.shape
    assert H == W, "fused PAA kernel assumes square feature maps (reference reshape quirk)"
    assert r % 2 == 1, "receptive_size must be odd ('same' padding arithmetic)"
    S = H
    C = params['w0'].shape[-1]
    Cq = C // 8
    assert C % 8 == 0 and Cq >= 1
    f32, bf16 = jnp.float32, jnp.bfloat16
    p1 = r // 2
    NQK = S * (2 * Cq + C)

    # ---- parameter prep (weights in bf16, biases in f32) ----
    w0 = params['w0'].reshape(Cin, C).astype(bf16)
    w1 = params['w1'].reshape(r * C, C).astype(bf16)          # (1, r, C, C) -> tap-major
    w2 = params['w2'].reshape(r * C, C).astype(bf16)          # (r, 1, C, C) -> tap-major
    w3 = params['w3'].reshape(9 * C, C).astype(bf16)          # (3, 3, C, C) -> (dy, dx)-major
    b0 = params['b0'].reshape(1, C).astype(f32)
    b1 = params['b1'].reshape(1, C).astype(f32)
    b2 = params['b2'].reshape(1, C).astype(f32)
    b3 = params['b3'].reshape(1, C).astype(f32)

    def qkv_block(att):
        # Block-diagonal (kron(I_S, W)) weights turn the per-position 1x1 q/k/v convs into a
        # single big-K matmul acting on the lane-dense (S, S*C) slab inside the kernel.
        eye = jnp.eye(S, dtype=f32)
        wq = att['wq'].reshape(C, Cq).astype(f32)
        wk = att['wk'].reshape(C, Cq).astype(f32)
        wv = att['wv'].reshape(C, C).astype(f32)
        wblk = jnp.concatenate(
            [jnp.kron(eye, wq), jnp.kron(eye, wk), jnp.kron(eye, wv)], axis=1).astype(bf16)
        bblk = jnp.concatenate(
            [jnp.tile(att['bq'], S), jnp.tile(att['bk'], S), jnp.tile(att['bv'], S)]
        ).reshape(1, NQK).astype(f32)
        return wblk, bblk

    wqkv_h, bqkv_h = qkv_block(params['hattn'])
    wqkv_w, bqkv_w = qkv_block(params['wattn'])
    gammas = jnp.concatenate(
        [params['hattn']['gamma'].reshape(1), params['wattn']['gamma'].reshape(1)]
    ).astype(f32)                                                             # (2,) -> SMEM

    x_nhwc = jnp.transpose(x_nchw, (0, 2, 3, 1)).astype(f32)                  # NCHW -> NHWC

    kernel = functools.partial(_paa_fused_kernel, S=S, Cin=Cin, C=C, Cq=Cq, r=r)
    out = pl.pallas_call(
        kernel,
        out_shape=jax.ShapeDtypeStruct((B, S, S * C), jnp.float32),
        grid=(B,),
        in_specs=[
            pl.BlockSpec(memory_space=pltpu.MemorySpace.SMEM),                # gammas (2,)
            pl.BlockSpec((1, S, S, Cin), lambda b: (b, 0, 0, 0)),             # x (NHWC block)
            pl.BlockSpec((Cin, C), lambda b: (0, 0)),                         # w0
            pl.BlockSpec((1, C), lambda b: (0, 0)),                           # b0
            pl.BlockSpec((r * C, C), lambda b: (0, 0)),                       # w1
            pl.BlockSpec((1, C), lambda b: (0, 0)),                           # b1
            pl.BlockSpec((r * C, C), lambda b: (0, 0)),                       # w2
            pl.BlockSpec((1, C), lambda b: (0, 0)),                           # b2
            pl.BlockSpec((S * C, NQK), lambda b: (0, 0)),                     # wqkv (Hattn)
            pl.BlockSpec((1, NQK), lambda b: (0, 0)),                         # bqkv (Hattn)
            pl.BlockSpec((S * C, NQK), lambda b: (0, 0)),                     # wqkv (Wattn)
            pl.BlockSpec((1, NQK), lambda b: (0, 0)),                         # bqkv (Wattn)
            pl.BlockSpec((9 * C, C), lambda b: (0, 0)),                       # w3
            pl.BlockSpec((1, C), lambda b: (0, 0)),                           # b3
        ],
        out_specs=pl.BlockSpec((1, S, S * C), lambda b: (b, 0, 0)),           # lane-dense
        scratch_shapes=[
            pltpu.VMEM((S, S + 2 * p1, C), jnp.float32),                      # conv1 pad
            pltpu.VMEM((S + 2 * p1, S, C), jnp.float32),                      # conv2 pad
            pltpu.VMEM((S + 2 * r, S + 2 * r, C), jnp.float32),               # conv3 pad
            pltpu.VMEM((S * S, 9 * C), jnp.float32),                          # shared im2col
            pltpu.VMEM((S, S * C), jnp.float32),                              # yf slab
        ],
        compiler_params=pltpu.CompilerParams(dimension_semantics=("parallel",)),
    )(gammas, x_nhwc, w0, b0, w1, b1, w2, b2,
      wqkv_h, bqkv_h, wqkv_w, bqkv_w, w3, b3)

    # out[b, w, h*C + c]  ->  (B, C, H, W)
    return jnp.transpose(out.reshape(B, S, S, C), (0, 3, 2, 1))


# ----------------------------------------------------------------------------
# Deterministic parameter initialization (synthetic; eval-mode BN folded into conv)
# ----------------------------------------------------------------------------
def init_params(key, cin, cout, r):
    keys = iter(jax.random.split(key, 64))

    def conv_bn(kh, kw, ci, co):
        w = jax.random.normal(next(keys), (kh, kw, ci, co), jnp.float32)
        w = w * (1.0 / math.sqrt(kh * kw * ci))
        g = 1.0 + 0.1 * jax.random.normal(next(keys), (co,), jnp.float32)
        beta = 0.1 * jax.random.normal(next(keys), (co,), jnp.float32)
        mean = 0.1 * jax.random.normal(next(keys), (co,), jnp.float32)
        var = 0.5 + jax.random.uniform(next(keys), (co,), jnp.float32)
        scale = g / jnp.sqrt(var + 1e-5)
        return w * scale, beta - mean * scale

    p = {}
    p['w0'], p['b0'] = conv_bn(1, 1, cin, cout)
    p['w1'], p['b1'] = conv_bn(1, r, cout, cout)
    p['w2'], p['b2'] = conv_bn(r, 1, cout, cout)
    p['w3'], p['b3'] = conv_bn(3, 3, cout, cout)

    def attn(co):
        cq = co // 8
        d = {}
        d['wq'], d['bq'] = conv_bn(1, 1, co, cq)
        d['wk'], d['bk'] = conv_bn(1, 1, co, cq)
        d['wv'], d['bv'] = conv_bn(1, 1, co, co)
        # Reference inits gamma to zero; deterministic nonzero so attention is exercised.
        d['gamma'] = 0.5 * jax.random.normal(next(keys), (1,), jnp.float32)
        return d

    p['hattn'] = attn(cout)
    p['wattn'] = attn(cout)
    return p


# ----------------------------------------------------------------------------
if __name__ == "__main__":
    key = jax.random.PRNGKey(0)
    kx, kp = jax.random.split(key)

    B, Cin, H, W = 2, 16, 16, 16
    Cout, receptive_size = 32, 3              # out_channel must be a multiple of 8

    x = jax.random.normal(kx, (B, Cin, H, W), jnp.float32)   # NCHW, like PyTorch
    params = init_params(kp, Cin, Cout, receptive_size)

    fwd = jax.jit(functools.partial(paa_kernel_forward, receptive_size=receptive_size))
    y = fwd(x, params)
    y = jax.block_until_ready(y)

    assert y.shape == (B, Cout, H, W), y.shape
    assert bool(jnp.all(jnp.isfinite(y)))
    print("KERNEL_OK")
</pallas_src>

<mosaic_0001>
module attributes {stable_mosaic.version = 11 : i64} {
  func.func @_paa_fused_kernel(%arg0: i32, %arg1: memref<2xf32, #tpu.memory_space<smem>>, %arg2: memref<1x16x16x16xf32, #tpu.memory_space<vmem>>, %arg3: memref<16x32xbf16, #tpu.memory_space<vmem>>, %arg4: memref<1x32xf32, #tpu.memory_space<vmem>>, %arg5: memref<96x32xbf16, #tpu.memory_space<vmem>>, %arg6: memref<1x32xf32, #tpu.memory_space<vmem>>, %arg7: memref<96x32xbf16, #tpu.memory_space<vmem>>, %arg8: memref<1x32xf32, #tpu.memory_space<vmem>>, %arg9: memref<512x640xbf16, #tpu.memory_space<vmem>>, %arg10: memref<1x640xf32, #tpu.memory_space<vmem>>, %arg11: memref<512x640xbf16, #tpu.memory_space<vmem>>, %arg12: memref<1x640xf32, #tpu.memory_space<vmem>>, %arg13: memref<288x32xbf16, #tpu.memory_space<vmem>>, %arg14: memref<1x32xf32, #tpu.memory_space<vmem>>, %arg15: memref<1x16x512xf32, #tpu.memory_space<vmem>>, %arg16: memref<16x18x32xf32, #tpu.memory_space<vmem>>, %arg17: memref<18x16x32xf32, #tpu.memory_space<vmem>>, %arg18: memref<22x22x32xf32, #tpu.memory_space<vmem>>, %arg19: memref<256x288xf32, #tpu.memory_space<vmem>>, %arg20: memref<16x512xf32, #tpu.memory_space<vmem>>) attributes {dimension_semantics = [#tpu.dimension_semantics<parallel>], iteration_bounds = array<i64: 2>, scalar_prefetch = 0 : i64, scratch_operands = 5 : i64, tpu.core_type = #tpu.core_type<tc>, window_params = [{transform_indices = @transform_0, window_bounds = array<i64: 2>}, {transform_indices = @transform_1, window_bounds = array<i64: 1, 16, 16, 16>}, {pipeline_mode = #tpu.pipeline_mode<synchronous>, transform_indices = @transform_2, window_bounds = array<i64: 16, 32>}, {pipeline_mode = #tpu.pipeline_mode<synchronous>, transform_indices = @transform_3, window_bounds = array<i64: 1, 32>}, {pipeline_mode = #tpu.pipeline_mode<synchronous>, transform_indices = @transform_4, window_bounds = array<i64: 96, 32>}, {pipeline_mode = #tpu.pipeline_mode<synchronous>, transform_indices = @transform_5, window_bounds = array<i64: 1, 32>}, {pipeline_mode = #tpu.pipeline_mode<synchronous>, transform_indices = @transform_6, window_bounds = array<i64: 96, 32>}, {pipeline_mode = #tpu.pipeline_mode<synchronous>, transform_indices = @transform_7, window_bounds = array<i64: 1, 32>}, {pipeline_mode = #tpu.pipeline_mode<synchronous>, transform_indices = @transform_8, window_bounds = array<i64: 512, 640>}, {pipeline_mode = #tpu.pipeline_mode<synchronous>, transform_indices = @transform_9, window_bounds = array<i64: 1, 640>}, {pipeline_mode = #tpu.pipeline_mode<synchronous>, transform_indices = @transform_10, window_bounds = array<i64: 512, 640>}, {pipeline_mode = #tpu.pipeline_mode<synchronous>, transform_indices = @transform_11, window_bounds = array<i64: 1, 640>}, {pipeline_mode = #tpu.pipeline_mode<synchronous>, transform_indices = @transform_12, window_bounds = array<i64: 288, 32>}, {pipeline_mode = #tpu.pipeline_mode<synchronous>, transform_indices = @transform_13, window_bounds = array<i64: 1, 32>}, {transform_indices = @transform_14, window_bounds = array<i64: 1, 16, 512>}]} {
    %cst = arith.constant 0.000000e+00 : f32
    %0 = vector.broadcast %cst : f32 to vector<16x18x32xf32>
    %c0 = arith.constant 0 : index
    %c0_0 = arith.constant 0 : index
    %c0_1 = arith.constant 0 : index
    %1 = vector.load %arg16[%c0, %c0_0, %c0_1] : memref<16x18x32xf32, #tpu.memory_space<vmem>>, vector<16x18x32xf32>
    tpu.vector_store %arg16[%c0, %c0_0, %c0_1], %0 {strides = array<i32>} : memref<16x18x32xf32, #tpu.memory_space<vmem>>, vector<16x18x32xf32>,
    %cst_2 = arith.constant 0.000000e+00 : f32
    %2 = vector.broadcast %cst_2 : f32 to vector<18x16x32xf32>
    %c0_3 = arith.constant 0 : index
    %c0_4 = arith.constant 0 : index
    %c0_5 = arith.constant 0 : index
    %3 = vector.load %arg17[%c0_3, %c0_4, %c0_5] : memref<18x16x32xf32, #tpu.memory_space<vmem>>, vector<18x16x32xf32>
    tpu.vector_store %arg17[%c0_3, %c0_4, %c0_5], %2 {strides = array<i32>} : memref<18x16x32xf32, #tpu.memory_space<vmem>>, vector<18x16x32xf32>,
    %cst_6 = arith.constant 0.000000e+00 : f32
    %4 = vector.broadcast %cst_6 : f32 to vector<22x22x32xf32>
    %c0_7 = arith.constant 0 : index
    %c0_8 = arith.constant 0 : index
    %c0_9 = arith.constant 0 : index
    %5 = vector.load %arg18[%c0_7, %c0_8, %c0_9] : memref<22x22x32xf32, #tpu.memory_space<vmem>>, vector<22x22x32xf32>
    tpu.vector_store %arg18[%c0_7, %c0_8, %c0_9], %4 {strides = array<i32>} : memref<22x22x32xf32, #tpu.memory_space<vmem>>, vector<22x22x32xf32>,
    %c0_10 = arith.constant 0 : index
    %c0_11 = arith.constant 0 : index
    %c0_12 = arith.constant 0 : index
    %c0_13 = arith.constant 0 : index
    %6 = vector.load %arg2[%c0_10, %c0_11, %c0_12, %c0_13] : memref<1x16x16x16xf32, #tpu.memory_space<vmem>>, vector<1x16x16x16xf32>
    %7 = vector.shape_cast %6 : vector<1x16x16x16xf32> to vector<16x16x16xf32>
    %8 = vector.shape_cast %7 : vector<16x16x16xf32> to vector<256x16xf32>
    %9 = arith.truncf %8 : vector<256x16xf32> to vector<256x16xbf16>
    %c0_14 = arith.constant 0 : index
    %c0_15 = arith.constant 0 : index
    %10 = vector.load %arg3[%c0_14, %c0_15] : memref<16x32xbf16, #tpu.memory_space<vmem>>, vector<16x32xbf16>
    %cst_16 = arith.constant dense<0.000000e+00> : vector<256x32xf32>
    %11 = tpu.matmul %9, %10, %cst_16 {dimension_numbers = #tpu.dot_dimension_numbers<[1], [0], [0], [1], [0, 0, 1, 1], [], []>} : vector<256x16xbf16>, vector<16x32xbf16>, vector<256x32xf32> -> vector<256x32xf32>
    %c0_17 = arith.constant 0 : index
    %c0_18 = arith.constant 0 : index
    %12 = vector.load %arg4[%c0_17, %c0_18] : memref<1x32xf32, #tpu.memory_space<vmem>>, vector<1x32xf32>
    %13 = vector.broadcast %12 : vector<1x32xf32> to vector<256x32xf32>
    %14 = arith.addf %11, %13 : vector<256x32xf32>
    %15 = vector.shape_cast %14 : vector<256x32xf32> to vector<16x16x32xf32>
    %c0_19 = arith.constant 0 : index
    %c1 = arith.constant 1 : index
    %c0_20 = arith.constant 0 : index
    %16 = vector.load %arg16[%c0_19, %c1, %c0_20] : memref<16x18x32xf32, #tpu.memory_space<vmem>>, vector<16x16x32xf32>
    tpu.vector_store %arg16[%c0_19, %c1, %c0_20], %15 {strides = array<i32>} : memref<16x18x32xf32, #tpu.memory_space<vmem>>, vector<16x16x32xf32>,
    %c0_21 = arith.constant 0 : index
    %c0_22 = arith.constant 0 : index
    %c0_23 = arith.constant 0 : index
    %17 = vector.load %arg16[%c0_21, %c0_22, %c0_23] : memref<16x18x32xf32, #tpu.memory_space<vmem>>, vector<16x16x32xf32>
    %18 = vector.shape_cast %17 : vector<16x16x32xf32> to vector<256x32xf32>
    %c0_24 = arith.constant 0 : index
    %c0_25 = arith.constant 0 : index
    %19 = vector.load %arg19[%c0_24, %c0_25] : memref<256x288xf32, #tpu.memory_space<vmem>>, vector<256x32xf32>
    tpu.vector_store %arg19[%c0_24, %c0_25], %18 {strides = array<i32>} : memref<256x288xf32, #tpu.memory_space<vmem>>, vector<256x32xf32>,
    %c0_26 = arith.constant 0 : index
    %c1_27 = arith.constant 1 : index
    %c0_28 = arith.constant 0 : index
    %20 = vector.load %arg16[%c0_26, %c1_27, %c0_28] : memref<16x18x32xf32, #tpu.memory_space<vmem>>, vector<16x16x32xf32>
    %21 = vector.shape_cast %20 : vector<16x16x32xf32> to vector<256x32xf32>
    %c0_29 = arith.constant 0 : index
    %c32 = arith.constant 32 : index
    %22 = vector.load %arg19[%c0_29, %c32] : memref<256x288xf32, #tpu.memory_space<vmem>>, vector<256x32xf32>
    tpu.vector_store %arg19[%c0_29, %c32], %21 {strides = array<i32>} : memref<256x288xf32, #tpu.memory_space<vmem>>, vector<256x32xf32>,
    %c0_30 = arith.constant 0 : index
    %c2 = arith.constant 2 : index
    %c0_31 = arith.constant 0 : index
    %23 = vector.load %arg16[%c0_30, %c2, %c0_31] : memref<16x18x32xf32, #tpu.memory_space<vmem>>, vector<16x16x32xf32>
    %24 = vector.shape_cast %23 : vector<16x16x32xf32> to vector<256x32xf32>
    %c0_32 = arith.constant 0 : index
    %c64 = arith.constant 64 : index
    %25 = vector.load %arg19[%c0_32, %c64] : memref<256x288xf32, #tpu.memory_space<vmem>>, vector<256x32xf32>
    tpu.vector_store %arg19[%c0_32, %c64], %24 {strides = array<i32>} : memref<256x288xf32, #tpu.memory_space<vmem>>, vector<256x32xf32>,
    %c0_33 = arith.constant 0 : index
    %c0_34 = arith.constant 0 : index
    %26 = vector.load %arg19[%c0_33, %c0_34] : memref<256x288xf32, #tpu.memory_space<vmem>>, vector<256x96xf32>
    %27 = arith.truncf %26 : vector<256x96xf32> to vector<256x96xbf16>
    %c0_35 = arith.constant 0 : index
    %c0_36 = arith.constant 0 : index
    %28 = vector.load %arg5[%c0_35, %c0_36] : memref<96x32xbf16, #tpu.memory_space<vmem>>, vector<96x32xbf16>
    %cst_37 = arith.constant dense<0.000000e+00> : vector<256x32xf32>
    %29 = tpu.matmul %27, %28, %cst_37 {dimension_numbers = #tpu.dot_dimension_numbers<[1], [0], [0], [1], [0, 0, 1, 1], [], []>} : vector<256x96xbf16>, vector<96x32xbf16>, vector<256x32xf32> -> vector<256x32xf32>
    %c0_38 = arith.constant 0 : index
    %c0_39 = arith.constant 0 : index
    %30 = vector.load %arg6[%c0_38, %c0_39] : memref<1x32xf32, #tpu.memory_space<vmem>>, vector<1x32xf32>
    %31 = vector.broadcast %30 : vector<1x32xf32> to vector<256x32xf32>
    %32 = arith.addf %29, %31 : vector<256x32xf32>
    %33 = vector.shape_cast %32 : vector<256x32xf32> to vector<16x16x32xf32>
    %c1_40 = arith.constant 1 : index
    %c0_41 = arith.constant 0 : index
    %c0_42 = arith.constant 0 : index
    %34 = vector.load %arg17[%c1_40, %c0_41, %c0_42] : memref<18x16x32xf32, #tpu.memory_space<vmem>>, vector<16x16x32xf32>
    tpu.vector_store %arg17[%c1_40, %c0_41, %c0_42], %33 {strides = array<i32>} : memref<18x16x32xf32, #tpu.memory_space<vmem>>, vector<16x16x32xf32>,
    %c0_43 = arith.constant 0 : index
    %c0_44 = arith.constant 0 : index
    %c0_45 = arith.constant 0 : index
    %35 = vector.load %arg17[%c0_43, %c0_44, %c0_45] : memref<18x16x32xf32, #tpu.memory_space<vmem>>, vector<16x16x32xf32>
    %36 = vector.shape_cast %35 : vector<16x16x32xf32> to vector<256x32xf32>
    %c0_46 = arith.constant 0 : index
    %c0_47 = arith.constant 0 : index
    %37 = vector.load %arg19[%c0_46, %c0_47] : memref<256x288xf32, #tpu.memory_space<vmem>>, vector<256x32xf32>
    tpu.vector_store %arg19[%c0_46, %c0_47], %36 {strides = array<i32>} : memref<256x288xf32, #tpu.memory_space<vmem>>, vector<256x32xf32>,
    %c1_48 = arith.constant 1 : index
    %c0_49 = arith.constant 0 : index
    %c0_50 = arith.constant 0 : index
    %38 = vector.load %arg17[%c1_48, %c0_49, %c0_50] : memref<18x16x32xf32, #tpu.memory_space<vmem>>, vector<16x16x32xf32>
    %39 = vector.shape_cast %38 : vector<16x16x32xf32> to vector<256x32xf32>
    %c0_51 = arith.constant 0 : index
    %c32_52 = arith.constant 32 : index
    %40 = vector.load %arg19[%c0_51, %c32_52] : memref<256x288xf32, #tpu.memory_space<vmem>>, vector<256x32xf32>
    tpu.vector_store %arg19[%c0_51, %c32_52], %39 {strides = array<i32>} : memref<256x288xf32, #tpu.memory_space<vmem>>, vector<256x32xf32>,
    %c2_53 = arith.constant 2 : index
    %c0_54 = arith.constant 0 : index
    %c0_55 = arith.constant 0 : index
    %41 = vector.load %arg17[%c2_53, %c0_54, %c0_55] : memref<18x16x32xf32, #tpu.memory_space<vmem>>, vector<16x16x32xf32>
    %42 = vector.shape_cast %41 : vector<16x16x32xf32> to vector<256x32xf32>
    %c0_56 = arith.constant 0 : index
    %c64_57 = arith.constant 64 : index
    %43 = vector.load %arg19[%c0_56, %c64_57] : memref<256x288xf32, #tpu.memory_space<vmem>>, vector<256x32xf32>
    tpu.vector_store %arg19[%c0_56, %c64_57], %42 {strides = array<i32>} : memref<256x288xf32, #tpu.memory_space<vmem>>, vector<256x32xf32>,
    %c0_58 = arith.constant 0 : index
    %c0_59 = arith.constant 0 : index
    %44 = vector.load %arg19[%c0_58, %c0_59] : memref<256x288xf32, #tpu.memory_space<vmem>>, vector<256x96xf32>
    %45 = arith.truncf %44 : vector<256x96xf32> to vector<256x96xbf16>
    %c0_60 = arith.constant 0 : index
    %c0_61 = arith.constant 0 : index
    %46 = vector.load %arg7[%c0_60, %c0_61] : memref<96x32xbf16, #tpu.memory_space<vmem>>, vector<96x32xbf16>
    %cst_62 = arith.constant dense<0.000000e+00> : vector<256x32xf32>
    %47 = tpu.matmul %45, %46, %cst_62 {dimension_numbers = #tpu.dot_dimension_numbers<[1], [0], [0], [1], [0, 0, 1, 1], [], []>} : vector<256x96xbf16>, vector<96x32xbf16>, vector<256x32xf32> -> vector<256x32xf32>
    %c0_63 = arith.constant 0 : index
    %c0_64 = arith.constant 0 : index
    %48 = vector.load %arg8[%c0_63, %c0_64] : memref<1x32xf32, #tpu.memory_space<vmem>>, vector<1x32xf32>
    %49 = vector.broadcast %48 : vector<1x32xf32> to vector<256x32xf32>
    %50 = arith.addf %47, %49 : vector<256x32xf32>
    %51 = vector.extract_strided_slice %50 {offsets = [0, 0], sizes = [16, 32], strides = [1, 1]} : vector<256x32xf32> to vector<16x32xf32>
    %c0_65 = arith.constant 0 : index
    %c0_66 = arith.constant 0 : index
    %52 = vector.load %arg20[%c0_65, %c0_66] : memref<16x512xf32, #tpu.memory_space<vmem>>, vector<16x32xf32>
    tpu.vector_store %arg20[%c0_65, %c0_66], %51 {strides = array<i32>} : memref<16x512xf32, #tpu.memory_space<vmem>>, vector<16x32xf32>,
    %53 = vector.extract_strided_slice %50 {offsets = [16, 0], sizes = [16, 32], strides = [1, 1]} : vector<256x32xf32> to vector<16x32xf32>
    %c0_67 = arith.constant 0 : index
    %c32_68 = arith.constant 32 : index
    %54 = vector.load %arg20[%c0_67, %c32_68] : memref<16x512xf32, #tpu.memory_space<vmem>>, vector<16x32xf32>
    tpu.vector_store %arg20[%c0_67, %c32_68], %53 {strides = array<i32>} : memref<16x512xf32, #tpu.memory_space<vmem>>, vector<16x32xf32>,
    %55 = vector.extract_strided_slice %50 {offsets = [32, 0], sizes = [16, 32], strides = [1, 1]} : vector<256x32xf32> to vector<16x32xf32>
    %c0_69 = arith.constant 0 : index
    %c64_70 = arith.constant 64 : index
    %56 = vector.load %arg20[%c0_69, %c64_70] : memref<16x512xf32, #tpu.memory_space<vmem>>, vector<16x32xf32>
    tpu.vector_store %arg20[%c0_69, %c64_70], %55 {strides = array<i32>} : memref<16x512xf32, #tpu.memory_space<vmem>>, vector<16x32xf32>,
    %57 = vector.extract_strided_slice %50 {offsets = [48, 0], sizes = [16, 32], strides = [1, 1]} : vector<256x32xf32> to vector<16x32xf32>
    %c0_71 = arith.constant 0 : index
    %c96 = arith.constant 96 : index
    %58 = vector.load %arg20[%c0_71, %c96] : memref<16x512xf32, #tpu.memory_space<vmem>>, vector<16x32xf32>
    tpu.vector_store %arg20[%c0_71, %c96], %57 {strides = array<i32>} : memref<16x512xf32, #tpu.memory_space<vmem>>, vector<16x32xf32>,
    %59 = vector.extract_strided_slice %50 {offsets = [64, 0], sizes = [16, 32], strides = [1, 1]} : vector<256x32xf32> to vector<16x32xf32>
    %c0_72 = arith.constant 0 : index
    %c128 = arith.constant 128 : index
    %60 = vector.load %arg20[%c0_72, %c128] : memref<16x512xf32, #tpu.memory_space<vmem>>, vector<16x32xf32>
    tpu.vector_store %arg20[%c0_72, %c128], %59 {strides = array<i32>} : memref<16x512xf32, #tpu.memory_space<vmem>>, vector<16x32xf32>,
    %61 = vector.extract_strided_slice %50 {offsets = [80, 0], sizes = [16, 32], strides = [1, 1]} : vector<256x32xf32> to vector<16x32xf32>
    %c0_73 = arith.constant 0 : index
    %c160 = arith.constant 160 : index
    %62 = vector.load %arg20[%c0_73, %c160] : memref<16x512xf32, #tpu.memory_space<vmem>>, vector<16x32xf32>
    tpu.vector_store %arg20[%c0_73, %c160], %61 {strides = array<i32>} : memref<16x512xf32, #tpu.memory_space<vmem>>, vector<16x32xf32>,
    %63 = vector.extract_strided_slice %50 {offsets = [96, 0], sizes = [16, 32], strides = [1, 1]} : vector<256x32xf32> to vector<16x32xf32>
    %c0_74 = arith.constant 0 : index
    %c192 = arith.constant 192 : index
    %64 = vector.load %arg20[%c0_74, %c192] : memref<16x512xf32, #tpu.memory_space<vmem>>, vector<16x32xf32>
    tpu.vector_store %arg20[%c0_74, %c192], %63 {strides = array<i32>} : memref<16x512xf32, #tpu.memory_space<vmem>>, vector<16x32xf32>,
    %65 = vector.extract_strided_slice %50 {offsets = [112, 0], sizes = [16, 32], strides = [1, 1]} : vector<256x32xf32> to vector<16x32xf32>
    %c0_75 = arith.constant 0 : index
    %c224 = arith.constant 224 : index
    %66 = vector.load %arg20[%c0_75, %c224] : memref<16x512xf32, #tpu.memory_space<vmem>>, vector<16x32xf32>
    tpu.vector_store %arg20[%c0_75, %c224], %65 {strides = array<i32>} : memref<16x512xf32, #tpu.memory_space<vmem>>, vector<16x32xf32>,
    %67 = vector.extract_strided_slice %50 {offsets = [128, 0], sizes = [16, 32], strides = [1, 1]} : vector<256x32xf32> to vector<16x32xf32>
    %c0_76 = arith.constant 0 : index
    %c256 = arith.constant 256 : index
    %68 = vector.load %arg20[%c0_76, %c256] : memref<16x512xf32, #tpu.memory_space<vmem>>, vector<16x32xf32>
    tpu.vector_store %arg20[%c0_76, %c256], %67 {strides = array<i32>} : memref<16x512xf32, #tpu.memory_space<vmem>>, vector<16x32xf32>,
    %69 = vector.extract_strided_slice %50 {offsets = [144, 0], sizes = [16, 32], strides = [1, 1]} : vector<256x32xf32> to vector<16x32xf32>
    %c0_77 = arith.constant 0 : index
    %c288 = arith.constant 288 : index
    %70 = vector.load %arg20[%c0_77, %c288] : memref<16x512xf32, #tpu.memory_space<vmem>>, vector<16x32xf32>
    tpu.vector_store %arg20[%c0_77, %c288], %69 {strides = array<i32>} : memref<16x512xf32, #tpu.memory_space<vmem>>, vector<16x32xf32>,
    %71 = vector.extract_strided_slice %50 {offsets = [160, 0], sizes = [16, 32], strides = [1, 1]} : vector<256x32xf32> to vector<16x32xf32>
    %c0_78 = arith.constant 0 : index
    %c320 = arith.constant 320 : index
    %72 = vector.load %arg20[%c0_78, %c320] : memref<16x512xf32, #tpu.memory_space<vmem>>, vector<16x32xf32>
    tpu.vector_store %arg20[%c0_78, %c320], %71 {strides = array<i32>} : memref<16x512xf32, #tpu.memory_space<vmem>>, vector<16x32xf32>,
    %73 = vector.extract_strided_slice %50 {offsets = [176, 0], sizes = [16, 32], strides = [1, 1]} : vector<256x32xf32> to vector<16x32xf32>
    %c0_79 = arith.constant 0 : index
    %c352 = arith.constant 352 : index
    %74 = vector.load %arg20[%c0_79, %c352] : memref<16x512xf32, #tpu.memory_space<vmem>>, vector<16x32xf32>
    tpu.vector_store %arg20[%c0_79, %c352], %73 {strides = array<i32>} : memref<16x512xf32, #tpu.memory_space<vmem>>, vector<16x32xf32>,
    %75 = vector.extract_strided_slice %50 {offsets = [192, 0], sizes = [16, 32], strides = [1, 1]} : vector<256x32xf32> to vector<16x32xf32>
    %c0_80 = arith.constant 0 : index
    %c384 = arith.constant 384 : index
    %76 = vector.load %arg20[%c0_80, %c384] : memref<16x512xf32, #tpu.memory_space<vmem>>, vector<16x32xf32>
    tpu.vector_store %arg20[%c0_80, %c384], %75 {strides = array<i32>} : memref<16x512xf32, #tpu.memory_space<vmem>>, vector<16x32xf32>,
    %77 = vector.extract_strided_slice %50 {offsets = [208, 0], sizes = [16, 32], strides = [1, 1]} : vector<256x32xf32> to vector<16x32xf32>
    %c0_81 = arith.constant 0 : index
    %c416 = arith.constant 416 : index
    %78 = vector.load %arg20[%c0_81, %c416] : memref<16x512xf32, #tpu.memory_space<vmem>>, vector<16x32xf32>
    tpu.vector_store %arg20[%c0_81, %c416], %77 {strides = array<i32>} : memref<16x512xf32, #tpu.memory_space<vmem>>, vector<16x32xf32>,
    %79 = vector.extract_strided_slice %50 {offsets = [224, 0], sizes = [16, 32], strides = [1, 1]} : vector<256x32xf32> to vector<16x32xf32>
    %c0_82 = arith.constant 0 : index
    %c448 = arith.constant 448 : index
    %80 = vector.load %arg20[%c0_82, %c448] : memref<16x512xf32, #tpu.memory_space<vmem>>, vector<16x32xf32>
    tpu.vector_store %arg20[%c0_82, %c448], %79 {strides = array<i32>} : memref<16x512xf32, #tpu.memory_space<vmem>>, vector<16x32xf32>,
    %81 = vector.extract_strided_slice %50 {offsets = [240, 0], sizes = [16, 32], strides = [1, 1]} : vector<256x32xf32> to vector<16x32xf32>
    %c0_83 = arith.constant 0 : index
    %c480 = arith.constant 480 : index
    %82 = vector.load %arg20[%c0_83, %c480] : memref<16x512xf32, #tpu.memory_space<vmem>>, vector<16x32xf32>
    tpu.vector_store %arg20[%c0_83, %c480], %81 {strides = array<i32>} : memref<16x512xf32, #tpu.memory_space<vmem>>, vector<16x32xf32>,
    %c0_84 = arith.constant 0 : index
    %c0_85 = arith.constant 0 : index
    %83 = vector.load %arg20[%c0_84, %c0_85] : memref<16x512xf32, #tpu.memory_space<vmem>>, vector<16x512xf32>
    %84 = arith.truncf %83 : vector<16x512xf32> to vector<16x512xbf16>
    %c0_86 = arith.constant 0 : index
    %85 = memref.load %arg1[%c0_86] : memref<2xf32, #tpu.memory_space<smem>>
    %c0_87 = arith.constant 0 : index
    %c0_88 = arith.constant 0 : index
    %86 = vector.load %arg9[%c0_87, %c0_88] : memref<512x640xbf16, #tpu.memory_space<vmem>>, vector<512x640xbf16>
    %cst_89 = arith.constant dense<0.000000e+00> : vector<16x640xf32>
    %87 = tpu.matmul %84, %86, %cst_89 {dimension_numbers = #tpu.dot_dimension_numbers<[1], [0], [0], [1], [0, 0, 1, 1], [], []>} : vector<16x512xbf16>, vector<512x640xbf16>, vector<16x640xf32> -> vector<16x640xf32>
    %c0_90 = arith.constant 0 : index
    %c0_91 = arith.constant 0 : index
    %88 = vector.load %arg10[%c0_90, %c0_91] : memref<1x640xf32, #tpu.memory_space<vmem>>, vector<1x640xf32>
    %89 = vector.broadcast %88 : vector<1x640xf32> to vector<16x640xf32>
    %90 = arith.addf %87, %89 : vector<16x640xf32>
    %91 = vector.extract_strided_slice %90 {offsets = [0, 0], sizes = [16, 64], strides = [1, 1]} : vector<16x640xf32> to vector<16x64xf32>
    %cst_92 = arith.constant 1.250000e-01 : f32
    %92 = vector.broadcast %cst_92 : f32 to vector<16x64xf32>
    %93 = arith.mulf %91, %92 : vector<16x64xf32>
    %94 = vector.extract_strided_slice %90 {offsets = [0, 64], sizes = [16, 64], strides = [1, 1]} : vector<16x640xf32> to vector<16x64xf32>
    %cst_93 = arith.constant 1.250000e-01 : f32
    %95 = vector.broadcast %cst_93 : f32 to vector<16x64xf32>
    %96 = arith.mulf %94, %95 : vector<16x64xf32>
    %97 = vector.extract_strided_slice %90 {offsets = [0, 128], sizes = [16, 512], strides = [1, 1]} : vector<16x640xf32> to vector<16x512xf32>
    %98 = arith.truncf %97 : vector<16x512xf32> to vector<16x512xbf16>
    %cst_94 = arith.constant dense<0.000000e+00> : vector<16x16xf32>
    %99 = tpu.matmul %93, %96, %cst_94 {dimension_numbers = #tpu.dot_dimension_numbers<[1], [1], [0], [0], [0, 0, 1, 0], [], []>} : vector<16x64xf32>, vector<16x64xf32>, vector<16x16xf32> -> vector<16x16xf32>
    %cst_95 = arith.constant dense<0xFF800000> : vector<16xf32>
    %100 = vector.multi_reduction <maximumf>, %99, %cst_95 [1] : vector<16x16xf32> to vector<16xf32>
    %101 = vector.shape_cast %100 : vector<16xf32> to vector<16x1xf32>
    %102 = vector.broadcast %101 : vector<16x1xf32> to vector<16x16xf32>
    %103 = arith.subf %99, %102 : vector<16x16xf32>
    %104 = math.exp %103 : vector<16x16xf32>
    %cst_96 = arith.constant dense<0.000000e+00> : vector<16xf32>
    %105 = vector.multi_reduction <add>, %104, %cst_96 [1] : vector<16x16xf32> to vector<16xf32>
    %106 = vector.shape_cast %105 : vector<16xf32> to vector<16x1xf32>
    %107 = tpu.reciprocal %106 {approx = true} : vector<16x1xf32> -> vector<16x1xf32>
    %108 = vector.broadcast %107 : vector<16x1xf32> to vector<16x16xf32>
    %109 = arith.mulf %104, %108 : vector<16x16xf32>
    %110 = arith.truncf %109 : vector<16x16xf32> to vector<16x16xbf16>
    %cst_97 = arith.constant dense<0.000000e+00> : vector<16x512xf32>
    %111 = tpu.matmul %110, %98, %cst_97 {dimension_numbers = #tpu.dot_dimension_numbers<[1], [0], [0], [1], [0, 0, 1, 1], [], []>} : vector<16x16xbf16>, vector<16x512xbf16>, vector<16x512xf32> -> vector<16x512xf32>
    %112 = vector.broadcast %85 : f32 to vector<16x512xf32>
    %113 = arith.mulf %112, %111 : vector<16x512xf32>
    %114 = arith.addf %113, %83 : vector<16x512xf32>
    %c1_98 = arith.constant 1 : index
    %115 = memref.load %arg1[%c1_98] : memref<2xf32, #tpu.memory_space<smem>>
    %c0_99 = arith.constant 0 : index
    %c0_100 = arith.constant 0 : index
    %116 = vector.load %arg11[%c0_99, %c0_100] : memref<512x640xbf16, #tpu.memory_space<vmem>>, vector<512x640xbf16>
    %cst_101 = arith.constant dense<0.000000e+00> : vector<16x640xf32>
    %117 = tpu.matmul %84, %116, %cst_101 {dimension_numbers = #tpu.dot_dimension_numbers<[1], [0], [0], [1], [0, 0, 1, 1], [], []>} : vector<16x512xbf16>, vector<512x640xbf16>, vector<16x640xf32> -> vector<16x640xf32>
    %c0_102 = arith.constant 0 : index
    %c0_103 = arith.constant 0 : index
    %118 = vector.load %arg12[%c0_102, %c0_103] : memref<1x640xf32, #tpu.memory_space<vmem>>, vector<1x640xf32>
    %119 = vector.broadcast %118 : vector<1x640xf32> to vector<16x640xf32>
    %120 = arith.addf %117, %119 : vector<16x640xf32>
    %121 = vector.extract_strided_slice %120 {offsets = [0, 0], sizes = [16, 64], strides = [1, 1]} : vector<16x640xf32> to vector<16x64xf32>
    %cst_104 = arith.constant 1.250000e-01 : f32
    %122 = vector.broadcast %cst_104 : f32 to vector<16x64xf32>
    %123 = arith.mulf %121, %122 : vector<16x64xf32>
    %124 = vector.extract_strided_slice %120 {offsets = [0, 64], sizes = [16, 64], strides = [1, 1]} : vector<16x640xf32> to vector<16x64xf32>
    %cst_105 = arith.constant 1.250000e-01 : f32
    %125 = vector.broadcast %cst_105 : f32 to vector<16x64xf32>
    %126 = arith.mulf %124, %125 : vector<16x64xf32>
    %127 = vector.extract_strided_slice %120 {offsets = [0, 128], sizes = [16, 512], strides = [1, 1]} : vector<16x640xf32> to vector<16x512xf32>
    %128 = arith.truncf %127 : vector<16x512xf32> to vector<16x512xbf16>
    %cst_106 = arith.constant dense<0.000000e+00> : vector<16x16xf32>
    %129 = tpu.matmul %123, %126, %cst_106 {dimension_numbers = #tpu.dot_dimension_numbers<[1], [1], [0], [0], [0, 0, 1, 0], [], []>} : vector<16x64xf32>, vector<16x64xf32>, vector<16x16xf32> -> vector<16x16xf32>
    %cst_107 = arith.constant dense<0xFF800000> : vector<16xf32>
    %130 = vector.multi_reduction <maximumf>, %129, %cst_107 [1] : vector<16x16xf32> to vector<16xf32>
    %131 = vector.shape_cast %130 : vector<16xf32> to vector<16x1xf32>
    %132 = vector.broadcast %131 : vector<16x1xf32> to vector<16x16xf32>
    %133 = arith.subf %129, %132 : vector<16x16xf32>
    %134 = math.exp %133 : vector<16x16xf32>
    %cst_108 = arith.constant dense<0.000000e+00> : vector<16xf32>
    %135 = vector.multi_reduction <add>, %134, %cst_108 [1] : vector<16x16xf32> to vector<16xf32>
    %136 = vector.shape_cast %135 : vector<16xf32> to vector<16x1xf32>
    %137 = tpu.reciprocal %136 {approx = true} : vector<16x1xf32> -> vector<16x1xf32>
    %138 = vector.broadcast %137 : vector<16x1xf32> to vector<16x16xf32>
    %139 = arith.mulf %134, %138 : vector<16x16xf32>
    %140 = arith.truncf %139 : vector<16x16xf32> to vector<16x16xbf16>
    %cst_109 = arith.constant dense<0.000000e+00> : vector<16x512xf32>
    %141 = tpu.matmul %140, %128, %cst_109 {dimension_numbers = #tpu.dot_dimension_numbers<[1], [0], [0], [1], [0, 0, 1, 1], [], []>} : vector<16x16xbf16>, vector<16x512xbf16>, vector<16x512xf32> -> vector<16x512xf32>
    %142 = vector.broadcast %115 : f32 to vector<16x512xf32>
    %143 = arith.mulf %142, %141 : vector<16x512xf32>
    %144 = arith.addf %143, %83 : vector<16x512xf32>
    %145 = arith.addf %114, %144 : vector<16x512xf32>
    %146 = vector.extract_strided_slice %145 {offsets = [0, 0], sizes = [16, 32], strides = [1, 1]} : vector<16x512xf32> to vector<16x32xf32>
    %c3 = arith.constant 3 : index
    %c3_110 = arith.constant 3 : index
    %c0_111 = arith.constant 0 : index
    %147 = vector.load %arg18[%c3, %c3_110, %c0_111] : memref<22x22x32xf32, #tpu.memory_space<vmem>>, vector<1x16x32xf32>
    %148 = vector.shape_cast %147 : vector<1x16x32xf32> to vector<16x32xf32>
    %149 = vector.shape_cast %146 : vector<16x32xf32> to vector<1x16x32xf32>
    tpu.vector_store %arg18[%c3, %c3_110, %c0_111], %149 {strides = array<i32>} : memref<22x22x32xf32, #tpu.memory_space<vmem>>, vector<1x16x32xf32>,
    %150 = vector.extract_strided_slice %145 {offsets = [0, 32], sizes = [16, 32], strides = [1, 1]} : vector<16x512xf32> to vector<16x32xf32>
    %c4 = arith.constant 4 : index
    %c3_112 = arith.constant 3 : index
    %c0_113 = arith.constant 0 : index
    %151 = vector.load %arg18[%c4, %c3_112, %c0_113] : memref<22x22x32xf32, #tpu.memory_space<vmem>>, vector<1x16x32xf32>
    %152 = vector.shape_cast %151 : vector<1x16x32xf32> to vector<16x32xf32>
    %153 = vector.shape_cast %150 : vector<16x32xf32> to vector<1x16x32xf32>
    tpu.vector_store %arg18[%c4, %c3_112, %c0_113], %153 {strides = array<i32>} : memref<22x22x32xf32, #tpu.memory_space<vmem>>, vector<1x16x32xf32>,
    %154 = vector.extract_strided_slice %145 {offsets = [0, 64], sizes = [16, 32], strides = [1, 1]} : vector<16x512xf32> to vector<16x32xf32>
    %c5 = arith.constant 5 : index
    %c3_114 = arith.constant 3 : index
    %c0_115 = arith.constant 0 : index
    %155 = vector.load %arg18[%c5, %c3_114, %c0_115] : memref<22x22x32xf32, #tpu.memory_space<vmem>>, vector<1x16x32xf32>
    %156 = vector.shape_cast %155 : vector<1x16x32xf32> to vector<16x32xf32>
    %157 = vector.shape_cast %154 : vector<16x32xf32> to vector<1x16x32xf32>
    tpu.vector_store %arg18[%c5, %c3_114, %c0_115], %157 {strides = array<i32>} : memref<22x22x32xf32, #tpu.memory_space<vmem>>, vector<1x16x32xf32>,
    %158 = vector.extract_strided_slice %145 {offsets = [0, 96], sizes = [16, 32], strides = [1, 1]} : vector<16x512xf32> to vector<16x32xf32>
    %c6 = arith.constant 6 : index
    %c3_116 = arith.constant 3 : index
    %c0_117 = arith.constant 0 : index
    %159 = vector.load %arg18[%c6, %c3_116, %c0_117] : memref<22x22x32xf32, #tpu.memory_space<vmem>>, vector<1x16x32xf32>
    %160 = vector.shape_cast %159 : vector<1x16x32xf32> to vector<16x32xf32>
    %161 = vector.shape_cast %158 : vector<16x32xf32> to vector<1x16x32xf32>
    tpu.vector_store %arg18[%c6, %c3_116, %c0_117], %161 {strides = array<i32>} : memref<22x22x32xf32, #tpu.memory_space<vmem>>, vector<1x16x32xf32>,
    %162 = vector.extract_strided_slice %145 {offsets = [0, 128], sizes = [16, 32], strides = [1, 1]} : vector<16x512xf32> to vector<16x32xf32>
    %c7 = arith.constant 7 : index
    %c3_118 = arith.constant 3 : index
    %c0_119 = arith.constant 0 : index
    %163 = vector.load %arg18[%c7, %c3_118, %c0_119] : memref<22x22x32xf32, #tpu.memory_space<vmem>>, vector<1x16x32xf32>
    %164 = vector.shape_cast %163 : vector<1x16x32xf32> to vector<16x32xf32>
    %165 = vector.shape_cast %162 : vector<16x32xf32> to vector<1x16x32xf32>
    tpu.vector_store %arg18[%c7, %c3_118, %c0_119], %165 {strides = array<i32>} : memref<22x22x32xf32, #tpu.memory_space<vmem>>, vector<1x16x32xf32>,
    %166 = vector.extract_strided_slice %145 {offsets = [0, 160], sizes = [16, 32], strides = [1, 1]} : vector<16x512xf32> to vector<16x32xf32>
    %c8 = arith.constant 8 : index
    %c3_120 = arith.constant 3 : index
    %c0_121 = arith.constant 0 : index
    %167 = vector.load %arg18[%c8, %c3_120, %c0_121] : memref<22x22x32xf32, #tpu.memory_space<vmem>>, vector<1x16x32xf32>
    %168 = vector.shape_cast %167 : vector<1x16x32xf32> to vector<16x32xf32>
    %169 = vector.shape_cast %166 : vector<16x32xf32> to vector<1x16x32xf32>
    tpu.vector_store %arg18[%c8, %c3_120, %c0_121], %169 {strides = array<i32>} : memref<22x22x32xf32, #tpu.memory_space<vmem>>, vector<1x16x32xf32>,
    %170 = vector.extract_strided_slice %145 {offsets = [0, 192], sizes = [16, 32], strides = [1, 1]} : vector<16x512xf32> to vector<16x32xf32>
    %c9 = arith.constant 9 : index
    %c3_122 = arith.constant 3 : index
    %c0_123 = arith.constant 0 : index
    %171 = vector.load %arg18[%c9, %c3_122, %c0_123] : memref<22x22x32xf32, #tpu.memory_space<vmem>>, vector<1x16x32xf32>
    %172 = vector.shape_cast %171 : vector<1x16x32xf32> to vector<16x32xf32>
    %173 = vector.shape_cast %170 : vector<16x32xf32> to vector<1x16x32xf32>
    tpu.vector_store %arg18[%c9, %c3_122, %c0_123], %173 {strides = array<i32>} : memref<22x22x32xf32, #tpu.memory_space<vmem>>, vector<1x16x32xf32>,
    %174 = vector.extract_strided_slice %145 {offsets = [0, 224], sizes = [16, 32], strides = [1, 1]} : vector<16x512xf32> to vector<16x32xf32>
    %c10 = arith.constant 10 : index
    %c3_124 = arith.constant 3 : index
    %c0_125 = arith.constant 0 : index
    %175 = vector.load %arg18[%c10, %c3_124, %c0_125] : memref<22x22x32xf32, #tpu.memory_space<vmem>>, vector<1x16x32xf32>
    %176 = vector.shape_cast %175 : vector<1x16x32xf32> to vector<16x32xf32>
    %177 = vector.shape_cast %174 : vector<16x32xf32> to vector<1x16x32xf32>
    tpu.vector_store %arg18[%c10, %c3_124, %c0_125], %177 {strides = array<i32>} : memref<22x22x32xf32, #tpu.memory_space<vmem>>, vector<1x16x32xf32>,
    %178 = vector.extract_strided_slice %145 {offsets = [0, 256], sizes = [16, 32], strides = [1, 1]} : vector<16x512xf32> to vector<16x32xf32>
    %c11 = arith.constant 11 : index
    %c3_126 = arith.constant 3 : index
    %c0_127 = arith.constant 0 : index
    %179 = vector.load %arg18[%c11, %c3_126, %c0_127] : memref<22x22x32xf32, #tpu.memory_space<vmem>>, vector<1x16x32xf32>
    %180 = vector.shape_cast %179 : vector<1x16x32xf32> to vector<16x32xf32>
    %181 = vector.shape_cast %178 : vector<16x32xf32> to vector<1x16x32xf32>
    tpu.vector_store %arg18[%c11, %c3_126, %c0_127], %181 {strides = array<i32>} : memref<22x22x32xf32, #tpu.memory_space<vmem>>, vector<1x16x32xf32>,
    %182 = vector.extract_strided_slice %145 {offsets = [0, 288], sizes = [16, 32], strides = [1, 1]} : vector<16x512xf32> to vector<16x32xf32>
    %c12 = arith.constant 12 : index
    %c3_128 = arith.constant 3 : index
    %c0_129 = arith.constant 0 : index
    %183 = vector.load %arg18[%c12, %c3_128, %c0_129] : memref<22x22x32xf32, #tpu.memory_space<vmem>>, vector<1x16x32xf32>
    %184 = vector.shape_cast %183 : vector<1x16x32xf32> to vector<16x32xf32>
    %185 = vector.shape_cast %182 : vector<16x32xf32> to vector<1x16x32xf32>
    tpu.vector_store %arg18[%c12, %c3_128, %c0_129], %185 {strides = array<i32>} : memref<22x22x32xf32, #tpu.memory_space<vmem>>, vector<1x16x32xf32>,
    %186 = vector.extract_strided_slice %145 {offsets = [0, 320], sizes = [16, 32], strides = [1, 1]} : vector<16x512xf32> to vector<16x32xf32>
    %c13 = arith.constant 13 : index
    %c3_130 = arith.constant 3 : index
    %c0_131 = arith.constant 0 : index
    %187 = vector.load %arg18[%c13, %c3_130, %c0_131] : memref<22x22x32xf32, #tpu.memory_space<vmem>>, vector<1x16x32xf32>
    %188 = vector.shape_cast %187 : vector<1x16x32xf32> to vector<16x32xf32>
    %189 = vector.shape_cast %186 : vector<16x32xf32> to vector<1x16x32xf32>
    tpu.vector_store %arg18[%c13, %c3_130, %c0_131], %189 {strides = array<i32>} : memref<22x22x32xf32, #tpu.memory_space<vmem>>, vector<1x16x32xf32>,
    %190 = vector.extract_strided_slice %145 {offsets = [0, 352], sizes = [16, 32], strides = [1, 1]} : vector<16x512xf32> to vector<16x32xf32>
    %c14 = arith.constant 14 : index
    %c3_132 = arith.constant 3 : index
    %c0_133 = arith.constant 0 : index
    %191 = vector.load %arg18[%c14, %c3_132, %c0_133] : memref<22x22x32xf32, #tpu.memory_space<vmem>>, vector<1x16x32xf32>
    %192 = vector.shape_cast %191 : vector<1x16x32xf32> to vector<16x32xf32>
    %193 = vector.shape_cast %190 : vector<16x32xf32> to vector<1x16x32xf32>
    tpu.vector_store %arg18[%c14, %c3_132, %c0_133], %193 {strides = array<i32>} : memref<22x22x32xf32, #tpu.memory_space<vmem>>, vector<1x16x32xf32>,
    %194 = vector.extract_strided_slice %145 {offsets = [0, 384], sizes = [16, 32], strides = [1, 1]} : vector<16x512xf32> to vector<16x32xf32>
    %c15 = arith.constant 15 : index
    %c3_134 = arith.constant 3 : index
    %c0_135 = arith.constant 0 : index
    %195 = vector.load %arg18[%c15, %c3_134, %c0_135] : memref<22x22x32xf32, #tpu.memory_space<vmem>>, vector<1x16x32xf32>
    %196 = vector.shape_cast %195 : vector<1x16x32xf32> to vector<16x32xf32>
    %197 = vector.shape_cast %194 : vector<16x32xf32> to vector<1x16x32xf32>
    tpu.vector_store %arg18[%c15, %c3_134, %c0_135], %197 {strides = array<i32>} : memref<22x22x32xf32, #tpu.memory_space<vmem>>, vector<1x16x32xf32>,
    %198 = vector.extract_strided_slice %145 {offsets = [0, 416], sizes = [16, 32], strides = [1, 1]} : vector<16x512xf32> to vector<16x32xf32>
    %c16 = arith.constant 16 : index
    %c3_136 = arith.constant 3 : index
    %c0_137 = arith.constant 0 : index
    %199 = vector.load %arg18[%c16, %c3_136, %c0_137] : memref<22x22x32xf32, #tpu.memory_space<vmem>>, vector<1x16x32xf32>
    %200 = vector.shape_cast %199 : vector<1x16x32xf32> to vector<16x32xf32>
    %201 = vector.shape_cast %198 : vector<16x32xf32> to vector<1x16x32xf32>
    tpu.vector_store %arg18[%c16, %c3_136, %c0_137], %201 {strides = array<i32>} : memref<22x22x32xf32, #tpu.memory_space<vmem>>, vector<1x16x32xf32>,
    %202 = vector.extract_strided_slice %145 {offsets = [0, 448], sizes = [16, 32], strides = [1, 1]} : vector<16x512xf32> to vector<16x32xf32>
    %c17 = arith.constant 17 : index
    %c3_138 = arith.constant 3 : index
    %c0_139 = arith.constant 0 : index
    %203 = vector.load %arg18[%c17, %c3_138, %c0_139] : memref<22x22x32xf32, #tpu.memory_space<vmem>>, vector<1x16x32xf32>
    %204 = vector.shape_cast %203 : vector<1x16x32xf32> to vector<16x32xf32>
    %205 = vector.shape_cast %202 : vector<16x32xf32> to vector<1x16x32xf32>
    tpu.vector_store %arg18[%c17, %c3_138, %c0_139], %205 {strides = array<i32>} : memref<22x22x32xf32, #tpu.memory_space<vmem>>, vector<1x16x32xf32>,
    %206 = vector.extract_strided_slice %145 {offsets = [0, 480], sizes = [16, 32], strides = [1, 1]} : vector<16x512xf32> to vector<16x32xf32>
    %c18 = arith.constant 18 : index
    %c3_140 = arith.constant 3 : index
    %c0_141 = arith.constant 0 : index
    %207 = vector.load %arg18[%c18, %c3_140, %c0_141] : memref<22x22x32xf32, #tpu.memory_space<vmem>>, vector<1x16x32xf32>
    %208 = vector.shape_cast %207 : vector<1x16x32xf32> to vector<16x32xf32>
    %209 = vector.shape_cast %206 : vector<16x32xf32> to vector<1x16x32xf32>
    tpu.vector_store %arg18[%c18, %c3_140, %c0_141], %209 {strides = array<i32>} : memref<22x22x32xf32, #tpu.memory_space<vmem>>, vector<1x16x32xf32>,
    %c0_142 = arith.constant 0 : index
    %c0_143 = arith.constant 0 : index
    %c0_144 = arith.constant 0 : index
    %210 = vector.load %arg18[%c0_142, %c0_143, %c0_144] : memref<22x22x32xf32, #tpu.memory_space<vmem>>, vector<16x16x32xf32>
    %211 = vector.shape_cast %210 : vector<16x16x32xf32> to vector<256x32xf32>
    %c0_145 = arith.constant 0 : index
    %c0_146 = arith.constant 0 : index
    %212 = vector.load %arg19[%c0_145, %c0_146] : memref<256x288xf32, #tpu.memory_space<vmem>>, vector<256x32xf32>
    tpu.vector_store %arg19[%c0_145, %c0_146], %211 {strides = array<i32>} : memref<256x288xf32, #tpu.memory_space<vmem>>, vector<256x32xf32>,
    %c0_147 = arith.constant 0 : index
    %c3_148 = arith.constant 3 : index
    %c0_149 = arith.constant 0 : index
    %213 = vector.load %arg18[%c0_147, %c3_148, %c0_149] : memref<22x22x32xf32, #tpu.memory_space<vmem>>, vector<16x16x32xf32>
    %214 = vector.shape_cast %213 : vector<16x16x32xf32> to vector<256x32xf32>
    %c0_150 = arith.constant 0 : index
    %c32_151 = arith.constant 32 : index
    %215 = vector.load %arg19[%c0_150, %c32_151] : memref<256x288xf32, #tpu.memory_space<vmem>>, vector<256x32xf32>
    tpu.vector_store %arg19[%c0_150, %c32_151], %214 {strides = array<i32>} : memref<256x288xf32, #tpu.memory_space<vmem>>, vector<256x32xf32>,
    %c0_152 = arith.constant 0 : index
    %c6_153 = arith.constant 6 : index
    %c0_154 = arith.constant 0 : index
    %216 = vector.load %arg18[%c0_152, %c6_153, %c0_154] : memref<22x22x32xf32, #tpu.memory_space<vmem>>, vector<16x16x32xf32>
    %217 = vector.shape_cast %216 : vector<16x16x32xf32> to vector<256x32xf32>
    %c0_155 = arith.constant 0 : index
    %c64_156 = arith.constant 64 : index
    %218 = vector.load %arg19[%c0_155, %c64_156] : memref<256x288xf32, #tpu.memory_space<vmem>>, vector<256x32xf32>
    tpu.vector_store %arg19[%c0_155, %c64_156], %217 {strides = array<i32>} : memref<256x288xf32, #tpu.memory_space<vmem>>, vector<256x32xf32>,
    %c3_157 = arith.constant 3 : index
    %c0_158 = arith.constant 0 : index
    %c0_159 = arith.constant 0 : index
    %219 = vector.load %arg18[%c3_157, %c0_158, %c0_159] : memref<22x22x32xf32, #tpu.memory_space<vmem>>, vector<16x16x32xf32>
    %220 = vector.shape_cast %219 : vector<16x16x32xf32> to vector<256x32xf32>
    %c0_160 = arith.constant 0 : index
    %c96_161 = arith.constant 96 : index
    %221 = vector.load %arg19[%c0_160, %c96_161] : memref<256x288xf32, #tpu.memory_space<vmem>>, vector<256x32xf32>
    tpu.vector_store %arg19[%c0_160, %c96_161], %220 {strides = array<i32>} : memref<256x288xf32, #tpu.memory_space<vmem>>, vector<256x32xf32>,
    %c3_162 = arith.constant 3 : index
    %c3_163 = arith.constant 3 : index
    %c0_164 = arith.constant 0 : index
    %222 = vector.load %arg18[%c3_162, %c3_163, %c0_164] : memref<22x22x32xf32, #tpu.memory_space<vmem>>, vector<16x16x32xf32>
    %223 = vector.shape_cast %222 : vector<16x16x32xf32> to vector<256x32xf32>
    %c0_165 = arith.constant 0 : index
    %c128_166 = arith.constant 128 : index
    %224 = vector.load %arg19[%c0_165, %c128_166] : memref<256x288xf32, #tpu.memory_space<vmem>>, vector<256x32xf32>
    tpu.vector_store %arg19[%c0_165, %c128_166], %223 {strides = array<i32>} : memref<256x288xf32, #tpu.memory_space<vmem>>, vector<256x32xf32>,
    %c3_167 = arith.constant 3 : index
    %c6_168 = arith.constant 6 : index
    %c0_169 = arith.constant 0 : index
    %225 = vector.load %arg18[%c3_167, %c6_168, %c0_169] : memref<22x22x32xf32, #tpu.memory_space<vmem>>, vector<16x16x32xf32>
    %226 = vector.shape_cast %225 : vector<16x16x32xf32> to vector<256x32xf32>
    %c0_170 = arith.constant 0 : index
    %c160_171 = arith.constant 160 : index
    %227 = vector.load %arg19[%c0_170, %c160_171] : memref<256x288xf32, #tpu.memory_space<vmem>>, vector<256x32xf32>
    tpu.vector_store %arg19[%c0_170, %c160_171], %226 {strides = array<i32>} : memref<256x288xf32, #tpu.memory_space<vmem>>, vector<256x32xf32>,
    %c6_172 = arith.constant 6 : index
    %c0_173 = arith.constant 0 : index
    %c0_174 = arith.constant 0 : index
    %228 = vector.load %arg18[%c6_172, %c0_173, %c0_174] : memref<22x22x32xf32, #tpu.memory_space<vmem>>, vector<16x16x32xf32>
    %229 = vector.shape_cast %228 : vector<16x16x32xf32> to vector<256x32xf32>
    %c0_175 = arith.constant 0 : index
    %c192_176 = arith.constant 192 : index
    %230 = vector.load %arg19[%c0_175, %c192_176] : memref<256x288xf32, #tpu.memory_space<vmem>>, vector<256x32xf32>
    tpu.vector_store %arg19[%c0_175, %c192_176], %229 {strides = array<i32>} : memref<256x288xf32, #tpu.memory_space<vmem>>, vector<256x32xf32>,
    %c6_177 = arith.constant 6 : index
    %c3_178 = arith.constant 3 : index
    %c0_179 = arith.constant 0 : index
    %231 = vector.load %arg18[%c6_177, %c3_178, %c0_179] : memref<22x22x32xf32, #tpu.memory_space<vmem>>, vector<16x16x32xf32>
    %232 = vector.shape_cast %231 : vector<16x16x32xf32> to vector<256x32xf32>
    %c0_180 = arith.constant 0 : index
    %c224_181 = arith.constant 224 : index
    %233 = vector.load %arg19[%c0_180, %c224_181] : memref<256x288xf32, #tpu.memory_space<vmem>>, vector<256x32xf32>
    tpu.vector_store %arg19[%c0_180, %c224_181], %232 {strides = array<i32>} : memref<256x288xf32, #tpu.memory_space<vmem>>, vector<256x32xf32>,
    %c6_182 = arith.constant 6 : index
    %c6_183 = arith.constant 6 : index
    %c0_184 = arith.constant 0 : index
    %234 = vector.load %arg18[%c6_182, %c6_183, %c0_184] : memref<22x22x32xf32, #tpu.memory_space<vmem>>, vector<16x16x32xf32>
    %235 = vector.shape_cast %234 : vector<16x16x32xf32> to vector<256x32xf32>
    %c0_185 = arith.constant 0 : index
    %c256_186 = arith.constant 256 : index
    %236 = vector.load %arg19[%c0_185, %c256_186] : memref<256x288xf32, #tpu.memory_space<vmem>>, vector<256x32xf32>
    tpu.vector_store %arg19[%c0_185, %c256_186], %235 {strides = array<i32>} : memref<256x288xf32, #tpu.memory_space<vmem>>, vector<256x32xf32>,
    %c0_187 = arith.constant 0 : index
    %c0_188 = arith.constant 0 : index
    %237 = vector.load %arg19[%c0_187, %c0_188] : memref<256x288xf32, #tpu.memory_space<vmem>>, vector<256x288xf32>
    %238 = arith.truncf %237 : vector<256x288xf32> to vector<256x288xbf16>
    %c0_189 = arith.constant 0 : index
    %c0_190 = arith.constant 0 : index
    %239 = vector.load %arg13[%c0_189, %c0_190] : memref<288x32xbf16, #tpu.memory_space<vmem>>, vector<288x32xbf16>
    %cst_191 = arith.constant dense<0.000000e+00> : vector<256x32xf32>
    %240 = tpu.matmul %238, %239, %cst_191 {dimension_numbers = #tpu.dot_dimension_numbers<[1], [0], [0], [1], [0, 0, 1, 1], [], []>} : vector<256x288xbf16>, vector<288x32xbf16>, vector<256x32xf32> -> vector<256x32xf32>
    %c0_192 = arith.constant 0 : index
    %c0_193 = arith.constant 0 : index
    %241 = vector.load %arg14[%c0_192, %c0_193] : memref<1x32xf32, #tpu.memory_space<vmem>>, vector<1x32xf32>
    %242 = vector.broadcast %241 : vector<1x32xf32> to vector<256x32xf32>
    %243 = arith.addf %240, %242 : vector<256x32xf32>
    %244 = vector.extract_strided_slice %243 {offsets = [0, 0], sizes = [16, 32], strides = [1, 1]} : vector<256x32xf32> to vector<16x32xf32>
    %c0_194 = arith.constant 0 : index
    %c0_195 = arith.constant 0 : index
    %c0_196 = arith.constant 0 : index
    %245 = vector.load %arg15[%c0_194, %c0_195, %c0_196] : memref<1x16x512xf32, #tpu.memory_space<vmem>>, vector<1x16x32xf32>
    %246 = vector.shape_cast %245 : vector<1x16x32xf32> to vector<16x32xf32>
    %247 = vector.shape_cast %244 : vector<16x32xf32> to vector<1x16x32xf32>
    tpu.vector_store %arg15[%c0_194, %c0_195, %c0_196], %247 {strides = array<i32>} : memref<1x16x512xf32, #tpu.memory_space<vmem>>, vector<1x16x32xf32>,
    %248 = vector.extract_strided_slice %243 {offsets = [16, 0], sizes = [16, 32], strides = [1, 1]} : vector<256x32xf32> to vector<16x32xf32>
    %c0_197 = arith.constant 0 : index
    %c0_198 = arith.constant 0 : index
    %c32_199 = arith.constant 32 : index
    %249 = vector.load %arg15[%c0_197, %c0_198, %c32_199] : memref<1x16x512xf32, #tpu.memory_space<vmem>>, vector<1x16x32xf32>
    %250 = vector.shape_cast %249 : vector<1x16x32xf32> to vector<16x32xf32>
    %251 = vector.shape_cast %248 : vector<16x32xf32> to vector<1x16x32xf32>
    tpu.vector_store %arg15[%c0_197, %c0_198, %c32_199], %251 {strides = array<i32>} : memref<1x16x512xf32, #tpu.memory_space<vmem>>, vector<1x16x32xf32>,
    %252 = vector.extract_strided_slice %243 {offsets = [32, 0], sizes = [16, 32], strides = [1, 1]} : vector<256x32xf32> to vector<16x32xf32>
    %c0_200 = arith.constant 0 : index
    %c0_201 = arith.constant 0 : index
    %c64_202 = arith.constant 64 : index
    %253 = vector.load %arg15[%c0_200, %c0_201, %c64_202] : memref<1x16x512xf32, #tpu.memory_space<vmem>>, vector<1x16x32xf32>
    %254 = vector.shape_cast %253 : vector<1x16x32xf32> to vector<16x32xf32>
    %255 = vector.shape_cast %252 : vector<16x32xf32> to vector<1x16x32xf32>
    tpu.vector_store %arg15[%c0_200, %c0_201, %c64_202], %255 {strides = array<i32>} : memref<1x16x512xf32, #tpu.memory_space<vmem>>, vector<1x16x32xf32>,
    %256 = vector.extract_strided_slice %243 {offsets = [48, 0], sizes = [16, 32], strides = [1, 1]} : vector<256x32xf32> to vector<16x32xf32>
    %c0_203 = arith.constant 0 : index
    %c0_204 = arith.constant 0 : index
    %c96_205 = arith.constant 96 : index
    %257 = vector.load %arg15[%c0_203, %c0_204, %c96_205] : memref<1x16x512xf32, #tpu.memory_space<vmem>>, vector<1x16x32xf32>
    %258 = vector.shape_cast %257 : vector<1x16x32xf32> to vector<16x32xf32>
    %259 = vector.shape_cast %256 : vector<16x32xf32> to vector<1x16x32xf32>
    tpu.vector_store %arg15[%c0_203, %c0_204, %c96_205], %259 {strides = array<i32>} : memref<1x16x512xf32, #tpu.memory_space<vmem>>, vector<1x16x32xf32>,
    %260 = vector.extract_strided_slice %243 {offsets = [64, 0], sizes = [16, 32], strides = [1, 1]} : vector<256x32xf32> to vector<16x32xf32>
    %c0_206 = arith.constant 0 : index
    %c0_207 = arith.constant 0 : index
    %c128_208 = arith.constant 128 : index
    %261 = vector.load %arg15[%c0_206, %c0_207, %c128_208] : memref<1x16x512xf32, #tpu.memory_space<vmem>>, vector<1x16x32xf32>
    %262 = vector.shape_cast %261 : vector<1x16x32xf32> to vector<16x32xf32>
    %263 = vector.shape_cast %260 : vector<16x32xf32> to vector<1x16x32xf32>
    tpu.vector_store %arg15[%c0_206, %c0_207, %c128_208], %263 {strides = array<i32>} : memref<1x16x512xf32, #tpu.memory_space<vmem>>, vector<1x16x32xf32>,
    %264 = vector.extract_strided_slice %243 {offsets = [80, 0], sizes = [16, 32], strides = [1, 1]} : vector<256x32xf32> to vector<16x32xf32>
    %c0_209 = arith.constant 0 : index
    %c0_210 = arith.constant 0 : index
    %c160_211 = arith.constant 160 : index
    %265 = vector.load %arg15[%c0_209, %c0_210, %c160_211] : memref<1x16x512xf32, #tpu.memory_space<vmem>>, vector<1x16x32xf32>
    %266 = vector.shape_cast %265 : vector<1x16x32xf32> to vector<16x32xf32>
    %267 = vector.shape_cast %264 : vector<16x32xf32> to vector<1x16x32xf32>
    tpu.vector_store %arg15[%c0_209, %c0_210, %c160_211], %267 {strides = array<i32>} : memref<1x16x512xf32, #tpu.memory_space<vmem>>, vector<1x16x32xf32>,
    %268 = vector.extract_strided_slice %243 {offsets = [96, 0], sizes = [16, 32], strides = [1, 1]} : vector<256x32xf32> to vector<16x32xf32>
    %c0_212 = arith.constant 0 : index
    %c0_213 = arith.constant 0 : index
    %c192_214 = arith.constant 192 : index
    %269 = vector.load %arg15[%c0_212, %c0_213, %c192_214] : memref<1x16x512xf32, #tpu.memory_space<vmem>>, vector<1x16x32xf32>
    %270 = vector.shape_cast %269 : vector<1x16x32xf32> to vector<16x32xf32>
    %271 = vector.shape_cast %268 : vector<16x32xf32> to vector<1x16x32xf32>
    tpu.vector_store %arg15[%c0_212, %c0_213, %c192_214], %271 {strides = array<i32>} : memref<1x16x512xf32, #tpu.memory_space<vmem>>, vector<1x16x32xf32>,
    %272 = vector.extract_strided_slice %243 {offsets = [112, 0], sizes = [16, 32], strides = [1, 1]} : vector<256x32xf32> to vector<16x32xf32>
    %c0_215 = arith.constant 0 : index
    %c0_216 = arith.constant 0 : index
    %c224_217 = arith.constant 224 : index
    %273 = vector.load %arg15[%c0_215, %c0_216, %c224_217] : memref<1x16x512xf32, #tpu.memory_space<vmem>>, vector<1x16x32xf32>
    %274 = vector.shape_cast %273 : vector<1x16x32xf32> to vector<16x32xf32>
    %275 = vector.shape_cast %272 : vector<16x32xf32> to vector<1x16x32xf32>
    tpu.vector_store %arg15[%c0_215, %c0_216, %c224_217], %275 {strides = array<i32>} : memref<1x16x512xf32, #tpu.memory_space<vmem>>, vector<1x16x32xf32>,
    %276 = vector.extract_strided_slice %243 {offsets = [128, 0], sizes = [16, 32], strides = [1, 1]} : vector<256x32xf32> to vector<16x32xf32>
    %c0_218 = arith.constant 0 : index
    %c0_219 = arith.constant 0 : index
    %c256_220 = arith.constant 256 : index
    %277 = vector.load %arg15[%c0_218, %c0_219, %c256_220] : memref<1x16x512xf32, #tpu.memory_space<vmem>>, vector<1x16x32xf32>
    %278 = vector.shape_cast %277 : vector<1x16x32xf32> to vector<16x32xf32>
    %279 = vector.shape_cast %276 : vector<16x32xf32> to vector<1x16x32xf32>
    tpu.vector_store %arg15[%c0_218, %c0_219, %c256_220], %279 {strides = array<i32>} : memref<1x16x512xf32, #tpu.memory_space<vmem>>, vector<1x16x32xf32>,
    %280 = vector.extract_strided_slice %243 {offsets = [144, 0], sizes = [16, 32], strides = [1, 1]} : vector<256x32xf32> to vector<16x32xf32>
    %c0_221 = arith.constant 0 : index
    %c0_222 = arith.constant 0 : index
    %c288_223 = arith.constant 288 : index
    %281 = vector.load %arg15[%c0_221, %c0_222, %c288_223] : memref<1x16x512xf32, #tpu.memory_space<vmem>>, vector<1x16x32xf32>
    %282 = vector.shape_cast %281 : vector<1x16x32xf32> to vector<16x32xf32>
    %283 = vector.shape_cast %280 : vector<16x32xf32> to vector<1x16x32xf32>
    tpu.vector_store %arg15[%c0_221, %c0_222, %c288_223], %283 {strides = array<i32>} : memref<1x16x512xf32, #tpu.memory_space<vmem>>, vector<1x16x32xf32>,
    %284 = vector.extract_strided_slice %243 {offsets = [160, 0], sizes = [16, 32], strides = [1, 1]} : vector<256x32xf32> to vector<16x32xf32>
    %c0_224 = arith.constant 0 : index
    %c0_225 = arith.constant 0 : index
    %c320_226 = arith.constant 320 : index
    %285 = vector.load %arg15[%c0_224, %c0_225, %c320_226] : memref<1x16x512xf32, #tpu.memory_space<vmem>>, vector<1x16x32xf32>
    %286 = vector.shape_cast %285 : vector<1x16x32xf32> to vector<16x32xf32>
    %287 = vector.shape_cast %284 : vector<16x32xf32> to vector<1x16x32xf32>
    tpu.vector_store %arg15[%c0_224, %c0_225, %c320_226], %287 {strides = array<i32>} : memref<1x16x512xf32, #tpu.memory_space<vmem>>, vector<1x16x32xf32>,
    %288 = vector.extract_strided_slice %243 {offsets = [176, 0], sizes = [16, 32], strides = [1, 1]} : vector<256x32xf32> to vector<16x32xf32>
    %c0_227 = arith.constant 0 : index
    %c0_228 = arith.constant 0 : index
    %c352_229 = arith.constant 352 : index
    %289 = vector.load %arg15[%c0_227, %c0_228, %c352_229] : memref<1x16x512xf32, #tpu.memory_space<vmem>>, vector<1x16x32xf32>
    %290 = vector.shape_cast %289 : vector<1x16x32xf32> to vector<16x32xf32>
    %291 = vector.shape_cast %288 : vector<16x32xf32> to vector<1x16x32xf32>
    tpu.vector_store %arg15[%c0_227, %c0_228, %c352_229], %291 {strides = array<i32>} : memref<1x16x512xf32, #tpu.memory_space<vmem>>, vector<1x16x32xf32>,
    %292 = vector.extract_strided_slice %243 {offsets = [192, 0], sizes = [16, 32], strides = [1, 1]} : vector<256x32xf32> to vector<16x32xf32>
    %c0_230 = arith.constant 0 : index
    %c0_231 = arith.constant 0 : index
    %c384_232 = arith.constant 384 : index
    %293 = vector.load %arg15[%c0_230, %c0_231, %c384_232] : memref<1x16x512xf32, #tpu.memory_space<vmem>>, vector<1x16x32xf32>
    %294 = vector.shape_cast %293 : vector<1x16x32xf32> to vector<16x32xf32>
    %295 = vector.shape_cast %292 : vector<16x32xf32> to vector<1x16x32xf32>
    tpu.vector_store %arg15[%c0_230, %c0_231, %c384_232], %295 {strides = array<i32>} : memref<1x16x512xf32, #tpu.memory_space<vmem>>, vector<1x16x32xf32>,
    %296 = vector.extract_strided_slice %243 {offsets = [208, 0], sizes = [16, 32], strides = [1, 1]} : vector<256x32xf32> to vector<16x32xf32>
    %c0_233 = arith.constant 0 : index
    %c0_234 = arith.constant 0 : index
    %c416_235 = arith.constant 416 : index
    %297 = vector.load %arg15[%c0_233, %c0_234, %c416_235] : memref<1x16x512xf32, #tpu.memory_space<vmem>>, vector<1x16x32xf32>
    %298 = vector.shape_cast %297 : vector<1x16x32xf32> to vector<16x32xf32>
    %299 = vector.shape_cast %296 : vector<16x32xf32> to vector<1x16x32xf32>
    tpu.vector_store %arg15[%c0_233, %c0_234, %c416_235], %299 {strides = array<i32>} : memref<1x16x512xf32, #tpu.memory_space<vmem>>, vector<1x16x32xf32>,
    %300 = vector.extract_strided_slice %243 {offsets = [224, 0], sizes = [16, 32], strides = [1, 1]} : vector<256x32xf32> to vector<16x32xf32>
    %c0_236 = arith.constant 0 : index
    %c0_237 = arith.constant 0 : index
    %c448_238 = arith.constant 448 : index
    %301 = vector.load %arg15[%c0_236, %c0_237, %c448_238] : memref<1x16x512xf32, #tpu.memory_space<vmem>>, vector<1x16x32xf32>
    %302 = vector.shape_cast %301 : vector<1x16x32xf32> to vector<16x32xf32>
    %303 = vector.shape_cast %300 : vector<16x32xf32> to vector<1x16x32xf32>
    tpu.vector_store %arg15[%c0_236, %c0_237, %c448_238], %303 {strides = array<i32>} : memref<1x16x512xf32, #tpu.memory_space<vmem>>, vector<1x16x32xf32>,
    %304 = vector.extract_strided_slice %243 {offsets = [240, 0], sizes = [16, 32], strides = [1, 1]} : vector<256x32xf32> to vector<16x32xf32>
    %c0_239 = arith.constant 0 : index
    %c0_240 = arith.constant 0 : index
    %c480_241 = arith.constant 480 : index
    %305 = vector.load %arg15[%c0_239, %c0_240, %c480_241] : memref<1x16x512xf32, #tpu.memory_space<vmem>>, vector<1x16x32xf32>
    %306 = vector.shape_cast %305 : vector<1x16x32xf32> to vector<16x32xf32>
    %307 = vector.shape_cast %304 : vector<16x32xf32> to vector<1x16x32xf32>
    tpu.vector_store %arg15[%c0_239, %c0_240, %c480_241], %307 {strides = array<i32>} : memref<1x16x512xf32, #tpu.memory_space<vmem>>, vector<1x16x32xf32>,
    return
  }
  func.func @transform_0(%arg0: i32) -> i32 {
    %c0_i32 = arith.constant 0 : i32
    %c0_i32_0 = arith.constant 0 : i32
    return %c0_i32 : i32
  }
  func.func @transform_1(%arg0: i32) -> (i32, i32, i32, i32) {
    %c0_i32 = arith.constant 0 : i32
    %c0_i32_0 = arith.constant 0 : i32
    %c0_i32_1 = arith.constant 0 : i32
    %c0_i32_2 = arith.constant 0 : i32
    return %arg0, %c0_i32, %c0_i32_0, %c0_i32_1 : i32, i32, i32, i32
  }
  func.func @transform_2(%arg0: i32) -> (i32, i32) {
    %c0_i32 = arith.constant 0 : i32
    %c0_i32_0 = arith.constant 0 : i32
    %c0_i32_1 = arith.constant 0 : i32
    return %c0_i32, %c0_i32_0 : i32, i32
  }
  func.func @transform_3(%arg0: i32) -> (i32, i32) {
    %c0_i32 = arith.constant 0 : i32
    %c0_i32_0 = arith.constant 0 : i32
    %c0_i32_1 = arith.constant 0 : i32
    return %c0_i32, %c0_i32_0 : i32, i32
  }
  func.func @transform_4(%arg0: i32) -> (i32, i32) {
    %c0_i32 = arith.constant 0 : i32
    %c0_i32_0 = arith.constant 0 : i32
    %c0_i32_1 = arith.constant 0 : i32
    return %c0_i32, %c0_i32_0 : i32, i32
  }
  func.func @transform_5(%arg0: i32) -> (i32, i32) {
    %c0_i32 = arith.constant 0 : i32
    %c0_i32_0 = arith.constant 0 : i32
    %c0_i32_1 = arith.constant 0 : i32
    return %c0_i32, %c0_i32_0 : i32, i32
  }
  func.func @transform_6(%arg0: i32) -> (i32, i32) {
    %c0_i32 = arith.constant 0 : i32
    %c0_i32_0 = arith.constant 0 : i32
    %c0_i32_1 = arith.constant 0 : i32
    return %c0_i32, %c0_i32_0 : i32, i32
  }
  func.func @transform_7(%arg0: i32) -> (i32, i32) {
    %c0_i32 = arith.constant 0 : i32
    %c0_i32_0 = arith.constant 0 : i32
    %c0_i32_1 = arith.constant 0 : i32
    return %c0_i32, %c0_i32_0 : i32, i32
  }
  func.func @transform_8(%arg0: i32) -> (i32, i32) {
    %c0_i32 = arith.constant 0 : i32
    %c0_i32_0 = arith.constant 0 : i32
    %c0_i32_1 = arith.constant 0 : i32
    return %c0_i32, %c0_i32_0 : i32, i32
  }
  func.func @transform_9(%arg0: i32) -> (i32, i32) {
    %c0_i32 = arith.constant 0 : i32
    %c0_i32_0 = arith.constant 0 : i32
    %c0_i32_1 = arith.constant 0 : i32
    return %c0_i32, %c0_i32_0 : i32, i32
  }
  func.func @transform_10(%arg0: i32) -> (i32, i32) {
    %c0_i32 = arith.constant 0 : i32
    %c0_i32_0 = arith.constant 0 : i32
    %c0_i32_1 = arith.constant 0 : i32
    return %c0_i32, %c0_i32_0 : i32, i32
  }
  func.func @transform_11(%arg0: i32) -> (i32, i32) {
    %c0_i32 = arith.constant 0 : i32
    %c0_i32_0 = arith.constant 0 : i32
    %c0_i32_1 = arith.constant 0 : i32
    return %c0_i32, %c0_i32_0 : i32, i32
  }
  func.func @transform_12(%arg0: i32) -> (i32, i32) {
    %c0_i32 = arith.constant 0 : i32
    %c0_i32_0 = arith.constant 0 : i32
    %c0_i32_1 = arith.constant 0 : i32
    return %c0_i32, %c0_i32_0 : i32, i32
  }
  func.func @transform_13(%arg0: i32) -> (i32, i32) {
    %c0_i32 = arith.constant 0 : i32
    %c0_i32_0 = arith.constant 0 : i32
    %c0_i32_1 = arith.constant 0 : i32
    return %c0_i32, %c0_i32_0 : i32, i32
  }
  func.func @transform_14(%arg0: i32) -> (i32, i32, i32) {
    %c0_i32 = arith.constant 0 : i32
    %c0_i32_0 = arith.constant 0 : i32
    %c0_i32_1 = arith.constant 0 : i32
    return %arg0, %c0_i32, %c0_i32_0 : i32, i32, i32
  }
}

</mosaic_0001>

<bundles_post_ra>
// kernel: tile.43
= control target key start
LH: loop header
LB: loop body
LE: loop exit
PB: predicated region body
PF: predicated region fallthrough
CT: control target
= control target key end

     0   :  { %s28_s0 = inlined_call_operand.vmem [shape: f32[32], index: 0, kind: input, shape index: {}]   ;;  %s29_s1 = inlined_call_operand.vmem [shape: f32[16,32], index: 1, kind: output, shape index: {}]  }
   0x1   :  { %v4_v0 = vld [vmem:[%s28_s0] ss:$0 sm:$0xff] }
   0x2   :  { %5 = vst [vmem:[%s29_s1] sm:$0xff] %v4_v0  ;;  %8 = vst [vmem:[%s29_s1 + $0x8] sm:$0xff] %v4_v0 }

// kernel: tile.44
= control target key start
LH: loop header
LB: loop body
LE: loop exit
PB: predicated region body
PF: predicated region fallthrough
CT: control target
= control target key end

     0   :  { %s35_s8 = smov 96   ;;  %vm3_vm0 = vcmask 261120   ;;  %s37_s15 = smov 64   ;;  %vm9_vm1 = vcmask 1048320   ;;  %vm15_vm2 = vcmask 785920   ;;  %vm21_vm3 = vcmask 523520   ;;  %s63_s0 = inlined_call_operand.vmem [shape: f32[16,32], index: 0, kind: input, shape index: {}]   ;;  %s64_s1 = inlined_call_operand.vmem [shape: f32[512], index: 1, kind: output, shape index: {}]  }
   0x1   :  { %v29_v0 = vld [vmem:[%s63_s0 + $0x3] ss:$4 sm:$0xf]   ;;  %v30_v1 = vld [vmem:[%s63_s0 + $0x2] ss:$4 sm:$0xf]  }
   0x2   :  { %7 = vrot.lane.b32.xlu0 %v29_v0, %s35_s8  ;;  %v31_v2 = vld [vmem:[%s63_s0 + $0x1] ss:$4 sm:$0xf]   ;;  %v2_v3 = vld [vmem:[%s63_s0] ss:$4 sm:$0xf]  }
   0x3   :  { %s36_s0 = smov 32   ;;  %4 = vst.msk [vmem:[#allocation0] sm:$0xf] %vm3_vm0, %v2_v3  }
   0x4   :  { %19 = vrot.lane.b32.xlu1 %v31_v2, %s36_s0 }
   0x6   :  { %13 = vrot.lane.b32.xlu0 %v30_v1, %s37_s15 }
  0x74   :  { %v8_v4 = vpop.permute.xlu0 %7  }
  0x75   :  { %10 = vst.msk [vmem:[#allocation0] sm:$0xf] %vm9_vm1, %v8_v4  }
  0x76   :  { %v20_v5 = vpop.permute.xlu1 %19  }
  0x78   :  { %v14_v6 = vpop.permute.xlu0 %13  }
  0x79   :  { %16 = vst.msk [vmem:[#allocation0] sm:$0xf] %vm15_vm2, %v14_v6  }
  0x7a   :  { %22 = vst.msk [vmem:[#allocation0] sm:$0xf] %vm21_vm3, %v20_v5  }
  0x81   :  { %v26_v7 = vld [vmem:[#allocation0] sm:$0xf] }
  0x82   :  { %28 = vst [vmem:[%s64_s1] sm:$0xf] %v26_v7 }

// kernel: tile.38
= control target key start
LH: loop header
LB: loop body
LE: loop exit
PB: predicated region body
PF: predicated region fallthrough
CT: control target
= control target key end

     0   :  { %s28_s0 = inlined_call_operand.vmem [shape: f32[4], index: 0, kind: input, shape index: {}]   ;;  %s29_s1 = inlined_call_operand.vmem [shape: f32[16,4], index: 1, kind: output, shape index: {}]  }
   0x1   :  { %v4_v0 = vld [vmem:[%s28_s0] ss:$0 sm:$0xff] }
   0x2   :  { %5 = vst [vmem:[%s29_s1] sm:$0xff] %v4_v0  ;;  %8 = vst [vmem:[%s29_s1 + $0x8] sm:$0xff] %v4_v0 }

// kernel: tile.39
= control target key start
LH: loop header
LB: loop body
LE: loop exit
PB: predicated region body
PF: predicated region fallthrough
CT: control target
= control target key end

     0   :  { %s131_s10 = smov 60   ;;  %s132_s11 = smov 52   ;;  %vm3_vm0 = vcmask 31744   ;;  %vm9_vm1 = vcmask 523744   ;;  %vm15_vm2 = vcmask 490944   ;;  %vm21_vm3 = vcmask 458144   ;;  %s207_s0 = inlined_call_operand.vmem [shape: f32[16,4], index: 0, kind: input, shape index: {}]   ;;  %s208_s1 = inlined_call_operand.vmem [shape: f32[64], index: 1, kind: output, shape index: {}]  }
   0x1   :  { %v101_v0 = vld [vmem:[%s207_s0 + $0xf] sm:$0x1]   ;;  %v103_v1 = vld [vmem:[%s207_s0 + $0xd] sm:$0x1]   ;;  %v102_v2 = vld [vmem:[%s207_s0 + $0xe] sm:$0x1]  }
   0x2   :  { %7 = vrot.lane.b32.xlu0 %v101_v0, %s131_s10  ;;  %19 = vrot.lane.b32.xlu1 %v103_v1, %s132_s11  ;;  %v104_v3 = vld [vmem:[%s207_s0 + $0xc] sm:$0x1]   ;;  %s133_s16 = smov 56   ;;  %s134_s17 = smov 48   ;;  %v105_v4 = vld [vmem:[%s207_s0 + $0xb] sm:$0x1]  }
   0x3   :  { %v106_v5 = vld [vmem:[%s207_s0 + $0xa] sm:$0x1]   ;;  %v2_v6 = vld [vmem:[%s207_s0] sm:$0x1]   ;;  %s135_s24 = smov 44   ;;  %s136_s25 = smov 40  }
   0x4   :  { %4 = vst.msk [vmem:[#allocation0] sm:$0x1] %vm3_vm0, %v2_v6   ;;  %v107_v7 = vld [vmem:[%s207_s0 + $0x9] sm:$0x1]   ;;  %v108_v8 = vld [vmem:[%s207_s0 + $0x8] sm:$0x1]  }
   0x5   :  { %s137_s30 = smov 36   ;;  %s138_s2 = smov 32   ;;  %v109_v9 = vld [vmem:[%s207_s0 + $0x7] sm:$0x1]   ;;  %v110_v10 = vld [vmem:[%s207_s0 + $0x6] sm:$0x1]  }
   0x6   :  { %13 = vrot.lane.b32.xlu0 %v102_v2, %s133_s16  ;;  %25 = vrot.lane.b32.xlu1 %v104_v3, %s134_s17  ;;  %s139_s7 = smov 28   ;;  %s140_s8 = smov 24   ;;  %v111_v11 = vld [vmem:[%s207_s0 + $0x5] sm:$0x1]   ;;  %v112_v12 = vld [vmem:[%s207_s0 + $0x4] sm:$0x1]  }
   0x7   :  { %s141_s13 = smov 20   ;;  %s142_s14 = smov 16   ;;  %v113_v13 = vld [vmem:[%s207_s0 + $0x3] sm:$0x1]   ;;  %v114_v14 = vld [vmem:[%s207_s0 + $0x2] sm:$0x1]  }
   0x8   :  { %s143_s19 = smov 12   ;;  %s144_s20 = smov 8   ;;  %v115_v15 = vld [vmem:[%s207_s0 + $0x1] sm:$0x1]   ;;  %vm27_vm4 = vcmask 425344   ;;  %vm33_vm5 = vcmask 392544  }
   0x9   :  { %s145_s0 = smov 4   ;;  %vm39_vm6 = vcmask 359744   ;;  %vm45_vm7 = vcmask 326944   ;;  %vm51_vm8 = vcmask 294144   ;;  %vm57_vm9 = vcmask 261344  }
   0xa   :  { %31 = vrot.lane.b32.xlu0 %v105_v4, %s135_s24  ;;  %37 = vrot.lane.b32.xlu1 %v106_v5, %s136_s25  ;;  %vm63_vm10 = vcmask 228544   ;;  %vm69_vm11 = vcmask 195744   ;;  %vm75_vm12 = vcmask 162944   ;;  %vm81_vm13 = vcmask 130144  }
   0xb   :  { %vm87_vm14 = vcmask 97344   ;;  %vm93_vm15 = vcmask 64544  }
   0xe   :  { %43 = vrot.lane.b32.xlu0 %v107_v7, %s137_s30  ;;  %49 = vrot.lane.b32.xlu1 %v108_v8, %s138_s2 }
  0x12   :  { %55 = vrot.lane.b32.xlu0 %v109_v9, %s139_s7  ;;  %61 = vrot.lane.b32.xlu1 %v110_v10, %s140_s8 }
  0x16   :  { %67 = vrot.lane.b32.xlu0 %v111_v11, %s141_s13  ;;  %73 = vrot.lane.b32.xlu1 %v112_v12, %s142_s14 }
  0x1a   :  { %79 = vrot.lane.b32.xlu0 %v113_v13, %s143_s19  ;;  %85 = vrot.lane.b32.xlu1 %v114_v14, %s144_s20 }
  0x1e   :  { %91 = vrot.lane.b32.xlu0 %v115_v15, %s145_s0 }
  0x74   :  { %v8_v16 = vpop.permute.xlu0 %7   ;;  %v20_v17 = vpop.permute.xlu1 %19  }
  0x75   :  { %10 = vst.msk [vmem:[#allocation0] sm:$0x1] %vm9_vm1, %v8_v16  }
  0x78   :  { %v14_v18 = vpop.permute.xlu0 %13   ;;  %v26_v19 = vpop.permute.xlu1 %25  }
  0x79   :  { %16 = vst.msk [vmem:[#allocation0] sm:$0x1] %vm15_vm2, %v14_v18  }
  0x7a   :  { %22 = vst.msk [vmem:[#allocation0] sm:$0x1] %vm21_vm3, %v20_v17  }
  0x7b   :  { %28 = vst.msk [vmem:[#allocation0] sm:$0x1] %vm27_vm4, %v26_v19  }
  0x7c   :  { %v32_v20 = vpop.permute.xlu0 %31   ;;  %v38_v21 = vpop.permute.xlu1 %37  }
  0x7d   :  { %34 = vst.msk [vmem:[#allocation0] sm:$0x1] %vm33_vm5, %v32_v20  }
  0x7e   :  { %40 = vst.msk [vmem:[#allocation0] sm:$0x1] %vm39_vm6, %v38_v21  }
  0x80   :  { %v44_v22 = vpop.permute.xlu0 %43   ;;  %v50_v23 = vpop.permute.xlu1 %49  }
  0x81   :  { %46 = vst.msk [vmem:[#allocation0] sm:$0x1] %vm45_vm7, %v44_v22  }
  0x82   :  { %52 = vst.msk [vmem:[#allocation0] sm:$0x1] %vm51_vm8, %v50_v23  }
  0x84   :  { %v56_v24 = vpop.permute.xlu0 %55   ;;  %v62_v25 = vpop.permute.xlu1 %61  }
  0x85   :  { %58 = vst.msk [vmem:[#allocation0] sm:$0x1] %vm57_vm9, %v56_v24  }
  0x86   :  { %64 = vst.msk [vmem:[#allocation0] sm:$0x1] %vm63_vm10, %v62_v25  }
  0x88   :  { %v68_v26 = vpop.permute.xlu0 %67   ;;  %v74_v27 = vpop.permute.xlu1 %73  }
  0x89   :  { %70 = vst.msk [vmem:[#allocation0] sm:$0x1] %vm69_vm11, %v68_v26  }
  0x8a   :  { %76 = vst.msk [vmem:[#allocation0] sm:$0x1] %vm75_vm12, %v74_v27  }
  0x8c   :  { %v80_v28 = vpop.permute.xlu0 %79   ;;  %v86_v29 = vpop.permute.xlu1 %85  }
  0x8d   :  { %82 = vst.msk [vmem:[#allocation0] sm:$0x1] %vm81_vm13, %v80_v28  }
  0x8e   :  { %88 = vst.msk [vmem:[#allocation0] sm:$0x1] %vm87_vm14, %v86_v29  }
  0x90   :  { %v92_v30 = vpop.permute.xlu0 %91  }
  0x91   :  { %94 = vst.msk [vmem:[#allocation0] sm:$0x1] %vm93_vm15, %v92_v30  }
  0x98   :  { %v98_v31 = vld [vmem:[#allocation0] sm:$0x1] }
  0x99   :  { %100 = vst [vmem:[%s208_s1] sm:$0x1] %v98_v31 }

// kernel: paa_kernel_forward.1
= control target key start
LH: loop header
LB: loop body
LE: loop exit
PB: predicated region body
PF: predicated region fallthrough
CT: control target
= control target key end

     0   :  { %19 = vsyncpa [#allocation8], 0  ;;  %s9635_s29 = smov 0   ;;  %s13096_s0 = inlined_call_operand.vmem [shape: f32[2], index: 0, kind: input, shape index: {}]   ;;  %s13097_s1 = inlined_call_operand.vmem [shape: f32[2,16,16,16], index: 1, kind: input, shape index: {}]   ;;  %s13098_s2 = inlined_call_operand.vmem [shape: bf16[16,32], index: 2, kind: input, shape index: {}]   ;;  %s13099_s3 = inlined_call_operand.vmem [shape: f32[1,32], index: 3, kind: input, shape index: {}]   ;;  %s13100_s4 = inlined_call_operand.vmem [shape: bf16[96,32], index: 4, kind: input, shape index: {}]   ;;  %s13101_s5 = inlined_call_operand.vmem [shape: f32[1,32], index: 5, kind: input, shape index: {}]   ;;  %s13102_s6 = inlined_call_operand.vmem [shape: bf16[96,32], index: 6, kind: input, shape index: {}]   ;;  %s13103_s7 = inlined_call_operand.vmem [shape: f32[1,32], index: 7, kind: input, shape index: {}]   ;;  %s13104_s8 = inlined_call_operand.vmem [shape: bf16[512,640], index: 8, kind: input, shape index: {}]   ;;  %s13105_s9 = inlined_call_operand.vmem [shape: f32[1,640], index: 9, kind: input, shape index: {}]   ;;  %s13106_s10 = inlined_call_operand.vmem [shape: bf16[512,640], index: 10, kind: input, shape index: {}]   ;;  %s13107_s11 = inlined_call_operand.vmem [shape: f32[1,640], index: 11, kind: input, shape index: {}]   ;;  %s13108_s12 = inlined_call_operand.vmem [shape: bf16[288,32], index: 12, kind: input, shape index: {}]   ;;  %s13109_s13 = inlined_call_operand.vmem [shape: f32[1,32], index: 13, kind: input, shape index: {}]   ;;  %s13110_s14 = inlined_call_operand.vmem [shape: f32[2,16,512], index: 14, kind: output, shape index: {}]  }
   0x1 LB: > { %s8040_s30 = sadd.s32 4294967295, %s9552_s29   ;;  %p8042_p0 = scmp.ge.s32.totalorder %s9552_s29, 1  ;;  %s9552_s29 = sphi %s9635_s29, %s25_s29  }
   0x2   : > { %p355_p1 = scmp.lt.s32.totalorder %s9552_s29, 3  ;;  %s368_s17 = sshll.u32 %s13096_s0, 4  ;;  %s369_s17 = int_to_ptr.vmem [resolvable:$true] %s368_s17 }
   0x3   : > { %p8998_p3 = scmp.eq.s32.totalorder %s8040_s30, 0  ;;  %s9527_s19 = scalar_lea.vmem %s369_s17, 16 }
   0x4   : > { %p9646_p2 = pnand %p8042_p0, %p355_p1  ;;  %p9528_p6 = scmp.ne.s32.totalorder %s369_s17, %s9527_s19 }
   0x5   : > { %p9535_p10 = scmp.lt.s32.totalorder %s369_s17, %s369_s17  ;;  %p9536_p11 = scmp.lt.s32.totalorder %s9527_s19, %s9527_s19 }
   0x6   : > { %p8994_p4 = pneg %p9646_p2 }
   0x7   : > { %p9537_p12 = por %p9536_p11, %p9535_p10 }
   0x8   : > { %p8995_p5 = pnand %p8998_p3, %p8994_p4 }
   0xa   : > { %p9529_p7 = pneg %p8995_p5 }
   0xc   : > { %p9530_p8 = pnand %p9529_p7, %p9528_p6 }
   0xe   : > { %p9531_p9 = pneg %p9530_p8 }
  0x10   : > { %p9538_p13 = pnand %p9537_p12, %p9531_p9 }
  0x12   : > { %9541 = shalt.err (!%p9538_p13)
}
  0x13   : > { %s9554_s20 = smov [#allocation7]   ;;  %425 = sbr.rel (%p9646_p2) target bundleno = 4202 (0x106a), region = 76 }
  0x14   : > { %8997 = dma.vmem_to_smem (!%p8995_p5), %s369_s17, 16, %s9554_s20, [#allocation8]  }
  0x1a   : > { %9547 = dma.done.wait (%p8998_p3), [#allocation8], 16  }
  0x1b   : > { %9549 = vsyncadd (%p8998_p3), [#allocation8], 4294967280 }
  0x1c   : > { %431 = sfence }
  0x1d   : > { %v9660_v0 = vld [vmem:[%s13098_s2] sm:$0xff]   ;;  %p472_p0 = scmp.lt.s32.totalorder %s8040_s30, 1  ;;  %vm483_vm0 = vcmask 261120   ;;  %v9555_v1 = vmov 0.0   ;;  %vm699_vm1 = vcmask 130048   ;;  %vm486_vm2 = vcmask 254976  }
  0x1e   : > { %8774 = vmatprep.subr.bf16.mxu0 %v9660_v0  ;;  %488 = vst.msk [vmem:[#allocation2 + $0x18] sm:$0xff] %vm483_vm0, %v9555_v1  ;;  %489 = vst.msk [vmem:[#allocation2 + $0x20] sm:$0xff] %vm483_vm0, %v9555_v1  ;;  %v9025_v50 = vld [vmem:[%s13100_s4] sm:$0xff]   ;;  %v9026_v57 = vld [vmem:[%s13100_s4 + $0x8] sm:$0xff]   ;;  %vm1165_vm3 = vcmask 523520   ;;  %vm1358_vm4 = vcmask 785920  }
  0x1f   : > { %s13115_s30 = smov (!%p472_p0, %s8040_s30), 1  ;;  %484 = vst.msk [vmem:[#allocation2] sm:$0xff] %vm483_vm0, %v9555_v1  ;;  %485 = vst.msk [vmem:[#allocation2 + $0x8] sm:$0xff] %vm483_vm0, %v9555_v1  ;;  %8775 = vmatpush3.bf16.msra.mxu0 %v9660_v0  ;;  %v9982_v51 = vld [vmem:[%s13099_s3] ss:$0 sm:$0xff]  ;;  %8808 = vmatprep.subr.bf16.mxu1 %v9025_v50  ;;  %v9027_v61 = vld [vmem:[%s13100_s4 + $0x10] sm:$0xff]  }
  0x20   : > { %491 = vst.msk [vmem:[#allocation2 + $0x30] sm:$0xff] %vm483_vm0, %v9555_v1  ;;  %492 = vst.msk [vmem:[#allocation2 + $0x38] sm:$0xff] %vm483_vm0, %v9555_v1  ;;  %s8485_s23 = sshll.u32 %s13115_s30, 8  ;;  %8809 = vmatpush3.bf16.msra.mxu1 %v9025_v50  ;;  %vm1494_vm5 = vcmask 785408   ;;  %s9558_s21 = smov 96   ;;  %vm2528_vm6 = vcmask 1048320  }
  0x21   : > { %494 = vst.msk [vmem:[#allocation2 + $0x48] sm:$0xff] %vm483_vm0, %v9555_v1  ;;  %495 = vst.msk [vmem:[#allocation2 + $0x50] sm:$0xff] %vm483_vm0, %v9555_v1  ;;  %s9894_s26 = scalar_lea.vmem %s13097_s1, %s8485_s23  ;;  %8810 = vmatprep.subr.bf16.mxu1 %v9026_v57  ;;  %s9556_s23 = smov 32   ;;  %vm3957_vm7 = vcmask 523264   ;;  %vm571_vm9 = vcmask 259072  }
  0x22   : > { %497 = vst.msk [vmem:[#allocation2 + $0x60] sm:$0xff] %vm483_vm0, %v9555_v1  ;;  %498 = vst.msk [vmem:[#allocation2 + $0x68] sm:$0xff] %vm483_vm0, %v9555_v1  ;;  %v636_v2 = vld [vmem:[%s9894_s26] sm:$0xff]  ;;  %v637_v3 = vld [vmem:[%s9894_s26 + $0x8] sm:$0xff]  ;;  %s2639_s15 = sld [smem:[#allocation7]]  ;;  %s8281_s16 = sld [smem:[#allocation7 + $0x1]] }
  0x23   : > { %500 = vst.msk [vmem:[#allocation2 + $0x78] sm:$0xff] %vm483_vm0, %v9555_v1  ;;  %501 = vst.msk [vmem:[#allocation2 + $0x80] sm:$0xff] %vm483_vm0, %v9555_v1  ;;  %v638_v4 = vld [vmem:[%s9894_s26 + $0x10] sm:$0xff]  ;;  %v668_v5 = vpack.c.bf16 %v637_v3, %v636_v2  ;;  %v639_v6 = vld [vmem:[%s9894_s26 + $0x18] sm:$0xff]  ;;  %s8486_s24 = sshll.u32 %s13115_s30, 6 }
  0x24   : > { %503 = vst.msk [vmem:[#allocation2 + $0x90] sm:$0xff] %vm483_vm0, %v9555_v1  ;;  %504 = vst.msk [vmem:[#allocation2 + $0x98] sm:$0xff] %vm483_vm0, %v9555_v1  ;;  %v640_v7 = vld [vmem:[%s9894_s26 + $0x20] sm:$0xff]  ;;  %v641_v8 = vld [vmem:[%s9894_s26 + $0x28] sm:$0xff]  ;;  %v669_v9 = vpack.c.bf16 %v639_v6, %v638_v4  ;;  %8811 = vmatpush3.bf16.msra.mxu1 %v9026_v57  ;;  %s12895_s30 = scalar_lea.vmem %s13110_s14, %s8486_s24 }
  0x25   : > { %506 = vst.msk [vmem:[#allocation2 + $0xa8] sm:$0xff] %vm483_vm0, %v9555_v1  ;;  %507 = vst.msk [vmem:[#allocation2 + $0xb0] sm:$0xff] %vm483_vm0, %v9555_v1  ;;  %v670_v10 = vpack.c.bf16 %v641_v8, %v640_v7  ;;  %8776 = vmatprep.mubr.msk.bf16.mxu0 %vm699_vm1, %v668_v5  ;;  %v642_v11 = vld [vmem:[%s9894_s26 + $0x30] sm:$0xff]  ;;  %v643_v12 = vld [vmem:[%s9894_s26 + $0x38] sm:$0xff]  ;;  %8812 = vmatprep.subr.bf16.mxu1 %v9027_v61 }
  0x26   : > { %509 = vst.msk [vmem:[#allocation2 + $0xc0] sm:$0xff] %vm483_vm0, %v9555_v1  ;;  %510 = vst.msk [vmem:[#allocation2 + $0xc8] sm:$0xff] %vm483_vm0, %v9555_v1  ;;  %8777 = vmatmul.mubr.msk.bf16.vlgmr.msra.gmra.mrb[0].mxu0 %vm699_vm1, %v669_v9  ;;  %v644_v13 = vld [vmem:[%s9894_s26 + $0x40] sm:$0xff]  ;;  %v645_v14 = vld [vmem:[%s9894_s26 + $0x48] sm:$0xff]  ;;  %v671_v15 = vpack.c.bf16 %v643_v12, %v642_v11 }
  0x27   : > { %512 = vst.msk [vmem:[#allocation2 + $0xd8] sm:$0xff] %vm483_vm0, %v9555_v1  ;;  %513 = vst.msk [vmem:[#allocation2 + $0xe0] sm:$0xff] %vm483_vm0, %v9555_v1  ;;  %8780 = vmatprep.mubr.msk.bf16.mxu0 %vm699_vm1, %v670_v10  ;;  %v672_v16 = vpack.c.bf16 %v645_v14, %v644_v13  ;;  %v646_v17 = vld [vmem:[%s9894_s26 + $0x50] sm:$0xff]  ;;  %v647_v18 = vld [vmem:[%s9894_s26 + $0x58] sm:$0xff] }
  0x28   : > { %515 = vst.msk [vmem:[#allocation2 + $0xf0] sm:$0xff] %vm483_vm0, %v9555_v1  ;;  %516 = vst.msk [vmem:[#allocation2 + $0xf8] sm:$0xff] %vm483_vm0, %v9555_v1  ;;  %v648_v19 = vld [vmem:[%s9894_s26 + $0x60] sm:$0xff]  ;;  %v649_v20 = vld [vmem:[%s9894_s26 + $0x68] sm:$0xff]  ;;  %v673_v21 = vpack.c.bf16 %v647_v18, %v646_v17  ;;  %8813 = vmatpush3.bf16.msra.mxu1 %v9027_v61 }
  0x29   : > { %518 = vst.msk [vmem:[#allocation2 + $0x108] sm:$0xff] %vm483_vm0, %v9555_v1  ;;  %519 = vst.msk [vmem:[#allocation2 + $0x110] sm:$0xff] %vm483_vm0, %v9555_v1  ;;  %v674_v22 = vpack.c.bf16 %v649_v20, %v648_v19  ;;  %v650_v23 = vld [vmem:[%s9894_s26 + $0x70] sm:$0xff]  ;;  %v651_v24 = vld [vmem:[%s9894_s26 + $0x78] sm:$0xff] }
  0x2a   : > { %521 = vst.msk [vmem:[#allocation2 + $0x120] sm:$0xff] %vm483_vm0, %v9555_v1  ;;  %522 = vst.msk [vmem:[#allocation2 + $0x128] sm:$0xff] %vm483_vm0, %v9555_v1  ;;  %v652_v25 = vld [vmem:[%s9894_s26 + $0x80] sm:$0xff]  ;;  %v653_v26 = vld [vmem:[%s9894_s26 + $0x88] sm:$0xff]  ;;  %v675_v27 = vpack.c.bf16 %v651_v24, %v650_v23 }
  0x2b   : > { %524 = vst.msk [vmem:[#allocation2 + $0x138] sm:$0xff] %vm483_vm0, %v9555_v1  ;;  %525 = vst.msk [vmem:[#allocation2 + $0x140] sm:$0xff] %vm483_vm0, %v9555_v1  ;;  %v676_v28 = vpack.c.bf16 %v653_v26, %v652_v25  ;;  %v654_v29 = vld [vmem:[%s9894_s26 + $0x90] sm:$0xff]  ;;  %v655_v30 = vld [vmem:[%s9894_s26 + $0x98] sm:$0xff] }
  0x2c   : > { %527 = vst.msk [vmem:[#allocation2 + $0x150] sm:$0xff] %vm483_vm0, %v9555_v1  ;;  %528 = vst.msk [vmem:[#allocation2 + $0x158] sm:$0xff] %vm483_vm0, %v9555_v1  ;;  %v656_v31 = vld [vmem:[%s9894_s26 + $0xa0] sm:$0xff]  ;;  %v657_v32 = vld [vmem:[%s9894_s26 + $0xa8] sm:$0xff]  ;;  %v677_v33 = vpack.c.bf16 %v655_v30, %v654_v29 }
  0x2d   : > { %530 = vst.msk [vmem:[#allocation2 + $0x168] sm:$0xff] %vm483_vm0, %v9555_v1  ;;  %531 = vst.msk [vmem:[#allocation2 + $0x170] sm:$0xff] %vm483_vm0, %v9555_v1  ;;  %v678_v34 = vpack.c.bf16 %v657_v32, %v656_v31  ;;  %v658_v35 = vld [vmem:[%s9894_s26 + $0xb0] sm:$0xff]  ;;  %v659_v36 = vld [vmem:[%s9894_s26 + $0xb8] sm:$0xff] }
  0x2e   : > { %533 = vst.msk [vmem:[#allocation3] sm:$0xff] %vm483_vm0, %v9555_v1  ;;  %534 = vst.msk [vmem:[#allocation3 + $0x8] sm:$0xff] %vm483_vm0, %v9555_v1  ;;  %8781 = vmatmul.mubr.msk.bf16.gmra.mrb[4].mxu0 %vm699_vm1, %v671_v15  ;;  %v660_v37 = vld [vmem:[%s9894_s26 + $0xc0] sm:$0xff]  ;;  %v661_v38 = vld [vmem:[%s9894_s26 + $0xc8] sm:$0xff]  ;;  %v679_v39 = vpack.c.bf16 %v659_v36, %v658_v35 }
  0x2f   : > { %535 = vst.msk [vmem:[#allocation3 + $0x10] sm:$0xff] %vm483_vm0, %v9555_v1  ;;  %536 = vst.msk [vmem:[#allocation3 + $0x18] sm:$0xff] %vm483_vm0, %v9555_v1  ;;  %8784 = vmatprep.mubr.msk.bf16.mxu0 %vm699_vm1, %v672_v16  ;;  %v680_v40 = vpack.c.bf16 %v661_v38, %v660_v37  ;;  %v662_v41 = vld [vmem:[%s9894_s26 + $0xd0] sm:$0xff]  ;;  %v663_v42 = vld [vmem:[%s9894_s26 + $0xd8] sm:$0xff] }
  0x30   : > { %537 = vst.msk [vmem:[#allocation3 + $0x20] sm:$0xff] %vm483_vm0, %v9555_v1  ;;  %538 = vst.msk [vmem:[#allocation3 + $0x28] sm:$0xff] %vm483_vm0, %v9555_v1  ;;  %v664_v43 = vld [vmem:[%s9894_s26 + $0xe0] sm:$0xff]  ;;  %v665_v44 = vld [vmem:[%s9894_s26 + $0xe8] sm:$0xff]  ;;  %v681_v45 = vpack.c.bf16 %v663_v42, %v662_v41 }
  0x31   : > { %539 = vst.msk [vmem:[#allocation3 + $0x30] sm:$0xff] %vm483_vm0, %v9555_v1  ;;  %540 = vst.msk [vmem:[#allocation3 + $0x38] sm:$0xff] %vm483_vm0, %v9555_v1  ;;  %v682_v46 = vpack.c.bf16 %v665_v44, %v664_v43  ;;  %v666_v47 = vld [vmem:[%s9894_s26 + $0xf0] sm:$0xff]  ;;  %v667_v48 = vld [vmem:[%s9894_s26 + $0xf8] sm:$0xff]  ;;  %s9557_s26 = smov 64  }
  0x32   : > { %541 = vst.msk [vmem:[#allocation3 + $0x40] sm:$0xff] %vm483_vm0, %v9555_v1  ;;  %542 = vst.msk [vmem:[#allocation3 + $0x48] sm:$0xff] %vm483_vm0, %v9555_v1  ;;  %v683_v49 = vpack.c.bf16 %v667_v48, %v666_v47  ;;  %v9028_v6 = vld [vmem:[%s13100_s4 + $0x18] sm:$0xff]   ;;  %v9029_v15 = vld [vmem:[%s13100_s4 + $0x20] sm:$0xff]  }
  0x33   : > { %543 = vst.msk [vmem:[#allocation3 + $0x50] sm:$0xff] %vm483_vm0, %v9555_v1  ;;  %544 = vst.msk [vmem:[#allocation3 + $0x58] sm:$0xff] %vm483_vm0, %v9555_v1  ;;  %8814 = vmatprep.subr.bf16.mxu1 %v9028_v6  ;;  %v9030_v24 = vld [vmem:[%s13100_s4 + $0x28] sm:$0xff]  }
  0x34   : > { %545 = vst.msk [vmem:[#allocation3 + $0x60] sm:$0xff] %vm483_vm0, %v9555_v1  ;;  %546 = vst.msk [vmem:[#allocation3 + $0x68] sm:$0xff] %vm483_vm0, %v9555_v1  ;;  %8815 = vmatpush3.bf16.msra.mxu1 %v9028_v6 }
  0x35   : > { %547 = vst.msk [vmem:[#allocation3 + $0x70] sm:$0xff] %vm483_vm0, %v9555_v1  ;;  %548 = vst.msk [vmem:[#allocation3 + $0x78] sm:$0xff] %vm483_vm0, %v9555_v1  ;;  %8816 = vmatprep.subr.bf16.mxu1 %v9029_v15 }
  0x36   : > { %549 = vst.msk [vmem:[#allocation3 + $0x80] sm:$0xff] %vm483_vm0, %v9555_v1  ;;  %550 = vst.msk [vmem:[#allocation3 + $0x88] sm:$0xff] %vm483_vm0, %v9555_v1  ;;  %8785 = vmatmul.mubr.msk.bf16.gmra.mrb[8].mxu0 %vm699_vm1, %v673_v21 }
  0x37   : > { %551 = vst.msk [vmem:[#allocation3 + $0x90] sm:$0xff] %vm483_vm0, %v9555_v1  ;;  %552 = vst.msk [vmem:[#allocation3 + $0x98] sm:$0xff] %vm483_vm0, %v9555_v1  ;;  %8788 = vmatprep.mubr.msk.bf16.mxu0 %vm699_vm1, %v674_v22 }
  0x38   : > { %553 = vst.msk [vmem:[#allocation3 + $0xa0] sm:$0xff] %vm483_vm0, %v9555_v1  ;;  %554 = vst.msk [vmem:[#allocation3 + $0xa8] sm:$0xff] %vm483_vm0, %v9555_v1  ;;  %8817 = vmatpush3.bf16.msra.mxu1 %v9029_v15 }
  0x39   : > { %555 = vst.msk [vmem:[#allocation3 + $0xb0] sm:$0xff] %vm483_vm0, %v9555_v1  ;;  %556 = vst.msk [vmem:[#allocation3 + $0xb8] sm:$0xff] %vm483_vm0, %v9555_v1  ;;  %8818 = vmatprep.subr.bf16.mxu1 %v9030_v24 }
  0x3a   : > { %557 = vst.msk [vmem:[#allocation3 + $0xc0] sm:$0xff] %vm483_vm0, %v9555_v1  ;;  %558 = vst.msk [vmem:[#allocation3 + $0xc8] sm:$0xff] %vm483_vm0, %v9555_v1 }
  0x3b   : > { %559 = vst.msk [vmem:[#allocation3 + $0xd0] sm:$0xff] %vm483_vm0, %v9555_v1  ;;  %560 = vst.msk [vmem:[#allocation3 + $0xd8] sm:$0xff] %vm483_vm0, %v9555_v1 }
  0x3c   : > { %561 = vst.msk [vmem:[#allocation3 + $0xe0] sm:$0xff] %vm483_vm0, %v9555_v1  ;;  %562 = vst.msk [vmem:[#allocation3 + $0xe8] sm:$0xff] %vm483_vm0, %v9555_v1  ;;  %8819 = vmatpush3.bf16.msra.mxu1 %v9030_v24 }
  0x3d   : > { %563 = vst.msk [vmem:[#allocation3 + $0xf0] sm:$0xff] %vm483_vm0, %v9555_v1  ;;  %564 = vst.msk [vmem:[#allocation3 + $0xf8] sm:$0xff] %vm483_vm0, %v9555_v1 }
  0x3e   : > { %565 = vst.msk [vmem:[#allocation3 + $0x100] sm:$0xff] %vm483_vm0, %v9555_v1  ;;  %566 = vst.msk [vmem:[#allocation3 + $0x108] sm:$0xff] %vm483_vm0, %v9555_v1  ;;  %8789 = vmatmul.mubr.msk.bf16.gmra.mrb[12].mxu0 %vm699_vm1, %v675_v27 }
  0x3f   : > { %567 = vst.msk [vmem:[#allocation3 + $0x110] sm:$0xff] %vm483_vm0, %v9555_v1  ;;  %568 = vst.msk [vmem:[#allocation3 + $0x118] sm:$0xff] %vm483_vm0, %v9555_v1  ;;  %8792 = vmatprep.mubr.msk.bf16.mxu0 %vm699_vm1, %v676_v28 }
  0x40   : > { %569 = vst.msk [vmem:[#allocation4] sm:$0xff] %vm483_vm0, %v9555_v1  ;;  %570 = vst.msk [vmem:[#allocation4 + $0x8] sm:$0xff] %vm483_vm0, %v9555_v1 }
  0x41   : > { %573 = vst.msk [vmem:[#allocation4 + $0x18] sm:$0xff] %vm483_vm0, %v9555_v1  ;;  %574 = vst.msk [vmem:[#allocation4 + $0x20] sm:$0xff] %vm483_vm0, %v9555_v1 }
  0x42   : > { %576 = vst.msk [vmem:[#allocation4 + $0x30] sm:$0xff] %vm483_vm0, %v9555_v1  ;;  %577 = vst.msk [vmem:[#allocation4 + $0x38] sm:$0xff] %vm483_vm0, %v9555_v1 }
  0x43   : > { %579 = vst.msk [vmem:[#allocation4 + $0x48] sm:$0xff] %vm483_vm0, %v9555_v1  ;;  %580 = vst.msk [vmem:[#allocation4 + $0x50] sm:$0xff] %vm483_vm0, %v9555_v1 }
  0x44   : > { %582 = vst.msk [vmem:[#allocation4 + $0x60] sm:$0xff] %vm483_vm0, %v9555_v1  ;;  %583 = vst.msk [vmem:[#allocation4 + $0x68] sm:$0xff] %vm483_vm0, %v9555_v1 }
  0x45   : > { %585 = vst.msk [vmem:[#allocation4 + $0x78] sm:$0xff] %vm483_vm0, %v9555_v1  ;;  %586 = vst.msk [vmem:[#allocation4 + $0x80] sm:$0xff] %vm483_vm0, %v9555_v1 }
  0x46   : > { %588 = vst.msk [vmem:[#allocation4 + $0x90] sm:$0xff] %vm483_vm0, %v9555_v1  ;;  %589 = vst.msk [vmem:[#allocation4 + $0x98] sm:$0xff] %vm483_vm0, %v9555_v1  ;;  %8793 = vmatmul.mubr.msk.bf16.gmra.mrb[16].mxu0 %vm699_vm1, %v677_v33 }
  0x47   : > { %591 = vst.msk [vmem:[#allocation4 + $0xa8] sm:$0xff] %vm483_vm0, %v9555_v1  ;;  %592 = vst.msk [vmem:[#allocation4 + $0xb0] sm:$0xff] %vm483_vm0, %v9555_v1  ;;  %8796 = vmatprep.mubr.msk.bf16.mxu0 %vm699_vm1, %v678_v34 }
  0x48   : > { %594 = vst.msk [vmem:[#allocation4 + $0xc0] sm:$0xff] %vm483_vm0, %v9555_v1  ;;  %595 = vst.msk [vmem:[#allocation4 + $0xc8] sm:$0xff] %vm483_vm0, %v9555_v1 }
  0x49   : > { %597 = vst.msk [vmem:[#allocation4 + $0xd8] sm:$0xff] %vm483_vm0, %v9555_v1  ;;  %598 = vst.msk [vmem:[#allocation4 + $0xe0] sm:$0xff] %vm483_vm0, %v9555_v1 }
  0x4a   : > { %600 = vst.msk [vmem:[#allocation4 + $0xf0] sm:$0xff] %vm483_vm0, %v9555_v1  ;;  %601 = vst.msk [vmem:[#allocation4 + $0xf8] sm:$0xff] %vm483_vm0, %v9555_v1 }
  0x4b   : > { %603 = vst.msk [vmem:[#allocation4 + $0x108] sm:$0xff] %vm483_vm0, %v9555_v1  ;;  %604 = vst.msk [vmem:[#allocation4 + $0x110] sm:$0xff] %vm483_vm0, %v9555_v1 }
  0x4c   : > { %606 = vst.msk [vmem:[#allocation4 + $0x120] sm:$0xff] %vm483_vm0, %v9555_v1  ;;  %607 = vst.msk [vmem:[#allocation4 + $0x128] sm:$0xff] %vm483_vm0, %v9555_v1 }
  0x4d   : > { %609 = vst.msk [vmem:[#allocation4 + $0x138] sm:$0xff] %vm483_vm0, %v9555_v1  ;;  %610 = vst.msk [vmem:[#allocation4 + $0x140] sm:$0xff] %vm483_vm0, %v9555_v1 }
  0x4e   : > { %612 = vst.msk [vmem:[#allocation4 + $0x150] sm:$0xff] %vm483_vm0, %v9555_v1  ;;  %613 = vst.msk [vmem:[#allocation4 + $0x158] sm:$0xff] %vm483_vm0, %v9555_v1  ;;  %8797 = vmatmul.mubr.msk.bf16.gmra.mrb[20].mxu0 %vm699_vm1, %v679_v39 }
  0x4f   : > { %615 = vst.msk [vmem:[#allocation4 + $0x168] sm:$0xff] %vm483_vm0, %v9555_v1  ;;  %616 = vst.msk [vmem:[#allocation4 + $0x170] sm:$0xff] %vm483_vm0, %v9555_v1  ;;  %8800 = vmatprep.mubr.msk.bf16.mxu0 %vm699_vm1, %v680_v40 }
  0x50   : > { %618 = vst.msk [vmem:[#allocation4 + $0x180] sm:$0xff] %vm483_vm0, %v9555_v1  ;;  %619 = vst.msk [vmem:[#allocation4 + $0x188] sm:$0xff] %vm483_vm0, %v9555_v1 }
  0x51   : > { %621 = vst.msk [vmem:[#allocation4 + $0x198] sm:$0xff] %vm483_vm0, %v9555_v1  ;;  %622 = vst.msk [vmem:[#allocation4 + $0x1a0] sm:$0xff] %vm483_vm0, %v9555_v1 }
  0x52   : > { %624 = vst.msk [vmem:[#allocation4 + $0x1b0] sm:$0xff] %vm483_vm0, %v9555_v1  ;;  %625 = vst.msk [vmem:[#allocation4 + $0x1b8] sm:$0xff] %vm483_vm0, %v9555_v1 }
  0x53   : > { %627 = vst.msk [vmem:[#allocation4 + $0x1c8] sm:$0xff] %vm483_vm0, %v9555_v1  ;;  %628 = vst.msk [vmem:[#allocation4 + $0x1d0] sm:$0xff] %vm483_vm0, %v9555_v1 }
  0x54   : > { %630 = vst.msk [vmem:[#allocation4 + $0x1e0] sm:$0xff] %vm483_vm0, %v9555_v1  ;;  %631 = vst.msk [vmem:[#allocation4 + $0x1e8] sm:$0xff] %vm483_vm0, %v9555_v1 }
  0x55   : > { %633 = vst.msk [vmem:[#allocation4 + $0x1f8] sm:$0xff] %vm483_vm0, %v9555_v1  ;;  %634 = vst.msk [vmem:[#allocation4 + $0x200] sm:$0xff] %vm483_vm0, %v9555_v1 }
  0x56   : > { %8801 = vmatmul.mubr.msk.bf16.gmra.mrb[24].mxu0 %vm699_vm1, %v681_v45  ;;  %490 = vst.msk [vmem:[#allocation2 + $0x28] sm:$0x3] %vm486_vm2, %v9555_v1  ;;  %487 = vst.msk [vmem:[#allocation2 + $0x10] sm:$0x3] %vm486_vm2, %v9555_v1 }
  0x57   : > { %8804 = vmatprep.mubr.msk.bf16.mxu0 %vm699_vm1, %v682_v46  ;;  %493 = vst.msk [vmem:[#allocation2 + $0x40] sm:$0x3] %vm486_vm2, %v9555_v1  ;;  %496 = vst.msk [vmem:[#allocation2 + $0x58] sm:$0x3] %vm486_vm2, %v9555_v1 }
  0x58   : > { %499 = vst.msk [vmem:[#allocation2 + $0x70] sm:$0x3] %vm486_vm2, %v9555_v1  ;;  %502 = vst.msk [vmem:[#allocation2 + $0x88] sm:$0x3] %vm486_vm2, %v9555_v1 }
  0x59   : > { %505 = vst.msk [vmem:[#allocation2 + $0xa0] sm:$0x3] %vm486_vm2, %v9555_v1  ;;  %508 = vst.msk [vmem:[#allocation2 + $0xb8] sm:$0x3] %vm486_vm2, %v9555_v1 }
  0x5a   : > { %511 = vst.msk [vmem:[#allocation2 + $0xd0] sm:$0x3] %vm486_vm2, %v9555_v1  ;;  %514 = vst.msk [vmem:[#allocation2 + $0xe8] sm:$0x3] %vm486_vm2, %v9555_v1 }
  0x5b   : > { %517 = vst.msk [vmem:[#allocation2 + $0x100] sm:$0x3] %vm486_vm2, %v9555_v1  ;;  %520 = vst.msk [vmem:[#allocation2 + $0x118] sm:$0x3] %vm486_vm2, %v9555_v1 }
  0x5c   : > { %523 = vst.msk [vmem:[#allocation2 + $0x130] sm:$0x3] %vm486_vm2, %v9555_v1  ;;  %526 = vst.msk [vmem:[#allocation2 + $0x148] sm:$0x3] %vm486_vm2, %v9555_v1 }
  0x5d   : > { %529 = vst.msk [vmem:[#allocation2 + $0x160] sm:$0x3] %vm486_vm2, %v9555_v1  ;;  %532 = vst.msk [vmem:[#allocation2 + $0x178] sm:$0x3] %vm486_vm2, %v9555_v1 }
  0x5e   : > { %8805 = vmatmul.mubr.msk.bf16.gmra.mrb[28].mxu0 %vm699_vm1, %v683_v49  ;;  %vm11377_vm8 = vmpackc.low %vm3957_vm7, %vm3957_vm7  ;;  %572 = vst.msk [vmem:[#allocation4 + $0x10] sm:$0x3f] %vm571_vm9, %v9555_v1 }
  0x5f   : > { %575 = vst.msk [vmem:[#allocation4 + $0x28] sm:$0x3f] %vm571_vm9, %v9555_v1  ;;  %578 = vst.msk [vmem:[#allocation4 + $0x40] sm:$0x3f] %vm571_vm9, %v9555_v1 }
  0x60   : > { %581 = vst.msk [vmem:[#allocation4 + $0x58] sm:$0x3f] %vm571_vm9, %v9555_v1  ;;  %584 = vst.msk [vmem:[#allocation4 + $0x70] sm:$0x3f] %vm571_vm9, %v9555_v1 }
  0x61   : > { %587 = vst.msk [vmem:[#allocation4 + $0x88] sm:$0x3f] %vm571_vm9, %v9555_v1  ;;  %590 = vst.msk [vmem:[#allocation4 + $0xa0] sm:$0x3f] %vm571_vm9, %v9555_v1 }
  0x62   : > { %593 = vst.msk [vmem:[#allocation4 + $0xb8] sm:$0x3f] %vm571_vm9, %v9555_v1  ;;  %596 = vst.msk [vmem:[#allocation4 + $0xd0] sm:$0x3f] %vm571_vm9, %v9555_v1 }
  0x63   : > { %599 = vst.msk [vmem:[#allocation4 + $0xe8] sm:$0x3f] %vm571_vm9, %v9555_v1  ;;  %602 = vst.msk [vmem:[#allocation4 + $0x100] sm:$0x3f] %vm571_vm9, %v9555_v1 }
  0x64   : > { %605 = vst.msk [vmem:[#allocation4 + $0x118] sm:$0x3f] %vm571_vm9, %v9555_v1  ;;  %608 = vst.msk [vmem:[#allocation4 + $0x130] sm:$0x3f] %vm571_vm9, %v9555_v1 }
  0x65   : > { %611 = vst.msk [vmem:[#allocation4 + $0x148] sm:$0x3f] %vm571_vm9, %v9555_v1  ;;  %614 = vst.msk [vmem:[#allocation4 + $0x160] sm:$0x3f] %vm571_vm9, %v9555_v1 }
  0x66   : > { %617 = vst.msk [vmem:[#allocation4 + $0x178] sm:$0x3f] %vm571_vm9, %v9555_v1  ;;  %620 = vst.msk [vmem:[#allocation4 + $0x190] sm:$0x3f] %vm571_vm9, %v9555_v1 }
  0x67   : > { %623 = vst.msk [vmem:[#allocation4 + $0x1a8] sm:$0x3f] %vm571_vm9, %v9555_v1  ;;  %626 = vst.msk [vmem:[#allocation4 + $0x1c0] sm:$0x3f] %vm571_vm9, %v9555_v1 }
  0x68   : > { %629 = vst.msk [vmem:[#allocation4 + $0x1d8] sm:$0x3f] %vm571_vm9, %v9555_v1  ;;  %632 = vst.msk [vmem:[#allocation4 + $0x1f0] sm:$0x3f] %vm571_vm9, %v9555_v1 }
  0x69   : > { %635 = vst.msk [vmem:[#allocation4 + $0x208] sm:$0x3f] %vm571_vm9, %v9555_v1  ;;  %v6095_v1 = vld [vmem:[#allocation4 + $0x26] sm:$0xff] }
  0xf9   : > { %v8778_v52 = vpop.f32.mrb[0].mxu0 }
  0xfa   : > { %v791_v53 = vadd.f32 %v8778_v52, %v9982_v51  ;;  %v782_v54 = vpop.f32.mrb[1].mxu0 }
  0xfb   : > { %v783_v55 = vadd.f32 %v9982_v51, %v782_v54  ;;  %v8779_v56 = vpop.f32.mrb[2].mxu0 }
  0xfc   : > { %911 = vst.msk [vmem:[#allocation2 + $0x19] sm:$0xff] %vm483_vm0, %v791_v53  ;;  %v794_v58 = vadd.f32 %v8779_v56, %v9982_v51  ;;  %v785_v59 = vpop.f32.mrb[3].mxu0 }
  0xfd   : > { %909 = vst.msk [vmem:[#allocation2 + $0x1] sm:$0xff] %vm483_vm0, %v783_v55  ;;  %v786_v60 = vadd.f32 %v9982_v51, %v785_v59 }
  0xfe   : > { %912 = vst.msk [vmem:[#allocation2 + $0x21] sm:$0xff] %vm483_vm0, %v794_v58 }
  0xff   : > { %910 = vst.msk [vmem:[#allocation2 + $0x9] sm:$0xff] %vm483_vm0, %v786_v60 }
 0x101   : > { %v8782_v62 = vpop.f32.mrb[4].mxu0 }
 0x102   : > { %v807_v63 = vadd.f32 %v8782_v62, %v9982_v51  ;;  %v798_v0 = vpop.f32.mrb[5].mxu0 }
 0x103   : > { %v1007_v2 = vld [vmem:[#allocation2 + $0x19] sm:$0xff]  ;;  %v799_v3 = vadd.f32 %v9982_v51, %v798_v0  ;;  %v8783_v4 = vpop.f32.mrb[6].mxu0 }
 0x104   : > { %v943_v5 = vld [vmem:[#allocation2 + $0x18] sm:$0xff]  ;;  %1073 = vrot.lane.b32.xlu1 %v1007_v2, %s9556_s23  ;;  %915 = vst.msk [vmem:[#allocation2 + $0x49] sm:$0xff] %vm483_vm0, %v807_v63  ;;  %v1005_v7 = vld [vmem:[#allocation2 + $0x1] sm:$0xff]  ;;  %v810_v8 = vadd.f32 %v8783_v4, %v9982_v51  ;;  %v801_v9 = vpop.f32.mrb[7].mxu0 }
 0x105   : > { %975 = vst.msk [vmem:[#allocation5 + $0x30] sm:$0xff] %vm483_vm0, %v943_v5  ;;  %v941_v10 = vld [vmem:[#allocation2] sm:$0xff]  ;;  %1069 = vrot.lane.b32.xlu0 %v1005_v7, %s9556_s23  ;;  %913 = vst.msk [vmem:[#allocation2 + $0x31] sm:$0xff] %vm483_vm0, %v799_v3  ;;  %v802_v11 = vadd.f32 %v9982_v51, %v801_v9 }
 0x106   : > { %973 = vst.msk [vmem:[#allocation5] sm:$0xff] %vm483_vm0, %v941_v10  ;;  %916 = vst.msk [vmem:[#allocation2 + $0x51] sm:$0xff] %vm483_vm0, %v810_v8  ;;  %v1008_v12 = vld [vmem:[#allocation2 + $0x21] sm:$0xff]  ;;  %v1006_v25 = vld [vmem:[#allocation2 + $0x9] sm:$0xff] }
 0x107   : > { %914 = vst.msk [vmem:[#allocation2 + $0x39] sm:$0xff] %vm483_vm0, %v802_v11  ;;  %v944_v13 = vld [vmem:[#allocation2 + $0x20] sm:$0xff]  ;;  %v942_v14 = vld [vmem:[#allocation2 + $0x8] sm:$0xff] }
 0x108   : > { %1075 = vrot.lane.b32.xlu1 %v1008_v12, %s9556_s23  ;;  %v1200_v16 = vld [vmem:[#allocation2 + $0x1a] sm:$0xff]  ;;  %976 = vst.msk [vmem:[#allocation5 + $0x48] sm:$0xff] %vm483_vm0, %v944_v13  ;;  %974 = vst.msk [vmem:[#allocation5 + $0x18] sm:$0xff] %vm483_vm0, %v942_v14  ;;  %v1201_v20 = vld [vmem:[#allocation2 + $0x22] sm:$0xff] }
 0x109   : > { %1266 = vrot.lane.b32.xlu0 %v1200_v16, %s9557_s26  ;;  %v8786_v17 = vpop.f32.mrb[8].mxu0  ;;  %v1199_v30 = vld [vmem:[#allocation2 + $0xa] sm:$0xff]  ;;  %v1198_v33 = vld [vmem:[#allocation2 + $0x2] sm:$0xff] }
 0x10a   : > { %v823_v18 = vadd.f32 %v8786_v17, %v9982_v51  ;;  %v814_v19 = vpop.f32.mrb[9].mxu0 }
 0x10b   : > { %v815_v21 = vadd.f32 %v9982_v51, %v814_v19  ;;  %v8787_v22 = vpop.f32.mrb[10].mxu0  ;;  %v947_v23 = vld [vmem:[#allocation2 + $0x48] sm:$0xff] }
 0x10c   : > { %1268 = vrot.lane.b32.xlu1 %v1201_v20, %s9557_s26  ;;  %919 = vst.msk [vmem:[#allocation2 + $0x79] sm:$0xff] %vm483_vm0, %v823_v18  ;;  %v826_v26 = vadd.f32 %v8787_v22, %v9982_v51  ;;  %v817_v27 = vpop.f32.mrb[11].mxu0  ;;  %979 = vst.msk [vmem:[#allocation5 + $0x90] sm:$0xff] %vm483_vm0, %v947_v23  ;;  %v945_v28 = vld [vmem:[#allocation2 + $0x30] sm:$0xff] }
 0x10d   : > { %1071 = vrot.lane.b32.xlu0 %v1006_v25, %s9556_s23  ;;  %917 = vst.msk [vmem:[#allocation2 + $0x61] sm:$0xff] %vm483_vm0, %v815_v21  ;;  %v818_v29 = vadd.f32 %v9982_v51, %v817_v27  ;;  %977 = vst.msk [vmem:[#allocation5 + $0x60] sm:$0xff] %vm483_vm0, %v945_v28  ;;  %v948_v31 = vld [vmem:[#allocation2 + $0x50] sm:$0xff] }
 0x10e   : > { %920 = vst.msk [vmem:[#allocation2 + $0x81] sm:$0xff] %vm483_vm0, %v826_v26  ;;  %v946_v32 = vld [vmem:[#allocation2 + $0x38] sm:$0xff]  ;;  %980 = vst.msk [vmem:[#allocation5 + $0xa8] sm:$0xff] %vm483_vm0, %v948_v31  ;;  %v1011_v41 = vld [vmem:[#allocation2 + $0x49] sm:$0xff] }
 0x10f   : > { %918 = vst.msk [vmem:[#allocation2 + $0x69] sm:$0xff] %vm483_vm0, %v818_v29  ;;  %978 = vst.msk [vmem:[#allocation5 + $0x78] sm:$0xff] %vm483_vm0, %v946_v32  ;;  %v1012_v34 = vld [vmem:[#allocation2 + $0x51] sm:$0xff]  ;;  %v1010_v54 = vld [vmem:[#allocation2 + $0x39] sm:$0xff] }
 0x110   : > { %1264 = vrot.lane.b32.xlu1 %v1199_v30, %s9557_s26  ;;  %v1205_v46 = vld [vmem:[#allocation2 + $0x52] sm:$0xff]  ;;  %v1204_v58 = vld [vmem:[#allocation2 + $0x4a] sm:$0xff]  ;;  %v1203_v63 = vld [vmem:[#allocation2 + $0x3a] sm:$0xff] }
 0x111   : > { %1262 = vrot.lane.b32.xlu0 %v1198_v33, %s9557_s26  ;;  %v8790_v35 = vpop.f32.mrb[12].mxu0  ;;  %v1009_v49 = vld [vmem:[#allocation2 + $0x31] sm:$0xff] }
 0x112   : > { %v839_v36 = vadd.f32 %v8790_v35, %v9982_v51  ;;  %v830_v37 = vpop.f32.mrb[13].mxu0  ;;  %v1202_v3 = vld [vmem:[#allocation2 + $0x32] sm:$0xff] }
 0x113   : > { %v831_v38 = vadd.f32 %v9982_v51, %v830_v37  ;;  %v8791_v39 = vpop.f32.mrb[14].mxu0  ;;  %v951_v40 = vld [vmem:[#allocation2 + $0x78] sm:$0xff] }
 0x114   : > { %1083 = vrot.lane.b32.xlu1 %v1012_v34, %s9556_s23  ;;  %923 = vst.msk [vmem:[#allocation2 + $0xa9] sm:$0xff] %vm483_vm0, %v839_v36  ;;  %v842_v42 = vadd.f32 %v8791_v39, %v9982_v51  ;;  %v833_v43 = vpop.f32.mrb[15].mxu0  ;;  %983 = vst.msk [vmem:[#allocation5 + $0xf0] sm:$0xff] %vm483_vm0, %v951_v40  ;;  %v949_v44 = vld [vmem:[#allocation2 + $0x60] sm:$0xff] }
 0x115   : > { %1081 = vrot.lane.b32.xlu0 %v1011_v41, %s9556_s23  ;;  %921 = vst.msk [vmem:[#allocation2 + $0x91] sm:$0xff] %vm483_vm0, %v831_v38  ;;  %v834_v45 = vadd.f32 %v9982_v51, %v833_v43  ;;  %981 = vst.msk [vmem:[#allocation5 + $0xc0] sm:$0xff] %vm483_vm0, %v949_v44  ;;  %v952_v47 = vld [vmem:[#allocation2 + $0x80] sm:$0xff] }
 0x116   : > { %924 = vst.msk [vmem:[#allocation2 + $0xb1] sm:$0xff] %vm483_vm0, %v842_v42  ;;  %v950_v48 = vld [vmem:[#allocation2 + $0x68] sm:$0xff]  ;;  %984 = vst.msk [vmem:[#allocation5 + $0x108] sm:$0xff] %vm483_vm0, %v952_v47  ;;  %v1015_v11 = vld [vmem:[#allocation2 + $0x79] sm:$0xff] }
 0x117   : > { %922 = vst.msk [vmem:[#allocation2 + $0x99] sm:$0xff] %vm483_vm0, %v834_v45  ;;  %982 = vst.msk [vmem:[#allocation5 + $0xd8] sm:$0xff] %vm483_vm0, %v950_v48  ;;  %v1016_v4 = vld [vmem:[#allocation2 + $0x81] sm:$0xff]  ;;  %v1014_v23 = vld [vmem:[#allocation2 + $0x69] sm:$0xff] }
 0x118   : > { %1276 = vrot.lane.b32.xlu1 %v1205_v46, %s9557_s26  ;;  %v1209_v16 = vld [vmem:[#allocation2 + $0x82] sm:$0xff]  ;;  %v1208_v27 = vld [vmem:[#allocation2 + $0x7a] sm:$0xff]  ;;  %v1207_v32 = vld [vmem:[#allocation2 + $0x6a] sm:$0xff] }
 0x119   : > { %1077 = vrot.lane.b32.xlu0 %v1009_v49, %s9556_s23  ;;  %v8794_v50 = vpop.f32.mrb[16].mxu0  ;;  %v1013_v19 = vld [vmem:[#allocation2 + $0x61] sm:$0xff] }
 0x11a   : > { %v855_v52 = vadd.f32 %v8794_v50, %v9982_v51  ;;  %v846_v53 = vpop.f32.mrb[17].mxu0  ;;  %v1206_v35 = vld [vmem:[#allocation2 + $0x62] sm:$0xff] }
 0x11b   : > { %v847_v55 = vadd.f32 %v9982_v51, %v846_v53  ;;  %v8795_v56 = vpop.f32.mrb[18].mxu0  ;;  %v955_v57 = vld [vmem:[#allocation2 + $0xa8] sm:$0xff] }
 0x11c   : > { %1079 = vrot.lane.b32.xlu1 %v1010_v54, %s9556_s23  ;;  %927 = vst.msk [vmem:[#allocation2 + $0xd9] sm:$0xff] %vm483_vm0, %v855_v52  ;;  %v858_v59 = vadd.f32 %v8795_v56, %v9982_v51  ;;  %v849_v60 = vpop.f32.mrb[19].mxu0  ;;  %987 = vst.msk [vmem:[#allocation5 + $0x150] sm:$0xff] %vm483_vm0, %v955_v57  ;;  %v953_v61 = vld [vmem:[#allocation2 + $0x90] sm:$0xff] }
 0x11d   : > { %1274 = vrot.lane.b32.xlu0 %v1204_v58, %s9557_s26  ;;  %925 = vst.msk [vmem:[#allocation2 + $0xc1] sm:$0xff] %vm483_vm0, %v847_v55  ;;  %v850_v62 = vadd.f32 %v9982_v51, %v849_v60  ;;  %985 = vst.msk [vmem:[#allocation5 + $0x120] sm:$0xff] %vm483_vm0, %v953_v61  ;;  %v956_v0 = vld [vmem:[#allocation2 + $0xb0] sm:$0xff] }
 0x11e   : > { %928 = vst.msk [vmem:[#allocation2 + $0xe1] sm:$0xff] %vm483_vm0, %v858_v59  ;;  %v954_v2 = vld [vmem:[#allocation2 + $0x98] sm:$0xff]  ;;  %988 = vst.msk [vmem:[#allocation5 + $0x168] sm:$0xff] %vm483_vm0, %v956_v0  ;;  %v1019_v43 = vld [vmem:[#allocation2 + $0xa9] sm:$0xff] }
 0x11f   : > { %926 = vst.msk [vmem:[#allocation2 + $0xc9] sm:$0xff] %vm483_vm0, %v850_v62  ;;  %986 = vst.msk [vmem:[#allocation5 + $0x138] sm:$0xff] %vm483_vm0, %v954_v2  ;;  %v1020_v36 = vld [vmem:[#allocation2 + $0xb1] sm:$0xff]  ;;  %v1018_v53 = vld [vmem:[#allocation2 + $0x99] sm:$0xff] }
 0x120   : > { %1272 = vrot.lane.b32.xlu1 %v1203_v63, %s9557_s26  ;;  %v1213_v48 = vld [vmem:[#allocation2 + $0xb2] sm:$0xff]  ;;  %v1212_v54 = vld [vmem:[#allocation2 + $0xaa] sm:$0xff]  ;;  %v1211_v56 = vld [vmem:[#allocation2 + $0x9a] sm:$0xff] }
 0x121   : > { %1270 = vrot.lane.b32.xlu0 %v1202_v3, %s9557_s26  ;;  %v8798_v5 = vpop.f32.mrb[20].mxu0  ;;  %v1017_v52 = vld [vmem:[#allocation2 + $0x91] sm:$0xff] }
 0x122   : > { %v871_v6 = vadd.f32 %v8798_v5, %v9982_v51  ;;  %v862_v7 = vpop.f32.mrb[21].mxu0  ;;  %v1210_v59 = vld [vmem:[#allocation2 + $0x92] sm:$0xff] }
 0x123   : > { %v863_v8 = vadd.f32 %v9982_v51, %v862_v7  ;;  %v8799_v9 = vpop.f32.mrb[22].mxu0  ;;  %v959_v10 = vld [vmem:[#allocation2 + $0xd8] sm:$0xff] }
 0x124   : > { %1091 = vrot.lane.b32.xlu1 %v1016_v4, %s9556_s23  ;;  %931 = vst.msk [vmem:[#allocation2 + $0x109] sm:$0xff] %vm483_vm0, %v871_v6  ;;  %v874_v12 = vadd.f32 %v8799_v9, %v9982_v51  ;;  %v865_v13 = vpop.f32.mrb[23].mxu0  ;;  %991 = vst.msk [vmem:[#allocation5 + $0x1b0] sm:$0xff] %vm483_vm0, %v959_v10  ;;  %v957_v14 = vld [vmem:[#allocation2 + $0xc0] sm:$0xff] }
 0x125   : > { %1089 = vrot.lane.b32.xlu0 %v1015_v11, %s9556_s23  ;;  %929 = vst.msk [vmem:[#allocation2 + $0xf1] sm:$0xff] %vm483_vm0, %v863_v8  ;;  %v866_v15 = vadd.f32 %v9982_v51, %v865_v13  ;;  %989 = vst.msk [vmem:[#allocation5 + $0x180] sm:$0xff] %vm483_vm0, %v957_v14  ;;  %v960_v17 = vld [vmem:[#allocation2 + $0xe0] sm:$0xff] }
 0x126   : > { %932 = vst.msk [vmem:[#allocation2 + $0x111] sm:$0xff] %vm483_vm0, %v874_v12  ;;  %v958_v18 = vld [vmem:[#allocation2 + $0xc8] sm:$0xff]  ;;  %992 = vst.msk [vmem:[#allocation5 + $0x1c8] sm:$0xff] %vm483_vm0, %v960_v17  ;;  %v1023_v61 = vld [vmem:[#allocation2 + $0xd9] sm:$0xff] }
 0x127   : > { %930 = vst.msk [vmem:[#allocation2 + $0xf9] sm:$0xff] %vm483_vm0, %v866_v15  ;;  %990 = vst.msk [vmem:[#allocation5 + $0x198] sm:$0xff] %vm483_vm0, %v958_v18  ;;  %v1024_v60 = vld [vmem:[#allocation2 + $0xe1] sm:$0xff]  ;;  %v1022_v62 = vld [vmem:[#allocation2 + $0xc9] sm:$0xff] }
 0x128   : > { %1284 = vrot.lane.b32.xlu1 %v1209_v16, %s9557_s26  ;;  %v1021_v63 = vld [vmem:[#allocation2 + $0xc1] sm:$0xff]  ;;  %v1215_v0 = vld [vmem:[#allocation2 + $0xca] sm:$0xff] }
 0x129   : > { %1085 = vrot.lane.b32.xlu0 %v1013_v19, %s9556_s23  ;;  %v8802_v20 = vpop.f32.mrb[24].mxu0  ;;  %v1214_v2 = vld [vmem:[#allocation2 + $0xc2] sm:$0xff]  ;;  %v1216_v4 = vld [vmem:[#allocation2 + $0xda] sm:$0xff] }
 0x12a   : > { %v887_v21 = vadd.f32 %v8802_v20, %v9982_v51  ;;  %v878_v22 = vpop.f32.mrb[25].mxu0  ;;  %v1217_v3 = vld [vmem:[#allocation2 + $0xe2] sm:$0xff] }
 0x12b   : > { %v879_v24 = vadd.f32 %v9982_v51, %v878_v22  ;;  %v8803_v25 = vpop.f32.mrb[26].mxu0  ;;  %v963_v26 = vld [vmem:[#allocation2 + $0x108] sm:$0xff] }
 0x12c   : > { %1087 = vrot.lane.b32.xlu1 %v1014_v23, %s9556_s23  ;;  %935 = vst.msk [vmem:[#allocation2 + $0x139] sm:$0xff] %vm483_vm0, %v887_v21  ;;  %v890_v28 = vadd.f32 %v8803_v25, %v9982_v51  ;;  %v881_v29 = vpop.f32.mrb[27].mxu0  ;;  %995 = vst.msk [vmem:[#allocation5 + $0x210] sm:$0xff] %vm483_vm0, %v963_v26  ;;  %v961_v30 = vld [vmem:[#allocation2 + $0xf0] sm:$0xff] }
 0x12d   : > { %1282 = vrot.lane.b32.xlu0 %v1208_v27, %s9557_s26  ;;  %933 = vst.msk [vmem:[#allocation2 + $0x121] sm:$0xff] %vm483_vm0, %v879_v24  ;;  %v882_v31 = vadd.f32 %v9982_v51, %v881_v29  ;;  %993 = vst.msk [vmem:[#allocation5 + $0x1e0] sm:$0xff] %vm483_vm0, %v961_v30  ;;  %v964_v33 = vld [vmem:[#allocation2 + $0x110] sm:$0xff] }
 0x12e   : > { %936 = vst.msk [vmem:[#allocation2 + $0x141] sm:$0xff] %vm483_vm0, %v890_v28  ;;  %v962_v34 = vld [vmem:[#allocation2 + $0xf8] sm:$0xff]  ;;  %996 = vst.msk [vmem:[#allocation5 + $0x228] sm:$0xff] %vm483_vm0, %v964_v33  ;;  %v1027_v6 = vld [vmem:[#allocation2 + $0x109] sm:$0xff] }
 0x12f   : > { %934 = vst.msk [vmem:[#allocation2 + $0x129] sm:$0xff] %vm483_vm0, %v882_v31  ;;  %994 = vst.msk [vmem:[#allocation5 + $0x1f8] sm:$0xff] %vm483_vm0, %v962_v34  ;;  %v1028_v5 = vld [vmem:[#allocation2 + $0x111] sm:$0xff]  ;;  %v1026_v9 = vld [vmem:[#allocation2 + $0xf9] sm:$0xff] }
 0x130   : > { %1280 = vrot.lane.b32.xlu1 %v1207_v32, %s9557_s26  ;;  %v1221_v7 = vld [vmem:[#allocation2 + $0x112] sm:$0xff]  ;;  %v1220_v10 = vld [vmem:[#allocation2 + $0x10a] sm:$0xff]  ;;  %v1219_v11 = vld [vmem:[#allocation2 + $0xfa] sm:$0xff] }
 0x131   : > { %1278 = vrot.lane.b32.xlu0 %v1206_v35, %s9557_s26  ;;  %v8806_v37 = vpop.f32.mrb[28].mxu0  ;;  %v1025_v8 = vld [vmem:[#allocation2 + $0xf1] sm:$0xff] }
 0x132   : > { %v903_v38 = vadd.f32 %v8806_v37, %v9982_v51  ;;  %v894_v39 = vpop.f32.mrb[29].mxu0  ;;  %v1218_v12 = vld [vmem:[#allocation2 + $0xf2] sm:$0xff] }
 0x133   : > { %v895_v40 = vadd.f32 %v9982_v51, %v894_v39  ;;  %v8807_v41 = vpop.f32.mrb[30].mxu0  ;;  %v967_v42 = vld [vmem:[#allocation2 + $0x138] sm:$0xff] }
 0x134   : > { %1099 = vrot.lane.b32.xlu1 %v1020_v36, %s9556_s23  ;;  %939 = vst.msk [vmem:[#allocation2 + $0x169] sm:$0xff] %vm483_vm0, %v903_v38  ;;  %v906_v44 = vadd.f32 %v8807_v41, %v9982_v51  ;;  %v897_v45 = vpop.f32.mrb[31].mxu0  ;;  %999 = vst.msk [vmem:[#allocation5 + $0x270] sm:$0xff] %vm483_vm0, %v967_v42  ;;  %v965_v46 = vld [vmem:[#allocation2 + $0x120] sm:$0xff] }
 0x135   : > { %1097 = vrot.lane.b32.xlu0 %v1019_v43, %s9556_s23  ;;  %937 = vst.msk [vmem:[#allocation2 + $0x151] sm:$0xff] %vm483_vm0, %v895_v40  ;;  %v898_v47 = vadd.f32 %v9982_v51, %v897_v45  ;;  %997 = vst.msk [vmem:[#allocation5 + $0x240] sm:$0xff] %vm483_vm0, %v965_v46  ;;  %v968_v49 = vld [vmem:[#allocation2 + $0x140] sm:$0xff] }
 0x136   : > { %940 = vst.msk [vmem:[#allocation2 + $0x171] sm:$0xff] %vm483_vm0, %v906_v44  ;;  %v966_v50 = vld [vmem:[#allocation2 + $0x128] sm:$0xff]  ;;  %1000 = vst.msk [vmem:[#allocation5 + $0x288] sm:$0xff] %vm483_vm0, %v968_v49  ;;  %v1031_v14 = vld [vmem:[#allocation2 + $0x139] sm:$0xff] }
 0x137   : > { %938 = vst.msk [vmem:[#allocation2 + $0x159] sm:$0xff] %vm483_vm0, %v898_v47  ;;  %998 = vst.msk [vmem:[#allocation5 + $0x258] sm:$0xff] %vm483_vm0, %v966_v50  ;;  %v1032_v13 = vld [vmem:[#allocation2 + $0x141] sm:$0xff]  ;;  %v1030_v17 = vld [vmem:[#allocation2 + $0x129] sm:$0xff] }
 0x138   : > { %1292 = vrot.lane.b32.xlu1 %v1213_v48, %s9557_s26  ;;  %v1225_v15 = vld [vmem:[#allocation2 + $0x142] sm:$0xff]  ;;  %v1224_v18 = vld [vmem:[#allocation2 + $0x13a] sm:$0xff]  ;;  %v1223_v19 = vld [vmem:[#allocation2 + $0x12a] sm:$0xff] }
 0x139   : > { %1093 = vrot.lane.b32.xlu0 %v1017_v52, %s9556_s23  ;;  %v1029_v16 = vld [vmem:[#allocation2 + $0x121] sm:$0xff] }
 0x13a   : > { %v1222_v20 = vld [vmem:[#allocation2 + $0x122] sm:$0xff] }
 0x13b   : > { %v971_v51 = vld [vmem:[#allocation2 + $0x168] sm:$0xff] }
 0x13c   : > { %1095 = vrot.lane.b32.xlu1 %v1018_v53, %s9556_s23  ;;  %1003 = vst.msk [vmem:[#allocation5 + $0x2d0] sm:$0xff] %vm483_vm0, %v971_v51  ;;  %v969_v55 = vld [vmem:[#allocation2 + $0x150] sm:$0xff] }
 0x13d   : > { %1290 = vrot.lane.b32.xlu0 %v1212_v54, %s9557_s26  ;;  %1001 = vst.msk [vmem:[#allocation5 + $0x2a0] sm:$0xff] %vm483_vm0, %v969_v55  ;;  %v972_v57 = vld [vmem:[#allocation2 + $0x170] sm:$0xff] }
 0x13e   : > { %v970_v58 = vld [vmem:[#allocation2 + $0x158] sm:$0xff]  ;;  %1004 = vst.msk [vmem:[#allocation5 + $0x2e8] sm:$0xff] %vm483_vm0, %v972_v57  ;;  %v1035_v22 = vld [vmem:[#allocation2 + $0x169] sm:$0xff] }
 0x13f   : > { %1002 = vst.msk [vmem:[#allocation5 + $0x2b8] sm:$0xff] %vm483_vm0, %v970_v58  ;;  %v1036_v21 = vld [vmem:[#allocation2 + $0x171] sm:$0xff]  ;;  %v1034_v25 = vld [vmem:[#allocation2 + $0x159] sm:$0xff] }
 0x140   : > { %1288 = vrot.lane.b32.xlu1 %v1211_v56, %s9557_s26  ;;  %v1033_v26 = vld [vmem:[#allocation2 + $0x151] sm:$0xff]  ;;  %v1227_v29 = vld [vmem:[#allocation2 + $0x15a] sm:$0xff] }
 0x141   : > { %1286 = vrot.lane.b32.xlu0 %v1210_v59, %s9557_s26  ;;  %v1226_v30 = vld [vmem:[#allocation2 + $0x152] sm:$0xff]  ;;  %v1228_v34 = vld [vmem:[#allocation2 + $0x16a] sm:$0xff] }
 0x142   : > { %v1229_v33 = vld [vmem:[#allocation2 + $0x172] sm:$0xff] }
 0x144   : > { %1107 = vrot.lane.b32.xlu1 %v1024_v60, %s9556_s23 }
 0x145   : > { %1105 = vrot.lane.b32.xlu0 %v1023_v61, %s9556_s23 }
 0x148   : > { %1103 = vrot.lane.b32.xlu1 %v1022_v62, %s9556_s23 }
 0x149   : > { %1101 = vrot.lane.b32.xlu0 %v1021_v63, %s9556_s23 }
 0x14c   : > { %1296 = vrot.lane.b32.xlu1 %v1215_v0, %s9557_s26 }
 0x14d   : > { %1294 = vrot.lane.b32.xlu0 %v1214_v2, %s9557_s26 }
 0x150   : > { %1300 = vrot.lane.b32.xlu1 %v1217_v3, %s9557_s26 }
 0x151   : > { %1298 = vrot.lane.b32.xlu0 %v1216_v4, %s9557_s26 }
 0x154   : > { %1115 = vrot.lane.b32.xlu1 %v1028_v5, %s9556_s23 }
 0x155   : > { %1113 = vrot.lane.b32.xlu0 %v1027_v6, %s9556_s23 }
 0x158   : > { %1308 = vrot.lane.b32.xlu1 %v1221_v7, %s9557_s26 }
 0x159   : > { %1109 = vrot.lane.b32.xlu0 %v1025_v8, %s9556_s23 }
 0x15c   : > { %1111 = vrot.lane.b32.xlu1 %v1026_v9, %s9556_s23 }
 0x15d   : > { %1306 = vrot.lane.b32.xlu0 %v1220_v10, %s9557_s26 }
 0x160   : > { %1304 = vrot.lane.b32.xlu1 %v1219_v11, %s9557_s26 }
 0x161   : > { %1302 = vrot.lane.b32.xlu0 %v1218_v12, %s9557_s26 }
 0x164   : > { %1123 = vrot.lane.b32.xlu1 %v1032_v13, %s9556_s23 }
 0x165   : > { %1121 = vrot.lane.b32.xlu0 %v1031_v14, %s9556_s23 }
 0x168   : > { %1316 = vrot.lane.b32.xlu1 %v1225_v15, %s9557_s26 }
 0x169   : > { %1117 = vrot.lane.b32.xlu0 %v1029_v16, %s9556_s23 }
 0x16c   : > { %1119 = vrot.lane.b32.xlu1 %v1030_v17, %s9556_s23 }
 0x16d   : > { %1314 = vrot.lane.b32.xlu0 %v1224_v18, %s9557_s26 }
 0x170   : > { %1312 = vrot.lane.b32.xlu1 %v1223_v19, %s9557_s26 }
 0x171   : > { %1310 = vrot.lane.b32.xlu0 %v1222_v20, %s9557_s26 }
 0x174   : > { %1131 = vrot.lane.b32.xlu1 %v1036_v21, %s9556_s23 }
 0x175   : > { %1129 = vrot.lane.b32.xlu0 %v1035_v22, %s9556_s23 }
 0x176   : > { %v1074_v23 = vpop.permute.xlu1 %1073 }
 0x177   : > { %1168 = vst.msk [vmem:[#allocation5 + $0x30] sm:$0xff] %vm1165_vm3, %v1074_v23  ;;  %v1070_v24 = vpop.permute.xlu0 %1069 }
 0x178   : > { %1166 = vst.msk [vmem:[#allocation5] sm:$0xff] %vm1165_vm3, %v1070_v24  ;;  %1127 = vrot.lane.b32.xlu1 %v1034_v25, %s9556_s23 }
 0x179   : > { %1125 = vrot.lane.b32.xlu0 %v1033_v26, %s9556_s23 }
 0x17a   : > { %v1076_v27 = vpop.permute.xlu1 %1075 }
 0x17b   : > { %1169 = vst.msk [vmem:[#allocation5 + $0x48] sm:$0xff] %vm1165_vm3, %v1076_v27  ;;  %v1267_v28 = vpop.permute.xlu0 %1266 }
 0x17c   : > { %1361 = vst.msk [vmem:[#allocation5 + $0x30] sm:$0xff] %vm1358_vm4, %v1267_v28  ;;  %1320 = vrot.lane.b32.xlu1 %v1227_v29, %s9557_s26 }
 0x17d   : > { %1318 = vrot.lane.b32.xlu0 %v1226_v30, %s9557_s26 }
 0x17e   : > { %v1269_v31 = vpop.permute.xlu1 %1268 }
 0x17f   : > { %1362 = vst.msk [vmem:[#allocation5 + $0x48] sm:$0xff] %vm1358_vm4, %v1269_v31  ;;  %v1072_v32 = vpop.permute.xlu0 %1071 }
 0x180   : > { %1167 = vst.msk [vmem:[#allocation5 + $0x18] sm:$0xff] %vm1165_vm3, %v1072_v32  ;;  %1324 = vrot.lane.b32.xlu1 %v1229_v33, %s9557_s26 }
 0x181   : > { %1322 = vrot.lane.b32.xlu0 %v1228_v34, %s9557_s26 }
 0x182   : > { %v1265_v35 = vpop.permute.xlu1 %1264 }
 0x183   : > { %1360 = vst.msk [vmem:[#allocation5 + $0x18] sm:$0xff] %vm1358_vm4, %v1265_v35  ;;  %v1263_v36 = vpop.permute.xlu0 %1262  ;;  %v1393_v45 = vld [vmem:[#allocation5 + $0x30] sm:$0xff] }
 0x184   : > { %1359 = vst.msk [vmem:[#allocation5] sm:$0xff] %vm1358_vm4, %v1263_v36 }
 0x186   : > { %v1084_v37 = vpop.permute.xlu1 %1083  ;;  %v1394_v41 = vld [vmem:[#allocation5 + $0x48] sm:$0xff] }
 0x187   : > { %1173 = vst.msk [vmem:[#allocation5 + $0xa8] sm:$0xff] %vm1165_vm3, %v1084_v37  ;;  %v1082_v38 = vpop.permute.xlu0 %1081  ;;  %v1424_v46 = vpack.c.bf16 %v1394_v41, %v1393_v45 }
 0x188   : > { %1172 = vst.msk [vmem:[#allocation5 + $0x90] sm:$0xff] %vm1165_vm3, %v1082_v38 }
 0x18a   : > { %v1277_v39 = vpop.permute.xlu1 %1276  ;;  %v1392_v40 = vld [vmem:[#allocation5 + $0x18] sm:$0xff] }
 0x18b   : > { %1366 = vst.msk [vmem:[#allocation5 + $0xa8] sm:$0xff] %vm1358_vm4, %v1277_v39  ;;  %v1078_v42 = vpop.permute.xlu0 %1077  ;;  %v1391_v43 = vld [vmem:[#allocation5] sm:$0xff] }
 0x18c   : > { %1170 = vst.msk [vmem:[#allocation5 + $0x60] sm:$0xff] %vm1165_vm3, %v1078_v42  ;;  %v1423_v44 = vpack.c.bf16 %v1392_v40, %v1391_v43 }
 0x18e   : > { %v1080_v47 = vpop.permute.xlu1 %1079  ;;  %8820 = vmatprep.mubr.msk.bf16.mxu1 %vm1494_vm5, %v1423_v44 }
 0x18f   : > { %1171 = vst.msk [vmem:[#allocation5 + $0x78] sm:$0xff] %vm1165_vm3, %v1080_v47  ;;  %v1275_v48 = vpop.permute.xlu0 %1274  ;;  %8821 = vmatmul.mubr.msk.bf16.vlgmr.msra.gmra.mrb[0].mxu1 %vm1494_vm5, %v1424_v46 }
 0x190   : > { %1365 = vst.msk [vmem:[#allocation5 + $0x90] sm:$0xff] %vm1358_vm4, %v1275_v48 }
 0x192   : > { %v1273_v49 = vpop.permute.xlu1 %1272  ;;  %v1398_v59 = vld [vmem:[#allocation5 + $0xa8] sm:$0xff] }
 0x193   : > { %1364 = vst.msk [vmem:[#allocation5 + $0x78] sm:$0xff] %vm1358_vm4, %v1273_v49  ;;  %v1271_v50 = vpop.permute.xlu0 %1270 }
 0x194   : > { %1363 = vst.msk [vmem:[#allocation5 + $0x60] sm:$0xff] %vm1358_vm4, %v1271_v50 }
 0x196   : > { %v1092_v52 = vpop.permute.xlu1 %1091 }
 0x197   : > { %1177 = vst.msk [vmem:[#allocation5 + $0x108] sm:$0xff] %vm1165_vm3, %v1092_v52  ;;  %v1090_v53 = vpop.permute.xlu0 %1089  ;;  %v1397_v55 = vld [vmem:[#allocation5 + $0x90] sm:$0xff] }
 0x198   : > { %1176 = vst.msk [vmem:[#allocation5 + $0xf0] sm:$0xff] %vm1165_vm3, %v1090_v53  ;;  %v1426_v60 = vpack.c.bf16 %v1398_v59, %v1397_v55 }
 0x19a   : > { %v1285_v51 = vpop.permute.xlu1 %1284  ;;  %v1396_v54 = vld [vmem:[#allocation5 + $0x78] sm:$0xff] }
 0x19b   : > { %1370 = vst.msk [vmem:[#allocation5 + $0x108] sm:$0xff] %vm1358_vm4, %v1285_v51  ;;  %v1086_v56 = vpop.permute.xlu0 %1085  ;;  %v1395_v57 = vld [vmem:[#allocation5 + $0x60] sm:$0xff] }
 0x19c   : > { %1174 = vst.msk [vmem:[#allocation5 + $0xc0] sm:$0xff] %vm1165_vm3, %v1086_v56  ;;  %v1425_v58 = vpack.c.bf16 %v1396_v54, %v1395_v57 }
 0x19e   : > { %v1088_v61 = vpop.permute.xlu1 %1087  ;;  %8824 = vmatprep.mubr.msk.bf16.mxu1 %vm1494_vm5, %v1425_v58 }
 0x19f   : > { %1175 = vst.msk [vmem:[#allocation5 + $0xd8] sm:$0xff] %vm1165_vm3, %v1088_v61  ;;  %v1283_v62 = vpop.permute.xlu0 %1282  ;;  %8825 = vmatmul.mubr.msk.bf16.gmra.mrb[4].mxu1 %vm1494_vm5, %v1426_v60 }
 0x1a0   : > { %1369 = vst.msk [vmem:[#allocation5 + $0xf0] sm:$0xff] %vm1358_vm4, %v1283_v62 }
 0x1a2   : > { %v1281_v63 = vpop.permute.xlu1 %1280  ;;  %v1402_v10 = vld [vmem:[#allocation5 + $0x108] sm:$0xff] }
 0x1a3   : > { %1368 = vst.msk [vmem:[#allocation5 + $0xd8] sm:$0xff] %vm1358_vm4, %v1281_v63  ;;  %v1279_v0 = vpop.permute.xlu0 %1278 }
 0x1a4   : > { %1367 = vst.msk [vmem:[#allocation5 + $0xc0] sm:$0xff] %vm1358_vm4, %v1279_v0 }
 0x1a6   : > { %v1100_v2 = vpop.permute.xlu1 %1099 }
 0x1a7   : > { %1181 = vst.msk [vmem:[#allocation5 + $0x168] sm:$0xff] %vm1165_vm3, %v1100_v2  ;;  %v1098_v3 = vpop.permute.xlu0 %1097  ;;  %v1401_v6 = vld [vmem:[#allocation5 + $0xf0] sm:$0xff] }
 0x1a8   : > { %1180 = vst.msk [vmem:[#allocation5 + $0x150] sm:$0xff] %vm1165_vm3, %v1098_v3  ;;  %v1428_v11 = vpack.c.bf16 %v1402_v10, %v1401_v6 }
 0x1aa   : > { %v1293_v4 = vpop.permute.xlu1 %1292  ;;  %v1400_v5 = vld [vmem:[#allocation5 + $0xd8] sm:$0xff] }
 0x1ab   : > { %1374 = vst.msk [vmem:[#allocation5 + $0x168] sm:$0xff] %vm1358_vm4, %v1293_v4  ;;  %v1094_v7 = vpop.permute.xlu0 %1093  ;;  %v1399_v8 = vld [vmem:[#allocation5 + $0xc0] sm:$0xff] }
 0x1ac   : > { %1178 = vst.msk [vmem:[#allocation5 + $0x120] sm:$0xff] %vm1165_vm3, %v1094_v7  ;;  %v1427_v9 = vpack.c.bf16 %v1400_v5, %v1399_v8 }
 0x1ae   : > { %v1096_v12 = vpop.permute.xlu1 %1095  ;;  %8828 = vmatprep.mubr.msk.bf16.mxu1 %vm1494_vm5, %v1427_v9 }
 0x1af   : > { %1179 = vst.msk [vmem:[#allocation5 + $0x138] sm:$0xff] %vm1165_vm3, %v1096_v12  ;;  %v1291_v13 = vpop.permute.xlu0 %1290  ;;  %8829 = vmatmul.mubr.msk.bf16.gmra.mrb[8].mxu1 %vm1494_vm5, %v1428_v11 }
 0x1b0   : > { %1373 = vst.msk [vmem:[#allocation5 + $0x150] sm:$0xff] %vm1358_vm4, %v1291_v13 }
 0x1b2   : > { %v1289_v14 = vpop.permute.xlu1 %1288  ;;  %v1406_v24 = vld [vmem:[#allocation5 + $0x168] sm:$0xff] }
 0x1b3   : > { %1372 = vst.msk [vmem:[#allocation5 + $0x138] sm:$0xff] %vm1358_vm4, %v1289_v14  ;;  %v1287_v15 = vpop.permute.xlu0 %1286 }
 0x1b4   : > { %1371 = vst.msk [vmem:[#allocation5 + $0x120] sm:$0xff] %vm1358_vm4, %v1287_v15  ;;  %v9031_v15 = vld [vmem:[%s13102_s6] sm:$0xff]  }
 0x1b5   : > { %8852 = vmatprep.subr.bf16.mxu0 %v9031_v15 }
 0x1b6   : > { %v1108_v16 = vpop.permute.xlu1 %1107  ;;  %8853 = vmatpush3.bf16.msra.mxu0 %v9031_v15 }
 0x1b7   : > { %1185 = vst.msk [vmem:[#allocation5 + $0x1c8] sm:$0xff] %vm1165_vm3, %v1108_v16  ;;  %v1106_v17 = vpop.permute.xlu0 %1105  ;;  %v1405_v20 = vld [vmem:[#allocation5 + $0x150] sm:$0xff] }
 0x1b8   : > { %1184 = vst.msk [vmem:[#allocation5 + $0x1b0] sm:$0xff] %vm1165_vm3, %v1106_v17  ;;  %v1430_v25 = vpack.c.bf16 %v1406_v24, %v1405_v20  ;;  %v10245_v16 = vld [vmem:[%s13101_s5] ss:$0 sm:$0xff]  ;;  %v9032_v17 = vld [vmem:[%s13102_s6 + $0x8] sm:$0xff]  }
 0x1b9   : > { %8854 = vmatprep.subr.bf16.mxu0 %v9032_v17 }
 0x1ba   : > { %v1104_v18 = vpop.permute.xlu1 %1103  ;;  %v1404_v19 = vld [vmem:[#allocation5 + $0x138] sm:$0xff]  ;;  %8855 = vmatpush3.bf16.msra.mxu0 %v9032_v17 }
 0x1bb   : > { %1183 = vst.msk [vmem:[#allocation5 + $0x198] sm:$0xff] %vm1165_vm3, %v1104_v18  ;;  %v1102_v21 = vpop.permute.xlu0 %1101  ;;  %v1403_v22 = vld [vmem:[#allocation5 + $0x120] sm:$0xff] }
 0x1bc   : > { %1182 = vst.msk [vmem:[#allocation5 + $0x180] sm:$0xff] %vm1165_vm3, %v1102_v21  ;;  %v1429_v23 = vpack.c.bf16 %v1404_v19, %v1403_v22 }
 0x1be   : > { %v1297_v26 = vpop.permute.xlu1 %1296  ;;  %8832 = vmatprep.mubr.msk.bf16.mxu1 %vm1494_vm5, %v1429_v23 }
 0x1bf   : > { %1376 = vst.msk [vmem:[#allocation5 + $0x198] sm:$0xff] %vm1358_vm4, %v1297_v26  ;;  %v1295_v27 = vpop.permute.xlu0 %1294  ;;  %8833 = vmatmul.mubr.msk.bf16.gmra.mrb[12].mxu1 %vm1494_vm5, %v1430_v25  ;;  %v1737_v26 = vld [vmem:[#allocation3] sm:$0xff] }
 0x1c0   : > { %1375 = vst.msk [vmem:[#allocation5 + $0x180] sm:$0xff] %vm1358_vm4, %v1295_v27  ;;  %v1738_v27 = vld [vmem:[#allocation3 + $0x8] sm:$0xff] }
 0x1c1   : > { %1769 = vst.msk [vmem:[#allocation5] sm:$0xff] %vm483_vm0, %v1737_v26  ;;  %1770 = vst.msk [vmem:[#allocation5 + $0x18] sm:$0xff] %vm483_vm0, %v1738_v27 }
 0x1c2   : > { %v1301_v28 = vpop.permute.xlu1 %1300 }
 0x1c3   : > { %1378 = vst.msk [vmem:[#allocation5 + $0x1c8] sm:$0xff] %vm1358_vm4, %v1301_v28  ;;  %v1299_v29 = vpop.permute.xlu0 %1298  ;;  %v9033_v28 = vld [vmem:[%s13102_s6 + $0x10] sm:$0xff]  }
 0x1c4   : > { %1377 = vst.msk [vmem:[#allocation5 + $0x1b0] sm:$0xff] %vm1358_vm4, %v1299_v29  ;;  %8856 = vmatprep.subr.bf16.mxu0 %v9033_v28 }
 0x1c5   : > { %8857 = vmatpush3.bf16.msra.mxu0 %v9033_v28 }
 0x1c6   : > { %v1116_v30 = vpop.permute.xlu1 %1115  ;;  %v1408_v31 = vld [vmem:[#allocation5 + $0x198] sm:$0xff] }
 0x1c7   : > { %1189 = vst.msk [vmem:[#allocation5 + $0x228] sm:$0xff] %vm1165_vm3, %v1116_v30  ;;  %v1114_v32 = vpop.permute.xlu0 %1113  ;;  %v1407_v33 = vld [vmem:[#allocation5 + $0x180] sm:$0xff] }
 0x1c8   : > { %1188 = vst.msk [vmem:[#allocation5 + $0x210] sm:$0xff] %vm1165_vm3, %v1114_v32  ;;  %v1431_v34 = vpack.c.bf16 %v1408_v31, %v1407_v33 }
 0x1ca   : > { %v1309_v35 = vpop.permute.xlu1 %1308  ;;  %8836 = vmatprep.mubr.msk.bf16.mxu1 %vm1494_vm5, %v1431_v34  ;;  %v1410_v36 = vld [vmem:[#allocation5 + $0x1c8] sm:$0xff] }
 0x1cb   : > { %1382 = vst.msk [vmem:[#allocation5 + $0x228] sm:$0xff] %vm1358_vm4, %v1309_v35  ;;  %v1110_v37 = vpop.permute.xlu0 %1109  ;;  %v1409_v38 = vld [vmem:[#allocation5 + $0x1b0] sm:$0xff] }
 0x1cc   : > { %1186 = vst.msk [vmem:[#allocation5 + $0x1e0] sm:$0xff] %vm1165_vm3, %v1110_v37  ;;  %v1432_v39 = vpack.c.bf16 %v1410_v36, %v1409_v38  ;;  %v9034_v36 = vld [vmem:[%s13102_s6 + $0x18] sm:$0xff]  }
 0x1cd   : > { %8858 = vmatprep.subr.bf16.mxu0 %v9034_v36 }
 0x1ce   : > { %v1112_v40 = vpop.permute.xlu1 %1111  ;;  %8837 = vmatmul.mubr.msk.bf16.gmra.mrb[16].mxu1 %vm1494_vm5, %v1432_v39  ;;  %8859 = vmatpush3.bf16.msra.mxu0 %v9034_v36 }
 0x1cf   : > { %1187 = vst.msk [vmem:[#allocation5 + $0x1f8] sm:$0xff] %vm1165_vm3, %v1112_v40  ;;  %v1307_v41 = vpop.permute.xlu0 %1306 }
 0x1d0   : > { %1381 = vst.msk [vmem:[#allocation5 + $0x210] sm:$0xff] %vm1358_vm4, %v1307_v41 }
 0x1d2   : > { %v1305_v42 = vpop.permute.xlu1 %1304  ;;  %v1414_v53 = vld [vmem:[#allocation5 + $0x228] sm:$0xff] }
 0x1d3   : > { %1380 = vst.msk [vmem:[#allocation5 + $0x1f8] sm:$0xff] %vm1358_vm4, %v1305_v42  ;;  %v1303_v43 = vpop.permute.xlu0 %1302 }
 0x1d4   : > { %1379 = vst.msk [vmem:[#allocation5 + $0x1e0] sm:$0xff] %vm1358_vm4, %v1303_v43  ;;  %v9035_v43 = vld [vmem:[%s13102_s6 + $0x20] sm:$0xff]  }
 0x1d5   : > { %8860 = vmatprep.subr.bf16.mxu0 %v9035_v43 }
 0x1d6   : > { %v1124_v44 = vpop.permute.xlu1 %1123  ;;  %8861 = vmatpush3.bf16.msra.mxu0 %v9035_v43 }
 0x1d7   : > { %1193 = vst.msk [vmem:[#allocation5 + $0x288] sm:$0xff] %vm1165_vm3, %v1124_v44  ;;  %v1122_v45 = vpop.permute.xlu0 %1121  ;;  %v1413_v48 = vld [vmem:[#allocation5 + $0x210] sm:$0xff] }
 0x1d8   : > { %1192 = vst.msk [vmem:[#allocation5 + $0x270] sm:$0xff] %vm1165_vm3, %v1122_v45  ;;  %v1434_v51 = vpack.c.bf16 %v1414_v53, %v1413_v48 }
 0x1da   : > { %v1317_v46 = vpop.permute.xlu1 %1316  ;;  %v1412_v47 = vld [vmem:[#allocation5 + $0x1f8] sm:$0xff] }
 0x1db   : > { %1386 = vst.msk [vmem:[#allocation5 + $0x288] sm:$0xff] %vm1358_vm4, %v1317_v46  ;;  %v1118_v49 = vpop.permute.xlu0 %1117  ;;  %v1411_v50 = vld [vmem:[#allocation5 + $0x1e0] sm:$0xff] }
 0x1dc   : > { %1190 = vst.msk [vmem:[#allocation5 + $0x240] sm:$0xff] %vm1165_vm3, %v1118_v49  ;;  %v1433_v52 = vpack.c.bf16 %v1412_v47, %v1411_v50  ;;  %v9036_v47 = vld [vmem:[%s13102_s6 + $0x28] sm:$0xff]  }
 0x1dd   : > { %8862 = vmatprep.subr.bf16.mxu0 %v9036_v47 }
 0x1de   : > { %v1120_v54 = vpop.permute.xlu1 %1119  ;;  %8840 = vmatprep.mubr.msk.bf16.mxu1 %vm1494_vm5, %v1433_v52  ;;  %8863 = vmatpush3.bf16.msra.mxu0 %v9036_v47 }
 0x1df   : > { %1191 = vst.msk [vmem:[#allocation5 + $0x258] sm:$0xff] %vm1165_vm3, %v1120_v54  ;;  %v1315_v55 = vpop.permute.xlu0 %1314  ;;  %8841 = vmatmul.mubr.msk.bf16.gmra.mrb[20].mxu1 %vm1494_vm5, %v1434_v51 }
 0x1e0   : > { %1385 = vst.msk [vmem:[#allocation5 + $0x270] sm:$0xff] %vm1358_vm4, %v1315_v55 }
 0x1e2   : > { %v1313_v56 = vpop.permute.xlu1 %1312  ;;  %v1418_v3 = vld [vmem:[#allocation5 + $0x288] sm:$0xff] }
 0x1e3   : > { %1384 = vst.msk [vmem:[#allocation5 + $0x258] sm:$0xff] %vm1358_vm4, %v1313_v56  ;;  %v1311_v57 = vpop.permute.xlu0 %1310 }
 0x1e4   : > { %1383 = vst.msk [vmem:[#allocation5 + $0x240] sm:$0xff] %vm1358_vm4, %v1311_v57 }
 0x1e6   : > { %v1132_v58 = vpop.permute.xlu1 %1131 }
 0x1e7   : > { %1197 = vst.msk [vmem:[#allocation5 + $0x2e8] sm:$0xff] %vm1165_vm3, %v1132_v58  ;;  %v1130_v59 = vpop.permute.xlu0 %1129  ;;  %v1417_v62 = vld [vmem:[#allocation5 + $0x270] sm:$0xff] }
 0x1e8   : > { %1196 = vst.msk [vmem:[#allocation5 + $0x2d0] sm:$0xff] %vm1165_vm3, %v1130_v59  ;;  %v1436_v4 = vpack.c.bf16 %v1418_v3, %v1417_v62 }
 0x1ea   : > { %v1128_v60 = vpop.permute.xlu1 %1127  ;;  %v1416_v61 = vld [vmem:[#allocation5 + $0x258] sm:$0xff] }
 0x1eb   : > { %1195 = vst.msk [vmem:[#allocation5 + $0x2b8] sm:$0xff] %vm1165_vm3, %v1128_v60  ;;  %v1126_v63 = vpop.permute.xlu0 %1125  ;;  %v1415_v0 = vld [vmem:[#allocation5 + $0x240] sm:$0xff] }
 0x1ec   : > { %1194 = vst.msk [vmem:[#allocation5 + $0x2a0] sm:$0xff] %vm1165_vm3, %v1126_v63  ;;  %v1435_v2 = vpack.c.bf16 %v1416_v61, %v1415_v0 }
 0x1ee   : > { %v1321_v5 = vpop.permute.xlu1 %1320  ;;  %8844 = vmatprep.mubr.msk.bf16.mxu1 %vm1494_vm5, %v1435_v2 }
 0x1ef   : > { %1388 = vst.msk [vmem:[#allocation5 + $0x2b8] sm:$0xff] %vm1358_vm4, %v1321_v5  ;;  %v1319_v6 = vpop.permute.xlu0 %1318  ;;  %8845 = vmatmul.mubr.msk.bf16.gmra.mrb[24].mxu1 %vm1494_vm5, %v1436_v4 }
 0x1f0   : > { %1387 = vst.msk [vmem:[#allocation5 + $0x2a0] sm:$0xff] %vm1358_vm4, %v1319_v6 }
 0x1f2   : > { %v1325_v7 = vpop.permute.xlu1 %1324 }
 0x1f3   : > { %1390 = vst.msk [vmem:[#allocation5 + $0x2e8] sm:$0xff] %vm1358_vm4, %v1325_v7  ;;  %v1323_v8 = vpop.permute.xlu0 %1322 }
 0x1f4   : > { %1389 = vst.msk [vmem:[#allocation5 + $0x2d0] sm:$0xff] %vm1358_vm4, %v1323_v8 }
 0x1f6   : > { %v1420_v9 = vld [vmem:[#allocation5 + $0x2b8] sm:$0xff] }
 0x1f7   : > { %v1419_v10 = vld [vmem:[#allocation5 + $0x2a0] sm:$0xff] }
 0x1f8   : > { %v1437_v11 = vpack.c.bf16 %v1420_v9, %v1419_v10 }
 0x1fa   : > { %8848 = vmatprep.mubr.msk.bf16.mxu1 %vm1494_vm5, %v1437_v11  ;;  %v1422_v12 = vld [vmem:[#allocation5 + $0x2e8] sm:$0xff] }
 0x1fb   : > { %v1421_v13 = vld [vmem:[#allocation5 + $0x2d0] sm:$0xff] }
 0x1fc   : > { %v1438_v14 = vpack.c.bf16 %v1422_v12, %v1421_v13 }
 0x1fe   : > { %8849 = vmatmul.mubr.msk.bf16.gmra.mrb[28].mxu1 %vm1494_vm5, %v1438_v14 }
 0x262   : > { %v8822_v18 = vpop.f32.mrb[0].mxu1 }
 0x263   : > { %v1586_v19 = vadd.f32 %v8822_v18, %v10245_v16  ;;  %v1577_v20 = vpop.f32.mrb[1].mxu1 }
 0x264   : > { %v1578_v21 = vadd.f32 %v10245_v16, %v1577_v20  ;;  %v8823_v22 = vpop.f32.mrb[2].mxu1 }
 0x265   : > { %1707 = vst.msk [vmem:[#allocation3 + $0x20] sm:$0xff] %vm483_vm0, %v1586_v19  ;;  %v1589_v23 = vadd.f32 %v8823_v22, %v10245_v16  ;;  %v1580_v24 = vpop.f32.mrb[3].mxu1 }
 0x266   : > { %1705 = vst.msk [vmem:[#allocation3 + $0x10] sm:$0xff] %vm483_vm0, %v1578_v21  ;;  %v1581_v25 = vadd.f32 %v10245_v16, %v1580_v24 }
 0x267   : > { %1708 = vst.msk [vmem:[#allocation3 + $0x28] sm:$0xff] %vm483_vm0, %v1589_v23 }
 0x268   : > { %1706 = vst.msk [vmem:[#allocation3 + $0x18] sm:$0xff] %vm483_vm0, %v1581_v25 }
 0x26c   : > { %v1803_v29 = vld [vmem:[#allocation3 + $0x20] sm:$0xff] }
 0x26d   : > { %1869 = vrot.lane.b32.xlu0 %v1803_v29, %s9556_s23  ;;  %v1801_v30 = vld [vmem:[#allocation3 + $0x10] sm:$0xff]  ;;  %1773 = vst.msk [vmem:[#allocation5 + $0x60] sm:$0xff] %vm483_vm0, %v1803_v29 }
 0x26e   : > { %v1804_v31 = vld [vmem:[#allocation3 + $0x28] sm:$0xff]  ;;  %1771 = vst.msk [vmem:[#allocation5 + $0x30] sm:$0xff] %vm483_vm0, %v1801_v30 }
 0x26f   : > { %1871 = vrot.lane.b32.xlu1 %v1804_v31, %s9556_s23  ;;  %v1802_v32 = vld [vmem:[#allocation3 + $0x18] sm:$0xff]  ;;  %1774 = vst.msk [vmem:[#allocation5 + $0x78] sm:$0xff] %vm483_vm0, %v1804_v31 }
 0x270   : > { %1772 = vst.msk [vmem:[#allocation5 + $0x48] sm:$0xff] %vm483_vm0, %v1802_v32 }
 0x271   : > { %2058 = vrot.lane.b32.xlu0 %v1803_v29, %s9557_s26 }
 0x272   : > { %v8826_v33 = vpop.f32.mrb[4].mxu1 }
 0x273   : > { %v1602_v34 = vadd.f32 %v8826_v33, %v10245_v16  ;;  %2060 = vrot.lane.b32.xlu1 %v1804_v31, %s9557_s26  ;;  %v1593_v35 = vpop.f32.mrb[5].mxu1 }
 0x274   : > { %v1594_v37 = vadd.f32 %v10245_v16, %v1593_v35  ;;  %v8827_v38 = vpop.f32.mrb[6].mxu1 }
 0x275   : > { %1711 = vst.msk [vmem:[#allocation3 + $0x40] sm:$0xff] %vm483_vm0, %v1602_v34  ;;  %v1605_v39 = vadd.f32 %v8827_v38, %v10245_v16  ;;  %v1596_v40 = vpop.f32.mrb[7].mxu1  ;;  %1865 = vrot.lane.b32.xlu0 %v1801_v30, %s9556_s23 }
 0x276   : > { %1709 = vst.msk [vmem:[#allocation3 + $0x30] sm:$0xff] %vm483_vm0, %v1594_v37  ;;  %v1597_v41 = vadd.f32 %v10245_v16, %v1596_v40 }
 0x277   : > { %1712 = vst.msk [vmem:[#allocation3 + $0x48] sm:$0xff] %vm483_vm0, %v1605_v39  ;;  %1867 = vrot.lane.b32.xlu1 %v1802_v32, %s9556_s23 }
 0x278   : > { %1710 = vst.msk [vmem:[#allocation3 + $0x38] sm:$0xff] %vm483_vm0, %v1597_v41 }
 0x27c   : > { %v1807_v42 = vld [vmem:[#allocation3 + $0x40] sm:$0xff] }
 0x27d   : > { %1877 = vrot.lane.b32.xlu0 %v1807_v42, %s9556_s23  ;;  %v1996_v44 = vld [vmem:[#allocation3 + $0x30] sm:$0xff]  ;;  %1777 = vst.msk [vmem:[#allocation5 + $0xc0] sm:$0xff] %vm483_vm0, %v1807_v42 }
 0x27e   : > { %v1808_v45 = vld [vmem:[#allocation3 + $0x48] sm:$0xff]  ;;  %1775 = vst.msk [vmem:[#allocation5 + $0x90] sm:$0xff] %vm483_vm0, %v1996_v44 }
 0x27f   : > { %1879 = vrot.lane.b32.xlu1 %v1808_v45, %s9556_s23  ;;  %v1997_v46 = vld [vmem:[#allocation3 + $0x38] sm:$0xff]  ;;  %1778 = vst.msk [vmem:[#allocation5 + $0xd8] sm:$0xff] %vm483_vm0, %v1808_v45 }
 0x280   : > { %1776 = vst.msk [vmem:[#allocation5 + $0xa8] sm:$0xff] %vm483_vm0, %v1997_v46 }
 0x281   : > { %2066 = vrot.lane.b32.xlu0 %v1807_v42, %s9557_s26 }
 0x282   : > { %v8830_v48 = vpop.f32.mrb[8].mxu1 }
 0x283   : > { %v1618_v49 = vadd.f32 %v8830_v48, %v10245_v16  ;;  %v1609_v50 = vpop.f32.mrb[9].mxu1  ;;  %2068 = vrot.lane.b32.xlu1 %v1808_v45, %s9557_s26 }
 0x284   : > { %v1610_v52 = vadd.f32 %v10245_v16, %v1609_v50  ;;  %v8831_v53 = vpop.f32.mrb[10].mxu1 }
 0x285   : > { %1715 = vst.msk [vmem:[#allocation3 + $0x60] sm:$0xff] %vm483_vm0, %v1618_v49  ;;  %v1621_v51 = vadd.f32 %v8831_v53, %v10245_v16  ;;  %v1612_v54 = vpop.f32.mrb[11].mxu1  ;;  %2062 = vrot.lane.b32.xlu0 %v1996_v44, %s9557_s26 }
 0x286   : > { %1713 = vst.msk [vmem:[#allocation3 + $0x50] sm:$0xff] %vm483_vm0, %v1610_v52  ;;  %v1613_v55 = vadd.f32 %v10245_v16, %v1612_v54 }
 0x287   : > { %1716 = vst.msk [vmem:[#allocation3 + $0x68] sm:$0xff] %vm483_vm0, %v1621_v51  ;;  %2064 = vrot.lane.b32.xlu1 %v1997_v46, %s9557_s26 }
 0x288   : > { %1714 = vst.msk [vmem:[#allocation3 + $0x58] sm:$0xff] %vm483_vm0, %v1613_v55 }
 0x289   : > { %1873 = vrot.lane.b32.xlu0 %v1996_v44, %s9556_s23 }
 0x28b   : > { %1875 = vrot.lane.b32.xlu1 %v1997_v46, %s9556_s23 }
 0x28c   : > { %v1811_v56 = vld [vmem:[#allocation3 + $0x60] sm:$0xff] }
 0x28d   : > { %1885 = vrot.lane.b32.xlu0 %v1811_v56, %s9556_s23  ;;  %v2000_v57 = vld [vmem:[#allocation3 + $0x50] sm:$0xff]  ;;  %1781 = vst.msk [vmem:[#allocation5 + $0x120] sm:$0xff] %vm483_vm0, %v1811_v56 }
 0x28e   : > { %v1812_v58 = vld [vmem:[#allocation3 + $0x68] sm:$0xff]  ;;  %1779 = vst.msk [vmem:[#allocation5 + $0xf0] sm:$0xff] %vm483_vm0, %v2000_v57 }
 0x28f   : > { %1887 = vrot.lane.b32.xlu1 %v1812_v58, %s9556_s23  ;;  %v2001_v59 = vld [vmem:[#allocation3 + $0x58] sm:$0xff]  ;;  %1782 = vst.msk [vmem:[#allocation5 + $0x138] sm:$0xff] %vm483_vm0, %v1812_v58 }
 0x290   : > { %1780 = vst.msk [vmem:[#allocation5 + $0x108] sm:$0xff] %vm483_vm0, %v2001_v59 }
 0x291   : > { %2074 = vrot.lane.b32.xlu0 %v1811_v56, %s9557_s26 }
 0x292   : > { %v8834_v60 = vpop.f32.mrb[12].mxu1 }
 0x293   : > { %v1634_v61 = vadd.f32 %v8834_v60, %v10245_v16  ;;  %v1625_v62 = vpop.f32.mrb[13].mxu1  ;;  %2076 = vrot.lane.b32.xlu1 %v1812_v58, %s9557_s26 }
 0x294   : > { %v1626_v63 = vadd.f32 %v10245_v16, %v1625_v62  ;;  %v8835_v0 = vpop.f32.mrb[14].mxu1 }
 0x295   : > { %1719 = vst.msk [vmem:[#allocation3 + $0x80] sm:$0xff] %vm483_vm0, %v1634_v61  ;;  %v1637_v2 = vadd.f32 %v8835_v0, %v10245_v16  ;;  %v1628_v3 = vpop.f32.mrb[15].mxu1  ;;  %2070 = vrot.lane.b32.xlu0 %v2000_v57, %s9557_s26  ;;  %v2025_v0 = vld [vmem:[#allocation3 + $0x118] sm:$0xff] }
 0x296   : > { %1717 = vst.msk [vmem:[#allocation3 + $0x70] sm:$0xff] %vm483_vm0, %v1626_v63  ;;  %v1629_v4 = vadd.f32 %v10245_v16, %v1628_v3  ;;  %v2024_v63 = vld [vmem:[#allocation3 + $0x110] sm:$0xff] }
 0x297   : > { %1720 = vst.msk [vmem:[#allocation3 + $0x88] sm:$0xff] %vm483_vm0, %v1637_v2  ;;  %2072 = vrot.lane.b32.xlu1 %v2001_v59, %s9557_s26 }
 0x298   : > { %1718 = vst.msk [vmem:[#allocation3 + $0x78] sm:$0xff] %vm483_vm0, %v1629_v4 }
 0x299   : > { %1881 = vrot.lane.b32.xlu0 %v2000_v57, %s9556_s23 }
 0x29b   : > { %1883 = vrot.lane.b32.xlu1 %v2001_v59, %s9556_s23 }
 0x29c   : > { %v1815_v5 = vld [vmem:[#allocation3 + $0x80] sm:$0xff] }
 0x29d   : > { %1893 = vrot.lane.b32.xlu0 %v1815_v5, %s9556_s23  ;;  %v2004_v6 = vld [vmem:[#allocation3 + $0x70] sm:$0xff]  ;;  %1785 = vst.msk [vmem:[#allocation5 + $0x180] sm:$0xff] %vm483_vm0, %v1815_v5 }
 0x29e   : > { %v1816_v7 = vld [vmem:[#allocation3 + $0x88] sm:$0xff]  ;;  %1783 = vst.msk [vmem:[#allocation5 + $0x150] sm:$0xff] %vm483_vm0, %v2004_v6 }
 0x29f   : > { %1895 = vrot.lane.b32.xlu1 %v1816_v7, %s9556_s23  ;;  %v2005_v8 = vld [vmem:[#allocation3 + $0x78] sm:$0xff]  ;;  %1786 = vst.msk [vmem:[#allocation5 + $0x198] sm:$0xff] %vm483_vm0, %v1816_v7 }
 0x2a0   : > { %1784 = vst.msk [vmem:[#allocation5 + $0x168] sm:$0xff] %vm483_vm0, %v2005_v8 }
 0x2a1   : > { %v8838_v9 = vpop.f32.mrb[16].mxu1  ;;  %2082 = vrot.lane.b32.xlu0 %v1815_v5, %s9557_s26 }
 0x2a2   : > { %v1650_v10 = vadd.f32 %v8838_v9, %v10245_v16  ;;  %v1641_v11 = vpop.f32.mrb[17].mxu1 }
 0x2a3   : > { %v1642_v12 = vadd.f32 %v10245_v16, %v1641_v11  ;;  %v8839_v13 = vpop.f32.mrb[18].mxu1  ;;  %2084 = vrot.lane.b32.xlu1 %v1816_v7, %s9557_s26 }
 0x2a4   : > { %1723 = vst.msk [vmem:[#allocation3 + $0xa0] sm:$0xff] %vm483_vm0, %v1650_v10  ;;  %v1653_v14 = vadd.f32 %v8839_v13, %v10245_v16  ;;  %v1644_v15 = vpop.f32.mrb[19].mxu1 }
 0x2a5   : > { %1721 = vst.msk [vmem:[#allocation3 + $0x90] sm:$0xff] %vm483_vm0, %v1642_v12  ;;  %v1645_v17 = vadd.f32 %v10245_v16, %v1644_v15  ;;  %2078 = vrot.lane.b32.xlu0 %v2004_v6, %s9557_s26 }
 0x2a6   : > { %1724 = vst.msk [vmem:[#allocation3 + $0xa8] sm:$0xff] %vm483_vm0, %v1653_v14 }
 0x2a7   : > { %1722 = vst.msk [vmem:[#allocation3 + $0x98] sm:$0xff] %vm483_vm0, %v1645_v17  ;;  %2080 = vrot.lane.b32.xlu1 %v2005_v8, %s9557_s26 }
 0x2a9   : > { %1889 = vrot.lane.b32.xlu0 %v2004_v6, %s9556_s23 }
 0x2ab   : > { %1891 = vrot.lane.b32.xlu1 %v2005_v8, %s9556_s23  ;;  %v1819_v18 = vld [vmem:[#allocation3 + $0xa0] sm:$0xff] }
 0x2ac   : > { %v2008_v19 = vld [vmem:[#allocation3 + $0x90] sm:$0xff]  ;;  %1789 = vst.msk [vmem:[#allocation5 + $0x1e0] sm:$0xff] %vm483_vm0, %v1819_v18 }
 0x2ad   : > { %2086 = vrot.lane.b32.xlu0 %v2008_v19, %s9557_s26  ;;  %v1820_v20 = vld [vmem:[#allocation3 + $0xa8] sm:$0xff]  ;;  %1787 = vst.msk [vmem:[#allocation5 + $0x1b0] sm:$0xff] %vm483_vm0, %v2008_v19 }
 0x2ae   : > { %v2009_v21 = vld [vmem:[#allocation3 + $0x98] sm:$0xff]  ;;  %1790 = vst.msk [vmem:[#allocation5 + $0x1f8] sm:$0xff] %vm483_vm0, %v1820_v20 }
 0x2af   : > { %2088 = vrot.lane.b32.xlu1 %v2009_v21, %s9557_s26  ;;  %1788 = vst.msk [vmem:[#allocation5 + $0x1c8] sm:$0xff] %vm483_vm0, %v2009_v21 }
 0x2b1   : > { %1901 = vrot.lane.b32.xlu0 %v1819_v18, %s9556_s23 }
 0x2b2   : > { %v8842_v22 = vpop.f32.mrb[20].mxu1 }
 0x2b3   : > { %v1666_v23 = vadd.f32 %v8842_v22, %v10245_v16  ;;  %v1657_v24 = vpop.f32.mrb[21].mxu1  ;;  %1903 = vrot.lane.b32.xlu1 %v1820_v20, %s9556_s23 }
 0x2b4   : > { %v1658_v25 = vadd.f32 %v10245_v16, %v1657_v24  ;;  %v8843_v26 = vpop.f32.mrb[22].mxu1 }
 0x2b5   : > { %1727 = vst.msk [vmem:[#allocation3 + $0xc0] sm:$0xff] %vm483_vm0, %v1666_v23  ;;  %v1669_v27 = vadd.f32 %v8843_v26, %v10245_v16  ;;  %v1660_v28 = vpop.f32.mrb[23].mxu1  ;;  %1897 = vrot.lane.b32.xlu0 %v2008_v19, %s9556_s23 }
 0x2b6   : > { %1725 = vst.msk [vmem:[#allocation3 + $0xb0] sm:$0xff] %vm483_vm0, %v1658_v25  ;;  %v1661_v29 = vadd.f32 %v10245_v16, %v1660_v28 }
 0x2b7   : > { %1728 = vst.msk [vmem:[#allocation3 + $0xc8] sm:$0xff] %vm483_vm0, %v1669_v27  ;;  %2092 = vrot.lane.b32.xlu1 %v1820_v20, %s9557_s26 }
 0x2b8   : > { %1726 = vst.msk [vmem:[#allocation3 + $0xb8] sm:$0xff] %vm483_vm0, %v1661_v29 }
 0x2b9   : > { %2090 = vrot.lane.b32.xlu0 %v1819_v18, %s9557_s26 }
 0x2bb   : > { %1899 = vrot.lane.b32.xlu1 %v2009_v21, %s9556_s23 }
 0x2bc   : > { %v1823_v30 = vld [vmem:[#allocation3 + $0xc0] sm:$0xff] }
 0x2bd   : > { %1909 = vrot.lane.b32.xlu0 %v1823_v30, %s9556_s23  ;;  %v2012_v31 = vld [vmem:[#allocation3 + $0xb0] sm:$0xff]  ;;  %1793 = vst.msk [vmem:[#allocation5 + $0x240] sm:$0xff] %vm483_vm0, %v1823_v30 }
 0x2be   : > { %v1824_v32 = vld [vmem:[#allocation3 + $0xc8] sm:$0xff]  ;;  %1791 = vst.msk [vmem:[#allocation5 + $0x210] sm:$0xff] %vm483_vm0, %v2012_v31 }
 0x2bf   : > { %1911 = vrot.lane.b32.xlu1 %v1824_v32, %s9556_s23  ;;  %v2013_v33 = vld [vmem:[#allocation3 + $0xb8] sm:$0xff]  ;;  %1794 = vst.msk [vmem:[#allocation5 + $0x258] sm:$0xff] %vm483_vm0, %v1824_v32 }
 0x2c0   : > { %1792 = vst.msk [vmem:[#allocation5 + $0x228] sm:$0xff] %vm483_vm0, %v2013_v33 }
 0x2c1   : > { %2098 = vrot.lane.b32.xlu0 %v1823_v30, %s9557_s26 }
 0x2c2   : > { %v8846_v34 = vpop.f32.mrb[24].mxu1 }
 0x2c3   : > { %v1682_v35 = vadd.f32 %v8846_v34, %v10245_v16  ;;  %v1673_v36 = vpop.f32.mrb[25].mxu1  ;;  %2100 = vrot.lane.b32.xlu1 %v1824_v32, %s9557_s26 }
 0x2c4   : > { %v1674_v37 = vadd.f32 %v10245_v16, %v1673_v36  ;;  %v8847_v38 = vpop.f32.mrb[26].mxu1 }
 0x2c5   : > { %1731 = vst.msk [vmem:[#allocation3 + $0xe0] sm:$0xff] %vm483_vm0, %v1682_v35  ;;  %v1685_v39 = vadd.f32 %v8847_v38, %v10245_v16  ;;  %v1676_v40 = vpop.f32.mrb[27].mxu1  ;;  %2094 = vrot.lane.b32.xlu0 %v2012_v31, %s9557_s26 }
 0x2c6   : > { %1729 = vst.msk [vmem:[#allocation3 + $0xd0] sm:$0xff] %vm483_vm0, %v1674_v37  ;;  %v1677_v41 = vadd.f32 %v10245_v16, %v1676_v40 }
 0x2c7   : > { %1732 = vst.msk [vmem:[#allocation3 + $0xe8] sm:$0xff] %vm483_vm0, %v1685_v39  ;;  %2096 = vrot.lane.b32.xlu1 %v2013_v33, %s9557_s26 }
 0x2c8   : > { %1730 = vst.msk [vmem:[#allocation3 + $0xd8] sm:$0xff] %vm483_vm0, %v1677_v41 }
 0x2c9   : > { %1905 = vrot.lane.b32.xlu0 %v2012_v31, %s9556_s23 }
 0x2cb   : > { %1907 = vrot.lane.b32.xlu1 %v2013_v33, %s9556_s23 }
 0x2cc   : > { %v1827_v42 = vld [vmem:[#allocation3 + $0xe0] sm:$0xff] }
 0x2cd   : > { %1917 = vrot.lane.b32.xlu0 %v1827_v42, %s9556_s23  ;;  %v2016_v43 = vld [vmem:[#allocation3 + $0xd0] sm:$0xff]  ;;  %1797 = vst.msk [vmem:[#allocation5 + $0x2a0] sm:$0xff] %vm483_vm0, %v1827_v42 }
 0x2ce   : > { %v1828_v44 = vld [vmem:[#allocation3 + $0xe8] sm:$0xff]  ;;  %1795 = vst.msk [vmem:[#allocation5 + $0x270] sm:$0xff] %vm483_vm0, %v2016_v43 }
 0x2cf   : > { %1919 = vrot.lane.b32.xlu1 %v1828_v44, %s9556_s23  ;;  %v2017_v45 = vld [vmem:[#allocation3 + $0xd8] sm:$0xff]  ;;  %1798 = vst.msk [vmem:[#allocation5 + $0x2b8] sm:$0xff] %vm483_vm0, %v1828_v44 }
 0x2d0   : > { %1796 = vst.msk [vmem:[#allocation5 + $0x288] sm:$0xff] %vm483_vm0, %v2017_v45 }
 0x2d1   : > { %v8850_v46 = vpop.f32.mrb[28].mxu1  ;;  %2106 = vrot.lane.b32.xlu0 %v1827_v42, %s9557_s26 }
 0x2d2   : > { %v1698_v47 = vadd.f32 %v8850_v46, %v10245_v16  ;;  %v1689_v48 = vpop.f32.mrb[29].mxu1 }
 0x2d3   : > { %v1690_v49 = vadd.f32 %v10245_v16, %v1689_v48  ;;  %v8851_v50 = vpop.f32.mrb[30].mxu1  ;;  %2108 = vrot.lane.b32.xlu1 %v1828_v44, %s9557_s26 }
 0x2d4   : > { %1735 = vst.msk [vmem:[#allocation3 + $0x100] sm:$0xff] %vm483_vm0, %v1698_v47  ;;  %v1701_v52 = vadd.f32 %v8851_v50, %v10245_v16  ;;  %v1692_v53 = vpop.f32.mrb[31].mxu1 }
 0x2d5   : > { %1733 = vst.msk [vmem:[#allocation3 + $0xf0] sm:$0xff] %vm483_vm0, %v1690_v49  ;;  %v1693_v51 = vadd.f32 %v10245_v16, %v1692_v53  ;;  %2102 = vrot.lane.b32.xlu0 %v2016_v43, %s9557_s26 }
 0x2d6   : > { %1736 = vst.msk [vmem:[#allocation3 + $0x108] sm:$0xff] %vm483_vm0, %v1701_v52 }
 0x2d7   : > { %1734 = vst.msk [vmem:[#allocation3 + $0xf8] sm:$0xff] %vm483_vm0, %v1693_v51  ;;  %2104 = vrot.lane.b32.xlu1 %v2017_v45, %s9557_s26 }
 0x2d9   : > { %1913 = vrot.lane.b32.xlu0 %v2016_v43, %s9556_s23 }
 0x2db   : > { %1915 = vrot.lane.b32.xlu1 %v2017_v45, %s9556_s23  ;;  %v1831_v54 = vld [vmem:[#allocation3 + $0x100] sm:$0xff] }
 0x2dc   : > { %v2020_v55 = vld [vmem:[#allocation3 + $0xf0] sm:$0xff] }
 0x2dd   : > { %1925 = vrot.lane.b32.xlu0 %v1831_v54, %s9556_s23  ;;  %v1832_v56 = vld [vmem:[#allocation3 + $0x108] sm:$0xff]  ;;  %1799 = vst.msk [vmem:[#allocation5 + $0x2d0] sm:$0xff] %vm483_vm0, %v2020_v55 }
 0x2de   : > { %v2021_v16 = vld [vmem:[#allocation3 + $0xf8] sm:$0xff] }
 0x2df   : > { %v1870_v57 = vpop.permute.xlu0 %1869  ;;  %1927 = vrot.lane.b32.xlu1 %v1832_v56, %s9556_s23  ;;  %1800 = vst.msk [vmem:[#allocation5 + $0x2e8] sm:$0xff] %vm483_vm0, %v2021_v16 }
 0x2e0   : > { %1963 = vst.msk [vmem:[#allocation5 + $0x30] sm:$0xff] %vm1165_vm3, %v1870_v57 }
 0x2e1   : > { %v1872_v58 = vpop.permute.xlu1 %1871  ;;  %2114 = vrot.lane.b32.xlu0 %v1831_v54, %s9557_s26 }
 0x2e2   : > { %1964 = vst.msk [vmem:[#allocation5 + $0x48] sm:$0xff] %vm1165_vm3, %v1872_v58 }
 0x2e3   : > { %v2059_v59 = vpop.permute.xlu0 %2058  ;;  %2116 = vrot.lane.b32.xlu1 %v1832_v56, %s9557_s26 }
 0x2e5   : > { %v2061_v60 = vpop.permute.xlu1 %2060  ;;  %2110 = vrot.lane.b32.xlu0 %v2020_v55, %s9557_s26 }
 0x2e7   : > { %2112 = vrot.lane.b32.xlu1 %v2021_v16, %s9557_s26  ;;  %v1866_v61 = vpop.permute.xlu0 %1865 }
 0x2e8   : > { %1961 = vst.msk [vmem:[#allocation5] sm:$0xff] %vm1165_vm3, %v1866_v61 }
 0x2e9   : > { %2154 = vst.msk [vmem:[#allocation5] sm:$0xff] %vm1358_vm4, %v2059_v59  ;;  %v1868_v62 = vpop.permute.xlu1 %1867  ;;  %1921 = vrot.lane.b32.xlu0 %v2020_v55, %s9556_s23 }
 0x2ea   : > { %1962 = vst.msk [vmem:[#allocation5 + $0x18] sm:$0xff] %vm1165_vm3, %v1868_v62 }
 0x2eb   : > { %2155 = vst.msk [vmem:[#allocation5 + $0x18] sm:$0xff] %vm1358_vm4, %v2061_v60  ;;  %1923 = vrot.lane.b32.xlu1 %v2021_v16, %s9556_s23 }
 0x2ed   : > { %2118 = vrot.lane.b32.xlu0 %v2024_v63, %s9557_s26 }
 0x2ef   : > { %2120 = vrot.lane.b32.xlu1 %v2025_v0, %s9557_s26  ;;  %v1878_v2 = vpop.permute.xlu0 %1877 }
 0x2f0   : > { %1967 = vst.msk [vmem:[#allocation5 + $0x90] sm:$0xff] %vm1165_vm3, %v1878_v2  ;;  %v2186_v4 = vld [vmem:[#allocation5] sm:$0xff] }
 0x2f1   : > { %v1880_v3 = vpop.permute.xlu1 %1879 }
 0x2f2   : > { %1968 = vst.msk [vmem:[#allocation5 + $0xa8] sm:$0xff] %vm1165_vm3, %v1880_v3  ;;  %v2187_v5 = vld [vmem:[#allocation5 + $0x18] sm:$0xff] }
 0x2f3   : > { %v2067_v6 = vpop.permute.xlu0 %2066  ;;  %v2218_v7 = vpack.c.bf16 %v2187_v5, %v2186_v4 }
 0x2f5   : > { %v2069_v8 = vpop.permute.xlu1 %2068  ;;  %8864 = vmatprep.mubr.msk.bf16.mxu0 %vm1494_vm5, %v2218_v7 }
 0x2f7   : > { %v2063_v9 = vpop.permute.xlu0 %2062 }
 0x2f8   : > { %2156 = vst.msk [vmem:[#allocation5 + $0x30] sm:$0xff] %vm1358_vm4, %v2063_v9 }
 0x2f9   : > { %v2065_v10 = vpop.permute.xlu1 %2064 }
 0x2fa   : > { %2157 = vst.msk [vmem:[#allocation5 + $0x48] sm:$0xff] %vm1358_vm4, %v2065_v10 }
 0x2fb   : > { %v1874_v11 = vpop.permute.xlu0 %1873 }
 0x2fc   : > { %1965 = vst.msk [vmem:[#allocation5 + $0x60] sm:$0xff] %vm1165_vm3, %v1874_v11 }
 0x2fd   : > { %2158 = vst.msk [vmem:[#allocation5 + $0x60] sm:$0xff] %vm1358_vm4, %v2067_v6  ;;  %v1876_v12 = vpop.permute.xlu1 %1875 }
 0x2fe   : > { %1966 = vst.msk [vmem:[#allocation5 + $0x78] sm:$0xff] %vm1165_vm3, %v1876_v12 }
 0x2ff   : > { %2159 = vst.msk [vmem:[#allocation5 + $0x78] sm:$0xff] %vm1358_vm4, %v2069_v8  ;;  %v1886_v13 = vpop.permute.xlu0 %1885  ;;  %v2188_v15 = vld [vmem:[#allocation5 + $0x30] sm:$0xff] }
 0x300   : > { %1971 = vst.msk [vmem:[#allocation5 + $0xf0] sm:$0xff] %vm1165_vm3, %v1886_v13 }
 0x301   : > { %v1888_v14 = vpop.permute.xlu1 %1887  ;;  %v2189_v17 = vld [vmem:[#allocation5 + $0x48] sm:$0xff] }
 0x302   : > { %1972 = vst.msk [vmem:[#allocation5 + $0x108] sm:$0xff] %vm1165_vm3, %v1888_v14  ;;  %v2219_v18 = vpack.c.bf16 %v2189_v17, %v2188_v15 }
 0x303   : > { %v2075_v19 = vpop.permute.xlu0 %2074 }
 0x304   : > { %8865 = vmatmul.mubr.msk.bf16.vlgmr.msra.gmra.mrb[32].mxu0 %vm1494_vm5, %v2219_v18  ;;  %v2190_v21 = vld [vmem:[#allocation5 + $0x60] sm:$0xff] }
 0x305   : > { %v2077_v20 = vpop.permute.xlu1 %2076 }
 0x306   : > { %v2191_v22 = vld [vmem:[#allocation5 + $0x78] sm:$0xff] }
 0x307   : > { %v2071_v23 = vpop.permute.xlu0 %2070  ;;  %v2220_v24 = vpack.c.bf16 %v2191_v22, %v2190_v21 }
 0x308   : > { %2160 = vst.msk [vmem:[#allocation5 + $0x90] sm:$0xff] %vm1358_vm4, %v2071_v23 }
 0x309   : > { %v2073_v25 = vpop.permute.xlu1 %2072  ;;  %8868 = vmatprep.mubr.msk.bf16.mxu0 %vm1494_vm5, %v2220_v24 }
 0x30a   : > { %2161 = vst.msk [vmem:[#allocation5 + $0xa8] sm:$0xff] %vm1358_vm4, %v2073_v25 }
 0x30b   : > { %v1882_v26 = vpop.permute.xlu0 %1881 }
 0x30c   : > { %1969 = vst.msk [vmem:[#allocation5 + $0xc0] sm:$0xff] %vm1165_vm3, %v1882_v26 }
 0x30d   : > { %2162 = vst.msk [vmem:[#allocation5 + $0xc0] sm:$0xff] %vm1358_vm4, %v2075_v19  ;;  %v1884_v27 = vpop.permute.xlu1 %1883 }
 0x30e   : > { %1970 = vst.msk [vmem:[#allocation5 + $0xd8] sm:$0xff] %vm1165_vm3, %v1884_v27 }
 0x30f   : > { %2163 = vst.msk [vmem:[#allocation5 + $0xd8] sm:$0xff] %vm1358_vm4, %v2077_v20  ;;  %v1894_v28 = vpop.permute.xlu0 %1893  ;;  %v2192_v30 = vld [vmem:[#allocation5 + $0x90] sm:$0xff] }
 0x310   : > { %1975 = vst.msk [vmem:[#allocation5 + $0x150] sm:$0xff] %vm1165_vm3, %v1894_v28 }
 0x311   : > { %v1896_v29 = vpop.permute.xlu1 %1895  ;;  %v2193_v31 = vld [vmem:[#allocation5 + $0xa8] sm:$0xff] }
 0x312   : > { %1976 = vst.msk [vmem:[#allocation5 + $0x168] sm:$0xff] %vm1165_vm3, %v1896_v29  ;;  %v2221_v32 = vpack.c.bf16 %v2193_v31, %v2192_v30 }
 0x313   : > { %v2083_v33 = vpop.permute.xlu0 %2082 }
 0x314   : > { %8869 = vmatmul.mubr.msk.bf16.gmra.mrb[36].mxu0 %vm1494_vm5, %v2221_v32  ;;  %v2194_v35 = vld [vmem:[#allocation5 + $0xc0] sm:$0xff] }
 0x315   : > { %v2085_v34 = vpop.permute.xlu1 %2084 }
 0x316   : > { %v2195_v36 = vld [vmem:[#allocation5 + $0xd8] sm:$0xff] }
 0x317   : > { %v2079_v37 = vpop.permute.xlu0 %2078  ;;  %v2222_v38 = vpack.c.bf16 %v2195_v36, %v2194_v35 }
 0x318   : > { %2164 = vst.msk [vmem:[#allocation5 + $0xf0] sm:$0xff] %vm1358_vm4, %v2079_v37 }
 0x319   : > { %v2081_v39 = vpop.permute.xlu1 %2080  ;;  %8872 = vmatprep.mubr.msk.bf16.mxu0 %vm1494_vm5, %v2222_v38 }
 0x31a   : > { %2165 = vst.msk [vmem:[#allocation5 + $0x108] sm:$0xff] %vm1358_vm4, %v2081_v39 }
 0x31b   : > { %v1890_v40 = vpop.permute.xlu0 %1889 }
 0x31c   : > { %1973 = vst.msk [vmem:[#allocation5 + $0x120] sm:$0xff] %vm1165_vm3, %v1890_v40 }
 0x31d   : > { %2166 = vst.msk [vmem:[#allocation5 + $0x120] sm:$0xff] %vm1358_vm4, %v2083_v33  ;;  %v1892_v41 = vpop.permute.xlu1 %1891 }
 0x31e   : > { %1974 = vst.msk [vmem:[#allocation5 + $0x138] sm:$0xff] %vm1165_vm3, %v1892_v41 }
 0x31f   : > { %2167 = vst.msk [vmem:[#allocation5 + $0x138] sm:$0xff] %vm1358_vm4, %v2085_v34  ;;  %v2087_v42 = vpop.permute.xlu0 %2086  ;;  %v2196_v44 = vld [vmem:[#allocation5 + $0xf0] sm:$0xff] }
 0x320   : > { %2168 = vst.msk [vmem:[#allocation5 + $0x150] sm:$0xff] %vm1358_vm4, %v2087_v42 }
 0x321   : > { %v2089_v43 = vpop.permute.xlu1 %2088  ;;  %v2197_v45 = vld [vmem:[#allocation5 + $0x108] sm:$0xff] }
 0x322   : > { %2169 = vst.msk [vmem:[#allocation5 + $0x168] sm:$0xff] %vm1358_vm4, %v2089_v43  ;;  %v2223_v46 = vpack.c.bf16 %v2197_v45, %v2196_v44 }
 0x323   : > { %v1902_v47 = vpop.permute.xlu0 %1901 }
 0x324   : > { %1979 = vst.msk [vmem:[#allocation5 + $0x1b0] sm:$0xff] %vm1165_vm3, %v1902_v47  ;;  %8873 = vmatmul.mubr.msk.bf16.gmra.mrb[40].mxu0 %vm1494_vm5, %v2223_v46  ;;  %v2198_v49 = vld [vmem:[#allocation5 + $0x120] sm:$0xff]  ;;  %v9039_v47 = vld [vmem:[%s13104_s8 + $0x4] ss:$20 sps:$4 sm:$0xff]  }
 0x325   : > { %v1904_v48 = vpop.permute.xlu1 %1903  ;;  %v9037_v46 = vld [vmem:[%s13104_s8] ss:$20 sps:$4 sm:$0xff]   ;;  %3691 = vmatprep.subr.bf16.mxu1 %v9039_v47 }
 0x326   : > { %1980 = vst.msk [vmem:[#allocation5 + $0x1c8] sm:$0xff] %vm1165_vm3, %v1904_v48  ;;  %v2199_v50 = vld [vmem:[#allocation5 + $0x138] sm:$0xff]  ;;  %3692 = vmatpush1.bf16.msra.mxu1 %v9037_v46  ;;  %v9111_v46 = vld [vmem:[%s13104_s8 + $0x1e4] ss:$20 sps:$4 sm:$0xff]  }
 0x327   : > { %v1898_v52 = vpop.permute.xlu0 %1897  ;;  %v2224_v53 = vpack.c.bf16 %v2199_v50, %v2198_v49  ;;  %v2200_v54 = vld [vmem:[#allocation5 + $0x150] sm:$0xff]  ;;  %v9040_v48 = vld [vmem:[%s13104_s8 + $0x8] ss:$20 sps:$4 sm:$0xff]  }
 0x328   : > { %1977 = vst.msk [vmem:[#allocation5 + $0x180] sm:$0xff] %vm1165_vm3, %v1898_v52  ;;  %v9042_v49 = vld [vmem:[%s13104_s8 + $0xc] ss:$20 sps:$4 sm:$0xff]   ;;  %v9043_v50 = vld [vmem:[%s13104_s8 + $0x28] ss:$20 sps:$4 sm:$0xff]  }
 0x329   : > { %v2093_v51 = vpop.permute.xlu1 %2092  ;;  %8876 = vmatprep.mubr.msk.bf16.mxu0 %vm1494_vm5, %v2224_v53  ;;  %v2201_v55 = vld [vmem:[#allocation5 + $0x168] sm:$0xff]  ;;  %3777 = vmatprep.subr.bf16.mxu0 %v9042_v49  ;;  %v9045_v52 = vld [vmem:[%s13104_s8 + $0x2c] ss:$20 sps:$4 sm:$0xff]   ;;  %v9046_v53 = vld [vmem:[%s13104_s8 + $0x30] ss:$20 sps:$4 sm:$0xff]  }
 0x32a   : > { %v2225_v56 = vpack.c.bf16 %v2201_v55, %v2200_v54  ;;  %3778 = vmatpush1.bf16.msra.mxu0 %v9040_v48  ;;  %3693 = vmatprep.subr.bf16.mxu1 %v9045_v52  ;;  %v9049_v54 = vld [vmem:[%s13104_s8 + $0x50] ss:$20 sps:$4 sm:$0xff]   ;;  %v9051_v55 = vld [vmem:[%s13104_s8 + $0x54] ss:$20 sps:$4 sm:$0xff]   ;;  %v9114_v49 = vld [vmem:[%s13104_s8 + $0x1ec] ss:$20 sps:$4 sm:$0xff]  }
 0x32b   : > { %v2091_v16 = vpop.permute.xlu0 %2090  ;;  %3694 = vmatpush1.bf16.msra.mxu1 %v9043_v50  ;;  %v9109_v48 = vld [vmem:[%s13104_s8 + $0x1e0] ss:$20 sps:$4 sm:$0xff]  }
 0x32c   : > { %2170 = vst.msk [vmem:[#allocation5 + $0x180] sm:$0xff] %vm1358_vm4, %v2091_v16  ;;  %8877 = vmatmul.mubr.msk.bf16.gmra.mrb[44].mxu0 %vm1494_vm5, %v2225_v56  ;;  %v9052_v56 = vld [vmem:[%s13104_s8 + $0x58] ss:$20 sps:$4 sm:$0xff]   ;;  %v9054_v16 = vld [vmem:[%s13104_s8 + $0x5c] ss:$20 sps:$4 sm:$0xff]   ;;  %3695 = vmatprep.subr.bf16.mxu1 %v9051_v55 }
 0x32d   : > { %v1900_v57 = vpop.permute.xlu1 %1899 }
 0x32e   : > { %1978 = vst.msk [vmem:[#allocation5 + $0x198] sm:$0xff] %vm1165_vm3, %v1900_v57  ;;  %v9057_v57 = vld [vmem:[%s13104_s8 + $0x7c] ss:$20 sps:$4 sm:$0xff]  }
 0x32f   : > { %2171 = vst.msk [vmem:[#allocation5 + $0x198] sm:$0xff] %vm1358_vm4, %v2093_v51  ;;  %v1910_v58 = vpop.permute.xlu0 %1909  ;;  %v9048_v51 = vld [vmem:[%s13104_s8 + $0x34] ss:$20 sps:$4 sm:$0xff]   ;;  %3696 = vmatpush1.bf16.msra.mxu1 %v9049_v54 }
 0x330   : > { %1983 = vst.msk [vmem:[#allocation5 + $0x210] sm:$0xff] %vm1165_vm3, %v1910_v58  ;;  %3779 = vmatprep.subr.bf16.mxu0 %v9048_v51  ;;  %v9060_v58 = vld [vmem:[%s13104_s8 + $0x84] ss:$20 sps:$4 sm:$0xff]   ;;  %3697 = vmatprep.subr.bf16.mxu1 %v9057_v57  ;;  %v9115_v57 = vld [vmem:[%s13104_s8 + $0x208] ss:$20 sps:$4 sm:$0xff]  }
 0x331   : > { %v1912_v59 = vpop.permute.xlu1 %1911  ;;  %3780 = vmatpush1.bf16.msra.mxu0 %v9046_v53  ;;  %v9112_v53 = vld [vmem:[%s13104_s8 + $0x1e8] ss:$20 sps:$4 sm:$0xff]  }
 0x332   : > { %1984 = vst.msk [vmem:[#allocation5 + $0x228] sm:$0xff] %vm1165_vm3, %v1912_v59  ;;  %3781 = vmatprep.subr.bf16.mxu0 %v9054_v16  ;;  %v9055_v59 = vld [vmem:[%s13104_s8 + $0x78] ss:$20 sps:$4 sm:$0xff]  }
 0x333   : > { %v2099_v60 = vpop.permute.xlu0 %2098  ;;  %v2202_v62 = vld [vmem:[#allocation5 + $0x180] sm:$0xff]  ;;  %3698 = vmatpush1.bf16.msra.mxu1 %v9055_v59 }
 0x334   : > { %v9118_v59 = vld [vmem:[%s13104_s8 + $0x210] ss:$20 sps:$4 sm:$0xff]  }
 0x335   : > { %v2101_v61 = vpop.permute.xlu1 %2100  ;;  %3782 = vmatpush1.bf16.msra.mxu0 %v9052_v56 }
 0x336   : > { %v2203_v63 = vld [vmem:[#allocation5 + $0x198] sm:$0xff]  ;;  %3783 = vmatprep.subr.bf16.mxu0 %v9060_v58 }
 0x337   : > { %v2095_v0 = vpop.permute.xlu0 %2094  ;;  %v2226_v2 = vpack.c.bf16 %v2203_v63, %v2202_v62  ;;  %v9066_v62 = vld [vmem:[%s13104_s8 + $0xac] ss:$20 sps:$4 sm:$0xff]  }
 0x338   : > { %2172 = vst.msk [vmem:[#allocation5 + $0x1b0] sm:$0xff] %vm1358_vm4, %v2095_v0  ;;  %v10559_v63 = vld [vmem:[%s13103_s7] ss:$0 sm:$0xff] }
 0x339   : > { %v2097_v3 = vpop.permute.xlu1 %2096  ;;  %8880 = vmatprep.mubr.msk.bf16.mxu0 %vm1494_vm5, %v2226_v2  ;;  %v9061_v0 = vld [vmem:[%s13104_s8 + $0xa0] ss:$20 sps:$4 sm:$0xff]  }
 0x33a   : > { %2173 = vst.msk [vmem:[#allocation5 + $0x1c8] sm:$0xff] %vm1358_vm4, %v2097_v3  ;;  %v9064_v3 = vld [vmem:[%s13104_s8 + $0xa8] ss:$20 sps:$4 sm:$0xff]   ;;  %v9117_v58 = vld [vmem:[%s13104_s8 + $0x20c] ss:$20 sps:$4 sm:$0xff]  }
 0x33b   : > { %v1906_v4 = vpop.permute.xlu0 %1905 }
 0x33c   : > { %1981 = vst.msk [vmem:[#allocation5 + $0x1e0] sm:$0xff] %vm1165_vm3, %v1906_v4  ;;  %v9069_v4 = vld [vmem:[%s13104_s8 + $0xcc] ss:$20 sps:$4 sm:$0xff]  }
 0x33d   : > { %2174 = vst.msk [vmem:[#allocation5 + $0x1e0] sm:$0xff] %vm1358_vm4, %v2099_v60  ;;  %v1908_v5 = vpop.permute.xlu1 %1907  ;;  %v9058_v60 = vld [vmem:[%s13104_s8 + $0x80] ss:$20 sps:$4 sm:$0xff]  }
 0x33e   : > { %1982 = vst.msk [vmem:[#allocation5 + $0x1f8] sm:$0xff] %vm1165_vm3, %v1908_v5  ;;  %3784 = vmatpush1.bf16.msra.mxu0 %v9058_v60  ;;  %v9120_v60 = vld [vmem:[%s13104_s8 + $0x214] ss:$20 sps:$4 sm:$0xff]  }
 0x33f   : > { %2175 = vst.msk [vmem:[#allocation5 + $0x1f8] sm:$0xff] %vm1358_vm4, %v2101_v61  ;;  %v1918_v6 = vpop.permute.xlu0 %1917  ;;  %v2204_v8 = vld [vmem:[#allocation5 + $0x1b0] sm:$0xff]  ;;  %3785 = vmatprep.subr.bf16.mxu0 %v9066_v62 }
 0x340   : > { %1987 = vst.msk [vmem:[#allocation5 + $0x270] sm:$0xff] %vm1165_vm3, %v1918_v6  ;;  %v9063_v61 = vld [vmem:[%s13104_s8 + $0xa4] ss:$20 sps:$4 sm:$0xff]  }
 0x341   : > { %v1920_v7 = vpop.permute.xlu1 %1919  ;;  %v2205_v9 = vld [vmem:[#allocation5 + $0x1c8] sm:$0xff]  ;;  %3699 = vmatprep.subr.bf16.mxu1 %v9063_v61  ;;  %v9121_v62 = vld [vmem:[%s13104_s8 + $0x230] ss:$20 sps:$4 sm:$0xff]  }
 0x342   : > { %1988 = vst.msk [vmem:[#allocation5 + $0x288] sm:$0xff] %vm1165_vm3, %v1920_v7  ;;  %v2227_v10 = vpack.c.bf16 %v2205_v9, %v2204_v8  ;;  %v9072_v7 = vld [vmem:[%s13104_s8 + $0xd4] ss:$20 sps:$4 sm:$0xff]   ;;  %3700 = vmatpush1.bf16.msra.mxu1 %v9061_v0  ;;  %3786 = vmatpush1.bf16.msra.mxu0 %v9064_v3 }
 0x343   : > { %v2107_v11 = vpop.permute.xlu0 %2106  ;;  %3701 = vmatprep.subr.bf16.mxu1 %v9069_v4  ;;  %3787 = vmatprep.subr.bf16.mxu0 %v9072_v7  ;;  %v9123_v0 = vld [vmem:[%s13104_s8 + $0x234] ss:$20 sps:$4 sm:$0xff]   ;;  %v9124_v4 = vld [vmem:[%s13104_s8 + $0x238] ss:$20 sps:$4 sm:$0xff]   ;;  %v9129_v7 = vld [vmem:[%s13104_s8 + $0x25c] ss:$20 sps:$4 sm:$0xff]  }
 0x344   : > { %8881 = vmatmul.mubr.msk.bf16.gmra.mrb[48].mxu0 %vm1494_vm5, %v2227_v10  ;;  %v2206_v13 = vld [vmem:[#allocation5 + $0x1e0] sm:$0xff] }
 0x345   : > { %v2109_v12 = vpop.permute.xlu1 %2108 }
 0x346   : > { %v2207_v14 = vld [vmem:[#allocation5 + $0x1f8] sm:$0xff] }
 0x347   : > { %v2103_v15 = vpop.permute.xlu0 %2102  ;;  %v2228_v17 = vpack.c.bf16 %v2207_v14, %v2206_v13  ;;  %v9070_v14 = vld [vmem:[%s13104_s8 + $0xd0] ss:$20 sps:$4 sm:$0xff]  }
 0x348   : > { %2176 = vst.msk [vmem:[#allocation5 + $0x210] sm:$0xff] %vm1358_vm4, %v2103_v15  ;;  %3788 = vmatpush1.bf16.msra.mxu0 %v9070_v14  ;;  %v9073_v15 = vld [vmem:[%s13104_s8 + $0xf0] ss:$20 sps:$4 sm:$0xff]  }
 0x349   : > { %v2105_v18 = vpop.permute.xlu1 %2104  ;;  %8884 = vmatprep.mubr.msk.bf16.mxu0 %vm1494_vm5, %v2228_v17  ;;  %v9075_v17 = vld [vmem:[%s13104_s8 + $0xf4] ss:$20 sps:$4 sm:$0xff]  }
 0x34a   : > { %2177 = vst.msk [vmem:[#allocation5 + $0x228] sm:$0xff] %vm1358_vm4, %v2105_v18  ;;  %v9076_v18 = vld [vmem:[%s13104_s8 + $0xf8] ss:$20 sps:$4 sm:$0xff]  }
 0x34b   : > { %v1914_v19 = vpop.permute.xlu0 %1913 }
 0x34c   : > { %1985 = vst.msk [vmem:[#allocation5 + $0x240] sm:$0xff] %vm1165_vm3, %v1914_v19  ;;  %v9078_v19 = vld [vmem:[%s13104_s8 + $0xfc] ss:$20 sps:$4 sm:$0xff]  }
 0x34d   : > { %2178 = vst.msk [vmem:[#allocation5 + $0x240] sm:$0xff] %vm1358_vm4, %v2107_v11  ;;  %v1916_v20 = vpop.permute.xlu1 %1915  ;;  %3789 = vmatprep.subr.bf16.mxu0 %v9078_v19 }
 0x34e   : > { %1986 = vst.msk [vmem:[#allocation5 + $0x258] sm:$0xff] %vm1165_vm3, %v1916_v20  ;;  %v9081_v20 = vld [vmem:[%s13104_s8 + $0x11c] ss:$20 sps:$4 sm:$0xff]   ;;  %3790 = vmatpush1.bf16.msra.mxu0 %v9076_v18 }
 0x34f   : > { %2179 = vst.msk [vmem:[#allocation5 + $0x258] sm:$0xff] %vm1358_vm4, %v2109_v12  ;;  %v1926_v21 = vpop.permute.xlu0 %1925  ;;  %v2208_v23 = vld [vmem:[#allocation5 + $0x210] sm:$0xff]  ;;  %v9067_v12 = vld [vmem:[%s13104_s8 + $0xc8] ss:$20 sps:$4 sm:$0xff]  }
 0x350   : > { %1991 = vst.msk [vmem:[#allocation5 + $0x2d0] sm:$0xff] %vm1165_vm3, %v1926_v21  ;;  %3702 = vmatpush1.bf16.msra.mxu1 %v9067_v12  ;;  %v9084_v21 = vld [vmem:[%s13104_s8 + $0x124] ss:$20 sps:$4 sm:$0xff]  }
 0x351   : > { %v1928_v22 = vpop.permute.xlu1 %1927  ;;  %v2209_v24 = vld [vmem:[#allocation5 + $0x228] sm:$0xff]  ;;  %3703 = vmatprep.subr.bf16.mxu1 %v9075_v17  ;;  %3791 = vmatprep.subr.bf16.mxu0 %v9084_v21  ;;  %v9138_v17 = vld [vmem:[%s13104_s8 + $0x28c] ss:$20 sps:$4 sm:$0xff]  }
 0x352   : > { %1992 = vst.msk [vmem:[#allocation5 + $0x2e8] sm:$0xff] %vm1165_vm3, %v1928_v22  ;;  %v2229_v25 = vpack.c.bf16 %v2209_v24, %v2208_v23  ;;  %v9079_v22 = vld [vmem:[%s13104_s8 + $0x118] ss:$20 sps:$4 sm:$0xff]   ;;  %v9082_v23 = vld [vmem:[%s13104_s8 + $0x120] ss:$20 sps:$4 sm:$0xff]  }
 0x353   : > { %v2115_v26 = vpop.permute.xlu0 %2114  ;;  %v9087_v24 = vld [vmem:[%s13104_s8 + $0x144] ss:$20 sps:$4 sm:$0xff]   ;;  %3792 = vmatpush1.bf16.msra.mxu0 %v9082_v23 }
 0x354   : > { %8885 = vmatmul.mubr.msk.bf16.gmra.mrb[52].mxu0 %vm1494_vm5, %v2229_v25  ;;  %v2210_v28 = vld [vmem:[#allocation5 + $0x240] sm:$0xff]  ;;  %3704 = vmatpush1.bf16.msra.mxu1 %v9073_v15  ;;  %v9090_v25 = vld [vmem:[%s13104_s8 + $0x14c] ss:$20 sps:$4 sm:$0xff]   ;;  %v9135_v15 = vld [vmem:[%s13104_s8 + $0x284] ss:$20 sps:$4 sm:$0xff]  }
 0x355   : > { %v2117_v27 = vpop.permute.xlu1 %2116  ;;  %3705 = vmatprep.subr.bf16.mxu1 %v9081_v20  ;;  %3793 = vmatprep.subr.bf16.mxu0 %v9090_v25 }
 0x356   : > { %v2211_v29 = vld [vmem:[#allocation5 + $0x258] sm:$0xff] }
 0x357   : > { %v2111_v30 = vpop.permute.xlu0 %2110  ;;  %v2230_v31 = vpack.c.bf16 %v2211_v29, %v2210_v28  ;;  %v9088_v29 = vld [vmem:[%s13104_s8 + $0x148] ss:$20 sps:$4 sm:$0xff]  }
 0x358   : > { %2180 = vst.msk [vmem:[#allocation5 + $0x270] sm:$0xff] %vm1358_vm4, %v2111_v30  ;;  %3706 = vmatpush1.bf16.msra.mxu1 %v9079_v22  ;;  %v9093_v30 = vld [vmem:[%s13104_s8 + $0x16c] ss:$20 sps:$4 sm:$0xff]   ;;  %3794 = vmatpush1.bf16.msra.mxu0 %v9088_v29 }
 0x359   : > { %v2113_v32 = vpop.permute.xlu1 %2112  ;;  %8888 = vmatprep.mubr.msk.bf16.mxu0 %vm1494_vm5, %v2230_v31  ;;  %3707 = vmatprep.subr.bf16.mxu1 %v9087_v24 }
 0x35a   : > { %2181 = vst.msk [vmem:[#allocation5 + $0x288] sm:$0xff] %vm1358_vm4, %v2113_v32 }
 0x35b   : > { %v1922_v33 = vpop.permute.xlu0 %1921 }
 0x35c   : > { %1989 = vst.msk [vmem:[#allocation5 + $0x2a0] sm:$0xff] %vm1165_vm3, %v1922_v33  ;;  %v9096_v33 = vld [vmem:[%s13104_s8 + $0x174] ss:$20 sps:$4 sm:$0xff]  }
 0x35d   : > { %2182 = vst.msk [vmem:[#allocation5 + $0x2a0] sm:$0xff] %vm1358_vm4, %v2115_v26  ;;  %v1924_v34 = vpop.permute.xlu1 %1923  ;;  %3795 = vmatprep.subr.bf16.mxu0 %v9096_v33 }
 0x35e   : > { %1990 = vst.msk [vmem:[#allocation5 + $0x2b8] sm:$0xff] %vm1165_vm3, %v1924_v34 }
 0x35f   : > { %2183 = vst.msk [vmem:[#allocation5 + $0x2b8] sm:$0xff] %vm1358_vm4, %v2117_v27  ;;  %v2119_v35 = vpop.permute.xlu0 %2118  ;;  %v2212_v37 = vld [vmem:[#allocation5 + $0x270] sm:$0xff] }
 0x360   : > { %2184 = vst.msk [vmem:[#allocation5 + $0x2d0] sm:$0xff] %vm1358_vm4, %v2119_v35  ;;  %v9085_v27 = vld [vmem:[%s13104_s8 + $0x140] ss:$20 sps:$4 sm:$0xff]  }
 0x361   : > { %v2121_v36 = vpop.permute.xlu1 %2120  ;;  %v2213_v38 = vld [vmem:[#allocation5 + $0x288] sm:$0xff]  ;;  %3708 = vmatpush1.bf16.msra.mxu1 %v9085_v27 }
 0x362   : > { %2185 = vst.msk [vmem:[#allocation5 + $0x2e8] sm:$0xff] %vm1358_vm4, %v2121_v36  ;;  %v2231_v39 = vpack.c.bf16 %v2213_v38, %v2212_v37  ;;  %v9091_v36 = vld [vmem:[%s13104_s8 + $0x168] ss:$20 sps:$4 sm:$0xff]   ;;  %3709 = vmatprep.subr.bf16.mxu1 %v9093_v30  ;;  %v9094_v37 = vld [vmem:[%s13104_s8 + $0x170] ss:$20 sps:$4 sm:$0xff]  }
 0x363   : > { %v9097_v38 = vld [vmem:[%s13104_s8 + $0x190] ss:$20 sps:$4 sm:$0xff]   ;;  %3796 = vmatpush1.bf16.msra.mxu0 %v9094_v37 }
 0x364   : > { %8889 = vmatmul.mubr.msk.bf16.gmra.mrb[56].mxu0 %vm1494_vm5, %v2231_v39  ;;  %v2214_v40 = vld [vmem:[#allocation5 + $0x2a0] sm:$0xff] }
 0x365   : > { %3710 = vmatpush1.bf16.msra.mxu1 %v9091_v36  ;;  %v9099_v39 = vld [vmem:[%s13104_s8 + $0x194] ss:$20 sps:$4 sm:$0xff]  }
 0x366   : > { %v2215_v41 = vld [vmem:[#allocation5 + $0x2b8] sm:$0xff]  ;;  %3711 = vmatprep.subr.bf16.mxu1 %v9099_v39 }
 0x367   : > { %v2232_v42 = vpack.c.bf16 %v2215_v41, %v2214_v40  ;;  %v2216_v43 = vld [vmem:[#allocation5 + $0x2d0] sm:$0xff]  ;;  %v9100_v40 = vld [vmem:[%s13104_s8 + $0x198] ss:$20 sps:$4 sm:$0xff]   ;;  %v9102_v41 = vld [vmem:[%s13104_s8 + $0x19c] ss:$20 sps:$4 sm:$0xff]  }
 0x368   : > { %3797 = vmatprep.subr.bf16.mxu0 %v9102_v41 }
 0x369   : > { %8892 = vmatprep.mubr.msk.bf16.mxu0 %vm1494_vm5, %v2232_v42  ;;  %v2217_v44 = vld [vmem:[#allocation5 + $0x2e8] sm:$0xff]  ;;  %3712 = vmatpush1.bf16.msra.mxu1 %v9097_v38 }
 0x36a   : > { %v2233_v45 = vpack.c.bf16 %v2217_v44, %v2216_v43  ;;  %v9105_v42 = vld [vmem:[%s13104_s8 + $0x1bc] ss:$20 sps:$4 sm:$0xff]   ;;  %v9108_v43 = vld [vmem:[%s13104_s8 + $0x1c4] ss:$20 sps:$4 sm:$0xff]   ;;  %3798 = vmatpush1.bf16.msra.mxu0 %v9100_v40 }
 0x36b   : > { %v9103_v44 = vld [vmem:[%s13104_s8 + $0x1b8] ss:$20 sps:$4 sm:$0xff]   ;;  %3713 = vmatprep.subr.bf16.mxu1 %v9105_v42  ;;  %3799 = vmatprep.subr.bf16.mxu0 %v9108_v43 }
 0x36c   : > { %8893 = vmatmul.mubr.msk.bf16.gmra.mrb[60].mxu0 %vm1494_vm5, %v2233_v45  ;;  %v9106_v45 = vld [vmem:[%s13104_s8 + $0x1c0] ss:$20 sps:$4 sm:$0xff]  }
 0x36d   : > { %3714 = vmatpush1.bf16.msra.mxu1 %v9103_v44 }
 0x36e   : > { %3800 = vmatpush1.bf16.msra.mxu0 %v9106_v45  ;;  %3715 = vmatprep.subr.bf16.mxu1 %v9111_v46 }
 0x36f   : > { %3801 = vmatprep.subr.bf16.mxu0 %v9114_v49 }
 0x371   : > { %3716 = vmatpush1.bf16.msra.mxu1 %v9109_v48 }
 0x372   : > { %3802 = vmatpush1.bf16.msra.mxu0 %v9112_v53  ;;  %3717 = vmatprep.subr.bf16.mxu1 %v9117_v58 }
 0x373   : > { %3803 = vmatprep.subr.bf16.mxu0 %v9120_v60 }
 0x375   : > { %3718 = vmatpush1.bf16.msra.mxu1 %v9115_v57 }
 0x376   : > { %3804 = vmatpush1.bf16.msra.mxu0 %v9118_v59  ;;  %3719 = vmatprep.subr.bf16.mxu1 %v9123_v0 }
 0x379   : > { %3720 = vmatpush1.bf16.msra.mxu1 %v9121_v62 }
 0x37a   : > { %3721 = vmatprep.subr.bf16.mxu1 %v9129_v7 }
 0x3d7   : > { %v8866_v2 = vpop.f32.mrb[32].mxu0 }
 0x3d8   : > { %v2380_v5 = vadd.f32 %v8866_v2, %v10559_v63  ;;  %v2371_v6 = vpop.f32.mrb[33].mxu0 }
 0x3d9   : > { %v2372_v8 = vadd.f32 %v10559_v63, %v2371_v6  ;;  %v8867_v9 = vpop.f32.mrb[34].mxu0 }
 0x3da   : > { %v2383_v10 = vadd.f32 %v8867_v9, %v10559_v63  ;;  %2502 = vrot.lane.b32.xlu0 %v2380_v5, %s9556_s23  ;;  %v2374_v11 = vpop.f32.mrb[35].mxu0  ;;  %v9126_v5 = vld [vmem:[%s13104_s8 + $0x23c] ss:$20 sps:$4 sm:$0xff]  }
 0x3db   : > { %2498 = vst.msk [vmem:[#allocation6] sm:$0xff] %vm483_vm0, %v2372_v8  ;;  %v2375_v13 = vadd.f32 %v10559_v63, %v2374_v11  ;;  %3805 = vmatprep.subr.bf16.mxu0 %v9126_v5  ;;  %v9127_v11 = vld [vmem:[%s13104_s8 + $0x258] ss:$20 sps:$4 sm:$0xff]  }
 0x3dc   : > { %2504 = vrot.lane.b32.xlu1 %v2383_v10, %s9556_s23  ;;  %v9132_v10 = vld [vmem:[%s13104_s8 + $0x264] ss:$20 sps:$4 sm:$0xff]   ;;  %3806 = vmatpush1.bf16.msra.mxu0 %v9124_v4  ;;  %v9136_v4 = vld [vmem:[%s13104_s8 + $0x288] ss:$20 sps:$4 sm:$0xff]  }
 0x3dd   : > { %2499 = vst.msk [vmem:[#allocation6 + $0x20] sm:$0xff] %vm483_vm0, %v2375_v13  ;;  %v9130_v13 = vld [vmem:[%s13104_s8 + $0x260] ss:$20 sps:$4 sm:$0xff]   ;;  %3807 = vmatprep.subr.bf16.mxu0 %v9132_v10  ;;  %3722 = vmatpush1.bf16.msra.mxu1 %v9127_v11  ;;  %v9139_v10 = vld [vmem:[%s13104_s8 + $0x2a8] ss:$20 sps:$4 sm:$0xff]  }
 0x3de   : > { %3734 = vmatprep.subr.bf16.mxu1 %v9135_v15  ;;  %v9142_v11 = vld [vmem:[%s13104_s8 + $0x2b0] ss:$20 sps:$4 sm:$0xff]  }
 0x3e0   : > { %3808 = vmatpush1.bf16.msra.mxu0 %v9130_v13  ;;  %v9150_v13 = vld [vmem:[%s13104_s8 + $0x2dc] ss:$20 sps:$4 sm:$0xff]  }
 0x3e1   : > { %3820 = vmatprep.subr.bf16.mxu0 %v9138_v17  ;;  %v9145_v17 = vld [vmem:[%s13104_s8 + $0x2d0] ss:$20 sps:$4 sm:$0xff]  }
 0x3e7   : > { %v10617_v26 = vpop.f32.mrb[36].mxu0 }
 0x3e8   : > { %v2387_v28 = vpop.f32.mrb[37].mxu0  ;;  %v2396_v18 = vadd.f32 %v10617_v26, %v10559_v63 }
 0x3e9   : > { %v2388_v31 = vadd.f32 %v10559_v63, %v2387_v28  ;;  %v10629_v32 = vpop.f32.mrb[38].mxu0 }
 0x3ea   : > { %v2390_v34 = vpop.f32.mrb[39].mxu0  ;;  %v2399_v19 = vadd.f32 %v10629_v32, %v10559_v63 }
 0x3eb   : > { %v2391_v35 = vadd.f32 %v10559_v63, %v2390_v34  ;;  %2512 = vrot.lane.b32.xlu0 %v2388_v31, %s9557_s26 }
 0x3ed   : > { %2514 = vrot.lane.b32.xlu1 %v2391_v35, %s9557_s26 }
 0x3f7   : > { %v8874_v47 = vpop.f32.mrb[40].mxu0 }
 0x3f8   : > { %v2412_v50 = vadd.f32 %v8874_v47, %v10559_v63  ;;  %v2403_v52 = vpop.f32.mrb[41].mxu0 }
 0x3f9   : > { %v2404_v51 = vadd.f32 %v10559_v63, %v2403_v52  ;;  %v8875_v54 = vpop.f32.mrb[42].mxu0 }
 0x3fa   : > { %v2415_v55 = vadd.f32 %v8875_v54, %v10559_v63  ;;  %v2406_v56 = vpop.f32.mrb[43].mxu0  ;;  %2535 = vrot.lane.b32.xlu0 %v2412_v50, %s9556_s23 }
 0x3fb   : > { %2531 = vst.msk [vmem:[#allocation6 + $0x8] sm:$0xff] %vm483_vm0, %v2404_v51  ;;  %v2407_v16 = vadd.f32 %v10559_v63, %v2406_v56 }
 0x3fc   : > { %2537 = vrot.lane.b32.xlu1 %v2415_v55, %s9556_s23 }
 0x3fd   : > { %2532 = vst.msk [vmem:[#allocation6 + $0x28] sm:$0xff] %vm483_vm0, %v2407_v16 }
 0x3ff   : > { %v8878_v61 = vpop.f32.mrb[44].mxu0 }
 0x400   : > { %v2428_v2 = vadd.f32 %v8878_v61, %v10559_v63  ;;  %v2419_v3 = vpop.f32.mrb[45].mxu0 }
 0x401   : > { %v8879_v6 = vpop.f32.mrb[46].mxu0  ;;  %v2420_v12 = vadd.f32 %v10559_v63, %v2419_v3  ;;  %v9133_v3 = vld [vmem:[%s13104_s8 + $0x280] ss:$20 sps:$4 sm:$0xff]  }
 0x402   : > { %v2431_v8 = vadd.f32 %v8879_v6, %v10559_v63  ;;  %v2422_v9 = vpop.f32.mrb[47].mxu0  ;;  %2555 = vrot.lane.b32.xlu0 %v2428_v2, %s9558_s21 }
 0x403   : > { %v2423_v14 = vadd.f32 %v10559_v63, %v2422_v9  ;;  %v9144_v9 = vld [vmem:[%s13104_s8 + $0x2b4] ss:$20 sps:$4 sm:$0xff]  }
 0x404   : > { %2557 = vrot.lane.b32.xlu1 %v2431_v8, %s9558_s21  ;;  %v9141_v8 = vld [vmem:[%s13104_s8 + $0x2ac] ss:$20 sps:$4 sm:$0xff]  }
 0x406   : > { %2545 = vrot.lane.b32.xlu0 %v2420_v12, %s9557_s26  ;;  %v9147_v12 = vld [vmem:[%s13104_s8 + $0x2d4] ss:$20 sps:$4 sm:$0xff]  }
 0x408   : > { %2547 = vrot.lane.b32.xlu1 %v2423_v14, %s9557_s26 }
 0x40a   : > { %2522 = vrot.lane.b32.xlu0 %v2396_v18, %s9558_s21  ;;  %v9148_v18 = vld [vmem:[%s13104_s8 + $0x2d8] ss:$20 sps:$4 sm:$0xff]  }
 0x40c   : > { %2524 = vrot.lane.b32.xlu1 %v2399_v19, %s9558_s21  ;;  %v9153_v19 = vld [vmem:[%s13104_s8 + $0x2fc] ss:$20 sps:$4 sm:$0xff]  }
 0x417   : > { %v8882_v20 = vpop.f32.mrb[48].mxu0 }
 0x418   : > { %v2444_v21 = vadd.f32 %v8882_v20, %v10559_v63  ;;  %v2435_v22 = vpop.f32.mrb[49].mxu0  ;;  %v9156_v20 = vld [vmem:[%s13104_s8 + $0x304] ss:$20 sps:$4 sm:$0xff]  }
 0x419   : > { %v2436_v23 = vadd.f32 %v10559_v63, %v2435_v22  ;;  %v8883_v24 = vpop.f32.mrb[50].mxu0  ;;  %v9154_v22 = vld [vmem:[%s13104_s8 + $0x300] ss:$20 sps:$4 sm:$0xff]  }
 0x41a   : > { %v2447_v25 = vadd.f32 %v8883_v24, %v10559_v63  ;;  %v2438_v26 = vpop.f32.mrb[51].mxu0  ;;  %2567 = vrot.lane.b32.xlu0 %v2444_v21, %s9556_s23  ;;  %v9151_v21 = vld [vmem:[%s13104_s8 + $0x2f8] ss:$20 sps:$4 sm:$0xff]  }
 0x41b   : > { %2563 = vst.msk [vmem:[#allocation6 + $0x10] sm:$0xff] %vm483_vm0, %v2436_v23  ;;  %v2439_v27 = vadd.f32 %v10559_v63, %v2438_v26  ;;  %v9159_v23 = vld [vmem:[%s13104_s8 + $0x324] ss:$20 sps:$4 sm:$0xff]   ;;  %v9162_v24 = vld [vmem:[%s13104_s8 + $0x32c] ss:$20 sps:$4 sm:$0xff]  }
 0x41c   : > { %2569 = vrot.lane.b32.xlu1 %v2447_v25, %s9556_s23  ;;  %v9157_v25 = vld [vmem:[%s13104_s8 + $0x320] ss:$20 sps:$4 sm:$0xff]   ;;  %v9160_v26 = vld [vmem:[%s13104_s8 + $0x328] ss:$20 sps:$4 sm:$0xff]  }
 0x41d   : > { %2564 = vst.msk [vmem:[#allocation6 + $0x30] sm:$0xff] %vm483_vm0, %v2439_v27  ;;  %v9165_v27 = vld [vmem:[%s13104_s8 + $0x34c] ss:$20 sps:$4 sm:$0xff]  }
 0x427   : > { %v8886_v28 = vpop.f32.mrb[52].mxu0 }
 0x428   : > { %v2451_v29 = vpop.f32.mrb[53].mxu0  ;;  %v2460_v50 = vadd.f32 %v8886_v28, %v10559_v63  ;;  %v9168_v28 = vld [vmem:[%s13104_s8 + $0x354] ss:$20 sps:$4 sm:$0xff]  }
 0x429   : > { %v2452_v30 = vadd.f32 %v10559_v63, %v2451_v29  ;;  %v8887_v31 = vpop.f32.mrb[54].mxu0  ;;  %v9163_v29 = vld [vmem:[%s13104_s8 + $0x348] ss:$20 sps:$4 sm:$0xff]  }
 0x42a   : > { %v2454_v32 = vpop.f32.mrb[55].mxu0  ;;  %v2463_v52 = vadd.f32 %v8887_v31, %v10559_v63  ;;  %v9171_v31 = vld [vmem:[%s13104_s8 + $0x374] ss:$20 sps:$4 sm:$0xff]  }
 0x42b   : > { %v2455_v33 = vadd.f32 %v10559_v63, %v2454_v32  ;;  %2577 = vrot.lane.b32.xlu0 %v2452_v30, %s9557_s26  ;;  %v9166_v30 = vld [vmem:[%s13104_s8 + $0x350] ss:$20 sps:$4 sm:$0xff]  }
 0x42c   : > { %v9174_v32 = vld [vmem:[%s13104_s8 + $0x37c] ss:$20 sps:$4 sm:$0xff]  }
 0x42d   : > { %2579 = vrot.lane.b32.xlu1 %v2455_v33, %s9557_s26 }
 0x437   : > { %v8890_v34 = vpop.f32.mrb[56].mxu0 }
 0x438   : > { %v2476_v35 = vadd.f32 %v8890_v34, %v10559_v63  ;;  %v2467_v36 = vpop.f32.mrb[57].mxu0  ;;  %v9169_v34 = vld [vmem:[%s13104_s8 + $0x370] ss:$20 sps:$4 sm:$0xff]  }
 0x439   : > { %v2468_v37 = vadd.f32 %v10559_v63, %v2467_v36  ;;  %v8891_v38 = vpop.f32.mrb[58].mxu0 }
 0x43a   : > { %v2479_v39 = vadd.f32 %v8891_v38, %v10559_v63  ;;  %v2470_v40 = vpop.f32.mrb[59].mxu0  ;;  %2599 = vrot.lane.b32.xlu0 %v2476_v35, %s9556_s23  ;;  %v9172_v35 = vld [vmem:[%s13104_s8 + $0x378] ss:$20 sps:$4 sm:$0xff]  }
 0x43b   : > { %2595 = vst.msk [vmem:[#allocation6 + $0x18] sm:$0xff] %vm483_vm0, %v2468_v37  ;;  %v2471_v41 = vadd.f32 %v10559_v63, %v2470_v40  ;;  %v9177_v37 = vld [vmem:[%s13104_s8 + $0x39c] ss:$20 sps:$4 sm:$0xff]   ;;  %v9180_v38 = vld [vmem:[%s13104_s8 + $0x3a4] ss:$20 sps:$4 sm:$0xff]  }
 0x43c   : > { %2601 = vrot.lane.b32.xlu1 %v2479_v39, %s9556_s23  ;;  %v9175_v39 = vld [vmem:[%s13104_s8 + $0x398] ss:$20 sps:$4 sm:$0xff]   ;;  %v9178_v40 = vld [vmem:[%s13104_s8 + $0x3a0] ss:$20 sps:$4 sm:$0xff]  }
 0x43d   : > { %2596 = vst.msk [vmem:[#allocation6 + $0x38] sm:$0xff] %vm483_vm0, %v2471_v41  ;;  %v9183_v41 = vld [vmem:[%s13104_s8 + $0x3c4] ss:$20 sps:$4 sm:$0xff]  }
 0x43f   : > { %v8894_v42 = vpop.f32.mrb[60].mxu0 }
 0x440   : > { %v2492_v43 = vadd.f32 %v8894_v42, %v10559_v63  ;;  %v2483_v44 = vpop.f32.mrb[61].mxu0  ;;  %v9186_v42 = vld [vmem:[%s13104_s8 + $0x3cc] ss:$20 sps:$4 sm:$0xff]  }
 0x441   : > { %v8895_v45 = vpop.f32.mrb[62].mxu0  ;;  %v2484_v48 = vadd.f32 %v10559_v63, %v2483_v44  ;;  %v9184_v44 = vld [vmem:[%s13104_s8 + $0x3c8] ss:$20 sps:$4 sm:$0xff]  }
 0x442   : > { %v2495_v46 = vadd.f32 %v8895_v45, %v10559_v63  ;;  %v2486_v47 = vpop.f32.mrb[63].mxu0  ;;  %2619 = vrot.lane.b32.xlu0 %v2492_v43, %s9558_s21  ;;  %v9181_v43 = vld [vmem:[%s13104_s8 + $0x3c0] ss:$20 sps:$4 sm:$0xff]  }
 0x443   : > { %v2487_v49 = vadd.f32 %v10559_v63, %v2486_v47  ;;  %v9189_v45 = vld [vmem:[%s13104_s8 + $0x3ec] ss:$20 sps:$4 sm:$0xff]   ;;  %v9187_v47 = vld [vmem:[%s13104_s8 + $0x3e8] ss:$20 sps:$4 sm:$0xff]  }
 0x444   : > { %2621 = vrot.lane.b32.xlu1 %v2495_v46, %s9558_s21  ;;  %v9192_v46 = vld [vmem:[%s13104_s8 + $0x3f4] ss:$20 sps:$4 sm:$0xff]  }
 0x446   : > { %2609 = vrot.lane.b32.xlu0 %v2484_v48, %s9557_s26  ;;  %v9190_v48 = vld [vmem:[%s13104_s8 + $0x3f0] ss:$20 sps:$4 sm:$0xff]  }
 0x448   : > { %2611 = vrot.lane.b32.xlu1 %v2487_v49, %s9557_s26  ;;  %v9195_v49 = vld [vmem:[%s13104_s8 + $0x414] ss:$20 sps:$4 sm:$0xff]  }
 0x44a   : > { %2587 = vrot.lane.b32.xlu0 %v2460_v50, %s9558_s21  ;;  %v9198_v50 = vld [vmem:[%s13104_s8 + $0x41c] ss:$20 sps:$4 sm:$0xff]  }
 0x44c   : > { %v2503_v53 = vpop.permute.xlu0 %2502  ;;  %2589 = vrot.lane.b32.xlu1 %v2463_v52, %s9558_s21 }
 0x44d   : > { %2508 = vst.msk [vmem:[#allocation6] sm:$0xff] %vm1165_vm3, %v2503_v53 }
 0x44e   : > { %v2505_v51 = vpop.permute.xlu1 %2504 }
 0x44f   : > { %2509 = vst.msk [vmem:[#allocation6 + $0x20] sm:$0xff] %vm1165_vm3, %v2505_v51  ;;  %v9193_v51 = vld [vmem:[%s13104_s8 + $0x410] ss:$20 sps:$4 sm:$0xff]  }
 0x45d   : > { %v2513_v54 = vpop.permute.xlu0 %2512 }
 0x45e   : > { %2518 = vst.msk [vmem:[#allocation6] sm:$0xff] %vm1358_vm4, %v2513_v54  ;;  %v9196_v54 = vld [vmem:[%s13104_s8 + $0x418] ss:$20 sps:$4 sm:$0xff]  }
 0x45f   : > { %v2515_v55 = vpop.permute.xlu1 %2514 }
 0x460   : > { %2519 = vst.msk [vmem:[#allocation6 + $0x20] sm:$0xff] %vm1358_vm4, %v2515_v55  ;;  %v9201_v55 = vld [vmem:[%s13104_s8 + $0x43c] ss:$20 sps:$4 sm:$0xff]  }
 0x46c   : > { %v2536_v56 = vpop.permute.xlu0 %2535 }
 0x46d   : > { %2541 = vst.msk [vmem:[#allocation6 + $0x8] sm:$0xff] %vm1165_vm3, %v2536_v56  ;;  %v9204_v56 = vld [vmem:[%s13104_s8 + $0x444] ss:$20 sps:$4 sm:$0xff]  }
 0x46e   : > { %v2538_v63 = vpop.permute.xlu1 %2537 }
 0x46f   : > { %2542 = vst.msk [vmem:[#allocation6 + $0x28] sm:$0xff] %vm1165_vm3, %v2538_v63  ;;  %v9199_v63 = vld [vmem:[%s13104_s8 + $0x438] ss:$20 sps:$4 sm:$0xff]  }
 0x474   : > { %v2556_v16 = vpop.permute.xlu0 %2555 }
 0x476   : > { %v2558_v57 = vpop.permute.xlu1 %2557 }
 0x478   : > { %v2546_v58 = vpop.permute.xlu0 %2545 }
 0x479   : > { %2551 = vst.msk [vmem:[#allocation6 + $0x8] sm:$0xff] %vm1358_vm4, %v2546_v58  ;;  %v9210_v58 = vld [vmem:[%s13104_s8 + $0x46c] ss:$20 sps:$4 sm:$0xff]  }
 0x47a   : > { %2561 = vst.msk [vmem:[#allocation6 + $0x8] sm:$0xff] %vm2528_vm6, %v2556_v16  ;;  %v2548_v59 = vpop.permute.xlu1 %2547  ;;  %v9202_v16 = vld [vmem:[%s13104_s8 + $0x440] ss:$20 sps:$4 sm:$0xff]  }
 0x47b   : > { %2552 = vst.msk [vmem:[#allocation6 + $0x28] sm:$0xff] %vm1358_vm4, %v2548_v59 }
 0x47c   : > { %2562 = vst.msk [vmem:[#allocation6 + $0x28] sm:$0xff] %vm2528_vm6, %v2558_v57  ;;  %v2523_v60 = vpop.permute.xlu0 %2522  ;;  %v9207_v57 = vld [vmem:[%s13104_s8 + $0x464] ss:$20 sps:$4 sm:$0xff]  }
 0x47d   : > { %2529 = vst.msk [vmem:[#allocation6] sm:$0xff] %vm2528_vm6, %v2523_v60 }
 0x47e   : > { %v2525_v61 = vpop.permute.xlu1 %2524 }
 0x47f   : > { %2530 = vst.msk [vmem:[#allocation6 + $0x20] sm:$0xff] %vm2528_vm6, %v2525_v61  ;;  %v9205_v61 = vld [vmem:[%s13104_s8 + $0x460] ss:$20 sps:$4 sm:$0xff]  }
 0x481   : > { %v2628_v62 = vld [vmem:[#allocation6 + $0x8] sm:$0xff] }
 0x483   : > { %v2632_v0 = vld [vmem:[#allocation6 + $0x28] sm:$0xff] }
 0x484   : > { %v10787_v2 = vpack.c.bf16 %v2632_v0, %v2628_v62  ;;  %v2627_v5 = vld [vmem:[#allocation6] sm:$0xff]  ;;  %v9208_v62 = vld [vmem:[%s13104_s8 + $0x468] ss:$20 sps:$4 sm:$0xff]   ;;  %v9213_v0 = vld [vmem:[%s13104_s8 + $0x48c] ss:$20 sps:$4 sm:$0xff]  }
 0x486   : > { %3723 = vmatprep.mubr.bf16.mxu1 %v10787_v2  ;;  %3809 = vmatprep.mubr.bf16.mxu0 %v10787_v2  ;;  %v2631_v6 = vld [vmem:[#allocation6 + $0x20] sm:$0xff] }
 0x487   : > { %v10797_v7 = vpack.c.bf16 %v2631_v6, %v2627_v5  ;;  %v9211_v6 = vld [vmem:[%s13104_s8 + $0x488] ss:$20 sps:$4 sm:$0xff]  }
 0x489   : > { %3724 = vmatmul.mubr.bf16.vlgmr.msra.gmra.mrb[32].mxu1 %v10797_v7  ;;  %3810 = vmatmul.mubr.bf16.vlgmr.msra.gmra.mrb[64].mxu0 %v10797_v7 }
 0x48a   : > { %3735 = vmatpush1.bf16.msra.mxu1 %v9133_v3  ;;  %3821 = vmatpush1.bf16.msra.mxu0 %v9136_v4  ;;  %v9216_v3 = vld [vmem:[%s13104_s8 + $0x494] ss:$20 sps:$4 sm:$0xff]  }
 0x48b   : > { %3736 = vmatprep.subr.bf16.mxu1 %v9141_v8  ;;  %3822 = vmatprep.subr.bf16.mxu0 %v9144_v9  ;;  %v9214_v8 = vld [vmem:[%s13104_s8 + $0x490] ss:$20 sps:$4 sm:$0xff]   ;;  %v9219_v9 = vld [vmem:[%s13104_s8 + $0x4b4] ss:$20 sps:$4 sm:$0xff]  }
 0x48c   : > { %v2568_v14 = vpop.permute.xlu0 %2567 }
 0x48d   : > { %2573 = vst.msk [vmem:[#allocation6 + $0x10] sm:$0xff] %vm1165_vm3, %v2568_v14  ;;  %v9220_v14 = vld [vmem:[%s13104_s8 + $0x4b8] ss:$20 sps:$4 sm:$0xff]  }
 0x48e   : > { %3737 = vmatpush1.bf16.msra.mxu1 %v9139_v10  ;;  %3823 = vmatpush1.bf16.msra.mxu0 %v9142_v11  ;;  %v2570_v15 = vpop.permute.xlu1 %2569  ;;  %v9222_v10 = vld [vmem:[%s13104_s8 + $0x4bc] ss:$20 sps:$4 sm:$0xff]  }
 0x48f   : > { %2574 = vst.msk [vmem:[#allocation6 + $0x30] sm:$0xff] %vm1165_vm3, %v2570_v15  ;;  %3738 = vmatprep.subr.bf16.mxu1 %v9147_v12  ;;  %3824 = vmatprep.subr.bf16.mxu0 %v9150_v13  ;;  %v9217_v13 = vld [vmem:[%s13104_s8 + $0x4b0] ss:$20 sps:$4 sm:$0xff]  }
 0x490   : > { %v9225_v15 = vld [vmem:[%s13104_s8 + $0x4dc] ss:$20 sps:$4 sm:$0xff]  }
 0x492   : > { %3739 = vmatpush1.bf16.msra.mxu1 %v9145_v17  ;;  %3825 = vmatpush1.bf16.msra.mxu0 %v9148_v18  ;;  %v9228_v17 = vld [vmem:[%s13104_s8 + $0x4e4] ss:$20 sps:$4 sm:$0xff]  }
 0x493   : > { %3740 = vmatprep.subr.bf16.mxu1 %v9153_v19  ;;  %3826 = vmatprep.subr.bf16.mxu0 %v9156_v20  ;;  %v9223_v18 = vld [vmem:[%s13104_s8 + $0x4d8] ss:$20 sps:$4 sm:$0xff]   ;;  %v9226_v19 = vld [vmem:[%s13104_s8 + $0x4e0] ss:$20 sps:$4 sm:$0xff]  }
 0x496   : > { %3741 = vmatpush1.bf16.msra.mxu1 %v9151_v21  ;;  %3827 = vmatpush1.bf16.msra.mxu0 %v9154_v22 }
 0x497   : > { %3742 = vmatprep.subr.bf16.mxu1 %v9159_v23  ;;  %3828 = vmatprep.subr.bf16.mxu0 %v9162_v24  ;;  %v9229_v23 = vld [vmem:[%s13104_s8 + $0x150] ss:$20 sps:$4 sm:$0xff]  }
 0x498   : > { %v9230_v24 = vld [vmem:[%s13104_s8 + $0x3d0] ss:$20 sps:$4 sm:$0xff]  }
 0x49a   : > { %3743 = vmatpush1.bf16.msra.mxu1 %v9157_v25  ;;  %3829 = vmatpush1.bf16.msra.mxu0 %v9160_v26  ;;  %v9231_v25 = vld [vmem:[%s13104_s8 + $0x10] ss:$20 sps:$4 sm:$0xff]  }
 0x49b   : > { %3744 = vmatprep.subr.bf16.mxu1 %v9165_v27  ;;  %3830 = vmatprep.subr.bf16.mxu0 %v9168_v28  ;;  %v9232_v28 = vld [vmem:[%s13104_s8 + $0x290] ss:$20 sps:$4 sm:$0xff]  }
 0x49d   : > { %v2578_v33 = vpop.permute.xlu0 %2577 }
 0x49e   : > { %2583 = vst.msk [vmem:[#allocation6 + $0x10] sm:$0xff] %vm1358_vm4, %v2578_v33  ;;  %3745 = vmatpush1.bf16.msra.mxu1 %v9163_v29  ;;  %3831 = vmatpush1.bf16.msra.mxu0 %v9166_v30  ;;  %v9233_v30 = vld [vmem:[%s13104_s8 + $0x178] ss:$20 sps:$4 sm:$0xff]  }
 0x49f   : > { %v2580_v36 = vpop.permute.xlu1 %2579  ;;  %3746 = vmatprep.subr.bf16.mxu1 %v9171_v31  ;;  %3832 = vmatprep.subr.bf16.mxu0 %v9174_v32  ;;  %v9234_v31 = vld [vmem:[%s13104_s8 + $0x3f8] ss:$20 sps:$4 sm:$0xff]  }
 0x4a0   : > { %2584 = vst.msk [vmem:[#allocation6 + $0x30] sm:$0xff] %vm1358_vm4, %v2580_v36  ;;  %v9235_v32 = vld [vmem:[%s13104_s8 + $0x38] ss:$20 sps:$4 sm:$0xff]   ;;  %v9239_v36 = vld [vmem:[%s13104_s8 + $0x60] ss:$20 sps:$4 sm:$0xff]  }
 0x4a1   : > { %v9236_v33 = vld [vmem:[%s13104_s8 + $0x2b8] ss:$20 sps:$4 sm:$0xff]  }
 0x4a2   : > { %3747 = vmatpush1.bf16.msra.mxu1 %v9169_v34  ;;  %3833 = vmatpush1.bf16.msra.mxu0 %v9172_v35  ;;  %v9237_v34 = vld [vmem:[%s13104_s8 + $0x1a0] ss:$20 sps:$4 sm:$0xff]  }
 0x4a3   : > { %3748 = vmatprep.subr.bf16.mxu1 %v9177_v37  ;;  %3834 = vmatprep.subr.bf16.mxu0 %v9180_v38  ;;  %v9238_v35 = vld [vmem:[%s13104_s8 + $0x420] ss:$20 sps:$4 sm:$0xff]   ;;  %v9241_v38 = vld [vmem:[%s13104_s8 + $0x1c8] ss:$20 sps:$4 sm:$0xff]  }
 0x4a4   : > { %v9240_v37 = vld [vmem:[%s13104_s8 + $0x2e0] ss:$20 sps:$4 sm:$0xff]  }
 0x4a6   : > { %3749 = vmatpush1.bf16.msra.mxu1 %v9175_v39  ;;  %3835 = vmatpush1.bf16.msra.mxu0 %v9178_v40  ;;  %v9242_v39 = vld [vmem:[%s13104_s8 + $0x448] ss:$20 sps:$4 sm:$0xff]  }
 0x4a7   : > { %3750 = vmatprep.subr.bf16.mxu1 %v9183_v41  ;;  %3836 = vmatprep.subr.bf16.mxu0 %v9186_v42  ;;  %v9243_v40 = vld [vmem:[%s13104_s8 + $0x88] ss:$20 sps:$4 sm:$0xff]   ;;  %v9245_v42 = vld [vmem:[%s13104_s8 + $0x1f0] ss:$20 sps:$4 sm:$0xff]  }
 0x4a8   : > { %v9244_v41 = vld [vmem:[%s13104_s8 + $0x308] ss:$20 sps:$4 sm:$0xff]  }
 0x4aa   : > { %3751 = vmatpush1.bf16.msra.mxu1 %v9181_v43  ;;  %3837 = vmatpush1.bf16.msra.mxu0 %v9184_v44  ;;  %v9246_v43 = vld [vmem:[%s13104_s8 + $0x470] ss:$20 sps:$4 sm:$0xff]  }
 0x4ab   : > { %3752 = vmatprep.subr.bf16.mxu1 %v9189_v45  ;;  %3838 = vmatprep.subr.bf16.mxu0 %v9192_v46  ;;  %v9247_v44 = vld [vmem:[%s13104_s8 + $0xb0] ss:$20 sps:$4 sm:$0xff]   ;;  %v9249_v46 = vld [vmem:[%s13104_s8 + $0x218] ss:$20 sps:$4 sm:$0xff]  }
 0x4ac   : > { %v2600_v52 = vpop.permute.xlu0 %2599  ;;  %v9248_v45 = vld [vmem:[%s13104_s8 + $0x330] ss:$20 sps:$4 sm:$0xff]  }
 0x4ad   : > { %2605 = vst.msk [vmem:[#allocation6 + $0x18] sm:$0xff] %vm1165_vm3, %v2600_v52  ;;  %v9254_v52 = vld [vmem:[%s13104_s8 + $0x4c0] ss:$20 sps:$4 sm:$0xff]  }
 0x4ae   : > { %3753 = vmatpush1.bf16.msra.mxu1 %v9187_v47  ;;  %3839 = vmatpush1.bf16.msra.mxu0 %v9190_v48  ;;  %v2602_v53 = vpop.permute.xlu1 %2601  ;;  %v9250_v47 = vld [vmem:[%s13104_s8 + $0x498] ss:$20 sps:$4 sm:$0xff]  }
 0x4af   : > { %2606 = vst.msk [vmem:[#allocation6 + $0x38] sm:$0xff] %vm1165_vm3, %v2602_v53  ;;  %3754 = vmatprep.subr.bf16.mxu1 %v9195_v49  ;;  %3840 = vmatprep.subr.bf16.mxu0 %v9198_v50  ;;  %v9251_v48 = vld [vmem:[%s13104_s8 + $0xd8] ss:$20 sps:$4 sm:$0xff]   ;;  %v9253_v50 = vld [vmem:[%s13104_s8 + $0x240] ss:$20 sps:$4 sm:$0xff]  }
 0x4b0   : > { %v9252_v49 = vld [vmem:[%s13104_s8 + $0x358] ss:$20 sps:$4 sm:$0xff]   ;;  %v9255_v53 = vld [vmem:[%s13104_s8 + $0x100] ss:$20 sps:$4 sm:$0xff]  }
 0x4b2   : > { %3755 = vmatpush1.bf16.msra.mxu1 %v9193_v51  ;;  %3841 = vmatpush1.bf16.msra.mxu0 %v9196_v54  ;;  %v9256_v51 = vld [vmem:[%s13104_s8 + $0x380] ss:$20 sps:$4 sm:$0xff]   ;;  %v9257_v54 = vld [vmem:[%s13104_s8 + $0x268] ss:$20 sps:$4 sm:$0xff]  }
 0x4b3   : > { %3756 = vmatprep.subr.bf16.mxu1 %v9201_v55  ;;  %3842 = vmatprep.subr.bf16.mxu0 %v9204_v56  ;;  %v9258_v55 = vld [vmem:[%s13104_s8 + $0x4e8] ss:$20 sps:$4 sm:$0xff]  }
 0x4b4   : > { %v2620_v59 = vpop.permute.xlu0 %2619  ;;  %v9259_v56 = vld [vmem:[%s13104_s8 + $0x128] ss:$20 sps:$4 sm:$0xff]  }
 0x4b6   : > { %3757 = vmatpush1.bf16.msra.mxu1 %v9199_v63  ;;  %3843 = vmatpush1.bf16.msra.mxu0 %v9202_v16  ;;  %v2622_v60 = vpop.permute.xlu1 %2621  ;;  %v9260_v63 = vld [vmem:[%s13104_s8 + $0x3a8] ss:$20 sps:$4 sm:$0xff]   ;;  %v9263_v16 = vld [vmem:[%s13106_s10 + $0xc] ss:$20 sps:$4 sm:$0xff]  }
 0x4b7   : > { %3758 = vmatprep.subr.bf16.mxu1 %v9207_v57  ;;  %3844 = vmatprep.subr.bf16.mxu0 %v9210_v58  ;;  %v9261_v57 = vld [vmem:[%s13106_s10 + $0x8] ss:$20 sps:$4 sm:$0xff]  }
 0x4b8   : > { %v2610_v4 = vpop.permute.xlu0 %2609  ;;  %v9266_v58 = vld [vmem:[%s13106_s10 + $0x34] ss:$20 sps:$4 sm:$0xff]  }
 0x4b9   : > { %2615 = vst.msk [vmem:[#allocation6 + $0x18] sm:$0xff] %vm1358_vm4, %v2610_v4  ;;  %v9273_v4 = vld [vmem:[%s13106_s10 + $0xa8] ss:$20 sps:$4 sm:$0xff]  }
 0x4ba   : > { %2625 = vst.msk [vmem:[#allocation6 + $0x18] sm:$0xff] %vm2528_vm6, %v2620_v59  ;;  %3759 = vmatpush1.bf16.msra.mxu1 %v9205_v61  ;;  %3845 = vmatpush1.bf16.msra.mxu0 %v9208_v62  ;;  %v2612_v5 = vpop.permute.xlu1 %2611  ;;  %v9264_v59 = vld [vmem:[%s13106_s10 + $0x30] ss:$20 sps:$4 sm:$0xff]   ;;  %v9267_v61 = vld [vmem:[%s13106_s10 + $0x58] ss:$20 sps:$4 sm:$0xff]  }
 0x4bb   : > { %2616 = vst.msk [vmem:[#allocation6 + $0x38] sm:$0xff] %vm1358_vm4, %v2612_v5  ;;  %3760 = vmatprep.subr.bf16.mxu1 %v9213_v0  ;;  %3846 = vmatprep.subr.bf16.mxu0 %v9216_v3  ;;  %v9272_v62 = vld [vmem:[%s13106_s10 + $0x84] ss:$20 sps:$4 sm:$0xff]   ;;  %v9270_v0 = vld [vmem:[%s13106_s10 + $0x80] ss:$20 sps:$4 sm:$0xff]  }
 0x4bc   : > { %2626 = vst.msk [vmem:[#allocation6 + $0x38] sm:$0xff] %vm2528_vm6, %v2622_v60  ;;  %v2588_v11 = vpop.permute.xlu0 %2587  ;;  %v9269_v60 = vld [vmem:[%s13106_s10 + $0x5c] ss:$20 sps:$4 sm:$0xff]   ;;  %v9275_v3 = vld [vmem:[%s13106_s10 + $0xac] ss:$20 sps:$4 sm:$0xff]  }
 0x4bd   : > { %2593 = vst.msk [vmem:[#allocation6 + $0x10] sm:$0xff] %vm2528_vm6, %v2588_v11  ;;  %v9278_v5 = vld [vmem:[%s13106_s10 + $0xd4] ss:$20 sps:$4 sm:$0xff]  }
 0x4be   : > { %3761 = vmatpush1.bf16.msra.mxu1 %v9211_v6  ;;  %3847 = vmatpush1.bf16.msra.mxu0 %v9214_v8  ;;  %v2590_v12 = vpop.permute.xlu1 %2589  ;;  %v9276_v6 = vld [vmem:[%s13106_s10 + $0xd0] ss:$20 sps:$4 sm:$0xff]   ;;  %v9282_v11 = vld [vmem:[%s13106_s10 + $0x120] ss:$20 sps:$4 sm:$0xff]  }
 0x4bf   : > { %2594 = vst.msk [vmem:[#allocation6 + $0x30] sm:$0xff] %vm2528_vm6, %v2590_v12  ;;  %3762 = vmatprep.subr.bf16.mxu1 %v9219_v9  ;;  %3848 = vmatprep.subr.bf16.mxu0 %v9222_v10  ;;  %v9281_v8 = vld [vmem:[%s13106_s10 + $0xfc] ss:$20 sps:$4 sm:$0xff]   ;;  %v9279_v9 = vld [vmem:[%s13106_s10 + $0xf8] ss:$20 sps:$4 sm:$0xff]  }
 0x4c0   : > { %v9284_v10 = vld [vmem:[%s13106_s10 + $0x124] ss:$20 sps:$4 sm:$0xff]   ;;  %v9287_v12 = vld [vmem:[%s13106_s10 + $0x14c] ss:$20 sps:$4 sm:$0xff]  }
 0x4c1   : > { %v2630_v20 = vld [vmem:[#allocation6 + $0x18] sm:$0xff] }
 0x4c2   : > { %3763 = vmatpush1.bf16.msra.mxu1 %v9217_v13  ;;  %3849 = vmatpush1.bf16.msra.mxu0 %v9220_v14  ;;  %v9285_v13 = vld [vmem:[%s13106_s10 + $0x148] ss:$20 sps:$4 sm:$0xff]  }
 0x4c3   : > { %3764 = vmatprep.subr.bf16.mxu1 %v9225_v15  ;;  %3850 = vmatprep.subr.bf16.mxu0 %v9228_v17  ;;  %v2634_v21 = vld [vmem:[#allocation6 + $0x38] sm:$0xff]  ;;  %v9288_v15 = vld [vmem:[%s13106_s10 + $0x170] ss:$20 sps:$4 sm:$0xff]  }
 0x4c4   : > { %v10993_v22 = vpack.c.bf16 %v2634_v21, %v2630_v20  ;;  %v2629_v26 = vld [vmem:[#allocation6 + $0x10] sm:$0xff]  ;;  %v9290_v14 = vld [vmem:[%s13106_s10 + $0x174] ss:$20 sps:$4 sm:$0xff]   ;;  %v9293_v17 = vld [vmem:[%s13106_s10 + $0x19c] ss:$20 sps:$4 sm:$0xff]  }
 0x4c5   : > { %v9294_v20 = vld [vmem:[%s13106_s10 + $0x1c0] ss:$20 sps:$4 sm:$0xff]  }
 0x4c6   : > { %3765 = vmatpush1.bf16.msra.mxu1 %v9223_v18  ;;  %3851 = vmatpush1.bf16.msra.mxu0 %v9226_v19  ;;  %v2633_v27 = vld [vmem:[#allocation6 + $0x30] sm:$0xff]  ;;  %v9291_v18 = vld [vmem:[%s13106_s10 + $0x198] ss:$20 sps:$4 sm:$0xff]  }
 0x4c7   : > { %3766 = vmatprep.mubr.bf16.mxu1 %v10993_v22  ;;  %3852 = vmatprep.mubr.bf16.mxu0 %v10993_v22  ;;  %v11009_v29 = vpack.c.bf16 %v2633_v27, %v2629_v26  ;;  %v9296_v19 = vld [vmem:[%s13106_s10 + $0x1c4] ss:$20 sps:$4 sm:$0xff]   ;;  %v9299_v21 = vld [vmem:[%s13106_s10 + $0x1ec] ss:$20 sps:$4 sm:$0xff]   ;;  %v9305_v26 = vld [vmem:[%s13106_s10 + $0x23c] ss:$20 sps:$4 sm:$0xff]  }
 0x4c8   : > { %8548 = vmatprep.subr.bf16.mxu0 %v9229_v23  ;;  %8570 = vmatprep.subr.bf16.mxu1 %v9230_v24  ;;  %v9297_v23 = vld [vmem:[%s13106_s10 + $0x1e8] ss:$20 sps:$4 sm:$0xff]   ;;  %v9303_v27 = vld [vmem:[%s13106_s10 + $0x238] ss:$20 sps:$4 sm:$0xff]  }
 0x4c9   : > { %3767 = vmatmul.mubr.bf16.vlgmr.msra.gmra.mrb[32].mxu1 %v11009_v29  ;;  %3853 = vmatmul.mubr.bf16.vlgmr.msra.gmra.mrb[64].mxu0 %v11009_v29  ;;  %v9302_v24 = vld [vmem:[%s13106_s10 + $0x214] ss:$20 sps:$4 sm:$0xff]  }
 0x4ca   : > { %8549 = vmatpush3.bf16.msra.mxu0 %v9231_v25  ;;  %8571 = vmatpush3.bf16.msra.mxu1 %v9232_v28  ;;  %v9300_v25 = vld [vmem:[%s13106_s10 + $0x210] ss:$20 sps:$4 sm:$0xff]  }
 0x4cb   : > { %3895 = vmatprep.mubr.bf16.mxu0 %v10787_v2  ;;  %3936 = vmatprep.mubr.bf16.mxu1 %v10993_v22  ;;  %v9308_v28 = vld [vmem:[%s13106_s10 + $0x264] ss:$20 sps:$4 sm:$0xff]  }
 0x4cc   : > { %8550 = vmatprep.subr.bf16.mxu0 %v9233_v30  ;;  %8572 = vmatprep.subr.bf16.mxu1 %v9234_v31  ;;  %v9306_v30 = vld [vmem:[%s13106_s10 + $0x260] ss:$20 sps:$4 sm:$0xff]  }
 0x4cd   : > { %v9311_v31 = vld [vmem:[%s13106_s10 + $0x28c] ss:$20 sps:$4 sm:$0xff]  }
 0x4ce   : > { %8551 = vmatpush3.bf16.msra.mxu0 %v9235_v32  ;;  %8573 = vmatpush3.bf16.msra.mxu1 %v9236_v33  ;;  %v9309_v32 = vld [vmem:[%s13106_s10 + $0x288] ss:$20 sps:$4 sm:$0xff]  }
 0x4cf   : > { %8552 = vmatprep.subr.bf16.mxu0 %v9237_v34  ;;  %8574 = vmatprep.subr.bf16.mxu1 %v9238_v35  ;;  %v9314_v33 = vld [vmem:[%s13106_s10 + $0x2b4] ss:$20 sps:$4 sm:$0xff]   ;;  %v9312_v34 = vld [vmem:[%s13106_s10 + $0x2b0] ss:$20 sps:$4 sm:$0xff]  }
 0x4d0   : > { %v9317_v35 = vld [vmem:[%s13106_s10 + $0x2dc] ss:$20 sps:$4 sm:$0xff]  }
 0x4d2   : > { %8553 = vmatpush3.bf16.msra.mxu0 %v9239_v36  ;;  %8575 = vmatpush3.bf16.msra.mxu1 %v9240_v37  ;;  %v9315_v36 = vld [vmem:[%s13106_s10 + $0x2d8] ss:$20 sps:$4 sm:$0xff]  }
 0x4d3   : > { %8554 = vmatprep.subr.bf16.mxu0 %v9241_v38  ;;  %8576 = vmatprep.subr.bf16.mxu1 %v9242_v39  ;;  %v9320_v37 = vld [vmem:[%s13106_s10 + $0x304] ss:$20 sps:$4 sm:$0xff]   ;;  %v9318_v38 = vld [vmem:[%s13106_s10 + $0x300] ss:$20 sps:$4 sm:$0xff]  }
 0x4d4   : > { %v9323_v39 = vld [vmem:[%s13106_s10 + $0x32c] ss:$20 sps:$4 sm:$0xff]  }
 0x4d6   : > { %8555 = vmatpush3.bf16.msra.mxu0 %v9243_v40  ;;  %8577 = vmatpush3.bf16.msra.mxu1 %v9244_v41  ;;  %v9321_v40 = vld [vmem:[%s13106_s10 + $0x328] ss:$20 sps:$4 sm:$0xff]  }
 0x4d7   : > { %8556 = vmatprep.subr.bf16.mxu0 %v9245_v42  ;;  %8578 = vmatprep.subr.bf16.mxu1 %v9246_v43  ;;  %v9326_v41 = vld [vmem:[%s13106_s10 + $0x354] ss:$20 sps:$4 sm:$0xff]   ;;  %v9324_v42 = vld [vmem:[%s13106_s10 + $0x350] ss:$20 sps:$4 sm:$0xff]  }
 0x4d8   : > { %v9329_v43 = vld [vmem:[%s13106_s10 + $0x37c] ss:$20 sps:$4 sm:$0xff]  }
 0x4da   : > { %8557 = vmatpush3.bf16.msra.mxu0 %v9247_v44  ;;  %8579 = vmatpush3.bf16.msra.mxu1 %v9248_v45  ;;  %v9327_v44 = vld [vmem:[%s13106_s10 + $0x378] ss:$20 sps:$4 sm:$0xff]  }
 0x4db   : > { %8558 = vmatprep.subr.bf16.mxu0 %v9249_v46  ;;  %8580 = vmatprep.subr.bf16.mxu1 %v9250_v47  ;;  %v9332_v45 = vld [vmem:[%s13106_s10 + $0x3a4] ss:$20 sps:$4 sm:$0xff]   ;;  %v9330_v46 = vld [vmem:[%s13106_s10 + $0x3a0] ss:$20 sps:$4 sm:$0xff]  }
 0x4dc   : > { %v9335_v47 = vld [vmem:[%s13106_s10 + $0x3cc] ss:$20 sps:$4 sm:$0xff]  }
 0x4de   : > { %8559 = vmatpush3.bf16.msra.mxu0 %v9251_v48  ;;  %8581 = vmatpush3.bf16.msra.mxu1 %v9252_v49  ;;  %v9333_v48 = vld [vmem:[%s13106_s10 + $0x3c8] ss:$20 sps:$4 sm:$0xff]  }
 0x4df   : > { %8560 = vmatprep.subr.bf16.mxu0 %v9253_v50  ;;  %8582 = vmatprep.subr.bf16.mxu1 %v9254_v52  ;;  %v9338_v49 = vld [vmem:[%s13106_s10 + $0x3f4] ss:$20 sps:$4 sm:$0xff]   ;;  %v9336_v50 = vld [vmem:[%s13106_s10 + $0x3f0] ss:$20 sps:$4 sm:$0xff]  }
 0x4e0   : > { %v9341_v52 = vld [vmem:[%s13106_s10 + $0x41c] ss:$20 sps:$4 sm:$0xff]  }
 0x4e2   : > { %8561 = vmatpush3.bf16.msra.mxu0 %v9255_v53  ;;  %8583 = vmatpush3.bf16.msra.mxu1 %v9256_v51  ;;  %v9339_v53 = vld [vmem:[%s13106_s10 + $0x418] ss:$20 sps:$4 sm:$0xff]  }
 0x4e3   : > { %8562 = vmatprep.subr.bf16.mxu0 %v9257_v54  ;;  %8584 = vmatprep.subr.bf16.mxu1 %v9258_v55  ;;  %v9344_v51 = vld [vmem:[%s13106_s10 + $0x444] ss:$20 sps:$4 sm:$0xff]   ;;  %v9342_v54 = vld [vmem:[%s13106_s10 + $0x440] ss:$20 sps:$4 sm:$0xff]  }
 0x4e4   : > { %v9347_v55 = vld [vmem:[%s13106_s10 + $0x46c] ss:$20 sps:$4 sm:$0xff]  }
 0x4e6   : > { %8563 = vmatpush3.bf16.msra.mxu0 %v9259_v56  ;;  %8585 = vmatpush3.bf16.msra.mxu1 %v9260_v63  ;;  %v9345_v56 = vld [vmem:[%s13106_s10 + $0x468] ss:$20 sps:$4 sm:$0xff]  }
 0x4e7   : > { %5308 = vmatprep.subr.bf16.mxu1 %v9263_v16  ;;  %v9350_v63 = vld [vmem:[%s13106_s10 + $0x494] ss:$20 sps:$4 sm:$0xff]   ;;  %v9348_v16 = vld [vmem:[%s13106_s10 + $0x490] ss:$20 sps:$4 sm:$0xff]  }
 0x4e9   : > { %3896 = vmatmul.mubr.bf16.vlgmr.msra.gmra.mrb[68].mxu0 %v10797_v7  ;;  %3937 = vmatmul.mubr.bf16.vlgmr.msra.gmra.mrb[36].mxu1 %v11009_v29 }
 0x4ea   : > { %5309 = vmatpush1.bf16.msra.mxu1 %v9261_v57  ;;  %5340 = vmatprep.mubr.bf16.mxu1 %v10787_v2  ;;  %v9353_v57 = vld [vmem:[%s13106_s10 + $0x4bc] ss:$20 sps:$4 sm:$0xff]  }
 0x4eb   : > { %5310 = vmatprep.subr.bf16.mxu1 %v9266_v58  ;;  %v9351_v58 = vld [vmem:[%s13106_s10 + $0x4b8] ss:$20 sps:$4 sm:$0xff]  }
 0x4ee   : > { %5311 = vmatpush1.bf16.msra.mxu1 %v9264_v59  ;;  %v9356_v59 = vld [vmem:[%s13106_s10 + $0x4e4] ss:$20 sps:$4 sm:$0xff]  }
 0x4ef   : > { %5312 = vmatprep.subr.bf16.mxu1 %v9269_v60  ;;  %v9354_v60 = vld [vmem:[%s13106_s10 + $0x4e0] ss:$20 sps:$4 sm:$0xff]  }
 0x4f2   : > { %5313 = vmatpush1.bf16.msra.mxu1 %v9267_v61  ;;  %v9357_v61 = vld [vmem:[%s13106_s10 + $0x3d0] ss:$20 sps:$4 sm:$0xff]  }
 0x4f3   : > { %5314 = vmatprep.subr.bf16.mxu1 %v9272_v62  ;;  %v9358_v62 = vld [vmem:[%s13106_s10 + $0x290] ss:$20 sps:$4 sm:$0xff]  }
 0x4f6   : > { %5315 = vmatpush1.bf16.msra.mxu1 %v9270_v0  ;;  %v9359_v0 = vld [vmem:[%s13106_s10 + $0x3f8] ss:$20 sps:$4 sm:$0xff]  }
 0x4f7   : > { %5316 = vmatprep.subr.bf16.mxu1 %v9275_v3  ;;  %v9360_v3 = vld [vmem:[%s13106_s10 + $0x2b8] ss:$20 sps:$4 sm:$0xff]  }
 0x4fa   : > { %5317 = vmatpush1.bf16.msra.mxu1 %v9273_v4  ;;  %v9361_v4 = vld [vmem:[%s13106_s10 + $0x420] ss:$20 sps:$4 sm:$0xff]  }
 0x4fb   : > { %5318 = vmatprep.subr.bf16.mxu1 %v9278_v5  ;;  %v9362_v5 = vld [vmem:[%s13106_s10 + $0x2e0] ss:$20 sps:$4 sm:$0xff]  }
 0x4fe   : > { %5319 = vmatpush1.bf16.msra.mxu1 %v9276_v6  ;;  %v9363_v6 = vld [vmem:[%s13106_s10 + $0x448] ss:$20 sps:$4 sm:$0xff]  }
 0x4ff   : > { %5320 = vmatprep.subr.bf16.mxu1 %v9281_v8  ;;  %v9364_v8 = vld [vmem:[%s13106_s10 + $0x308] ss:$20 sps:$4 sm:$0xff]  }
 0x502   : > { %5321 = vmatpush1.bf16.msra.mxu1 %v9279_v9  ;;  %v9365_v9 = vld [vmem:[%s13106_s10 + $0x470] ss:$20 sps:$4 sm:$0xff]  }
 0x503   : > { %5322 = vmatprep.subr.bf16.mxu1 %v9284_v10  ;;  %v9366_v10 = vld [vmem:[%s13106_s10 + $0x330] ss:$20 sps:$4 sm:$0xff]  }
 0x506   : > { %5323 = vmatpush1.bf16.msra.mxu1 %v9282_v11  ;;  %v9367_v11 = vld [vmem:[%s13106_s10 + $0x498] ss:$20 sps:$4 sm:$0xff]  }
 0x507   : > { %5324 = vmatprep.subr.bf16.mxu1 %v9287_v12  ;;  %v9368_v12 = vld [vmem:[%s13106_s10 + $0x358] ss:$20 sps:$4 sm:$0xff]  }
 0x50a   : > { %5325 = vmatpush1.bf16.msra.mxu1 %v9285_v13  ;;  %v9369_v13 = vld [vmem:[%s13106_s10 + $0x4c0] ss:$20 sps:$4 sm:$0xff]  }
 0x50b   : > { %5326 = vmatprep.subr.bf16.mxu1 %v9290_v14  ;;  %v9370_v14 = vld [vmem:[%s13106_s10 + $0x380] ss:$20 sps:$4 sm:$0xff]  }
 0x50e   : > { %5327 = vmatpush1.bf16.msra.mxu1 %v9288_v15  ;;  %v9371_v15 = vld [vmem:[%s13106_s10 + $0x4e8] ss:$20 sps:$4 sm:$0xff]  }
 0x50f   : > { %5328 = vmatprep.subr.bf16.mxu1 %v9293_v17  ;;  %v9372_v17 = vld [vmem:[%s13106_s10 + $0x3a8] ss:$20 sps:$4 sm:$0xff]  }
 0x512   : > { %5329 = vmatpush1.bf16.msra.mxu1 %v9291_v18  ;;  %v2834_v18 = vlaneseq }
 0x513   : > { %5330 = vmatprep.subr.bf16.mxu1 %v9296_v19 }
 0x514   : > { %v11347_v19 = vshrl.u32 %v2834_v18, 7 }
 0x516   : > { %5331 = vmatpush1.bf16.msra.mxu1 %v9294_v20  ;;  %v2836_v20 = vsub.s32 0, %v11347_v19 }
 0x517   : > { %5332 = vmatprep.subr.bf16.mxu1 %v9299_v21  ;;  %v2844_v21 = vsub.s32 2, %v11347_v19 }
 0x51a   : > { %5333 = vmatpush1.bf16.msra.mxu1 %v9297_v23  ;;  %v2832_v23 = vld [vmem:[%s13105_s9] sm:$0x1f] }
 0x51b   : > { %5334 = vmatprep.subr.bf16.mxu1 %v9302_v24  ;;  %v2840_v24 = vsub.s32 1, %v11347_v19 }
 0x51e   : > { %5335 = vmatpush1.bf16.msra.mxu1 %v9300_v25  ;;  %v2848_v25 = vsub.s32 3, %v11347_v19 }
 0x51f   : > { %5336 = vmatprep.subr.bf16.mxu1 %v9305_v26  ;;  %v2837_v26 = vrot.slane %v2832_v23, %v2836_v20 }
 0x522   : > { %5337 = vmatpush1.bf16.msra.mxu1 %v9303_v27  ;;  %v2845_v27 = vrot.slane %v2832_v23, %v2844_v21 }
 0x523   : > { %5338 = vmatprep.subr.bf16.mxu1 %v9308_v28  ;;  %v2841_v28 = vrot.slane %v2832_v23, %v2840_v24 }
 0x526   : > { %5339 = vmatpush1.bf16.msra.mxu1 %v9306_v30  ;;  %v2849_v30 = vrot.slane %v2832_v23, %v2848_v25 }
 0x527   : > { %5351 = vmatprep.subr.bf16.mxu1 %v9311_v31 }
 0x529   : > { %5341 = vmatmul.mubr.bf16.vlgmr.msra.gmra.mrb[40].mxu1 %v10797_v7 }
 0x52a   : > { %5352 = vmatpush1.bf16.msra.mxu1 %v9309_v32  ;;  %5383 = vmatprep.mubr.bf16.mxu1 %v10993_v22 }
 0x52b   : > { %5353 = vmatprep.subr.bf16.mxu1 %v9314_v33 }
 0x52e   : > { %5354 = vmatpush1.bf16.msra.mxu1 %v9312_v34 }
 0x52f   : > { %5355 = vmatprep.subr.bf16.mxu1 %v9317_v35 }
 0x532   : > { %5356 = vmatpush1.bf16.msra.mxu1 %v9315_v36 }
 0x533   : > { %5357 = vmatprep.subr.bf16.mxu1 %v9320_v37 }
 0x536   : > { %5358 = vmatpush1.bf16.msra.mxu1 %v9318_v38 }
 0x537   : > { %5359 = vmatprep.subr.bf16.mxu1 %v9323_v39 }
 0x53a   : > { %5360 = vmatpush1.bf16.msra.mxu1 %v9321_v40 }
 0x53b   : > { %5361 = vmatprep.subr.bf16.mxu1 %v9326_v41 }
 0x53e   : > { %5362 = vmatpush1.bf16.msra.mxu1 %v9324_v42 }
 0x53f   : > { %5363 = vmatprep.subr.bf16.mxu1 %v9329_v43 }
 0x542   : > { %5364 = vmatpush1.bf16.msra.mxu1 %v9327_v44 }
 0x543   : > { %5365 = vmatprep.subr.bf16.mxu1 %v9332_v45 }
 0x546   : > { %5366 = vmatpush1.bf16.msra.mxu1 %v9330_v46 }
 0x547   : > { %5367 = vmatprep.subr.bf16.mxu1 %v9335_v47 }
 0x54a   : > { %5368 = vmatpush1.bf16.msra.mxu1 %v9333_v48 }
 0x54b   : > { %5369 = vmatprep.subr.bf16.mxu1 %v9338_v49 }
 0x54e   : > { %5370 = vmatpush1.bf16.msra.mxu1 %v9336_v50 }
 0x54f   : > { %5371 = vmatprep.subr.bf16.mxu1 %v9341_v52 }
 0x552   : > { %5372 = vmatpush1.bf16.msra.mxu1 %v9339_v53 }
 0x553   : > { %5373 = vmatprep.subr.bf16.mxu1 %v9344_v51  ;;  %v2852_v51 = vsub.s32 4, %v11347_v19 }
 0x556   : > { %5374 = vmatpush1.bf16.msra.mxu1 %v9342_v54 }
 0x557   : > { %5375 = vmatprep.subr.bf16.mxu1 %v9347_v55 }
 0x55a   : > { %5376 = vmatpush1.bf16.msra.mxu1 %v9345_v56  ;;  %v2853_v56 = vrot.slane %v2832_v23, %v2852_v51 }
 0x55b   : > { %5377 = vmatprep.subr.bf16.mxu1 %v9350_v63 }
 0x55e   : > { %5378 = vmatpush1.bf16.msra.mxu1 %v9348_v16 }
 0x55f   : > { %5379 = vmatprep.subr.bf16.mxu1 %v9353_v57 }
 0x562   : > { %5380 = vmatpush1.bf16.msra.mxu1 %v9351_v58 }
 0x563   : > { %5381 = vmatprep.subr.bf16.mxu1 %v9356_v59 }
 0x566   : > { %5382 = vmatpush1.bf16.msra.mxu1 %v9354_v60 }
 0x567   : > { %8618 = vmatprep.subr.bf16.mxu1 %v9357_v61 }
 0x569   : > { %5384 = vmatmul.mubr.bf16.vlgmr.msra.gmra.mrb[40].mxu1 %v11009_v29 }
 0x56a   : > { %8619 = vmatpush3.bf16.msra.mxu1 %v9358_v62  ;;  %5467 = vmatprep.mubr.bf16.mxu1 %v10993_v22 }
 0x56b   : > { %8620 = vmatprep.subr.bf16.mxu1 %v9359_v0 }
 0x56e   : > { %8621 = vmatpush3.bf16.msra.mxu1 %v9360_v3 }
 0x56f   : > { %8622 = vmatprep.subr.bf16.mxu1 %v9361_v4 }
 0x572   : > { %8623 = vmatpush3.bf16.msra.mxu1 %v9362_v5 }
 0x573   : > { %8624 = vmatprep.subr.bf16.mxu1 %v9363_v6 }
 0x576   : > { %8625 = vmatpush3.bf16.msra.mxu1 %v9364_v8 }
 0x577   : > { %8626 = vmatprep.subr.bf16.mxu1 %v9365_v9 }
 0x57a   : > { %8627 = vmatpush3.bf16.msra.mxu1 %v9366_v10 }
 0x57b   : > { %8628 = vmatprep.subr.bf16.mxu1 %v9367_v11 }
 0x57e   : > { %8629 = vmatpush3.bf16.msra.mxu1 %v9368_v12 }
 0x57f   : > { %8630 = vmatprep.subr.bf16.mxu1 %v9369_v13 }
 0x582   : > { %8631 = vmatpush3.bf16.msra.mxu1 %v9370_v14 }
 0x583   : > { %8632 = vmatprep.subr.bf16.mxu1 %v9371_v15  ;;  %v11389_v15 = vld [vmem:[%s13107_s11] sm:$0x1f] }
 0x584   : > { %v4380_v23 = vrot.slane %v11389_v15, %v2848_v25 }
 0x586   : > { %8633 = vmatpush3.bf16.msra.mxu1 %v9372_v17  ;;  %v4376_v17 = vrot.slane %v11389_v15, %v2844_v21 }
 0x589   : > { %5468 = vmatmul.mubr.bf16.vlgmr.msra.gmra.mrb[44].mxu1 %v11009_v29 }
 0x59c   : > { %v3768_v31 = vpop.f32.mrb[32].mxu1  ;;  %v3854_v32 = vpop.f32.mrb[64].mxu0 }
 0x59d   : > { %v8958_v33 = vadd.f32 %v3768_v31, %v2837_v26  ;;  %v8962_v34 = vadd.f32 %v3854_v32, %v2845_v27  ;;  %v3770_v35 = vpop.f32.mrb[33].mxu1  ;;  %v3856_v36 = vpop.f32.mrb[65].mxu0 }
 0x59e   : > { %v8959_v37 = vadd.f32 %v3770_v35, %v2841_v28  ;;  %v11364_v38 = vadd.f32 %v3856_v36, %v2849_v30  ;;  %v3772_v39 = vpop.f32.mrb[34].mxu1  ;;  %v3858_v40 = vpop.f32.mrb[66].mxu0 }
 0x59f   : > { %v3945_v41 = vmul.f32 0.125, %v8958_v33  ;;  %v8960_v42 = vadd.f32 %v3772_v39, %v2837_v26  ;;  %v8964_v43 = vadd.f32 %v3858_v40, %v2845_v27  ;;  %v3774_v44 = vpop.f32.mrb[35].mxu1  ;;  %v3860_v45 = vpop.f32.mrb[67].mxu0 }
 0x5a0   : > { %v8961_v46 = vadd.f32 %v3774_v44, %v2841_v28  ;;  %v11366_v47 = vadd.f32 %v3860_v45, %v2849_v30 }
 0x5a1   : > { %v3946_v48 = vmul.f32 0.125, %v8960_v42  ;;  %v3948_v49 = vpack.c.bf16 %v8964_v43, %v8962_v34  ;;  %8900 = vmatprep.mubr.msk.f32.mxu0 %vm3957_vm7, %v3945_v41 }
 0x5a2   : > { %v3947_v50 = vpack.c.bf16 %v8961_v46, %v8959_v37  ;;  %v3949_v52 = vpack.c.bf16 %v11366_v47, %v11364_v38  ;;  %v9376_v38 = vld [vmem:[%s13106_s10 + $0x28] ss:$20 sps:$4 sm:$0xff]  }
 0x5a3   : > { %v9014_v53 = vpack.i.bf16 %v3946_v48, %v3945_v41  ;;  %v9381_v47 = vld [vmem:[%s13106_s10 + $0x54] ss:$20 sps:$4 sm:$0xff]  }
 0x5a5   : > { %9015 = vrot.lane.b32.xlu0 %v9014_v53, %s9557_s26 }
 0x5bc   : > { %v8564_v54 = vpop.f32.mrb[68].mxu0  ;;  %v8586_v55 = vpop.f32.mrb[36].mxu1 }
 0x5bd   : > { %v8565_v63 = vpop.f32.mrb[69].mxu0  ;;  %v8587_v16 = vpop.f32.mrb[37].mxu1 }
 0x5be   : > { %v8566_v57 = vadd.f32 %v8565_v63, %v8564_v54  ;;  %v8588_v58 = vadd.f32 %v8587_v16, %v8586_v55  ;;  %v8567_v59 = vpop.f32.mrb[70].mxu0  ;;  %v8589_v60 = vpop.f32.mrb[38].mxu1  ;;  %v9559_v16 = vmov 0  }
 0x5bf   : > { %v8568_v61 = vpop.f32.mrb[71].mxu0  ;;  %v8590_v62 = vpop.f32.mrb[39].mxu1 }
 0x5c0   : > { %v3898_v0 = vadd.f32 %v8566_v57, %v2853_v56  ;;  %v8569_v3 = vadd.f32 %v8568_v61, %v8567_v59  ;;  %v8591_v4 = vadd.f32 %v8590_v62, %v8589_v60 }
 0x5c2   : > { %v3939_v5 = vadd.f32 %v8588_v58, %v3898_v0  ;;  %v3901_v6 = vadd.f32 %v8569_v3, %v2853_v56  ;;  %v9375_v3 = vld [vmem:[%s13106_s10 + $0x4] ss:$20 sps:$4 sm:$0xff]  }
 0x5c4   : > { %v3942_v8 = vadd.f32 %v8591_v4, %v3901_v6  ;;  %v9373_v4 = vld [vmem:[%s13106_s10] ss:$20 sps:$4 sm:$0xff]   ;;  %v9384_v6 = vld [vmem:[%s13106_s10 + $0x7c] ss:$20 sps:$4 sm:$0xff]  }
 0x5c6   : > { %v3950_v9 = vpack.c.bf16 %v3942_v8, %v3939_v5  ;;  %v9378_v5 = vld [vmem:[%s13106_s10 + $0x2c] ss:$20 sps:$4 sm:$0xff]  }
 0x5c7   : > { %v9382_v8 = vld [vmem:[%s13106_s10 + $0x78] ss:$20 sps:$4 sm:$0xff]  }
 0x617   : > { %v9016_v10 = vpop.permute.xlu0 %9015 }
 0x618   : > { %v9018_v11 = vunpack.i.h.bf16 %v9016_v10  ;;  %v9017_v12 = vunpack.i.l.bf16 %v9016_v10  ;;  %v9385_v10 = vld [vmem:[%s13106_s10 + $0xa0] ss:$20 sps:$4 sm:$0xff]  }
 0x61a   : > { %v8946_v14 = vpack.c.bf16 %v9018_v11, %v9017_v12  ;;  %v9390_v11 = vld [vmem:[%s13106_s10 + $0xcc] ss:$20 sps:$4 sm:$0xff]   ;;  %v9388_v12 = vld [vmem:[%s13106_s10 + $0xc8] ss:$20 sps:$4 sm:$0xff]  }
 0x61c   : > { %8948 = vmatprep.subr.msk.bf16.mxu0 %vm11377_vm8, %v8946_v14 }
 0x61d   : > { %8951 = vmatpush3.bf16.xpose.msk.msra.mxu0 %vm11377_vm8, %v8946_v14  ;;  %v9393_v14 = vld [vmem:[%s13106_s10 + $0xf4] ss:$20 sps:$4 sm:$0xff]  }
 0x61e   : > { %4067 = vmatprep.subr.bf16.mxu0 %v3948_v49 }
 0x624   : > { %8901 = vmatmul.mubr.msk.f32.vlgmr.msra.gmra.mrb[72].mxu0 %vm3957_vm7, %v3946_v48 }
 0x625   : > { %4068 = vmatpush1.bf16.msra.mxu0 %v3947_v50  ;;  %4099 = vmatprep.mubr.bf16.mxu0 %v9559_v16 }
 0x626   : > { %4110 = vmatprep.subr.bf16.mxu0 %v3950_v9  ;;  %v9387_v9 = vld [vmem:[%s13106_s10 + $0xa4] ss:$20 sps:$4 sm:$0xff]  }
 0x63c   : > { %v5385_v18 = vpop.f32.mrb[40].mxu1 }
 0x63d   : > { %v5387_v26 = vpop.f32.mrb[41].mxu1  ;;  %v11397_v28 = vadd.f32 %v5385_v18, %v4376_v17  ;;  %v9396_v18 = vld [vmem:[%s13106_s10 + $0x11c] ss:$20 sps:$4 sm:$0xff]  }
 0x63e   : > { %v5389_v27 = vpop.f32.mrb[42].mxu1  ;;  %v11401_v32 = vadd.f32 %v5387_v26, %v4380_v23  ;;  %v9399_v26 = vld [vmem:[%s13106_s10 + $0x144] ss:$20 sps:$4 sm:$0xff]  }
 0x63f   : > { %v11399_v30 = vadd.f32 %v5389_v27, %v4376_v17  ;;  %v5391_v31 = vpop.f32.mrb[43].mxu1  ;;  %v9391_v17 = vld [vmem:[%s13106_s10 + $0xf0] ss:$20 sps:$4 sm:$0xff]   ;;  %v9397_v27 = vld [vmem:[%s13106_s10 + $0x140] ss:$20 sps:$4 sm:$0xff]  }
 0x640   : > { %v11403_v33 = vadd.f32 %v5391_v31, %v4380_v23  ;;  %v9394_v23 = vld [vmem:[%s13106_s10 + $0x118] ss:$20 sps:$4 sm:$0xff]  }
 0x641   : > { %v5479_v34 = vpack.c.bf16 %v11399_v30, %v11397_v28  ;;  %v9402_v31 = vld [vmem:[%s13106_s10 + $0x16c] ss:$20 sps:$4 sm:$0xff]  }
 0x642   : > { %v5480_v21 = vpack.c.bf16 %v11403_v33, %v11401_v32 }
 0x65c   : > { %v8634_v35 = vpop.f32.mrb[44].mxu1 }
 0x65d   : > { %v8635_v36 = vpop.f32.mrb[45].mxu1 }
 0x65e   : > { %v11409_v25 = vadd.f32 %v8635_v36, %v8634_v35  ;;  %v8637_v37 = vpop.f32.mrb[46].mxu1  ;;  %v9400_v35 = vld [vmem:[%s13106_s10 + $0x168] ss:$20 sps:$4 sm:$0xff]  }
 0x65f   : > { %v8638_v39 = vpop.f32.mrb[47].mxu1  ;;  %v9405_v36 = vld [vmem:[%s13106_s10 + $0x194] ss:$20 sps:$4 sm:$0xff]  }
 0x660   : > { %v11411_v40 = vadd.f32 %v8638_v39, %v8637_v37  ;;  %v9403_v37 = vld [vmem:[%s13106_s10 + $0x190] ss:$20 sps:$4 sm:$0xff]  }
 0x661   : > { %v9408_v39 = vld [vmem:[%s13106_s10 + $0x1bc] ss:$20 sps:$4 sm:$0xff]  }
 0x6f7   : > { %v8902_v41 = vpop.f32.mrb[72].mxu0 }
 0x6f8   : > { %v4032_v42 = vpop.f32.mrb[73].mxu0  ;;  %v4044_v43 = vsel %vm699_vm1, %v8902_v41, -inf }
 0x6f9   : > { %4045 = vmax.xlane.f32.xlu0 %v4044_v43  ;;  %v4041_v44 = vsel %vm699_vm1, %v4032_v42, -inf  ;;  %v9409_v43 = vld [vmem:[%s13106_s10 + $0x1e0] ss:$20 sps:$4 sm:$0xff]  }
 0x6fa   : > { %4042 = vmax.xlane.f32.xlu1 %v4041_v44  ;;  %v9414_v44 = vld [vmem:[%s13106_s10 + $0x20c] ss:$20 sps:$4 sm:$0xff]  }
 0x786   : > { %v4046_v45 = vpop.xlane.xlu0 %4045 }
 0x787   : > { %v4048_v46 = vsub.f32 %v8902_v41, %v4046_v45  ;;  %v4043_v48 = vpop.xlane.xlu1 %4042  ;;  %v9406_v41 = vld [vmem:[%s13106_s10 + $0x1b8] ss:$20 sps:$4 sm:$0xff]   ;;  %v9412_v45 = vld [vmem:[%s13106_s10 + $0x208] ss:$20 sps:$4 sm:$0xff]  }
 0x788   : > { %v4047_v49 = vsub.f32 %v4032_v42, %v4043_v48  ;;  %v9411_v42 = vld [vmem:[%s13106_s10 + $0x1e4] ss:$20 sps:$4 sm:$0xff]  }
 0x789   : > { %v4051_v50 = vmul.f32 1.442695, %v4048_v46  ;;  %v9417_v46 = vld [vmem:[%s13106_s10 + $0x234] ss:$20 sps:$4 sm:$0xff]   ;;  %v9415_v48 = vld [vmem:[%s13106_s10 + $0x230] ss:$20 sps:$4 sm:$0xff]  }
 0x78a   : > { %v4049_v53 = vmul.f32 1.442695, %v4047_v49  ;;  %v9420_v49 = vld [vmem:[%s13106_s10 + $0x25c] ss:$20 sps:$4 sm:$0xff]  }
 0x78b   : > { %9503 = vpow2.f32 %v4051_v50  ;;  %v9418_v50 = vld [vmem:[%s13106_s10 + $0x258] ss:$20 sps:$4 sm:$0xff]  }
 0x78c   : > { %9505 = vpow2.f32 %v4049_v53  ;;  %v9423_v53 = vld [vmem:[%s13106_s10 + $0x284] ss:$20 sps:$4 sm:$0xff]  }
 0x795   : > { %v9504_v54 = vpop.eup %9503 }
 0x796   : > { %v9506_v55 = vpop.eup %9505  ;;  %v4056_v56 = vsel %vm699_vm1, %v9504_v54, 0.0 }
 0x797   : > { %4057 = vadd.xlane.f32.xlu1 %v4056_v56  ;;  %v4053_v63 = vsel %vm699_vm1, %v9506_v55, 0.0  ;;  %v9424_v56 = vld [vmem:[%s13106_s10 + $0x2a8] ss:$20 sps:$4 sm:$0xff]  }
 0x798   : > { %4054 = vadd.xlane.f32.xlu0 %v4053_v63  ;;  %v9429_v63 = vld [vmem:[%s13106_s10 + $0x2d4] ss:$20 sps:$4 sm:$0xff]  }
 0x824   : > { %v4058_v57 = vpop.xlane.xlu1 %4057 }
 0x825   : > { %9507 = vrcp.f32 %v4058_v57  ;;  %v4055_v58 = vpop.xlane.xlu0 %4054  ;;  %v9427_v57 = vld [vmem:[%s13106_s10 + $0x2d0] ss:$20 sps:$4 sm:$0xff]  }
 0x826   : > { %9509 = vrcp.f32 %v4055_v58  ;;  %v9432_v58 = vld [vmem:[%s13106_s10 + $0x2fc] ss:$20 sps:$4 sm:$0xff]  }
 0x82f   : > { %v9508_v59 = vpop.eup %9507 }
 0x830   : > { %v9510_v60 = vpop.eup %9509  ;;  %v4062_v61 = vmul.f32 %v9508_v59, %v9504_v54  ;;  %v9421_v54 = vld [vmem:[%s13106_s10 + $0x280] ss:$20 sps:$4 sm:$0xff]   ;;  %v9435_v59 = vld [vmem:[%s13106_s10 + $0x324] ss:$20 sps:$4 sm:$0xff]  }
 0x831   : > { %v4061_v62 = vmul.f32 %v9510_v60, %v9506_v55  ;;  %v9426_v55 = vld [vmem:[%s13106_s10 + $0x2ac] ss:$20 sps:$4 sm:$0xff]  }
 0x832   : > { %v9433_v60 = vld [vmem:[%s13106_s10 + $0x320] ss:$20 sps:$4 sm:$0xff]  }
 0x833   : > { %v4063_v0 = vpack.c.bf16 %v4062_v61, %v4061_v62  ;;  %v9438_v61 = vld [vmem:[%s13106_s10 + $0x34c] ss:$20 sps:$4 sm:$0xff]   ;;  %v9436_v62 = vld [vmem:[%s13106_s10 + $0x348] ss:$20 sps:$4 sm:$0xff]  }
 0x835   : > { %8279 = vmatmul.mubr.msk.bf16.vlgmr.msra.gmra.mrb[76].mxu0 %vm699_vm1, %v4063_v0 }
 0x836   : > { %4111 = vmatpush1.bf16.msra.mxu0 %v3949_v52  ;;  %4142 = vmatprep.mubr.bf16.mxu0 %v9559_v16  ;;  %v9379_v52 = vld [vmem:[%s13106_s10 + $0x50] ss:$20 sps:$4 sm:$0xff]  }
 0x837   : > { %5222 = vmatprep.subr.bf16.mxu0 %v9375_v3  ;;  %v9439_v3 = vld [vmem:[%s13106_s10 + $0x370] ss:$20 sps:$4 sm:$0xff]  }
 0x83d   : > { %8280 = vmatmul.mubr.msk.bf16.vlgmr.msra.gmra.mrb[80].mxu0 %vm699_vm1, %v4063_v0  ;;  %v9441_v0 = vld [vmem:[%s13106_s10 + $0x374] ss:$20 sps:$4 sm:$0xff]  }
 0x83e   : > { %5223 = vmatpush1.bf16.msra.mxu0 %v9373_v4  ;;  %5254 = vmatprep.mubr.bf16.mxu0 %v10787_v2  ;;  %v9444_v4 = vld [vmem:[%s13106_s10 + $0x39c] ss:$20 sps:$4 sm:$0xff]  }
 0x83f   : > { %5224 = vmatprep.subr.bf16.mxu0 %v9378_v5  ;;  %v9442_v5 = vld [vmem:[%s13106_s10 + $0x398] ss:$20 sps:$4 sm:$0xff]  }
 0x842   : > { %5225 = vmatpush1.bf16.msra.mxu0 %v9376_v38  ;;  %v9447_v38 = vld [vmem:[%s13106_s10 + $0x3c4] ss:$20 sps:$4 sm:$0xff]  }
 0x843   : > { %5226 = vmatprep.subr.bf16.mxu0 %v9381_v47  ;;  %v9445_v47 = vld [vmem:[%s13106_s10 + $0x3c0] ss:$20 sps:$4 sm:$0xff]  }
 0x846   : > { %5227 = vmatpush1.bf16.msra.mxu0 %v9379_v52  ;;  %v9450_v52 = vld [vmem:[%s13106_s10 + $0x3ec] ss:$20 sps:$4 sm:$0xff]  }
 0x847   : > { %5228 = vmatprep.subr.bf16.mxu0 %v9384_v6  ;;  %v9448_v6 = vld [vmem:[%s13106_s10 + $0x3e8] ss:$20 sps:$4 sm:$0xff]  }
 0x84a   : > { %5229 = vmatpush1.bf16.msra.mxu0 %v9382_v8  ;;  %v9453_v8 = vld [vmem:[%s13106_s10 + $0x414] ss:$20 sps:$4 sm:$0xff]  }
 0x84b   : > { %5230 = vmatprep.subr.bf16.mxu0 %v9387_v9  ;;  %v9451_v9 = vld [vmem:[%s13106_s10 + $0x410] ss:$20 sps:$4 sm:$0xff]  }
 0x84e   : > { %5231 = vmatpush1.bf16.msra.mxu0 %v9385_v10  ;;  %v9456_v10 = vld [vmem:[%s13106_s10 + $0x43c] ss:$20 sps:$4 sm:$0xff]  }
 0x84f   : > { %5232 = vmatprep.subr.bf16.mxu0 %v9390_v11  ;;  %v9454_v11 = vld [vmem:[%s13106_s10 + $0x438] ss:$20 sps:$4 sm:$0xff]  }
 0x852   : > { %5233 = vmatpush1.bf16.msra.mxu0 %v9388_v12  ;;  %v9459_v12 = vld [vmem:[%s13106_s10 + $0x464] ss:$20 sps:$4 sm:$0xff]  }
 0x853   : > { %5234 = vmatprep.subr.bf16.mxu0 %v9393_v14  ;;  %v9457_v14 = vld [vmem:[%s13106_s10 + $0x460] ss:$20 sps:$4 sm:$0xff]  }
 0x856   : > { %5235 = vmatpush1.bf16.msra.mxu0 %v9391_v17  ;;  %v9462_v17 = vld [vmem:[%s13106_s10 + $0x48c] ss:$20 sps:$4 sm:$0xff]  }
 0x857   : > { %5236 = vmatprep.subr.bf16.mxu0 %v9396_v18  ;;  %v9460_v18 = vld [vmem:[%s13106_s10 + $0x488] ss:$20 sps:$4 sm:$0xff]  }
 0x85a   : > { %5237 = vmatpush1.bf16.msra.mxu0 %v9394_v23  ;;  %v9465_v23 = vld [vmem:[%s13106_s10 + $0x4b4] ss:$20 sps:$4 sm:$0xff]  }
 0x85b   : > { %5238 = vmatprep.subr.bf16.mxu0 %v9399_v26  ;;  %v9463_v26 = vld [vmem:[%s13106_s10 + $0x4b0] ss:$20 sps:$4 sm:$0xff]  }
 0x85e   : > { %5239 = vmatpush1.bf16.msra.mxu0 %v9397_v27  ;;  %v9468_v27 = vld [vmem:[%s13106_s10 + $0x4dc] ss:$20 sps:$4 sm:$0xff]  }
 0x85f   : > { %5240 = vmatprep.subr.bf16.mxu0 %v9402_v31  ;;  %v9466_v31 = vld [vmem:[%s13106_s10 + $0x4d8] ss:$20 sps:$4 sm:$0xff]  }
 0x862   : > { %5241 = vmatpush1.bf16.msra.mxu0 %v9400_v35  ;;  %v9469_v35 = vld [vmem:[%s13106_s10 + $0x150] ss:$20 sps:$4 sm:$0xff]  }
 0x863   : > { %5242 = vmatprep.subr.bf16.mxu0 %v9405_v36  ;;  %v9470_v36 = vld [vmem:[%s13106_s10 + $0x10] ss:$20 sps:$4 sm:$0xff]  }
 0x866   : > { %5243 = vmatpush1.bf16.msra.mxu0 %v9403_v37  ;;  %v9471_v37 = vld [vmem:[%s13106_s10 + $0x178] ss:$20 sps:$4 sm:$0xff]  }
 0x867   : > { %5244 = vmatprep.subr.bf16.mxu0 %v9408_v39  ;;  %v9472_v39 = vld [vmem:[%s13106_s10 + $0x38] ss:$20 sps:$4 sm:$0xff]  }
 0x86a   : > { %5245 = vmatpush1.bf16.msra.mxu0 %v9406_v41  ;;  %v9473_v41 = vld [vmem:[%s13106_s10 + $0x1a0] ss:$20 sps:$4 sm:$0xff]  }
 0x86b   : > { %5246 = vmatprep.subr.bf16.mxu0 %v9411_v42  ;;  %v9474_v42 = vld [vmem:[%s13106_s10 + $0x60] ss:$20 sps:$4 sm:$0xff]  }
 0x86e   : > { %5247 = vmatpush1.bf16.msra.mxu0 %v9409_v43  ;;  %v9477_v43 = vld [vmem:[%s13106_s10 + $0x1f0] ss:$20 sps:$4 sm:$0xff]  }
 0x86f   : > { %5248 = vmatprep.subr.bf16.mxu0 %v9414_v44  ;;  %v9478_v44 = vld [vmem:[%s13106_s10 + $0xb0] ss:$20 sps:$4 sm:$0xff]  }
 0x872   : > { %5249 = vmatpush1.bf16.msra.mxu0 %v9412_v45  ;;  %v9479_v45 = vld [vmem:[%s13106_s10 + $0x218] ss:$20 sps:$4 sm:$0xff]  }
 0x873   : > { %5250 = vmatprep.subr.bf16.mxu0 %v9417_v46  ;;  %v9480_v46 = vld [vmem:[%s13106_s10 + $0xd8] ss:$20 sps:$4 sm:$0xff]  }
 0x876   : > { %5251 = vmatpush1.bf16.msra.mxu0 %v9415_v48  ;;  %v9481_v48 = vld [vmem:[%s13106_s10 + $0x240] ss:$20 sps:$4 sm:$0xff]  }
 0x877   : > { %5252 = vmatprep.subr.bf16.mxu0 %v9420_v49  ;;  %v9482_v49 = vld [vmem:[%s13106_s10 + $0x100] ss:$20 sps:$4 sm:$0xff]  }
 0x87a   : > { %5253 = vmatpush1.bf16.msra.mxu0 %v9418_v50  ;;  %v9483_v50 = vld [vmem:[%s13106_s10 + $0x268] ss:$20 sps:$4 sm:$0xff]  }
 0x87b   : > { %5265 = vmatprep.subr.bf16.mxu0 %v9423_v53  ;;  %v9484_v53 = vld [vmem:[%s13106_s10 + $0x128] ss:$20 sps:$4 sm:$0xff]  }
 0x87d   : > { %5255 = vmatmul.mubr.bf16.vlgmr.msra.gmra.mrb[84].mxu0 %v10797_v7 }
 0x87e   : > { %5266 = vmatpush1.bf16.msra.mxu0 %v9421_v54  ;;  %5297 = vmatprep.mubr.bf16.mxu0 %v10993_v22  ;;  %v9430_v22 = vld [vmem:[%s13106_s10 + $0x2f8] ss:$20 sps:$4 sm:$0xff]  }
 0x87f   : > { %5267 = vmatprep.subr.bf16.mxu0 %v9426_v55 }
 0x882   : > { %5268 = vmatpush1.bf16.msra.mxu0 %v9424_v56 }
 0x883   : > { %5269 = vmatprep.subr.bf16.mxu0 %v9429_v63 }
 0x886   : > { %5270 = vmatpush1.bf16.msra.mxu0 %v9427_v57 }
 0x887   : > { %5271 = vmatprep.subr.bf16.mxu0 %v9432_v58 }
 0x88a   : > { %5272 = vmatpush1.bf16.msra.mxu0 %v9430_v22 }
 0x88b   : > { %5273 = vmatprep.subr.bf16.mxu0 %v9435_v59 }
 0x88e   : > { %5274 = vmatpush1.bf16.msra.mxu0 %v9433_v60 }
 0x88f   : > { %5275 = vmatprep.subr.bf16.mxu0 %v9438_v61  ;;  %v4372_v61 = vrot.slane %v11389_v15, %v2840_v24  ;;  %v4384_v24 = vrot.slane %v11389_v15, %v2852_v51 }
 0x892   : > { %5276 = vmatpush1.bf16.msra.mxu0 %v9436_v62 }
 0x893   : > { %5277 = vmatprep.subr.bf16.mxu0 %v9441_v0 }
 0x896   : > { %5278 = vmatpush1.bf16.msra.mxu0 %v9439_v3 }
 0x897   : > { %5279 = vmatprep.subr.bf16.mxu0 %v9444_v4 }
 0x89a   : > { %5280 = vmatpush1.bf16.msra.mxu0 %v9442_v5 }
 0x89b   : > { %5281 = vmatprep.subr.bf16.mxu0 %v9447_v38 }
 0x89e   : > { %5282 = vmatpush1.bf16.msra.mxu0 %v9445_v47 }
 0x89f   : > { %5283 = vmatprep.subr.bf16.mxu0 %v9450_v52 }
 0x8a2   : > { %5284 = vmatpush1.bf16.msra.mxu0 %v9448_v6 }
 0x8a3   : > { %5285 = vmatprep.subr.bf16.mxu0 %v9453_v8 }
 0x8a6   : > { %5286 = vmatpush1.bf16.msra.mxu0 %v9451_v9 }
 0x8a7   : > { %5287 = vmatprep.subr.bf16.mxu0 %v9456_v10 }
 0x8aa   : > { %5288 = vmatpush1.bf16.msra.mxu0 %v9454_v11 }
 0x8ab   : > { %5289 = vmatprep.subr.bf16.mxu0 %v9459_v12 }
 0x8ae   : > { %5290 = vmatpush1.bf16.msra.mxu0 %v9457_v14 }
 0x8af   : > { %5291 = vmatprep.subr.bf16.mxu0 %v9462_v17 }
 0x8b2   : > { %5292 = vmatpush1.bf16.msra.mxu0 %v9460_v18 }
 0x8b3   : > { %5293 = vmatprep.subr.bf16.mxu0 %v9465_v23 }
 0x8b6   : > { %5294 = vmatpush1.bf16.msra.mxu0 %v9463_v26 }
 0x8b7   : > { %5295 = vmatprep.subr.bf16.mxu0 %v9468_v27 }
 0x8ba   : > { %5296 = vmatpush1.bf16.msra.mxu0 %v9466_v31 }
 0x8bb   : > { %8596 = vmatprep.subr.bf16.mxu0 %v9469_v35 }
 0x8bd   : > { %5298 = vmatmul.mubr.bf16.vlgmr.msra.gmra.mrb[84].mxu0 %v11009_v29  ;;  %v9475_v29 = vld [vmem:[%s13106_s10 + $0x1c8] ss:$20 sps:$4 sm:$0xff]  }
 0x8be   : > { %8597 = vmatpush3.bf16.msra.mxu0 %v9470_v36  ;;  %5426 = vmatprep.mubr.bf16.mxu0 %v10787_v2  ;;  %v9476_v2 = vld [vmem:[%s13106_s10 + $0x88] ss:$20 sps:$4 sm:$0xff]  }
 0x8bf   : > { %8598 = vmatprep.subr.bf16.mxu0 %v9471_v37 }
 0x8c2   : > { %8599 = vmatpush3.bf16.msra.mxu0 %v9472_v39 }
 0x8c3   : > { %8600 = vmatprep.subr.bf16.mxu0 %v9473_v41 }
 0x8c6   : > { %8601 = vmatpush3.bf16.msra.mxu0 %v9474_v42 }
 0x8c7   : > { %8602 = vmatprep.subr.bf16.mxu0 %v9475_v29 }
 0x8ca   : > { %8603 = vmatpush3.bf16.msra.mxu0 %v9476_v2 }
 0x8cb   : > { %8604 = vmatprep.subr.bf16.mxu0 %v9477_v43 }
 0x8ce   : > { %8605 = vmatpush3.bf16.msra.mxu0 %v9478_v44  ;;  %v5900_v44 = vld [vmem:[#allocation4 + $0x3] sm:$0xff] }
 0x8cf   : > { %8606 = vmatprep.subr.bf16.mxu0 %v9479_v45  ;;  %v6092_v45 = vld [vmem:[#allocation4 + $0x6] sm:$0xff] }
 0x8d2   : > { %8607 = vmatpush3.bf16.msra.mxu0 %v9480_v46  ;;  %v5902_v46 = vld [vmem:[#allocation4 + $0x1b] sm:$0xff] }
 0x8d3   : > { %8608 = vmatprep.subr.bf16.mxu0 %v9481_v48  ;;  %v5901_v48 = vld [vmem:[#allocation4 + $0xb] sm:$0xff] }
 0x8d6   : > { %8609 = vmatpush3.bf16.msra.mxu0 %v9482_v49  ;;  %v6093_v49 = vld [vmem:[#allocation4 + $0xe] sm:$0xff] }
 0x8d7   : > { %8610 = vmatprep.subr.bf16.mxu0 %v9483_v50  ;;  %v6094_v50 = vld [vmem:[#allocation4 + $0x1e] sm:$0xff] }
 0x8da   : > { %8611 = vmatpush3.bf16.msra.mxu0 %v9484_v53  ;;  %v5903_v53 = vld [vmem:[#allocation4 + $0x23] sm:$0xff] }
 0x8dd   : > { %5427 = vmatmul.mubr.bf16.vlgmr.msra.gmra.mrb[88].mxu0 %v10797_v7  ;;  %v4368_v7 = vrot.slane %v11389_v15, %v2836_v20 }
 0x908   : > { %v11670_v54 = vpop.f32.mrb[76].mxu0 }
 0x909   : > { %v11672_v55 = vpop.f32.mrb[77].mxu0 }
 0x90a   : > { %v11674_v56 = vpop.f32.mrb[78].mxu0 }
 0x90b   : > { %v11676_v63 = vpop.f32.mrb[79].mxu0 }
 0x910   : > { %v11678_v57 = vpop.f32.mrb[80].mxu0 }
 0x911   : > { %v11680_v58 = vpop.f32.mrb[81].mxu0 }
 0x912   : > { %v11682_v22 = vpop.f32.mrb[82].mxu0 }
 0x913   : > { %v11684_v59 = vpop.f32.mrb[83].mxu0 }
 0x990   : > { %v5299_v60 = vpop.f32.mrb[84].mxu0 }
 0x991   : > { %v8966_v62 = vadd.f32 %v5299_v60, %v4368_v7  ;;  %v5301_v0 = vpop.f32.mrb[85].mxu0  ;;  %v6096_v60 = vld [vmem:[#allocation4 + $0x36] sm:$0xff] }
 0x992   : > { %v5303_v3 = vpop.f32.mrb[86].mxu0  ;;  %v8967_v47 = vadd.f32 %v5301_v0, %v4372_v61  ;;  %v6097_v0 = vld [vmem:[#allocation4 + $0x3e] sm:$0xff] }
 0x993   : > { %v5476_v4 = vmul.f32 0.125, %v8966_v62  ;;  %v8968_v5 = vadd.f32 %v5303_v3, %v4368_v7  ;;  %v5305_v38 = vpop.f32.mrb[87].mxu0  ;;  %v5904_v7 = vld [vmem:[#allocation4 + $0x33] sm:$0xff]  ;;  %v6758_v62 = vld [vmem:[#allocation4 + $0x1c8] sm:$0xff] }
 0x994   : > { %v8969_v52 = vadd.f32 %v5305_v38, %v4372_v61  ;;  %v5905_v61 = vld [vmem:[#allocation4 + $0x3b] sm:$0xff]  ;;  %v6950_v3 = vld [vmem:[#allocation4 + $0x1cb] sm:$0xff]  ;;  %v6951_v38 = vld [vmem:[#allocation4 + $0x1d3] sm:$0xff] }
 0x995   : > { %v5477_v6 = vmul.f32 0.125, %v8968_v5  ;;  %8907 = vmatprep.mubr.msk.f32.mxu0 %vm3957_vm7, %v5476_v4  ;;  %v6760_v5 = vld [vmem:[#allocation4 + $0x1e0] sm:$0xff] }
 0x996   : > { %v5478_v8 = vpack.c.bf16 %v8969_v52, %v8967_v47  ;;  %v6761_v47 = vld [vmem:[#allocation4 + $0x1e8] sm:$0xff] }
 0x997   : > { %v9019_v9 = vpack.i.bf16 %v5477_v6, %v5476_v4  ;;  %v6759_v4 = vld [vmem:[#allocation4 + $0x1d0] sm:$0xff] }
 0x999   : > { %9020 = vrot.lane.b32.xlu0 %v9019_v9, %s9557_s26 }
 0x99d   : > { %5964 = vrot.lane.b32.xlu0 %v5900_v44, %s9556_s23  ;;  %v9519_v44 = vld [vmem:[#allocation6] sm:$0xff] }
 0x9a1   : > { %6156 = vrot.lane.b32.xlu0 %v6092_v45, %s9557_s26 }
 0x9a5   : > { %5968 = vrot.lane.b32.xlu0 %v5902_v46, %s9556_s23 }
 0x9a9   : > { %6160 = vrot.lane.b32.xlu0 %v6094_v50, %s9557_s26  ;;  %v9520_v50 = vld [vmem:[#allocation6 + $0x8] sm:$0xff] }
 0x9ad   : > { %5972 = vrot.lane.b32.xlu0 %v5904_v7, %s9556_s23 }
 0x9b0   : > { %v8612_v20 = vpop.f32.mrb[88].mxu0 }
 0x9b1   : > { %v8613_v10 = vpop.f32.mrb[89].mxu0  ;;  %6164 = vrot.lane.b32.xlu0 %v6096_v60, %s9557_s26 }
 0x9b2   : > { %v8614_v11 = vadd.f32 %v8613_v10, %v8612_v20  ;;  %v8615_v12 = vpop.f32.mrb[90].mxu0 }
 0x9b3   : > { %v8616_v14 = vpop.f32.mrb[91].mxu0 }
 0x9b4   : > { %v5429_v17 = vadd.f32 %v8614_v11, %v4384_v24  ;;  %v8617_v18 = vadd.f32 %v8616_v14, %v8615_v12  ;;  %v6952_v11 = vld [vmem:[#allocation4 + $0x1e3] sm:$0xff]  ;;  %v6953_v12 = vld [vmem:[#allocation4 + $0x1eb] sm:$0xff] }
 0x9b5   : > { %6848 = vrot.lane.b32.xlu0 %v6758_v62, %s9557_s26  ;;  %v5836_v14 = vld [vmem:[#allocation4] sm:$0xff] }
 0x9b6   : > { %v5470_v23 = vadd.f32 %v11409_v25, %v5429_v17  ;;  %v5432_v26 = vadd.f32 %v8617_v18, %v4384_v24  ;;  %v5837_v18 = vld [vmem:[#allocation4 + $0x8] sm:$0xff]  ;;  %5868 = vst.msk [vmem:[#allocation5] sm:$0xff] %vm483_vm0, %v5836_v14 }
 0x9b7   : > { %5869 = vst.msk [vmem:[#allocation5 + $0x18] sm:$0xff] %vm483_vm0, %v5837_v18 }
 0x9b8   : > { %v5473_v27 = vadd.f32 %v11411_v40, %v5432_v26  ;;  %v5839_v26 = vld [vmem:[#allocation4 + $0x20] sm:$0xff] }
 0x9b9   : > { %7040 = vrot.lane.b32.xlu0 %v6950_v3, %s9558_s21  ;;  %5871 = vst.msk [vmem:[#allocation5 + $0x48] sm:$0xff] %vm483_vm0, %v5839_v26 }
 0x9ba   : > { %v5481_v31 = vpack.c.bf16 %v5473_v27, %v5470_v23 }
 0x9bd   : > { %6852 = vrot.lane.b32.xlu0 %v6760_v5, %s9557_s26 }
 0x9c1   : > { %7044 = vrot.lane.b32.xlu0 %v6952_v11, %s9558_s21 }
 0xa0b   : > { %v9021_v35 = vpop.permute.xlu0 %9020 }
 0xa0c   : > { %v9023_v36 = vunpack.i.h.bf16 %v9021_v35  ;;  %v9022_v37 = vunpack.i.l.bf16 %v9021_v35 }
 0xa0e   : > { %v8952_v39 = vpack.c.bf16 %v9023_v36, %v9022_v37  ;;  %v5840_v36 = vld [vmem:[#allocation4 + $0x30] sm:$0xff] }
 0xa0f   : > { %v5965_v17 = vpop.permute.xlu0 %5964  ;;  %5872 = vst.msk [vmem:[#allocation5 + $0x60] sm:$0xff] %vm483_vm0, %v5840_v36 }
 0xa10   : > { %8954 = vmatprep.subr.msk.bf16.mxu0 %vm11377_vm8, %v8952_v39  ;;  %6060 = vst.msk [vmem:[#allocation5] sm:$0xff] %vm1165_vm3, %v5965_v17 }
 0xa11   : > { %8957 = vmatpush3.bf16.xpose.msk.msra.mxu0 %vm11377_vm8, %v8952_v39  ;;  %v5841_v39 = vld [vmem:[#allocation4 + $0x38] sm:$0xff] }
 0xa12   : > { %5597 = vmatprep.subr.bf16.mxu0 %v5479_v34  ;;  %5873 = vst.msk [vmem:[#allocation5 + $0x78] sm:$0xff] %vm483_vm0, %v5841_v39 }
 0xa13   : > { %v6157_v32 = vpop.permute.xlu0 %6156 }
 0xa14   : > { %6252 = vst.msk [vmem:[#allocation5] sm:$0xff] %vm1358_vm4, %v6157_v32 }
 0xa18   : > { %8908 = vmatmul.mubr.msk.f32.vlgmr.msra.gmra.mrb[74].mxu0 %vm3957_vm7, %v5477_v6 }
 0xa19   : > { %5598 = vmatpush1.bf16.msra.mxu0 %v5478_v8  ;;  %5629 = vmatprep.mubr.bf16.mxu0 %v9559_v16 }
 0xa1a   : > { %5640 = vmatprep.subr.bf16.mxu0 %v5481_v31 }
 0xaeb   : > { %v8909_v19 = vpop.f32.mrb[74].mxu0 }
 0xaec   : > { %v5562_v51 = vpop.f32.mrb[75].mxu0  ;;  %v5574_v25 = vsel %vm699_vm1, %v8909_v19, -inf }
 0xaed   : > { %v5571_v15 = vsel %vm699_vm1, %v5562_v51, -inf }
 0xaee   : > { %5572 = vmax.xlane.f32.xlu1 %v5571_v15 }
 0xaf2   : > { %5575 = vmax.xlane.f32.xlu1 %v5574_v25  ;;  %v4153_v25 = vstv %s2639_s15 }
 0xaf3   : > { %v4156_v3 = vmul.f32 %v4153_v25, %v11678_v57  ;;  %v4157_v5 = vmul.f32 %v4153_v25, %v11680_v58 }
 0xb7b   : > { %v5573_v13 = vpop.xlane.xlu1 %5572 }
 0xb7c   : > { %v5577_v40 = vsub.f32 %v5562_v51, %v5573_v13  ;;  %v5683_v13 = vstv %s8281_s16 }
 0xb7e   : > { %v5579_v41 = vmul.f32 1.442695, %v5577_v40  ;;  %v4154_v40 = vmul.f32 %v4153_v25, %v11670_v54 }
 0xb7f   : > { %v5576_v42 = vpop.xlane.xlu1 %5575 }
 0xb80   : > { %9511 = vpow2.f32 %v5579_v41  ;;  %v5578_v28 = vsub.f32 %v8909_v19, %v5576_v42  ;;  %v4155_v41 = vmul.f32 %v4153_v25, %v11672_v55  ;;  %v4162_v45 = vadd.f32 %v9519_v44, %v4154_v40 }
 0xb82   : > { %v5581_v30 = vmul.f32 1.442695, %v5578_v28  ;;  %v4158_v28 = vmul.f32 %v4153_v25, %v11674_v56  ;;  %v9522_v56 = vld [vmem:[#allocation6 + $0x28] sm:$0xff] }
 0xb84   : > { %9513 = vpow2.f32 %v5581_v30 }
 0xb8a   : > { %v11710_v34 = vpop.eup %9511 }
 0xb8b   : > { %v5583_v29 = vsel %vm699_vm1, %v11710_v34, 0.0 }
 0xb8c   : > { %5584 = vadd.xlane.f32.xlu1 %v5583_v29  ;;  %v4159_v29 = vmul.f32 %v4153_v25, %v11676_v63 }
 0xb8e   : > { %v11714_v2 = vpop.eup %9513  ;;  %v4167_v62 = vadd.f32 %v9522_v56, %v4159_v29 }
 0xb8f   : > { %v5586_v43 = vsel %vm699_vm1, %v11714_v2, 0.0 }
 0xb90   : > { %5587 = vadd.xlane.f32.xlu1 %v5586_v43 }
 0xba1   : > { %5966 = vrot.lane.b32.xlu1 %v5901_v48, %s9556_s23 }
 0xba5   : > { %6158 = vrot.lane.b32.xlu1 %v6093_v49, %s9557_s26 }
 0xba9   : > { %5970 = vrot.lane.b32.xlu1 %v5903_v53, %s9556_s23  ;;  %v4163_v53 = vadd.f32 %v9520_v50, %v4155_v41 }
 0xbad   : > { %6162 = vrot.lane.b32.xlu1 %v6095_v1, %s9557_s26  ;;  %v9521_v1 = vld [vmem:[#allocation6 + $0x20] sm:$0xff] }
 0xbae   : > { %v4166_v55 = vadd.f32 %v9521_v1, %v4158_v28 }
 0xbb1   : > { %5974 = vrot.lane.b32.xlu1 %v5905_v61, %s9556_s23 }
 0xbb5   : > { %6166 = vrot.lane.b32.xlu1 %v6097_v0, %s9557_s26 }
 0xbb9   : > { %6850 = vrot.lane.b32.xlu1 %v6759_v4, %s9557_s26 }
 0xbbd   : > { %7042 = vrot.lane.b32.xlu1 %v6951_v38, %s9558_s21 }
 0xbc1   : > { %6854 = vrot.lane.b32.xlu1 %v6761_v47, %s9557_s26 }
 0xbc5   : > { %7046 = vrot.lane.b32.xlu1 %v6953_v12, %s9558_s21  ;;  %v9524_v12 = vld [vmem:[#allocation6 + $0x18] sm:$0xff] }
 0xbc6   : > { %v4165_v14 = vadd.f32 %v9524_v12, %v4157_v5  ;;  %v9487_v5 = vld [vmem:[%s13108_s12 + $0x40] sm:$0xff]  }
 0xbc7   : > { %8644 = vmatprep.subr.bf16.mxu1 %v9487_v5 }
 0xc19   : > { %v5585_v52 = vpop.xlane.xlu1 %5584 }
 0xc1a   : > { %9515 = vrcp.f32 %v5585_v52  ;;  %v4160_v52 = vmul.f32 %v4153_v25, %v11682_v22 }
 0xc1d   : > { %v5588_v6 = vpop.xlane.xlu1 %5587 }
 0xc1e   : > { %9517 = vrcp.f32 %v5588_v6 }
 0xc21   : > { %v5967_v23 = vpop.permute.xlu1 %5966 }
 0xc22   : > { %6061 = vst.msk [vmem:[#allocation5 + $0x18] sm:$0xff] %vm1165_vm3, %v5967_v23  ;;  %v9525_v23 = vld [vmem:[#allocation6 + $0x30] sm:$0xff] }
 0xc24   : > { %v9516_v8 = vpop.eup %9515 }
 0xc25   : > { %v5591_v20 = vmul.f32 %v9516_v8, %v11710_v34  ;;  %v6159_v33 = vpop.permute.xlu1 %6158  ;;  %v4161_v8 = vmul.f32 %v4153_v25, %v11684_v59  ;;  %v4168_v59 = vadd.f32 %v9525_v23, %v4160_v52 }
 0xc26   : > { %6253 = vst.msk [vmem:[#allocation5 + $0x18] sm:$0xff] %vm1358_vm4, %v6159_v33 }
 0xc28   : > { %v9518_v9 = vpop.eup %9517 }
 0xc29   : > { %v5592_v24 = vmul.f32 %v9518_v9, %v11714_v2  ;;  %v5971_v27 = vpop.permute.xlu1 %5970 }
 0xc2a   : > { %6063 = vst.msk [vmem:[#allocation5 + $0x48] sm:$0xff] %vm1165_vm3, %v5971_v27 }
 0xc2b   : > { %v5593_v10 = vpack.c.bf16 %v5592_v24, %v5591_v20  ;;  %v9523_v24 = vld [vmem:[#allocation6 + $0x10] sm:$0xff] }
 0xc2c   : > { %v4164_v58 = vadd.f32 %v9523_v24, %v4156_v3 }
 0xc2d   : > { %8446 = vmatmul.mubr.msk.bf16.vlgmr.msra.gmra.mrb[92].mxu0 %vm699_vm1, %v5593_v10  ;;  %v6163_v35 = vpop.permute.xlu1 %6162 }
 0xc2e   : > { %5641 = vmatpush1.bf16.msra.mxu0 %v5480_v21  ;;  %5672 = vmatprep.mubr.bf16.mxu0 %v9559_v16  ;;  %v5838_v21 = vld [vmem:[#allocation4 + $0x18] sm:$0xff]  ;;  %v5969_v16 = vpop.permute.xlu0 %5968  ;;  %6255 = vst.msk [vmem:[#allocation5 + $0x48] sm:$0xff] %vm1358_vm4, %v6163_v35 }
 0xc2f   : > { %5870 = vst.msk [vmem:[#allocation5 + $0x30] sm:$0xff] %vm483_vm0, %v5838_v21  ;;  %v9526_v21 = vld [vmem:[#allocation6 + $0x38] sm:$0xff] }
 0xc30   : > { %6062 = vst.msk [vmem:[#allocation5 + $0x30] sm:$0xff] %vm1165_vm3, %v5969_v16  ;;  %v4169_v16 = vadd.f32 %v9526_v21, %v4161_v8 }
 0xc31   : > { %v5975_v19 = vpop.permute.xlu1 %5974 }
 0xc32   : > { %v6161_v31 = vpop.permute.xlu0 %6160  ;;  %6065 = vst.msk [vmem:[#allocation5 + $0x78] sm:$0xff] %vm1165_vm3, %v5975_v19 }
 0xc33   : > { %6254 = vst.msk [vmem:[#allocation5 + $0x30] sm:$0xff] %vm1358_vm4, %v6161_v31 }
 0xc35   : > { %8447 = vmatmul.mubr.msk.bf16.vlgmr.msra.gmra.mrb[96].mxu0 %vm699_vm1, %v5593_v10  ;;  %v6167_v15 = vpop.permute.xlu1 %6166 }
 0xc36   : > { %v5973_v37 = vpop.permute.xlu0 %5972  ;;  %6257 = vst.msk [vmem:[#allocation5 + $0x78] sm:$0xff] %vm1358_vm4, %v6167_v15 }
 0xc37   : > { %6064 = vst.msk [vmem:[#allocation5 + $0x60] sm:$0xff] %vm1165_vm3, %v5973_v37 }
 0xc3a   : > { %v6165_v51 = vpop.permute.xlu0 %6164 }
 0xc3b   : > { %6256 = vst.msk [vmem:[#allocation5 + $0x60] sm:$0xff] %vm1358_vm4, %v6165_v51 }
 0xd00   : > { %v5631_v42 = vpop.f32.mrb[92].mxu0 }
 0xd01   : > { %v5684_v30 = vmul.f32 %v5683_v13, %v5631_v42  ;;  %v5633_v34 = vpop.f32.mrb[93].mxu0 }
 0xd02   : > { %v5685_v2 = vmul.f32 %v5683_v13, %v5633_v34  ;;  %v5635_v43 = vpop.f32.mrb[94].mxu0 }
 0xd03   : > { %v5692_v46 = vadd.f32 %v9519_v44, %v5684_v30  ;;  %v5688_v48 = vmul.f32 %v5683_v13, %v5635_v43  ;;  %v5637_v49 = vpop.f32.mrb[95].mxu0 }
 0xd04   : > { %v5693_v7 = vadd.f32 %v9520_v50, %v5685_v2  ;;  %v5689_v54 = vmul.f32 %v5683_v13, %v5637_v49  ;;  %v9486_v50 = vld [vmem:[%s13108_s12 + $0x88] sm:$0xff]  }
 0xd05   : > { %v5700_v60 = vadd.f32 %v5692_v46, %v4162_v45  ;;  %v5696_v61 = vadd.f32 %v9521_v1, %v5688_v48  ;;  %v9485_v48 = vld [vmem:[%s13108_s12 + $0x80] sm:$0xff]   ;;  %v12004_v1 = vpop.permute.xlu0 %6848 }
 0xd06   : > { %v11812_v0 = vadd.f32 %v5693_v7, %v4163_v53  ;;  %v5697_v63 = vadd.f32 %v9522_v56, %v5689_v54  ;;  %8910 = vmatprep.subr.bf16.mxu0 %v9485_v48 }
 0xd07   : > { %5709 = vst.msk [vmem:[#allocation4 + $0x4b] sm:$0xff] %vm483_vm0, %v5700_v60  ;;  %v11816_v4 = vadd.f32 %v5696_v61, %v4166_v55  ;;  %5713 = vrot.lane.b32.xlu0 %v5700_v60, %s9558_s21  ;;  %5731 = vrot.lane.b32.xlu1 %v5700_v60, %s9556_s23  ;;  %v12006_v55 = vpop.permute.xlu1 %6850 }
 0xd08   : > { %5741 = vst.msk [vmem:[#allocation4 + $0xab] sm:$0xff] %vm483_vm0, %v11812_v0  ;;  %v5705_v38 = vadd.f32 %v5697_v63, %v4167_v62  ;;  %v5674_v47 = vpop.f32.mrb[96].mxu0  ;;  %8911 = vmatpush3.bf16.msra.mxu0 %v9485_v48 }
 0xd09   : > { %5710 = vst.msk [vmem:[#allocation4 + $0x53] sm:$0xff] %vm483_vm0, %v11816_v4  ;;  %v5686_v57 = vmul.f32 %v5683_v13, %v5674_v47  ;;  %v5676_v6 = vpop.f32.mrb[97].mxu0  ;;  %8912 = vmatprep.subr.bf16.mxu0 %v9486_v50 }
 0xd0a   : > { %5742 = vst.msk [vmem:[#allocation4 + $0xb3] sm:$0xff] %vm483_vm0, %v5705_v38  ;;  %v5687_v9 = vmul.f32 %v5683_v13, %v5676_v6  ;;  %v5678_v20 = vpop.f32.mrb[98].mxu0  ;;  %v9490_v6 = vld [vmem:[%s13108_s12 + $0x8] sm:$0xff]  }
 0xd0b   : > { %v5694_v10 = vadd.f32 %v9523_v24, %v5686_v57  ;;  %v5690_v11 = vmul.f32 %v5683_v13, %v5678_v20  ;;  %5722 = vrot.lane.b32.xlu0 %v5700_v60, %s9557_s26  ;;  %5724 = vrot.lane.b32.xlu1 %v11816_v4, %s9557_s26  ;;  %v5680_v22 = vpop.f32.mrb[99].mxu0  ;;  %v12016_v60 = vpop.permute.xlu0 %7040  ;;  %v9489_v57 = vld [vmem:[%s13108_s12 + $0x48] sm:$0xff]   ;;  %v9491_v20 = vld [vmem:[%s13108_s12 + $0x50] sm:$0xff]  }
 0xd0c   : > { %v5695_v17 = vadd.f32 %v9524_v12, %v5687_v9  ;;  %v5691_v18 = vmul.f32 %v5683_v13, %v5680_v22  ;;  %8913 = vmatpush3.bf16.msra.mxu0 %v9486_v50  ;;  %v12018_v61 = vpop.permute.xlu1 %7042  ;;  %v9492_v24 = vld [vmem:[%s13108_s12 + $0x10] sm:$0xff]  }
 0xd0d   : > { %v11831_v32 = vadd.f32 %v5694_v10, %v4164_v58  ;;  %v5698_v33 = vadd.f32 %v9525_v23, %v5690_v11 }
 0xd0e   : > { %v11833_v26 = vadd.f32 %v5695_v17, %v4165_v14  ;;  %v5699_v27 = vadd.f32 %v9526_v21, %v5691_v18  ;;  %v11835_v31 = vld [vmem:[#allocation4 + $0x48] sm:$0xff]  ;;  %v9493_v17 = vld [vmem:[%s13108_s12 + $0x58] sm:$0xff]  }
 0xd0f   : > { %v11837_v35 = vld [vmem:[#allocation4 + $0x4b] sm:$0xff]  ;;  %5773 = vst.msk [vmem:[#allocation4 + $0x10b] sm:$0xff] %vm483_vm0, %v11831_v32  ;;  %v11841_v36 = vadd.f32 %v5698_v33, %v4168_v59  ;;  %5745 = vrot.lane.b32.xlu0 %v11812_v0, %s9558_s21  ;;  %5747 = vrot.lane.b32.xlu1 %v5705_v38, %s9558_s21  ;;  %5874 = vst.msk [vmem:[#allocation5 + $0x90] sm:$0xff] %vm483_vm0, %v11835_v31  ;;  %v12024_v56 = vpop.permute.xlu0 %6852  ;;  %v9494_v18 = vld [vmem:[%s13108_s12 + $0x18] sm:$0xff]  }
 0xd10   : > { %v11846_v37 = vld [vmem:[#allocation4 + $0xa8] sm:$0xff]  ;;  %6508 = vst.msk [vmem:[#allocation5 + $0x8] sm:$0xff] %vm483_vm0, %v11837_v35  ;;  %5805 = vst.msk [vmem:[#allocation4 + $0x16b] sm:$0xff] %vm483_vm0, %v11833_v26  ;;  %v11856_v19 = vadd.f32 %v5699_v27, %v4169_v16  ;;  %v6285_v51 = vld [vmem:[#allocation4 + $0x50] sm:$0xff]  ;;  %v12026_v62 = vpop.permute.xlu1 %6854 }
 0xd11   : > { %v11848_v39 = vld [vmem:[#allocation4 + $0xab] sm:$0xff]  ;;  %v5907_v15 = vld [vmem:[#allocation4 + $0x53] sm:$0xff]  ;;  %5882 = vst.msk [vmem:[#allocation5 + $0x150] sm:$0xff] %vm483_vm0, %v11846_v37  ;;  %5774 = vst.msk [vmem:[#allocation4 + $0x113] sm:$0xff] %vm483_vm0, %v11841_v36 }
 0xd12   : > { %6516 = vst.msk [vmem:[#allocation5 + $0xc8] sm:$0xff] %vm483_vm0, %v11848_v39  ;;  %v11862_v25 = vld [vmem:[#allocation4 + $0xae] sm:$0xff]  ;;  %v11864_v13 = vld [vmem:[#allocation4 + $0xb6] sm:$0xff]  ;;  %6509 = vst.msk [vmem:[#allocation5 + $0x20] sm:$0xff] %vm483_vm0, %v5907_v15 }
 0xd13   : > { %v11868_v40 = vld [vmem:[#allocation4 + $0xb0] sm:$0xff]  ;;  %5875 = vst.msk [vmem:[#allocation5 + $0xa8] sm:$0xff] %vm483_vm0, %v6285_v51  ;;  %7150 = vst.msk [vmem:[#allocation5 + $0x40] sm:$0xff] %vm483_vm0, %v11862_v25  ;;  %5754 = vrot.lane.b32.xlu0 %v11812_v0, %s9557_s26  ;;  %5756 = vrot.lane.b32.xlu1 %v5705_v38, %s9557_s26  ;;  %v12034_v3 = vpop.permute.xlu0 %7044 }
 0xd14   : > { %7151 = vst.msk [vmem:[#allocation5 + $0x58] sm:$0xff] %vm483_vm0, %v11864_v13  ;;  %5806 = vst.msk [vmem:[#allocation4 + $0x173] sm:$0xff] %vm483_vm0, %v11856_v19  ;;  %v11878_v41 = vld [vmem:[#allocation4 + $0xb3] sm:$0xff] }
 0xd15   : > { %5883 = vst.msk [vmem:[#allocation5 + $0x168] sm:$0xff] %vm483_vm0, %v11868_v40  ;;  %6517 = vst.msk [vmem:[#allocation5 + $0xe0] sm:$0xff] %vm483_vm0, %v11878_v41  ;;  %v6541_v7 = vld [vmem:[#allocation4 + $0x56] sm:$0xff]  ;;  %v6540_v54 = vld [vmem:[#allocation4 + $0x4e] sm:$0xff] }
 0xd16   : > { %v11887_v42 = vld [vmem:[#allocation4 + $0x108] sm:$0xff] }
 0xd17   : > { %v11889_v28 = vld [vmem:[#allocation4 + $0x10b] sm:$0xff]  ;;  %5763 = vrot.lane.b32.xlu0 %v11812_v0, %s9556_s23  ;;  %5765 = vrot.lane.b32.xlu1 %v5705_v38, %s9556_s23  ;;  %5890 = vst.msk [vmem:[#allocation5 + $0x210] sm:$0xff] %vm483_vm0, %v11887_v42  ;;  %v9488_v38 = vld [vmem:[%s13108_s12] sm:$0xff]  }
 0xd18   : > { %v11894_v30 = vld [vmem:[#allocation4 + $0x16b] sm:$0xff]  ;;  %6524 = vst.msk [vmem:[#allocation5 + $0x188] sm:$0xff] %vm483_vm0, %v11889_v28  ;;  %v11902_v29 = vld [vmem:[#allocation4 + $0x113] sm:$0xff]  ;;  %8645 = vmatpush3.bf16.msra.mxu1 %v9488_v38 }
 0xd19   : > { %v11900_v34 = vld [vmem:[#allocation4 + $0x110] sm:$0xff]  ;;  %6532 = vst.msk [vmem:[#allocation5 + $0x248] sm:$0xff] %vm483_vm0, %v11894_v30  ;;  %6525 = vst.msk [vmem:[#allocation5 + $0x1a0] sm:$0xff] %vm483_vm0, %v11902_v29  ;;  %v5866_v53 = vld [vmem:[#allocation4 + $0x168] sm:$0xff]  ;;  %8646 = vmatprep.subr.bf16.mxu1 %v9489_v57 }
 0xd1a   : > { %v11904_v2 = vld [vmem:[#allocation4 + $0x116] sm:$0xff]  ;;  %5891 = vst.msk [vmem:[#allocation5 + $0x228] sm:$0xff] %vm483_vm0, %v11900_v34  ;;  %v11918_v45 = vld [vmem:[#allocation4 + $0x10e] sm:$0xff]  ;;  %5898 = vst.msk [vmem:[#allocation5 + $0x2d0] sm:$0xff] %vm483_vm0, %v5866_v53 }
 0xd1b   : > { %v11908_v43 = vld [vmem:[#allocation4 + $0x173] sm:$0xff]  ;;  %7159 = vst.msk [vmem:[#allocation5 + $0x118] sm:$0xff] %vm483_vm0, %v11904_v2  ;;  %5733 = vrot.lane.b32.xlu0 %v11816_v4, %s9556_s23  ;;  %5779 = vrot.lane.b32.xlu1 %v11841_v36, %s9558_s21  ;;  %7158 = vst.msk [vmem:[#allocation5 + $0x100] sm:$0xff] %vm483_vm0, %v11918_v45  ;;  %v6750_v0 = vld [vmem:[#allocation4 + $0x168] sm:$0xff] }
 0xd1c   : > { %v11910_v44 = vld [vmem:[#allocation4 + $0x176] sm:$0xff]  ;;  %v11920_v46 = vld [vmem:[#allocation4 + $0x16e] sm:$0xff]  ;;  %6533 = vst.msk [vmem:[#allocation5 + $0x260] sm:$0xff] %vm483_vm0, %v11908_v43  ;;  %8647 = vmatpush3.bf16.msra.mxu1 %v9490_v6 }
 0xd1d   : > { %7167 = vst.msk [vmem:[#allocation5 + $0x1d8] sm:$0xff] %vm483_vm0, %v11910_v44  ;;  %7166 = vst.msk [vmem:[#allocation5 + $0x1c0] sm:$0xff] %vm483_vm0, %v11920_v46  ;;  %v5867_v49 = vld [vmem:[#allocation4 + $0x170] sm:$0xff]  ;;  %8648 = vmatprep.subr.bf16.mxu1 %v9491_v20 }
 0xd1e   : > { %5899 = vst.msk [vmem:[#allocation5 + $0x2e8] sm:$0xff] %vm483_vm0, %v5867_v49  ;;  %v6751_v63 = vld [vmem:[#allocation4 + $0x170] sm:$0xff] }
 0xd1f   : > { %5715 = vrot.lane.b32.xlu0 %v11816_v4, %s9558_s21  ;;  %5788 = vrot.lane.b32.xlu1 %v11841_v36, %s9557_s26  ;;  %v12036_v4 = vpop.permute.xlu1 %7046 }
 0xd20   : > { %8649 = vmatpush3.bf16.msra.mxu1 %v9492_v24 }
 0xd21   : > { %8650 = vmatprep.subr.bf16.mxu1 %v9493_v17  ;;  %v7188_v17 = vld [vmem:[#allocation5 + $0x40] sm:$0xff] }
 0xd23   : > { %5777 = vrot.lane.b32.xlu0 %v11831_v32, %s9558_s21  ;;  %5797 = vrot.lane.b32.xlu1 %v11841_v36, %s9556_s23 }
 0xd24   : > { %8651 = vmatpush3.bf16.msra.mxu1 %v9494_v18 }
 0xd27   : > { %5786 = vrot.lane.b32.xlu0 %v11831_v32, %s9557_s26  ;;  %6606 = vrot.lane.b32.xlu1 %v6541_v7, %s9556_s23 }
 0xd2b   : > { %5795 = vrot.lane.b32.xlu0 %v11831_v32, %s9556_s23  ;;  %6350 = vrot.lane.b32.xlu1 %v6285_v51, %s9558_s21  ;;  %v9496_v51 = vld [vmem:[%s13108_s12 + $0x20] sm:$0xff]  }
 0xd2f   : > { %6348 = vrot.lane.b32.xlu0 %v11835_v31, %s9558_s21  ;;  %5978 = vrot.lane.b32.xlu1 %v5907_v15, %s9556_s23 }
 0xd33   : > { %5976 = vrot.lane.b32.xlu0 %v11837_v35, %s9556_s23  ;;  %6170 = vrot.lane.b32.xlu1 %v6541_v7, %s9557_s26 }
 0xd37   : > { %6800 = vrot.lane.b32.xlu0 %v11846_v37, %s9557_s26  ;;  %6802 = vrot.lane.b32.xlu1 %v11868_v40, %s9557_s26 }
 0xd3b   : > { %6992 = vrot.lane.b32.xlu0 %v11848_v39, %s9558_s21  ;;  %6994 = vrot.lane.b32.xlu1 %v11878_v41, %s9558_s21 }
 0xd3f   : > { %5809 = vrot.lane.b32.xlu0 %v11833_v26, %s9558_s21  ;;  %5811 = vrot.lane.b32.xlu1 %v11856_v19, %s9558_s21 }
 0xd43   : > { %5818 = vrot.lane.b32.xlu0 %v11833_v26, %s9557_s26  ;;  %5820 = vrot.lane.b32.xlu1 %v11856_v19, %s9557_s26 }
 0xd47   : > { %5827 = vrot.lane.b32.xlu0 %v11833_v26, %s9556_s23  ;;  %5829 = vrot.lane.b32.xlu1 %v11856_v19, %s9556_s23  ;;  %v9495_v26 = vld [vmem:[%s13108_s12 + $0x60] sm:$0xff]  }
 0xd48   : > { %8652 = vmatprep.subr.bf16.mxu1 %v9495_v26 }
 0xd49   : > { %8653 = vmatpush3.bf16.msra.mxu1 %v9496_v51 }
 0xd4b   : > { %6364 = vrot.lane.b32.xlu0 %v11846_v37, %s9558_s21  ;;  %6622 = vrot.lane.b32.xlu1 %v11864_v13, %s9556_s23 }
 0xd4f   : > { %5992 = vrot.lane.b32.xlu0 %v11848_v39, %s9556_s23  ;;  %6366 = vrot.lane.b32.xlu1 %v11868_v40, %s9558_s21 }
 0xd53   : > { %6604 = vrot.lane.b32.xlu0 %v6540_v54, %s9556_s23  ;;  %5994 = vrot.lane.b32.xlu1 %v11878_v41, %s9556_s23 }
 0xd57   : > { %6168 = vrot.lane.b32.xlu0 %v6540_v54, %s9557_s26  ;;  %6186 = vrot.lane.b32.xlu1 %v11864_v13, %s9557_s26  ;;  %v9500_v54 = vld [vmem:[%s13108_s12 + $0x30] sm:$0xff]  }
 0xd5b   : > { %6620 = vrot.lane.b32.xlu0 %v11862_v25, %s9556_s23  ;;  %6818 = vrot.lane.b32.xlu1 %v11900_v34, %s9557_s26 }
 0xd5f   : > { %6184 = vrot.lane.b32.xlu0 %v11862_v25, %s9557_s26  ;;  %7010 = vrot.lane.b32.xlu1 %v11902_v29, %s9558_s21  ;;  %v9497_v25 = vld [vmem:[%s13108_s12 + $0x68] sm:$0xff]  }
 0xd60   : > { %8654 = vmatprep.subr.bf16.mxu1 %v9497_v25 }
 0xd63   : > { %6816 = vrot.lane.b32.xlu0 %v11887_v42, %s9557_s26  ;;  %6638 = vrot.lane.b32.xlu1 %v11904_v2, %s9556_s23 }
 0xd67   : > { %7008 = vrot.lane.b32.xlu0 %v11889_v28, %s9558_s21  ;;  %6382 = vrot.lane.b32.xlu1 %v11900_v34, %s9558_s21 }
 0xd6b   : > { %6380 = vrot.lane.b32.xlu0 %v11887_v42, %s9558_s21  ;;  %6010 = vrot.lane.b32.xlu1 %v11902_v29, %s9556_s23 }
 0xd6f   : > { %6008 = vrot.lane.b32.xlu0 %v11889_v28, %s9556_s23  ;;  %6202 = vrot.lane.b32.xlu1 %v11904_v2, %s9557_s26  ;;  %v9498_v2 = vld [vmem:[%s13108_s12 + $0x28] sm:$0xff]  }
 0xd70   : > { %8655 = vmatpush3.bf16.msra.mxu1 %v9498_v2 }
 0xd73   : > { %6832 = vrot.lane.b32.xlu0 %v6750_v0, %s9557_s26  ;;  %6834 = vrot.lane.b32.xlu1 %v6751_v63, %s9557_s26 }
 0xd77   : > { %7024 = vrot.lane.b32.xlu0 %v11894_v30, %s9558_s21  ;;  %7026 = vrot.lane.b32.xlu1 %v11908_v43, %s9558_s21 }
 0xd79   : > { %v5714_v47 = vpop.permute.xlu0 %5713  ;;  %v5732_v52 = vpop.permute.xlu1 %5731 }
 0xd7a   : > { %5720 = vst.msk [vmem:[#allocation4 + $0x63] sm:$0xff] %vm483_vm0, %v5714_v47  ;;  %5738 = vst.msk [vmem:[#allocation4 + $0x93] sm:$0xff] %vm483_vm0, %v5732_v52 }
 0xd7b   : > { %6396 = vrot.lane.b32.xlu0 %v6750_v0, %s9558_s21  ;;  %6654 = vrot.lane.b32.xlu1 %v11910_v44, %s9556_s23  ;;  %v9499_v44 = vld [vmem:[%s13108_s12 + $0x70] sm:$0xff]   ;;  %v9501_v0 = vld [vmem:[%s13108_s12 + $0x78] sm:$0xff]  }
 0xd7c   : > { %8656 = vmatprep.subr.bf16.mxu1 %v9499_v44 }
 0xd7d   : > { %v5723_v8 = vpop.permute.xlu0 %5722  ;;  %v5725_v9 = vpop.permute.xlu1 %5724  ;;  %8657 = vmatpush3.bf16.msra.mxu1 %v9500_v54 }
 0xd7e   : > { %5729 = vst.msk [vmem:[#allocation4 + $0x7b] sm:$0xff] %vm483_vm0, %v5723_v8  ;;  %5730 = vst.msk [vmem:[#allocation4 + $0x83] sm:$0xff] %vm483_vm0, %v5725_v9  ;;  %8658 = vmatprep.subr.bf16.mxu1 %v9501_v0  ;;  %v9502_v9 = vld [vmem:[%s13108_s12 + $0x38] sm:$0xff]  }
 0xd7f   : > { %6636 = vrot.lane.b32.xlu0 %v11918_v45, %s9556_s23  ;;  %6398 = vrot.lane.b32.xlu1 %v6751_v63, %s9558_s21 }
 0xd81   : > { %v5746_v58 = vpop.permute.xlu0 %5745  ;;  %v5748_v10 = vpop.permute.xlu1 %5747  ;;  %v12070_v11 = vld [vmem:[#allocation4 + $0x90] sm:$0xff]  ;;  %v12072_v22 = vld [vmem:[#allocation4 + $0x60] sm:$0xff]  ;;  %8659 = vmatpush3.bf16.msra.mxu1 %v9502_v9 }
 0xd82   : > { %5752 = vst.msk [vmem:[#allocation4 + $0xc3] sm:$0xff] %vm483_vm0, %v5746_v58  ;;  %5753 = vst.msk [vmem:[#allocation4 + $0xcb] sm:$0xff] %vm483_vm0, %v5748_v10  ;;  %v12076_v12 = vld [vmem:[#allocation4 + $0x63] sm:$0xff]  ;;  %v6482_v14 = vld [vmem:[#allocation4 + $0x93] sm:$0xff] }
 0xd83   : > { %5876 = vst.msk [vmem:[#allocation5 + $0xc0] sm:$0xff] %vm483_vm0, %v12072_v22  ;;  %5880 = vst.msk [vmem:[#allocation5 + $0x120] sm:$0xff] %vm483_vm0, %v12070_v11  ;;  %6200 = vrot.lane.b32.xlu0 %v11918_v45, %s9557_s26  ;;  %v12159_v30 = vld [vmem:[#allocation4 + $0x93] sm:$0xff] }
 0xd84   : > { %6510 = vst.msk [vmem:[#allocation5 + $0x38] sm:$0xff] %vm483_vm0, %v12076_v12  ;;  %6514 = vst.msk [vmem:[#allocation5 + $0x98] sm:$0xff] %vm483_vm0, %v6482_v14 }
 0xd85   : > { %v5755_v23 = vpop.permute.xlu0 %5754  ;;  %v5757_v59 = vpop.permute.xlu1 %5756  ;;  %v12093_v32 = vld [vmem:[#allocation4 + $0x78] sm:$0xff]  ;;  %v12099_v21 = vld [vmem:[#allocation4 + $0x80] sm:$0xff] }
 0xd86   : > { %v12095_v33 = vld [vmem:[#allocation4 + $0x7b] sm:$0xff]  ;;  %5761 = vst.msk [vmem:[#allocation4 + $0xdb] sm:$0xff] %vm483_vm0, %v5755_v23  ;;  %5762 = vst.msk [vmem:[#allocation4 + $0xe3] sm:$0xff] %vm483_vm0, %v5757_v59  ;;  %v12101_v16 = vld [vmem:[#allocation4 + $0x83] sm:$0xff] }
 0xd87   : > { %5878 = vst.msk [vmem:[#allocation5 + $0xf0] sm:$0xff] %vm483_vm0, %v12093_v32  ;;  %6512 = vst.msk [vmem:[#allocation5 + $0x68] sm:$0xff] %vm483_vm0, %v12095_v33  ;;  %6652 = vrot.lane.b32.xlu0 %v11920_v46, %s9556_s23  ;;  %v7191_v23 = vld [vmem:[#allocation5 + $0x58] sm:$0xff] }
 0xd88   : > { %6513 = vst.msk [vmem:[#allocation5 + $0x80] sm:$0xff] %vm483_vm0, %v12101_v16  ;;  %5879 = vst.msk [vmem:[#allocation5 + $0x108] sm:$0xff] %vm483_vm0, %v12099_v21  ;;  %v12307_v9 = vld [vmem:[#allocation4 + $0x86] sm:$0xff] }
 0xd89   : > { %v12116_v27 = vld [vmem:[#allocation4 + $0xc6] sm:$0xff]  ;;  %v12118_v31 = vld [vmem:[#allocation4 + $0xce] sm:$0xff]  ;;  %v5764_v35 = vpop.permute.xlu0 %5763  ;;  %v5766_v36 = vpop.permute.xlu1 %5765 }
 0xd8a   : > { %v12120_v37 = vld [vmem:[#allocation4 + $0xc0] sm:$0xff]  ;;  %7152 = vst.msk [vmem:[#allocation5 + $0x70] sm:$0xff] %vm483_vm0, %v12116_v27  ;;  %7153 = vst.msk [vmem:[#allocation5 + $0x88] sm:$0xff] %vm483_vm0, %v12118_v31  ;;  %v12128_v39 = vld [vmem:[#allocation4 + $0xc8] sm:$0xff] }
 0xd8b   : > { %5770 = vst.msk [vmem:[#allocation4 + $0xf3] sm:$0xff] %vm483_vm0, %v5764_v35  ;;  %5771 = vst.msk [vmem:[#allocation4 + $0xfb] sm:$0xff] %vm483_vm0, %v5766_v36  ;;  %v12130_v19 = vld [vmem:[#allocation4 + $0xcb] sm:$0xff]  ;;  %6796 = vrot.lane.b32.xlu0 %v12070_v11, %s9557_s26  ;;  %v6486_v15 = vld [vmem:[#allocation4 + $0xc3] sm:$0xff] }
 0xd8c   : > { %5884 = vst.msk [vmem:[#allocation5 + $0x180] sm:$0xff] %vm483_vm0, %v12120_v37  ;;  %6519 = vst.msk [vmem:[#allocation5 + $0x110] sm:$0xff] %vm483_vm0, %v12130_v19 }
 0xd8d   : > { %5885 = vst.msk [vmem:[#allocation5 + $0x198] sm:$0xff] %vm483_vm0, %v12128_v39  ;;  %6518 = vst.msk [vmem:[#allocation5 + $0xf8] sm:$0xff] %vm483_vm0, %v6486_v15  ;;  %v12147_v13 = vld [vmem:[#allocation4 + $0xde] sm:$0xff]  ;;  %v12149_v40 = vld [vmem:[#allocation4 + $0xe6] sm:$0xff]  ;;  %v5734_v41 = vpop.permute.xlu0 %5733  ;;  %v5780_v42 = vpop.permute.xlu1 %5779 }
 0xd8e   : > { %v12151_v28 = vld [vmem:[#allocation4 + $0xd8] sm:$0xff]  ;;  %7154 = vst.msk [vmem:[#allocation5 + $0xa0] sm:$0xff] %vm483_vm0, %v12147_v13  ;;  %7155 = vst.msk [vmem:[#allocation5 + $0xb8] sm:$0xff] %vm483_vm0, %v12149_v40  ;;  %v12161_v34 = vld [vmem:[#allocation4 + $0xe0] sm:$0xff] }
 0xd8f   : > { %5739 = vst.msk [vmem:[#allocation4 + $0x9b] sm:$0xff] %vm483_vm0, %v5734_v41  ;;  %5785 = vst.msk [vmem:[#allocation4 + $0x12b] sm:$0xff] %vm483_vm0, %v5780_v42  ;;  %v12163_v29 = vld [vmem:[#allocation4 + $0xe3] sm:$0xff]  ;;  %6988 = vrot.lane.b32.xlu0 %v12159_v30, %s9558_s21  ;;  %v6488_v43 = vld [vmem:[#allocation4 + $0xdb] sm:$0xff] }
 0xd90   : > { %5886 = vst.msk [vmem:[#allocation5 + $0x1b0] sm:$0xff] %vm483_vm0, %v12151_v28  ;;  %6521 = vst.msk [vmem:[#allocation5 + $0x140] sm:$0xff] %vm483_vm0, %v12163_v29 }
 0xd91   : > { %5887 = vst.msk [vmem:[#allocation5 + $0x1c8] sm:$0xff] %vm483_vm0, %v12161_v34  ;;  %6520 = vst.msk [vmem:[#allocation5 + $0x128] sm:$0xff] %vm483_vm0, %v6488_v43  ;;  %v5716_v48 = vpop.permute.xlu0 %5715  ;;  %v5789_v49 = vpop.permute.xlu1 %5788  ;;  %v7194_v59 = vld [vmem:[#allocation5 + $0x70] sm:$0xff] }
 0xd92   : > { %v12180_v45 = vld [vmem:[#allocation4 + $0xf6] sm:$0xff]  ;;  %v12182_v46 = vld [vmem:[#allocation4 + $0xfe] sm:$0xff]  ;;  %5721 = vst.msk [vmem:[#allocation4 + $0x6b] sm:$0xff] %vm483_vm0, %v5716_v48  ;;  %5794 = vst.msk [vmem:[#allocation4 + $0x143] sm:$0xff] %vm483_vm0, %v5789_v49  ;;  %v7281_v48 = vpack.c.bf16 %v7191_v23, %v7188_v17 }
 0xd93   : > { %7156 = vst.msk [vmem:[#allocation5 + $0xd0] sm:$0xff] %vm483_vm0, %v12180_v45  ;;  %7157 = vst.msk [vmem:[#allocation5 + $0xe8] sm:$0xff] %vm483_vm0, %v12182_v46  ;;  %v12190_v50 = vld [vmem:[#allocation4 + $0xf0] sm:$0xff]  ;;  %6352 = vrot.lane.b32.xlu0 %v12072_v22, %s9558_s21  ;;  %v12194_v53 = vld [vmem:[#allocation4 + $0xf8] sm:$0xff] }
 0xd94   : > { %v12196_v7 = vld [vmem:[#allocation4 + $0xfb] sm:$0xff]  ;;  %5888 = vst.msk [vmem:[#allocation5 + $0x1e0] sm:$0xff] %vm483_vm0, %v12190_v50  ;;  %v6490_v63 = vld [vmem:[#allocation4 + $0xf3] sm:$0xff]  ;;  %5889 = vst.msk [vmem:[#allocation5 + $0x1f8] sm:$0xff] %vm483_vm0, %v12194_v53 }
 0xd95   : > { %6523 = vst.msk [vmem:[#allocation5 + $0x170] sm:$0xff] %vm483_vm0, %v12196_v7  ;;  %v5778_v52 = vpop.permute.xlu0 %5777  ;;  %v5798_v57 = vpop.permute.xlu1 %5797  ;;  %6522 = vst.msk [vmem:[#allocation5 + $0x158] sm:$0xff] %vm483_vm0, %v6490_v63  ;;  %v7203_v23 = vld [vmem:[#allocation5 + $0xb8] sm:$0xff] }
 0xd96   : > { %v12210_v5 = vld [vmem:[#allocation4 + $0x96] sm:$0xff]  ;;  %v12212_v38 = vld [vmem:[#allocation4 + $0x9e] sm:$0xff]  ;;  %v12214_v47 = vld [vmem:[#allocation4 + $0x12e] sm:$0xff]  ;;  %5784 = vst.msk [vmem:[#allocation4 + $0x123] sm:$0xff] %vm483_vm0, %v5778_v52 }
 0xd97   : > { %7148 = vst.msk [vmem:[#allocation5 + $0x10] sm:$0xff] %vm483_vm0, %v12210_v5  ;;  %7149 = vst.msk [vmem:[#allocation5 + $0x28] sm:$0xff] %vm483_vm0, %v12212_v38  ;;  %v12225_v6 = vld [vmem:[#allocation4 + $0x98] sm:$0xff]  ;;  %6356 = vrot.lane.b32.xlu0 %v12093_v32, %s9558_s21  ;;  %v12236_v20 = vld [vmem:[#allocation4 + $0x12b] sm:$0xff] }
 0xd98   : > { %7161 = vst.msk [vmem:[#allocation5 + $0x148] sm:$0xff] %vm483_vm0, %v12214_v47  ;;  %5803 = vst.msk [vmem:[#allocation4 + $0x15b] sm:$0xff] %vm483_vm0, %v5798_v57  ;;  %v12227_v8 = vld [vmem:[#allocation4 + $0x9b] sm:$0xff]  ;;  %6798 = vrot.lane.b32.xlu1 %v12225_v6, %s9557_s26 }
 0xd99   : > { %6515 = vst.msk [vmem:[#allocation5 + $0xb0] sm:$0xff] %vm483_vm0, %v12227_v8  ;;  %5881 = vst.msk [vmem:[#allocation5 + $0x138] sm:$0xff] %vm483_vm0, %v12225_v6  ;;  %v7131_v24 = vld [vmem:[#allocation4 + $0x146] sm:$0xff]  ;;  %v5787_v58 = vpop.permute.xlu0 %5786  ;;  %v6607_v10 = vpop.permute.xlu1 %6606  ;;  %v7197_v32 = vld [vmem:[#allocation5 + $0x88] sm:$0xff] }
 0xd9a   : > { %6527 = vst.msk [vmem:[#allocation5 + $0x1d0] sm:$0xff] %vm483_vm0, %v12236_v20  ;;  %v6287_v22 = vld [vmem:[#allocation4 + $0x68] sm:$0xff]  ;;  %7163 = vst.msk [vmem:[#allocation5 + $0x178] sm:$0xff] %vm483_vm0, %v7131_v24  ;;  %v7284_v0 = vpack.c.bf16 %v7197_v32, %v7194_v59  ;;  %v7200_v24 = vld [vmem:[#allocation5 + $0xa0] sm:$0xff] }
 0xd9b   : > { %5793 = vst.msk [vmem:[#allocation4 + $0x13b] sm:$0xff] %vm483_vm0, %v5787_v58  ;;  %v12247_v14 = vld [vmem:[#allocation4 + $0x6b] sm:$0xff]  ;;  %5877 = vst.msk [vmem:[#allocation5 + $0xd8] sm:$0xff] %vm483_vm0, %v6287_v22  ;;  %6360 = vrot.lane.b32.xlu0 %v12070_v11, %s9558_s21  ;;  %v12256_v18 = vld [vmem:[#allocation4 + $0x143] sm:$0xff] }
 0xd9c   : > { %6701 = vst.msk [vmem:[#allocation5 + $0x20] sm:$0xff] %vm1165_vm3, %v6607_v10  ;;  %6990 = vrot.lane.b32.xlu1 %v12227_v8, %s9558_s21  ;;  %v12264_v11 = vld [vmem:[#allocation4 + $0x6e] sm:$0xff]  ;;  %v7206_v59 = vld [vmem:[#allocation5 + $0xd0] sm:$0xff] }
 0xd9d   : > { %6511 = vst.msk [vmem:[#allocation5 + $0x50] sm:$0xff] %vm483_vm0, %v12247_v14  ;;  %6529 = vst.msk [vmem:[#allocation5 + $0x200] sm:$0xff] %vm483_vm0, %v12256_v18  ;;  %v7128_v26 = vld [vmem:[#allocation4 + $0x126] sm:$0xff]  ;;  %v5796_v36 = vpop.permute.xlu0 %5795  ;;  %v6351_v51 = vpop.permute.xlu1 %6350 }
 0xd9e   : > { %v7182_v15 = vld [vmem:[#allocation5 + $0x10] sm:$0xff]  ;;  %7160 = vst.msk [vmem:[#allocation5 + $0x130] sm:$0xff] %vm483_vm0, %v7128_v26  ;;  %5802 = vst.msk [vmem:[#allocation4 + $0x153] sm:$0xff] %vm483_vm0, %v5796_v36  ;;  %v7185_v25 = vld [vmem:[#allocation5 + $0x28] sm:$0xff] }
 0xd9f   : > { %v7133_v35 = vld [vmem:[#allocation4 + $0x15e] sm:$0xff]  ;;  %6445 = vst.msk [vmem:[#allocation5 + $0x18] sm:$0xff] %vm2528_vm6, %v6351_v51  ;;  %5980 = vrot.lane.b32.xlu0 %v12076_v12, %s9556_s23  ;;  %v7278_v42 = vpack.c.bf16 %v7185_v25, %v7182_v15  ;;  %v12274_v43 = vld [vmem:[#allocation4 + $0x128] sm:$0xff] }
 0xda0   : > { %7165 = vst.msk [vmem:[#allocation5 + $0x1a8] sm:$0xff] %vm483_vm0, %v7133_v35  ;;  %v12266_v41 = vld [vmem:[#allocation4 + $0x120] sm:$0xff]  ;;  %6610 = vrot.lane.b32.xlu1 %v12264_v11, %s9556_s23  ;;  %5893 = vst.msk [vmem:[#allocation5 + $0x258] sm:$0xff] %vm483_vm0, %v12274_v43  ;;  %v7287_v35 = vpack.c.bf16 %v7203_v23, %v7200_v24 }
 0xda1   : > { %v12272_v2 = vld [vmem:[#allocation4 + $0x123] sm:$0xff]  ;;  %v12276_v44 = vld [vmem:[#allocation4 + $0x15b] sm:$0xff]  ;;  %5892 = vst.msk [vmem:[#allocation5 + $0x240] sm:$0xff] %vm483_vm0, %v12266_v41  ;;  %8914 = vmatprep.mubr.msk.bf16.mxu0 %vm483_vm0, %v7278_v42  ;;  %v6349_v49 = vpop.permute.xlu0 %6348  ;;  %v5979_v54 = vpop.permute.xlu1 %5978  ;;  %v7212_v42 = vld [vmem:[#allocation5 + $0x100] sm:$0xff] }
 0xda2   : > { %6531 = vst.msk [vmem:[#allocation5 + $0x230] sm:$0xff] %vm483_vm0, %v12276_v44  ;;  %6526 = vst.msk [vmem:[#allocation5 + $0x1b8] sm:$0xff] %vm483_vm0, %v12272_v2  ;;  %v7130_v12 = vld [vmem:[#allocation4 + $0x13e] sm:$0xff]  ;;  %8915 = vmatmul.mubr.msk.bf16.vlgmr.msra.gmra.mrb[100].mxu0 %vm483_vm0, %v7281_v48  ;;  %v7215_v48 = vld [vmem:[#allocation5 + $0x118] sm:$0xff] }
 0xda3   : > { %v12287_v63 = vld [vmem:[#allocation4 + $0x138] sm:$0xff]  ;;  %7162 = vst.msk [vmem:[#allocation5 + $0x160] sm:$0xff] %vm483_vm0, %v7130_v12  ;;  %v12295_v57 = vld [vmem:[#allocation4 + $0x140] sm:$0xff]  ;;  %8918 = vmatprep.mubr.msk.bf16.mxu0 %vm483_vm0, %v7284_v0  ;;  %5984 = vrot.lane.b32.xlu0 %v12095_v33, %s9556_s23 }
 0xda4   : > { %6444 = vst.msk [vmem:[#allocation5] sm:$0xff] %vm2528_vm6, %v6349_v49  ;;  %v12293_v52 = vld [vmem:[#allocation4 + $0x13b] sm:$0xff]  ;;  %6354 = vrot.lane.b32.xlu1 %v6287_v22, %s9558_s21  ;;  %v12344_v49 = vld [vmem:[#allocation4 + $0xc3] sm:$0xff] }
 0xda5   : > { %6067 = vst.msk [vmem:[#allocation5 + $0xa8] sm:$0xff] %vm1165_vm3, %v5979_v54  ;;  %v7132_v58 = vld [vmem:[#allocation4 + $0x156] sm:$0xff]  ;;  %v5977_v10 = vpop.permute.xlu0 %5976  ;;  %v6171_v17 = vpop.permute.xlu1 %6170  ;;  %v7218_v12 = vld [vmem:[#allocation5 + $0x130] sm:$0xff]  ;;  %v7293_v54 = vpack.c.bf16 %v7215_v48, %v7212_v42 }
 0xda6   : > { %5894 = vst.msk [vmem:[#allocation5 + $0x270] sm:$0xff] %vm483_vm0, %v12287_v63  ;;  %5895 = vst.msk [vmem:[#allocation5 + $0x288] sm:$0xff] %vm483_vm0, %v12295_v57  ;;  %v7209_v22 = vld [vmem:[#allocation5 + $0xe8] sm:$0xff]  ;;  %v12312_v32 = vld [vmem:[#allocation4 + $0x150] sm:$0xff] }
 0xda7   : > { %6528 = vst.msk [vmem:[#allocation5 + $0x1e8] sm:$0xff] %vm483_vm0, %v12293_v52  ;;  %7164 = vst.msk [vmem:[#allocation5 + $0x190] sm:$0xff] %vm483_vm0, %v7132_v58  ;;  %v12314_v26 = vld [vmem:[#allocation4 + $0x153] sm:$0xff]  ;;  %5988 = vrot.lane.b32.xlu0 %v12159_v30, %s9556_s23  ;;  %v7290_v15 = vpack.c.bf16 %v7209_v22, %v7206_v59  ;;  %v12360_v22 = vld [vmem:[#allocation4 + $0xdb] sm:$0xff] }
 0xda8   : > { %6066 = vst.msk [vmem:[#allocation5 + $0x90] sm:$0xff] %vm1165_vm3, %v5977_v10  ;;  %6614 = vrot.lane.b32.xlu1 %v12307_v9, %s9556_s23  ;;  %v12318_v33 = vld [vmem:[#allocation4 + $0x158] sm:$0xff] }
 0xda9   : > { %6259 = vst.msk [vmem:[#allocation5 + $0xa8] sm:$0xff] %vm1358_vm4, %v6171_v17  ;;  %v12328_v36 = vpop.permute.xlu0 %6800  ;;  %v12330_v51 = vpop.permute.xlu1 %6802 }
 0xdaa   : > { %5896 = vst.msk [vmem:[#allocation5 + $0x2a0] sm:$0xff] %vm483_vm0, %v12312_v32  ;;  %6530 = vst.msk [vmem:[#allocation5 + $0x218] sm:$0xff] %vm483_vm0, %v12314_v26  ;;  %8919 = vmatmul.mubr.msk.bf16.gmra.mrb[104].mxu0 %vm483_vm0, %v7287_v35  ;;  %v7224_v23 = vld [vmem:[#allocation5 + $0x160] sm:$0xff]  ;;  %v7227_v35 = vld [vmem:[#allocation5 + $0x178] sm:$0xff] }
 0xdab   : > { %5897 = vst.msk [vmem:[#allocation5 + $0x2b8] sm:$0xff] %vm483_vm0, %v12318_v33  ;;  %8922 = vmatprep.mubr.msk.bf16.mxu0 %vm483_vm0, %v7290_v15  ;;  %6804 = vrot.lane.b32.xlu0 %v12120_v37, %s9557_s26  ;;  %v7233_v15 = vld [vmem:[#allocation5 + $0x1a8] sm:$0xff] }
 0xdac   : > { %6358 = vrot.lane.b32.xlu1 %v12099_v21, %s9558_s21  ;;  %v7221_v21 = vld [vmem:[#allocation5 + $0x148] sm:$0xff] }
 0xdad   : > { %v12338_v30 = vpop.permute.xlu0 %6992  ;;  %v12340_v25 = vpop.permute.xlu1 %6994  ;;  %v7296_v58 = vpack.c.bf16 %v7221_v21, %v7218_v12 }
 0xdae   : > { %v7230_v59 = vld [vmem:[#allocation5 + $0x190] sm:$0xff] }
 0xdaf   : > { %6996 = vrot.lane.b32.xlu0 %v12344_v49, %s9558_s21  ;;  %v7302_v21 = vpack.c.bf16 %v7233_v15, %v7230_v59  ;;  %v7236_v59 = vld [vmem:[#allocation5 + $0x1c0] sm:$0xff] }
 0xdb0   : > { %6618 = vrot.lane.b32.xlu1 %v12212_v38, %s9556_s23 }
 0xdb1   : > { %v5810_v0 = vpop.permute.xlu0 %5809  ;;  %v5812_v24 = vpop.permute.xlu1 %5811 }
 0xdb2   : > { %5816 = vst.msk [vmem:[#allocation4 + $0x183] sm:$0xff] %vm483_vm0, %v5810_v0  ;;  %8923 = vmatmul.mubr.msk.bf16.gmra.mrb[108].mxu0 %vm483_vm0, %v7293_v54  ;;  %5817 = vst.msk [vmem:[#allocation4 + $0x18b] sm:$0xff] %vm483_vm0, %v5812_v24  ;;  %v7239_v24 = vld [vmem:[#allocation5 + $0x1d8] sm:$0xff] }
 0xdb3   : > { %8926 = vmatprep.mubr.msk.bf16.mxu0 %vm483_vm0, %v7296_v58  ;;  %6808 = vrot.lane.b32.xlu0 %v12151_v28, %s9557_s26  ;;  %v7305_v15 = vpack.c.bf16 %v7239_v24, %v7236_v59 }
 0xdb4   : > { %6362 = vrot.lane.b32.xlu1 %v12225_v6, %s9558_s21  ;;  %v7299_v6 = vpack.c.bf16 %v7227_v35, %v7224_v23 }
 0xdb5   : > { %v5819_v10 = vpop.permute.xlu0 %5818  ;;  %v5821_v17 = vpop.permute.xlu1 %5820 }
 0xdb6   : > { %5825 = vst.msk [vmem:[#allocation4 + $0x19b] sm:$0xff] %vm483_vm0, %v5819_v10  ;;  %5826 = vst.msk [vmem:[#allocation4 + $0x1a3] sm:$0xff] %vm483_vm0, %v5821_v17 }
 0xdb7   : > { %7000 = vrot.lane.b32.xlu0 %v12360_v22, %s9558_s21 }
 0xdb8   : > { %5982 = vrot.lane.b32.xlu1 %v12247_v14, %s9556_s23 }
 0xdb9   : > { %v7136_v42 = vld [vmem:[#allocation4 + $0x186] sm:$0xff]  ;;  %v7137_v48 = vld [vmem:[#allocation4 + $0x18e] sm:$0xff]  ;;  %v5828_v12 = vpop.permute.xlu0 %5827  ;;  %v5830_v54 = vpop.permute.xlu1 %5829 }
 0xdba   : > { %7168 = vst.msk [vmem:[#allocation5 + $0x1f0] sm:$0xff] %vm483_vm0, %v7136_v42  ;;  %7169 = vst.msk [vmem:[#allocation5 + $0x208] sm:$0xff] %vm483_vm0, %v7137_v48  ;;  %8927 = vmatmul.mubr.msk.bf16.gmra.mrb[112].mxu0 %vm483_vm0, %v7299_v6  ;;  %v12369_v14 = vld [vmem:[#allocation4 + $0x183] sm:$0xff]  ;;  %v12374_v0 = vld [vmem:[#allocation4 + $0x18b] sm:$0xff] }
 0xdbb   : > { %5834 = vst.msk [vmem:[#allocation4 + $0x1b3] sm:$0xff] %vm483_vm0, %v5828_v12  ;;  %5835 = vst.msk [vmem:[#allocation4 + $0x1bb] sm:$0xff] %vm483_vm0, %v5830_v54  ;;  %8930 = vmatprep.mubr.msk.bf16.mxu0 %vm483_vm0, %v7302_v21  ;;  %6812 = vrot.lane.b32.xlu0 %v12190_v50, %s9557_s26  ;;  %v6932_v6 = vld [vmem:[#allocation4 + $0xf3] sm:$0xff] }
 0xdbc   : > { %6174 = vrot.lane.b32.xlu1 %v12264_v11, %s9557_s26  ;;  %6534 = vst.msk [vmem:[#allocation5 + $0x278] sm:$0xff] %vm483_vm0, %v12369_v14  ;;  %6535 = vst.msk [vmem:[#allocation5 + $0x290] sm:$0xff] %vm483_vm0, %v12374_v0 }
 0xdbd   : > { %v7138_v58 = vld [vmem:[#allocation4 + $0x19e] sm:$0xff]  ;;  %v7139_v10 = vld [vmem:[#allocation4 + $0x1a6] sm:$0xff]  ;;  %v12382_v17 = vpop.permute.xlu0 %6364  ;;  %v6623_v23 = vpop.permute.xlu1 %6622 }
 0xdbe   : > { %7170 = vst.msk [vmem:[#allocation5 + $0x220] sm:$0xff] %vm483_vm0, %v7138_v58  ;;  %7171 = vst.msk [vmem:[#allocation5 + $0x238] sm:$0xff] %vm483_vm0, %v7139_v10  ;;  %v12387_v11 = vld [vmem:[#allocation4 + $0x19b] sm:$0xff]  ;;  %v12389_v35 = vld [vmem:[#allocation4 + $0x1a3] sm:$0xff] }
 0xdbf   : > { %6709 = vst.msk [vmem:[#allocation5 + $0xe0] sm:$0xff] %vm1165_vm3, %v6623_v23  ;;  %7004 = vrot.lane.b32.xlu0 %v6932_v6, %s9558_s21 }
 0xdc0   : > { %5986 = vrot.lane.b32.xlu1 %v12101_v16, %s9556_s23  ;;  %6536 = vst.msk [vmem:[#allocation5 + $0x2a8] sm:$0xff] %vm483_vm0, %v12387_v11  ;;  %6537 = vst.msk [vmem:[#allocation5 + $0x2c0] sm:$0xff] %vm483_vm0, %v12389_v35 }
 0xdc1   : > { %v5993_v12 = vpop.permute.xlu0 %5992  ;;  %v12398_v54 = vpop.permute.xlu1 %6366  ;;  %v7242_v21 = vld [vmem:[#allocation5 + $0x1f0] sm:$0xff]  ;;  %v7245_v16 = vld [vmem:[#allocation5 + $0x208] sm:$0xff] }
 0xdc2   : > { %v7140_v42 = vld [vmem:[#allocation4 + $0x1b6] sm:$0xff]  ;;  %v7141_v48 = vld [vmem:[#allocation4 + $0x1be] sm:$0xff]  ;;  %6074 = vst.msk [vmem:[#allocation5 + $0x150] sm:$0xff] %vm1165_vm3, %v5993_v12  ;;  %8931 = vmatmul.mubr.msk.bf16.gmra.mrb[116].mxu0 %vm483_vm0, %v7305_v15  ;;  %v7308_v24 = vpack.c.bf16 %v7245_v16, %v7242_v21 }
 0xdc3   : > { %7172 = vst.msk [vmem:[#allocation5 + $0x250] sm:$0xff] %vm483_vm0, %v7140_v42  ;;  %7173 = vst.msk [vmem:[#allocation5 + $0x268] sm:$0xff] %vm483_vm0, %v7141_v48  ;;  %v12404_v58 = vld [vmem:[#allocation4 + $0x1b3] sm:$0xff]  ;;  %v12408_v10 = vld [vmem:[#allocation4 + $0x1bb] sm:$0xff]  ;;  %6368 = vrot.lane.b32.xlu0 %v12120_v37, %s9558_s21 }
 0xdc4   : > { %6178 = vrot.lane.b32.xlu1 %v12307_v9, %s9557_s26  ;;  %6538 = vst.msk [vmem:[#allocation5 + $0x2d8] sm:$0xff] %vm483_vm0, %v12404_v58  ;;  %6539 = vst.msk [vmem:[#allocation5 + $0x2f0] sm:$0xff] %vm483_vm0, %v12408_v10  ;;  %8934 = vmatprep.mubr.msk.bf16.mxu0 %vm483_vm0, %v7308_v24 }
 0xdc5   : > { %v6605_v23 = vpop.permute.xlu0 %6604  ;;  %v5995_v59 = vpop.permute.xlu1 %5994  ;;  %v7248_v15 = vld [vmem:[#allocation5 + $0x220] sm:$0xff]  ;;  %v7251_v42 = vld [vmem:[#allocation5 + $0x238] sm:$0xff] }
 0xdc6   : > { %6700 = vst.msk [vmem:[#allocation5 + $0x8] sm:$0xff] %vm1165_vm3, %v6605_v23  ;;  %6075 = vst.msk [vmem:[#allocation5 + $0x168] sm:$0xff] %vm1165_vm3, %v5995_v59  ;;  %v7311_v9 = vpack.c.bf16 %v7251_v42, %v7248_v15  ;;  %v6542_v15 = vld [vmem:[#allocation4 + $0x66] sm:$0xff] }
 0xdc7   : > { %6372 = vrot.lane.b32.xlu0 %v12151_v28, %s9558_s21 }
 0xdc8   : > { %5990 = vrot.lane.b32.xlu1 %v12227_v8, %s9556_s23 }
 0xdc9   : > { %v6169_v37 = vpop.permute.xlu0 %6168  ;;  %v6187_v48 = vpop.permute.xlu1 %6186 }
 0xdca   : > { %v7254_v12 = vld [vmem:[#allocation5 + $0x250] sm:$0xff]  ;;  %v7257_v21 = vld [vmem:[#allocation5 + $0x268] sm:$0xff]  ;;  %6258 = vst.msk [vmem:[#allocation5 + $0x90] sm:$0xff] %vm1358_vm4, %v6169_v37  ;;  %6267 = vst.msk [vmem:[#allocation5 + $0x168] sm:$0xff] %vm1358_vm4, %v6187_v48  ;;  %8935 = vmatmul.mubr.msk.bf16.gmra.mrb[120].mxu0 %vm483_vm0, %v7311_v9 }
 0xdcb   : > { %v7314_v16 = vpack.c.bf16 %v7257_v21, %v7254_v12  ;;  %6376 = vrot.lane.b32.xlu0 %v12190_v50, %s9558_s21  ;;  %v6544_v9 = vld [vmem:[#allocation4 + $0x7e] sm:$0xff] }
 0xdcc   : > { %6182 = vrot.lane.b32.xlu1 %v12212_v38, %s9557_s26 }
 0xdcd   : > { %8938 = vmatprep.mubr.msk.bf16.mxu0 %vm483_vm0, %v7314_v16  ;;  %v6621_v28 = vpop.permute.xlu0 %6620  ;;  %v12431_v8 = vpop.permute.xlu1 %6818 }
 0xdce   : > { %6708 = vst.msk [vmem:[#allocation5 + $0xc8] sm:$0xff] %vm1165_vm3, %v6621_v28 }
 0xdcf   : > { %5996 = vrot.lane.b32.xlu0 %v12344_v49, %s9556_s23 }
 0xdd0   : > { %6806 = vrot.lane.b32.xlu1 %v12128_v39, %s9557_s26 }
 0xdd1   : > { %v6185_v24 = vpop.permute.xlu0 %6184  ;;  %v12438_v23 = vpop.permute.xlu1 %7010 }
 0xdd2   : > { %6266 = vst.msk [vmem:[#allocation5 + $0x150] sm:$0xff] %vm1358_vm4, %v6185_v24 }
 0xdd3   : > { %6000 = vrot.lane.b32.xlu0 %v12360_v22, %s9556_s23 }
 0xdd4   : > { %6998 = vrot.lane.b32.xlu1 %v12130_v19, %s9558_s21 }
 0xdd5   : > { %v12445_v50 = vpop.permute.xlu0 %6816  ;;  %v6639_v38 = vpop.permute.xlu1 %6638 }
 0xdd6   : > { %6717 = vst.msk [vmem:[#allocation5 + $0x1a0] sm:$0xff] %vm1165_vm3, %v6639_v38 }
 0xdd7   : > { %6004 = vrot.lane.b32.xlu0 %v6932_v6, %s9556_s23 }
 0xdd8   : > { %6810 = vrot.lane.b32.xlu1 %v12161_v34, %s9557_s26 }
 0xdd9   : > { %v12451_v49 = vpop.permute.xlu0 %7008  ;;  %v12453_v59 = vpop.permute.xlu1 %6382 }
 0xddb   : > { %6608 = vrot.lane.b32.xlu0 %v6542_v15, %s9556_s23 }
 0xddc   : > { %7002 = vrot.lane.b32.xlu1 %v12163_v29, %s9558_s21 }
 0xddd   : > { %v12458_v22 = vpop.permute.xlu0 %6380  ;;  %v6011_v42 = vpop.permute.xlu1 %6010 }
 0xdde   : > { %6083 = vst.msk [vmem:[#allocation5 + $0x228] sm:$0xff] %vm1165_vm3, %v6011_v42 }
 0xddf   : > { %6612 = vrot.lane.b32.xlu0 %v6544_v9, %s9556_s23 }
 0xde0   : > { %6814 = vrot.lane.b32.xlu1 %v12194_v53, %s9557_s26 }
 0xde1   : > { %v6009_v6 = vpop.permute.xlu0 %6008  ;;  %v6203_v37 = vpop.permute.xlu1 %6202 }
 0xde2   : > { %6082 = vst.msk [vmem:[#allocation5 + $0x210] sm:$0xff] %vm1165_vm3, %v6009_v6 }
 0xde3   : > { %6275 = vst.msk [vmem:[#allocation5 + $0x228] sm:$0xff] %vm1358_vm4, %v6203_v37  ;;  %6616 = vrot.lane.b32.xlu0 %v12210_v5, %s9556_s23 }
 0xde4   : > { %7006 = vrot.lane.b32.xlu1 %v12196_v7, %s9558_s21 }
 0xde5   : > { %v12470_v48 = vpop.permute.xlu0 %6832  ;;  %v12472_v12 = vpop.permute.xlu1 %6834 }
 0xde7   : > { %6172 = vrot.lane.b32.xlu0 %v6542_v15, %s9557_s26 }
 0xde8   : > { %6626 = vrot.lane.b32.xlu1 %v12118_v31, %s9556_s23 }
 0xde9   : > { %v12477_v21 = vpop.permute.xlu0 %7024  ;;  %v12479_v16 = vpop.permute.xlu1 %7026 }
 0xdeb   : > { %6176 = vrot.lane.b32.xlu0 %v6544_v9, %s9557_s26 }
 0xdec   : > { %6370 = vrot.lane.b32.xlu1 %v12128_v39, %s9558_s21 }
 0xded   : > { %v12484_v28 = vpop.permute.xlu0 %6396  ;;  %v6655_v24 = vpop.permute.xlu1 %6654 }
 0xdee   : > { %6725 = vst.msk [vmem:[#allocation5 + $0x260] sm:$0xff] %vm1165_vm3, %v6655_v24 }
 0xdef   : > { %6180 = vrot.lane.b32.xlu0 %v12210_v5, %s9557_s26 }
 0xdf0   : > { %6630 = vrot.lane.b32.xlu1 %v12149_v40, %s9556_s23 }
 0xdf1   : > { %v6637_v38 = vpop.permute.xlu0 %6636 }
 0xdf2   : > { %6716 = vst.msk [vmem:[#allocation5 + $0x188] sm:$0xff] %vm1165_vm3, %v6637_v38  ;;  %v7183_v38 = vld [vmem:[#allocation5 + $0x18] sm:$0xff] }
 0xdf3   : > { %6624 = vrot.lane.b32.xlu0 %v12116_v27, %s9556_s23 }
 0xdf4   : > { %6374 = vrot.lane.b32.xlu1 %v12161_v34, %s9558_s21 }
 0xdf5   : > { %v6201_v39 = vpop.permute.xlu0 %6200 }
 0xdf6   : > { %6274 = vst.msk [vmem:[#allocation5 + $0x210] sm:$0xff] %vm1358_vm4, %v6201_v39 }
 0xdf7   : > { %6628 = vrot.lane.b32.xlu0 %v12147_v13, %s9556_s23 }
 0xdf8   : > { %6634 = vrot.lane.b32.xlu1 %v12182_v46, %s9556_s23 }
 0xdf9   : > { %v6653_v15 = vpop.permute.xlu0 %6652 }
 0xdfa   : > { %6724 = vst.msk [vmem:[#allocation5 + $0x248] sm:$0xff] %vm1165_vm3, %v6653_v15 }
 0xdfb   : > { %6632 = vrot.lane.b32.xlu0 %v12180_v45, %s9556_s23 }
 0xdfc   : > { %6378 = vrot.lane.b32.xlu1 %v12194_v53, %s9558_s21  ;;  %v12516_v53 = vpop.permute.xlu1 %6398 }
 0xdfd   : > { %v6797_v34 = vpop.permute.xlu0 %6796 }
 0xdfe   : > { %6892 = vst.msk [vmem:[#allocation5 + $0x8] sm:$0xff] %vm1358_vm4, %v6797_v34 }
 0xdff   : > { %6188 = vrot.lane.b32.xlu0 %v12116_v27, %s9557_s26 }
 0xe00   : > { %5998 = vrot.lane.b32.xlu1 %v12130_v19, %s9556_s23 }
 0xe01   : > { %v6989_v5 = vpop.permute.xlu0 %6988 }
 0xe02   : > { %7084 = vst.msk [vmem:[#allocation5 + $0x8] sm:$0xff] %vm2528_vm6, %v6989_v5 }
 0xe03   : > { %6192 = vrot.lane.b32.xlu0 %v12147_v13, %s9557_s26 }
 0xe04   : > { %6190 = vrot.lane.b32.xlu1 %v12118_v31, %s9557_s26 }
 0xe05   : > { %v6353_v42 = vpop.permute.xlu0 %6352 }
 0xe06   : > { %6446 = vst.msk [vmem:[#allocation5 + $0x30] sm:$0xff] %vm2528_vm6, %v6353_v42 }
 0xe07   : > { %6196 = vrot.lane.b32.xlu0 %v12180_v45, %s9557_s26 }
 0xe08   : > { %6002 = vrot.lane.b32.xlu1 %v12163_v29, %s9556_s23 }
 0xe09   : > { %v6357_v19 = vpop.permute.xlu0 %6356  ;;  %v7181_v9 = vld [vmem:[#allocation5 + $0x8] sm:$0xff] }
 0xe0a   : > { %v6799_v27 = vpop.permute.xlu1 %6798  ;;  %6448 = vst.msk [vmem:[#allocation5 + $0x60] sm:$0xff] %vm2528_vm6, %v6357_v19 }
 0xe0b   : > { %6893 = vst.msk [vmem:[#allocation5 + $0x20] sm:$0xff] %vm1358_vm4, %v6799_v27  ;;  %6820 = vrot.lane.b32.xlu0 %v12266_v41, %s9557_s26 }
 0xe0c   : > { %6194 = vrot.lane.b32.xlu1 %v12149_v40, %s9557_s26  ;;  %v7180_v40 = vld [vmem:[#allocation5] sm:$0xff] }
 0xe0d   : > { %v6361_v13 = vpop.permute.xlu0 %6360 }
 0xe0e   : > { %v6991_v31 = vpop.permute.xlu1 %6990  ;;  %6450 = vst.msk [vmem:[#allocation5 + $0x90] sm:$0xff] %vm2528_vm6, %v6361_v13 }
 0xe0f   : > { %7085 = vst.msk [vmem:[#allocation5 + $0x20] sm:$0xff] %vm2528_vm6, %v6991_v31  ;;  %7012 = vrot.lane.b32.xlu0 %v12272_v2, %s9558_s21 }
 0xe10   : > { %6006 = vrot.lane.b32.xlu1 %v12196_v7, %s9556_s23 }
 0xe11   : > { %v5981_v45 = vpop.permute.xlu0 %5980 }
 0xe12   : > { %v6611_v29 = vpop.permute.xlu1 %6610  ;;  %6068 = vst.msk [vmem:[#allocation5 + $0xc0] sm:$0xff] %vm1165_vm3, %v5981_v45 }
 0xe13   : > { %6703 = vst.msk [vmem:[#allocation5 + $0x50] sm:$0xff] %vm1165_vm3, %v6611_v29  ;;  %6824 = vrot.lane.b32.xlu0 %v12287_v63, %s9557_s26  ;;  %v5931_v29 = vld [vmem:[#allocation4 + $0x173] sm:$0xff] }
 0xe14   : > { %6895 = vst.msk [vmem:[#allocation5 + $0x50] sm:$0xff] %vm1358_vm4, %v12330_v51  ;;  %6198 = vrot.lane.b32.xlu1 %v12182_v46, %s9557_s26  ;;  %v7276_v46 = vpack.c.bf16 %v7183_v38, %v7180_v40 }
 0xe15   : > { %7087 = vst.msk [vmem:[#allocation5 + $0x50] sm:$0xff] %vm2528_vm6, %v12340_v25  ;;  %v5985_v37 = vpop.permute.xlu0 %5984 }
 0xe16   : > { %v6355_v7 = vpop.permute.xlu1 %6354  ;;  %v7184_v6 = vld [vmem:[#allocation5 + $0x20] sm:$0xff]  ;;  %6070 = vst.msk [vmem:[#allocation5 + $0xf0] sm:$0xff] %vm1165_vm3, %v5985_v37  ;;  %v6754_v37 = vld [vmem:[#allocation4 + $0x198] sm:$0xff] }
 0xe17   : > { %6447 = vst.msk [vmem:[#allocation5 + $0x48] sm:$0xff] %vm2528_vm6, %v6355_v7  ;;  %v7277_v24 = vpack.c.bf16 %v7184_v6, %v7181_v9  ;;  %7016 = vrot.lane.b32.xlu0 %v12293_v52, %s9558_s21  ;;  %v6561_v6 = vld [vmem:[#allocation4 + $0x146] sm:$0xff] }
 0xe18   : > { %6822 = vrot.lane.b32.xlu1 %v12274_v43, %s9557_s26 }
 0xe19   : > { %7555 = vmatprep.mubr.bf16.mxu1 %v7277_v24  ;;  %v5989_v25 = vpop.permute.xlu0 %5988 }
 0xe1a   : > { %7556 = vmatmul.mubr.bf16.vlgmr.msra.gmra.mrb[48].mxu1 %v7276_v46  ;;  %v6615_v51 = vpop.permute.xlu1 %6614  ;;  %6072 = vst.msk [vmem:[#allocation5 + $0x120] sm:$0xff] %vm1165_vm3, %v5989_v25  ;;  %v12621_v46 = vld [vmem:[#allocation4 + $0x15e] sm:$0xff] }
 0xe1b   : > { %6705 = vst.msk [vmem:[#allocation5 + $0x80] sm:$0xff] %vm1165_vm3, %v6615_v51  ;;  %6828 = vrot.lane.b32.xlu0 %v12312_v32, %s9557_s26  ;;  %v12632_v51 = vld [vmem:[#allocation4 + $0x1b0] sm:$0xff] }
 0xe1c   : > { %7014 = vrot.lane.b32.xlu1 %v12236_v20, %s9558_s21 }
 0xe1d   : > { %v12558_v15 = vpop.permute.xlu0 %6804 }
 0xe1e   : > { %v6359_v39 = vpop.permute.xlu1 %6358 }
 0xe1f   : > { %6449 = vst.msk [vmem:[#allocation5 + $0x78] sm:$0xff] %vm2528_vm6, %v6359_v39  ;;  %7020 = vrot.lane.b32.xlu0 %v12314_v26, %s9558_s21 }
 0xe20   : > { %6826 = vrot.lane.b32.xlu1 %v12295_v57, %s9557_s26 }
 0xe21   : > { %v12565_v5 = vpop.permute.xlu0 %6996 }
 0xe22   : > { %v6619_v34 = vpop.permute.xlu1 %6618 }
 0xe23   : > { %6707 = vst.msk [vmem:[#allocation5 + $0xb0] sm:$0xff] %vm1165_vm3, %v6619_v34  ;;  %6384 = vrot.lane.b32.xlu0 %v12266_v41, %s9558_s21  ;;  %v6117_v34 = vld [vmem:[#allocation4 + $0x12e] sm:$0xff] }
 0xe24   : > { %7018 = vrot.lane.b32.xlu1 %v12256_v18, %s9558_s21 }
 0xe25   : > { %v12572_v27 = vpop.permute.xlu0 %6808 }
 0xe26   : > { %v6363_v42 = vpop.permute.xlu1 %6362 }
 0xe27   : > { %6451 = vst.msk [vmem:[#allocation5 + $0xa8] sm:$0xff] %vm2528_vm6, %v6363_v42  ;;  %6388 = vrot.lane.b32.xlu0 %v12287_v63, %s9558_s21 }
 0xe28   : > { %6830 = vrot.lane.b32.xlu1 %v12318_v33, %s9557_s26 }
 0xe29   : > { %v12579_v31 = vpop.permute.xlu0 %7000 }
 0xe2a   : > { %v5983_v19 = vpop.permute.xlu1 %5982 }
 0xe2b   : > { %6069 = vst.msk [vmem:[#allocation5 + $0xd8] sm:$0xff] %vm1165_vm3, %v5983_v19  ;;  %6392 = vrot.lane.b32.xlu0 %v12312_v32, %s9558_s21  ;;  %v7186_v19 = vld [vmem:[#allocation5 + $0x30] sm:$0xff] }
 0xe2c   : > { %7022 = vrot.lane.b32.xlu1 %v12276_v44, %s9558_s21 }
 0xe2d   : > { %v6813_v13 = vpop.permute.xlu0 %6812 }
 0xe2e   : > { %v6175_v41 = vpop.permute.xlu1 %6174  ;;  %6900 = vst.msk [vmem:[#allocation5 + $0xc8] sm:$0xff] %vm1358_vm4, %v6813_v13 }
 0xe2f   : > { %6261 = vst.msk [vmem:[#allocation5 + $0xd8] sm:$0xff] %vm1358_vm4, %v6175_v41  ;;  %6012 = vrot.lane.b32.xlu0 %v12272_v2, %s9556_s23  ;;  %v6763_v2 = vld [vmem:[#allocation4 + $0x200] sm:$0xff] }
 0xe30   : > { %6453 = vst.msk [vmem:[#allocation5 + $0xd8] sm:$0xff] %vm2528_vm6, %v12398_v54  ;;  %6026 = vrot.lane.b32.xlu1 %v5931_v29, %s9556_s23 }
 0xe31   : > { %v7005_v45 = vpop.permute.xlu0 %7004 }
 0xe32   : > { %v5987_v63 = vpop.permute.xlu1 %5986  ;;  %7092 = vst.msk [vmem:[#allocation5 + $0xc8] sm:$0xff] %vm2528_vm6, %v7005_v45  ;;  %v7195_v45 = vld [vmem:[#allocation5 + $0x78] sm:$0xff] }
 0xe33   : > { %6071 = vst.msk [vmem:[#allocation5 + $0x108] sm:$0xff] %vm1165_vm3, %v5987_v63  ;;  %6016 = vrot.lane.b32.xlu0 %v12293_v52, %s9556_s23 }
 0xe34   : > { %6642 = vrot.lane.b32.xlu1 %v12214_v47, %s9556_s23  ;;  %v6752_v47 = vld [vmem:[#allocation4 + $0x180] sm:$0xff] }
 0xe35   : > { %v12599_v54 = vpop.permute.xlu0 %6368 }
 0xe36   : > { %v6179_v32 = vpop.permute.xlu1 %6178 }
 0xe37   : > { %6263 = vst.msk [vmem:[#allocation5 + $0x108] sm:$0xff] %vm1358_vm4, %v6179_v32  ;;  %6020 = vrot.lane.b32.xlu0 %v12314_v26, %s9556_s23 }
 0xe38   : > { %6386 = vrot.lane.b32.xlu1 %v12274_v43, %s9558_s21 }
 0xe39   : > { %v12606_v7 = vpop.permute.xlu0 %6372 }
 0xe3a   : > { %v5991_v40 = vpop.permute.xlu1 %5990 }
 0xe3b   : > { %6073 = vst.msk [vmem:[#allocation5 + $0x138] sm:$0xff] %vm1165_vm3, %v5991_v40  ;;  %6836 = vrot.lane.b32.xlu0 %v6752_v47, %s9557_s26 }
 0xe3c   : > { %6858 = vrot.lane.b32.xlu1 %v6763_v2, %s9557_s26  ;;  %v7192_v2 = vld [vmem:[#allocation5 + $0x60] sm:$0xff] }
 0xe3d   : > { %v6377_v9 = vpop.permute.xlu0 %6376 }
 0xe3e   : > { %v6183_v52 = vpop.permute.xlu1 %6182  ;;  %6458 = vst.msk [vmem:[#allocation5 + $0x150] sm:$0xff] %vm2528_vm6, %v6377_v9 }
 0xe3f   : > { %6265 = vst.msk [vmem:[#allocation5 + $0x138] sm:$0xff] %vm1358_vm4, %v6183_v52  ;;  %7028 = vrot.lane.b32.xlu0 %v12369_v14, %s9558_s21 }
 0xe40   : > { %6646 = vrot.lane.b32.xlu1 %v6561_v6, %s9556_s23 }
 0xe41   : > { %v5997_v26 = vpop.permute.xlu0 %5996 }
 0xe42   : > { %v6807_v43 = vpop.permute.xlu1 %6806  ;;  %6076 = vst.msk [vmem:[#allocation5 + $0x180] sm:$0xff] %vm1165_vm3, %v5997_v26  ;;  %v12691_v26 = vld [vmem:[#allocation4 + $0x188] sm:$0xff] }
 0xe43   : > { %6897 = vst.msk [vmem:[#allocation5 + $0x80] sm:$0xff] %vm1358_vm4, %v6807_v43  ;;  %6840 = vrot.lane.b32.xlu0 %v6754_v37, %s9557_s26 }
 0xe44   : > { %6390 = vrot.lane.b32.xlu1 %v12295_v57, %s9558_s21 }
 0xe45   : > { %v6001_v38 = vpop.permute.xlu0 %6000 }
 0xe46   : > { %v6999_v24 = vpop.permute.xlu1 %6998  ;;  %6078 = vst.msk [vmem:[#allocation5 + $0x1b0] sm:$0xff] %vm1165_vm3, %v6001_v38  ;;  %v7198_v38 = vld [vmem:[#allocation5 + $0x90] sm:$0xff] }
 0xe47   : > { %7089 = vst.msk [vmem:[#allocation5 + $0x80] sm:$0xff] %vm2528_vm6, %v6999_v24  ;;  %7032 = vrot.lane.b32.xlu0 %v12387_v11, %s9558_s21 }
 0xe48   : > { %6650 = vrot.lane.b32.xlu1 %v12621_v46, %s9556_s23 }
 0xe49   : > { %v6005_v57 = vpop.permute.xlu0 %6004 }
 0xe4a   : > { %v6811_v14 = vpop.permute.xlu1 %6810  ;;  %6080 = vst.msk [vmem:[#allocation5 + $0x1e0] sm:$0xff] %vm1165_vm3, %v6005_v57  ;;  %v7205_v57 = vld [vmem:[#allocation5 + $0xc8] sm:$0xff] }
 0xe4b   : > { %6899 = vst.msk [vmem:[#allocation5 + $0xb0] sm:$0xff] %vm1358_vm4, %v6811_v14  ;;  %6844 = vrot.lane.b32.xlu0 %v12632_v51, %s9557_s26 }
 0xe4c   : > { %6394 = vrot.lane.b32.xlu1 %v12318_v33, %s9558_s21 }
 0xe4d   : > { %v6609_v39 = vpop.permute.xlu0 %6608 }
 0xe4e   : > { %v7003_v25 = vpop.permute.xlu1 %7002  ;;  %6702 = vst.msk [vmem:[#allocation5 + $0x38] sm:$0xff] %vm1165_vm3, %v6609_v39 }
 0xe4f   : > { %7091 = vst.msk [vmem:[#allocation5 + $0xb0] sm:$0xff] %vm2528_vm6, %v7003_v25  ;;  %7036 = vrot.lane.b32.xlu0 %v12404_v58, %s9558_s21  ;;  %v6562_v25 = vld [vmem:[#allocation4 + $0x156] sm:$0xff] }
 0xe50   : > { %6014 = vrot.lane.b32.xlu1 %v12236_v20, %s9556_s23  ;;  %6894 = vst.msk [vmem:[#allocation5 + $0x38] sm:$0xff] %vm1358_vm4, %v12328_v36 }
 0xe51   : > { %7086 = vst.msk [vmem:[#allocation5 + $0x38] sm:$0xff] %vm2528_vm6, %v12338_v30  ;;  %v6613_v11 = vpop.permute.xlu0 %6612  ;;  %v7189_v30 = vld [vmem:[#allocation5 + $0x48] sm:$0xff] }
 0xe52   : > { %v6815_v33 = vpop.permute.xlu1 %6814  ;;  %6704 = vst.msk [vmem:[#allocation5 + $0x68] sm:$0xff] %vm1165_vm3, %v6613_v11  ;;  %v7279_v13 = vpack.c.bf16 %v7189_v30, %v7186_v19 }
 0xe53   : > { %6901 = vst.msk [vmem:[#allocation5 + $0xe0] sm:$0xff] %vm1358_vm4, %v6815_v33  ;;  %6896 = vst.msk [vmem:[#allocation5 + $0x68] sm:$0xff] %vm1358_vm4, %v12558_v15  ;;  %6400 = vrot.lane.b32.xlu0 %v6752_v47, %s9558_s21  ;;  %v7190_v15 = vld [vmem:[#allocation5 + $0x50] sm:$0xff]  ;;  %v7282_v47 = vpack.c.bf16 %v7195_v45, %v7192_v2 }
 0xe54   : > { %6206 = vrot.lane.b32.xlu1 %v6117_v34, %s9557_s26  ;;  %7088 = vst.msk [vmem:[#allocation5 + $0x68] sm:$0xff] %vm2528_vm6, %v12565_v5  ;;  %v12707_v33 = vld [vmem:[#allocation4 + $0x1a0] sm:$0xff] }
 0xe55   : > { %v6617_v36 = vpop.permute.xlu0 %6616 }
 0xe56   : > { %v7007_v20 = vpop.permute.xlu1 %7006  ;;  %6706 = vst.msk [vmem:[#allocation5 + $0x98] sm:$0xff] %vm1165_vm3, %v6617_v36  ;;  %v7202_v52 = vld [vmem:[#allocation5 + $0xb0] sm:$0xff] }
 0xe57   : > { %7093 = vst.msk [vmem:[#allocation5 + $0xe0] sm:$0xff] %vm2528_vm6, %v7007_v20  ;;  %6404 = vrot.lane.b32.xlu0 %v6754_v37, %s9558_s21  ;;  %v7201_v37 = vld [vmem:[#allocation5 + $0xa8] sm:$0xff]  ;;  %v7207_v20 = vld [vmem:[#allocation5 + $0xd8] sm:$0xff] }
 0xe58   : > { %6018 = vrot.lane.b32.xlu1 %v12256_v18, %s9556_s23  ;;  %6898 = vst.msk [vmem:[#allocation5 + $0x98] sm:$0xff] %vm1358_vm4, %v12572_v27  ;;  %v7187_v58 = vld [vmem:[#allocation5 + $0x38] sm:$0xff]  ;;  %v7285_v14 = vpack.c.bf16 %v7201_v37, %v7198_v38 }
 0xe59   : > { %7090 = vst.msk [vmem:[#allocation5 + $0x98] sm:$0xff] %vm2528_vm6, %v12579_v31  ;;  %v7280_v42 = vpack.c.bf16 %v7190_v15, %v7187_v58  ;;  %v6173_v41 = vpop.permute.xlu0 %6172  ;;  %v12668_v18 = vld [vmem:[#allocation4 + $0x126] sm:$0xff]  ;;  %v7196_v31 = vld [vmem:[#allocation5 + $0x80] sm:$0xff] }
 0xe5a   : > { %v6627_v5 = vpop.permute.xlu1 %6626  ;;  %6260 = vst.msk [vmem:[#allocation5 + $0xc0] sm:$0xff] %vm1358_vm4, %v6173_v41  ;;  %v6567_v37 = vld [vmem:[#allocation4 + $0x18e] sm:$0xff] }
 0xe5b   : > { %6711 = vst.msk [vmem:[#allocation5 + $0x110] sm:$0xff] %vm1165_vm3, %v6627_v5  ;;  %7563 = vmatprep.mubr.bf16.mxu1 %v7280_v42  ;;  %6640 = vrot.lane.b32.xlu0 %v12668_v18, %s9556_s23  ;;  %v7193_v27 = vld [vmem:[#allocation5 + $0x68] sm:$0xff] }
 0xe5c   : > { %6903 = vst.msk [vmem:[#allocation5 + $0x110] sm:$0xff] %vm1358_vm4, %v12431_v8  ;;  %6210 = vrot.lane.b32.xlu1 %v6561_v6, %s9557_s26  ;;  %7564 = vmatmul.mubr.bf16.gmra.mrb[52].mxu1 %v7279_v13  ;;  %v7283_v29 = vpack.c.bf16 %v7196_v31, %v7193_v27  ;;  %v6762_v6 = vld [vmem:[#allocation4 + $0x1f8] sm:$0xff] }
 0xe5d   : > { %7095 = vst.msk [vmem:[#allocation5 + $0x110] sm:$0xff] %vm2528_vm6, %v12438_v23  ;;  %6452 = vst.msk [vmem:[#allocation5 + $0xc0] sm:$0xff] %vm2528_vm6, %v12382_v17  ;;  %v6177_v63 = vpop.permute.xlu0 %6176  ;;  %v5930_v23 = vld [vmem:[#allocation4 + $0x16b] sm:$0xff]  ;;  %v12726_v13 = vld [vmem:[#allocation4 + $0x1b8] sm:$0xff] }
 0xe5e   : > { %v6371_v8 = vpop.permute.xlu1 %6370  ;;  %6262 = vst.msk [vmem:[#allocation5 + $0xf0] sm:$0xff] %vm1358_vm4, %v6177_v63  ;;  %7571 = vmatprep.mubr.bf16.mxu1 %v7283_v29  ;;  %v7143_v27 = vld [vmem:[#allocation4 + $0x1d6] sm:$0xff] }
 0xe5f   : > { %6455 = vst.msk [vmem:[#allocation5 + $0x108] sm:$0xff] %vm2528_vm6, %v6371_v8  ;;  %6454 = vst.msk [vmem:[#allocation5 + $0xf0] sm:$0xff] %vm2528_vm6, %v12599_v54  ;;  %6024 = vrot.lane.b32.xlu0 %v5930_v23, %s9556_s23  ;;  %v6566_v23 = vld [vmem:[#allocation4 + $0x186] sm:$0xff] }
 0xe60   : > { %6022 = vrot.lane.b32.xlu1 %v12276_v44, %s9556_s23  ;;  %v7199_v17 = vld [vmem:[#allocation5 + $0x98] sm:$0xff]  ;;  %v6560_v44 = vld [vmem:[#allocation4 + $0x13e] sm:$0xff]  ;;  %7175 = vst.msk [vmem:[#allocation5 + $0x298] sm:$0xff] %vm483_vm0, %v7143_v27 }
 0xe61   : > { %v6181_v40 = vpop.permute.xlu0 %6180  ;;  %v7286_v9 = vpack.c.bf16 %v7202_v52, %v7199_v17 }
 0xe62   : > { %v6631_v32 = vpop.permute.xlu1 %6630  ;;  %6264 = vst.msk [vmem:[#allocation5 + $0x120] sm:$0xff] %vm1358_vm4, %v6181_v40  ;;  %v6123_v40 = vld [vmem:[#allocation4 + $0x176] sm:$0xff] }
 0xe63   : > { %6713 = vst.msk [vmem:[#allocation5 + $0x140] sm:$0xff] %vm1165_vm3, %v6631_v32  ;;  %6644 = vrot.lane.b32.xlu0 %v6560_v44, %s9556_s23 }
 0xe64   : > { %6214 = vrot.lane.b32.xlu1 %v12621_v46, %s9557_s26  ;;  %6456 = vst.msk [vmem:[#allocation5 + $0x120] sm:$0xff] %vm2528_vm6, %v12606_v7  ;;  %7572 = vmatmul.mubr.bf16.gmra.mrb[56].mxu1 %v7282_v47  ;;  %v7208_v7 = vld [vmem:[#allocation5 + $0xe0] sm:$0xff]  ;;  %v7214_v58 = vld [vmem:[#allocation5 + $0x110] sm:$0xff] }
 0xe65   : > { %7579 = vmatprep.mubr.bf16.mxu1 %v7286_v9  ;;  %v6625_v43 = vpop.permute.xlu0 %6624  ;;  %v7204_v11 = vld [vmem:[#allocation5 + $0xc0] sm:$0xff] }
 0xe66   : > { %v6375_v54 = vpop.permute.xlu1 %6374  ;;  %6710 = vst.msk [vmem:[#allocation5 + $0xf8] sm:$0xff] %vm1165_vm3, %v6625_v43  ;;  %v7288_v30 = vpack.c.bf16 %v7207_v20, %v7204_v11 }
 0xe67   : > { %6457 = vst.msk [vmem:[#allocation5 + $0x138] sm:$0xff] %vm2528_vm6, %v6375_v54  ;;  %6856 = vrot.lane.b32.xlu0 %v6762_v6, %s9557_s26 }
 0xe68   : > { %6838 = vrot.lane.b32.xlu1 %v12691_v26, %s9557_s26  ;;  %6902 = vst.msk [vmem:[#allocation5 + $0xf8] sm:$0xff] %vm1358_vm4, %v12445_v50  ;;  %v7289_v50 = vpack.c.bf16 %v7208_v7, %v7205_v57  ;;  %v6568_v7 = vld [vmem:[#allocation4 + $0x19e] sm:$0xff] }
 0xe69   : > { %7094 = vst.msk [vmem:[#allocation5 + $0xf8] sm:$0xff] %vm2528_vm6, %v12451_v49  ;;  %v6629_v46 = vpop.permute.xlu0 %6628 }
 0xe6a   : > { %v6635_v24 = vpop.permute.xlu1 %6634  ;;  %6712 = vst.msk [vmem:[#allocation5 + $0x128] sm:$0xff] %vm1165_vm3, %v6629_v46  ;;  %v6954_v46 = vld [vmem:[#allocation4 + $0x1fb] sm:$0xff] }
 0xe6b   : > { %6715 = vst.msk [vmem:[#allocation5 + $0x170] sm:$0xff] %vm1165_vm3, %v6635_v24  ;;  %6648 = vrot.lane.b32.xlu0 %v6562_v25, %s9556_s23 }
 0xe6c   : > { %7030 = vrot.lane.b32.xlu1 %v12374_v0, %s9558_s21  ;;  %7580 = vmatmul.mubr.bf16.gmra.mrb[60].mxu1 %v7285_v14 }
 0xe6d   : > { %7587 = vmatprep.mubr.bf16.mxu1 %v7289_v50  ;;  %v6633_v49 = vpop.permute.xlu0 %6632 }
 0xe6e   : > { %v6379_v39 = vpop.permute.xlu1 %6378  ;;  %6714 = vst.msk [vmem:[#allocation5 + $0x158] sm:$0xff] %vm1165_vm3, %v6633_v49 }
 0xe6f   : > { %6459 = vst.msk [vmem:[#allocation5 + $0x168] sm:$0xff] %vm2528_vm6, %v6379_v39  ;;  %6204 = vrot.lane.b32.xlu0 %v12668_v18, %s9557_s26  ;;  %v7142_v18 = vld [vmem:[#allocation4 + $0x1ce] sm:$0xff]  ;;  %v6955_v39 = vld [vmem:[#allocation4 + $0x203] sm:$0xff] }
 0xe70   : > { %6842 = vrot.lane.b32.xlu1 %v12707_v33, %s9557_s26  ;;  %v7211_v0 = vld [vmem:[#allocation5 + $0xf8] sm:$0xff]  ;;  %7174 = vst.msk [vmem:[#allocation5 + $0x280] sm:$0xff] %vm483_vm0, %v7142_v18 }
 0xe71   : > { %v6189_v36 = vpop.permute.xlu0 %6188  ;;  %v7292_v15 = vpack.c.bf16 %v7214_v58, %v7211_v0  ;;  %v6570_v0 = vld [vmem:[#allocation4 + $0x1b6] sm:$0xff] }
 0xe72   : > { %v5999_v34 = vpop.permute.xlu1 %5998  ;;  %6268 = vst.msk [vmem:[#allocation5 + $0x180] sm:$0xff] %vm1358_vm4, %v6189_v36  ;;  %v7145_v36 = vld [vmem:[#allocation4 + $0x1ee] sm:$0xff] }
 0xe73   : > { %6077 = vst.msk [vmem:[#allocation5 + $0x198] sm:$0xff] %vm1165_vm3, %v5999_v34  ;;  %6208 = vrot.lane.b32.xlu0 %v6560_v44, %s9557_s26  ;;  %v7263_v44 = vld [vmem:[#allocation5 + $0x298] sm:$0xff] }
 0xe74   : > { %7034 = vrot.lane.b32.xlu1 %v12389_v35, %s9558_s21  ;;  %6460 = vst.msk [vmem:[#allocation5 + $0x180] sm:$0xff] %vm2528_vm6, %v12458_v22  ;;  %7588 = vmatmul.mubr.bf16.gmra.mrb[64].mxu1 %v7288_v30  ;;  %v7210_v22 = vld [vmem:[#allocation5 + $0xf0] sm:$0xff] }
 0xe75   : > { %7595 = vmatprep.mubr.bf16.mxu1 %v7292_v15  ;;  %v12721_v5 = vpop.f32.mrb[100].mxu0  ;;  %v6193_v41 = vpop.permute.xlu0 %6192  ;;  %v6569_v15 = vld [vmem:[#allocation4 + $0x1a6] sm:$0xff]  ;;  %7177 = vst.msk [vmem:[#allocation5 + $0x2c8] sm:$0xff] %vm483_vm0, %v7145_v36 }
 0xe76   : > { %v6191_v42 = vpop.permute.xlu1 %6190  ;;  %v12724_v19 = vpop.f32.mrb[101].mxu0  ;;  %6270 = vst.msk [vmem:[#allocation5 + $0x1b0] sm:$0xff] %vm1358_vm4, %v6193_v41  ;;  %v7147_v41 = vld [vmem:[#allocation4 + $0x206] sm:$0xff] }
 0xe77   : > { %6269 = vst.msk [vmem:[#allocation5 + $0x198] sm:$0xff] %vm1358_vm4, %v6191_v42  ;;  %v12731_v35 = vpop.f32.mrb[102].mxu0  ;;  %6212 = vrot.lane.b32.xlu0 %v6562_v25, %s9557_s26  ;;  %v7260_v52 = vld [vmem:[#allocation5 + $0x280] sm:$0xff]  ;;  %v7146_v42 = vld [vmem:[#allocation4 + $0x1fe] sm:$0xff] }
 0xe78   : > { %6461 = vst.msk [vmem:[#allocation5 + $0x198] sm:$0xff] %vm2528_vm6, %v12453_v59  ;;  %6846 = vrot.lane.b32.xlu1 %v12726_v13, %s9557_s26  ;;  %v12735_v31 = vpop.f32.mrb[103].mxu0  ;;  %v7213_v59 = vld [vmem:[#allocation5 + $0x108] sm:$0xff]  ;;  %v7317_v54 = vpack.c.bf16 %v7263_v44, %v7260_v52 }
 0xe79   : > { %v6197_v29 = vpop.permute.xlu0 %6196  ;;  %v7291_v63 = vpack.c.bf16 %v7213_v59, %v7210_v22  ;;  %7178 = vst.msk [vmem:[#allocation5 + $0x2e0] sm:$0xff] %vm483_vm0, %v7146_v42  ;;  %7179 = vst.msk [vmem:[#allocation5 + $0x2f8] sm:$0xff] %vm483_vm0, %v7147_v41  ;;  %v6571_v59 = vld [vmem:[#allocation4 + $0x1be] sm:$0xff] }
 0xe7a   : > { %v6003_v8 = vpop.permute.xlu1 %6002  ;;  %6272 = vst.msk [vmem:[#allocation5 + $0x1e0] sm:$0xff] %vm1358_vm4, %v6197_v29  ;;  %8939 = vmatmul.mubr.msk.bf16.gmra.mrb[124].mxu0 %vm483_vm0, %v7317_v54  ;;  %v7216_v54 = vld [vmem:[#allocation5 + $0x120] sm:$0xff]  ;;  %v7222_v42 = vld [vmem:[#allocation5 + $0x150] sm:$0xff] }
 0xe7b   : > { %6079 = vst.msk [vmem:[#allocation5 + $0x1c8] sm:$0xff] %vm1165_vm3, %v6003_v8  ;;  %6656 = vrot.lane.b32.xlu0 %v6566_v23, %s9556_s23 }
 0xe7c   : > { %7038 = vrot.lane.b32.xlu1 %v12408_v10, %s9558_s21  ;;  %7596 = vmatmul.mubr.bf16.gmra.mrb[68].mxu1 %v7291_v63  ;;  %v6122_v10 = vld [vmem:[#allocation4 + $0x16e] sm:$0xff] }
 0xe7d   : > { %v12745_v45 = vpop.f32.mrb[104].mxu0  ;;  %v6821_v2 = vpop.permute.xlu0 %6820  ;;  %v7219_v63 = vld [vmem:[#allocation5 + $0x138] sm:$0xff] }
 0xe7e   : > { %v6195_v17 = vpop.permute.xlu1 %6194  ;;  %v12748_v32 = vpop.f32.mrb[105].mxu0  ;;  %6904 = vst.msk [vmem:[#allocation5 + $0x128] sm:$0xff] %vm1358_vm4, %v6821_v2 }
 0xe7f   : > { %6271 = vst.msk [vmem:[#allocation5 + $0x1c8] sm:$0xff] %vm1358_vm4, %v6195_v17  ;;  %v12751_v47 = vpop.f32.mrb[106].mxu0  ;;  %6216 = vrot.lane.b32.xlu0 %v6122_v10, %s9557_s26  ;;  %v7269_v10 = vld [vmem:[#allocation5 + $0x2c8] sm:$0xff] }
 0xe80   : > { %6218 = vrot.lane.b32.xlu1 %v6123_v40, %s9557_s26  ;;  %v12754_v9 = vpop.f32.mrb[107].mxu0 }
 0xe81   : > { %v7013_v43 = vpop.permute.xlu0 %7012 }
 0xe82   : > { %v6007_v6 = vpop.permute.xlu1 %6006  ;;  %7096 = vst.msk [vmem:[#allocation5 + $0x128] sm:$0xff] %vm2528_vm6, %v7013_v43  ;;  %v7272_v43 = vld [vmem:[#allocation5 + $0x2e0] sm:$0xff] }
 0xe83   : > { %6081 = vst.msk [vmem:[#allocation5 + $0x1f8] sm:$0xff] %vm1165_vm3, %v6007_v6  ;;  %6660 = vrot.lane.b32.xlu0 %v6568_v7, %s9556_s23  ;;  %v7294_v7 = vpack.c.bf16 %v7219_v63, %v7216_v54 }
 0xe84   : > { %6658 = vrot.lane.b32.xlu1 %v6567_v37, %s9556_s23  ;;  %v7275_v37 = vld [vmem:[#allocation5 + $0x2f8] sm:$0xff] }
 0xe85   : > { %v12762_v24 = vpop.f32.mrb[108].mxu0  ;;  %v6825_v57 = vpop.permute.xlu0 %6824 }
 0xe86   : > { %v6199_v38 = vpop.permute.xlu1 %6198  ;;  %v12765_v14 = vpop.f32.mrb[109].mxu0  ;;  %6906 = vst.msk [vmem:[#allocation5 + $0x158] sm:$0xff] %vm1358_vm4, %v6825_v57 }
 0xe87   : > { %6273 = vst.msk [vmem:[#allocation5 + $0x1f8] sm:$0xff] %vm1358_vm4, %v6199_v38  ;;  %v12768_v25 = vpop.f32.mrb[110].mxu0  ;;  %7048 = vrot.lane.b32.xlu0 %v6954_v46, %s9558_s21  ;;  %v7323_v38 = vpack.c.bf16 %v7275_v37, %v7272_v43 }
 0xe88   : > { %6402 = vrot.lane.b32.xlu1 %v12691_v26, %s9558_s21  ;;  %v12772_v50 = vpop.f32.mrb[111].mxu0  ;;  %v7144_v26 = vld [vmem:[#allocation4 + $0x1e6] sm:$0xff] }
 0xe89   : > { %v7017_v11 = vpop.permute.xlu0 %7016  ;;  %7176 = vst.msk [vmem:[#allocation5 + $0x2b0] sm:$0xff] %vm483_vm0, %v7144_v26  ;;  %v7217_v29 = vld [vmem:[#allocation5 + $0x128] sm:$0xff] }
 0xe8a   : > { %v6823_v49 = vpop.permute.xlu1 %6822  ;;  %7098 = vst.msk [vmem:[#allocation5 + $0x158] sm:$0xff] %vm2528_vm6, %v7017_v11 }
 0xe8b   : > { %6905 = vst.msk [vmem:[#allocation5 + $0x140] sm:$0xff] %vm1358_vm4, %v6823_v49  ;;  %6664 = vrot.lane.b32.xlu0 %v6570_v0, %s9556_s23  ;;  %v7225_v49 = vld [vmem:[#allocation5 + $0x168] sm:$0xff] }
 0xe8c   : > { %7050 = vrot.lane.b32.xlu1 %v6955_v39, %s9558_s21 }
 0xe8d   : > { %v12779_v34 = vpop.f32.mrb[112].mxu0  ;;  %v6829_v58 = vpop.permute.xlu0 %6828 }
 0xe8e   : > { %v7015_v20 = vpop.permute.xlu1 %7014  ;;  %v12782_v30 = vpop.f32.mrb[113].mxu0  ;;  %6908 = vst.msk [vmem:[#allocation5 + $0x188] sm:$0xff] %vm1358_vm4, %v6829_v58 }
 0xe8f   : > { %7097 = vst.msk [vmem:[#allocation5 + $0x140] sm:$0xff] %vm2528_vm6, %v7015_v20  ;;  %v12787_v22 = vpop.f32.mrb[114].mxu0  ;;  %6408 = vrot.lane.b32.xlu0 %v12632_v51, %s9558_s21 }
 0xe90   : > { %6662 = vrot.lane.b32.xlu1 %v6569_v15, %s9556_s23  ;;  %v12792_v18 = vpop.f32.mrb[115].mxu0  ;;  %v7266_v40 = vld [vmem:[#allocation5 + $0x2b0] sm:$0xff] }
 0xe91   : > { %v7021_v8 = vpop.permute.xlu0 %7020  ;;  %v7320_v6 = vpack.c.bf16 %v7269_v10, %v7266_v40  ;;  %v7223_v20 = vld [vmem:[#allocation5 + $0x158] sm:$0xff] }
 0xe92   : > { %v6827_v27 = vpop.permute.xlu1 %6826  ;;  %7100 = vst.msk [vmem:[#allocation5 + $0x188] sm:$0xff] %vm2528_vm6, %v7021_v8 }
 0xe93   : > { %6907 = vst.msk [vmem:[#allocation5 + $0x170] sm:$0xff] %vm1358_vm4, %v6827_v27  ;;  %8942 = vmatprep.mubr.msk.bf16.mxu0 %vm483_vm0, %v7320_v6  ;;  %v7297_v27 = vpack.c.bf16 %v7225_v49, %v7222_v42 }
 0xe94   : > { %6406 = vrot.lane.b32.xlu1 %v12707_v33, %s9558_s21  ;;  %8943 = vmatmul.mubr.msk.bf16.gmra.mrb[128].mxu0 %vm483_vm0, %v7323_v38 }
 0xe95   : > { %v12800_v23 = vpop.f32.mrb[116].mxu0  ;;  %v6385_v52 = vpop.permute.xlu0 %6384 }
 0xe96   : > { %v7019_v17 = vpop.permute.xlu1 %7018  ;;  %v7220_v2 = vld [vmem:[#allocation5 + $0x140] sm:$0xff]  ;;  %v12803_v51 = vpop.f32.mrb[117].mxu0  ;;  %6462 = vst.msk [vmem:[#allocation5 + $0x1b0] sm:$0xff] %vm2528_vm6, %v6385_v52 }
 0xe97   : > { %7099 = vst.msk [vmem:[#allocation5 + $0x170] sm:$0xff] %vm2528_vm6, %v7019_v17  ;;  %v7295_v44 = vpack.c.bf16 %v7220_v2, %v7217_v29  ;;  %v12806_v33 = vpop.f32.mrb[118].mxu0  ;;  %v7231_v29 = vld [vmem:[#allocation5 + $0x198] sm:$0xff]  ;;  %v7228_v52 = vld [vmem:[#allocation5 + $0x180] sm:$0xff] }
 0xe98   : > { %6666 = vrot.lane.b32.xlu1 %v6571_v59, %s9556_s23  ;;  %v12809_v46 = vpop.f32.mrb[119].mxu0 }
 0xe99   : > { %7603 = vmatprep.mubr.bf16.mxu1 %v7295_v44  ;;  %v6389_v39 = vpop.permute.xlu0 %6388  ;;  %v7229_v17 = vld [vmem:[#allocation5 + $0x188] sm:$0xff]  ;;  %v7300_v44 = vpack.c.bf16 %v7231_v29, %v7228_v52 }
 0xe9a   : > { %7604 = vmatmul.mubr.bf16.gmra.mrb[72].mxu1 %v7294_v7  ;;  %v6831_v57 = vpop.permute.xlu1 %6830  ;;  %6464 = vst.msk [vmem:[#allocation5 + $0x1e0] sm:$0xff] %vm2528_vm6, %v6389_v39 }
 0xe9b   : > { %6909 = vst.msk [vmem:[#allocation5 + $0x1a0] sm:$0xff] %vm1358_vm4, %v6831_v57 }
 0xe9c   : > { %6410 = vrot.lane.b32.xlu1 %v12726_v13, %s9558_s21 }
 0xe9d   : > { %v12817_v11 = vpop.f32.mrb[120].mxu0  ;;  %v6393_v58 = vpop.permute.xlu0 %6392  ;;  %v7234_v52 = vld [vmem:[#allocation5 + $0x1b0] sm:$0xff] }
 0xe9e   : > { %v7023_v0 = vpop.permute.xlu1 %7022  ;;  %v7226_v26 = vld [vmem:[#allocation5 + $0x170] sm:$0xff]  ;;  %v12820_v36 = vpop.f32.mrb[121].mxu0  ;;  %6466 = vst.msk [vmem:[#allocation5 + $0x210] sm:$0xff] %vm2528_vm6, %v6393_v58 }
 0xe9f   : > { %7101 = vst.msk [vmem:[#allocation5 + $0x1a0] sm:$0xff] %vm2528_vm6, %v7023_v0  ;;  %v7298_v15 = vpack.c.bf16 %v7226_v26, %v7223_v20  ;;  %v12823_v41 = vpop.f32.mrb[122].mxu0 }
 0xea0   : > { %v12825_v13 = vpop.f32.mrb[123].mxu0 }
 0xea1   : > { %7611 = vmatprep.mubr.bf16.mxu1 %v7298_v15  ;;  %v6013_v59 = vpop.permute.xlu0 %6012 }
 0xea2   : > { %7612 = vmatmul.mubr.bf16.gmra.mrb[76].mxu1 %v7297_v27  ;;  %v6027_v8 = vpop.permute.xlu1 %6026  ;;  %6084 = vst.msk [vmem:[#allocation5 + $0x240] sm:$0xff] %vm1165_vm3, %v6013_v59 }
 0xea3   : > { %6091 = vst.msk [vmem:[#allocation5 + $0x2e8] sm:$0xff] %vm1165_vm3, %v6027_v8 }
 0xea5   : > { %v6017_v40 = vpop.permute.xlu0 %6016 }
 0xea6   : > { %v6643_v63 = vpop.permute.xlu1 %6642  ;;  %v7232_v2 = vld [vmem:[#allocation5 + $0x1a0] sm:$0xff]  ;;  %6086 = vst.msk [vmem:[#allocation5 + $0x270] sm:$0xff] %vm1165_vm3, %v6017_v40 }
 0xea7   : > { %6719 = vst.msk [vmem:[#allocation5 + $0x1d0] sm:$0xff] %vm1165_vm3, %v6643_v63  ;;  %v7301_v10 = vpack.c.bf16 %v7232_v2, %v7229_v17 }
 0xea8   : > { %6911 = vst.msk [vmem:[#allocation5 + $0x1d0] sm:$0xff] %vm1358_vm4, %v12472_v12 }
 0xea9   : > { %7103 = vst.msk [vmem:[#allocation5 + $0x1d0] sm:$0xff] %vm2528_vm6, %v12479_v16  ;;  %7619 = vmatprep.mubr.bf16.mxu1 %v7301_v10  ;;  %v6021_v6 = vpop.permute.xlu0 %6020 }
 0xeaa   : > { %7620 = vmatmul.mubr.bf16.gmra.mrb[80].mxu1 %v7300_v44  ;;  %v6387_v54 = vpop.permute.xlu1 %6386  ;;  %6088 = vst.msk [vmem:[#allocation5 + $0x2a0] sm:$0xff] %vm1165_vm3, %v6021_v6 }
 0xeab   : > { %6463 = vst.msk [vmem:[#allocation5 + $0x1c8] sm:$0xff] %vm2528_vm6, %v6387_v54 }
 0xead   : > { %v6837_v37 = vpop.permute.xlu0 %6836 }
 0xeae   : > { %v12837_v43 = vpop.permute.xlu1 %6858 }
 0xeb1   : > { %v7029_v12 = vpop.permute.xlu0 %7028 }
 0xeb2   : > { %v6647_v7 = vpop.permute.xlu1 %6646  ;;  %v7237_v2 = vld [vmem:[#allocation5 + $0x1c8] sm:$0xff] }
 0xeb3   : > { %6721 = vst.msk [vmem:[#allocation5 + $0x200] sm:$0xff] %vm1165_vm3, %v6647_v7  ;;  %v7303_v54 = vpack.c.bf16 %v7237_v2, %v7234_v52 }
 0xeb5   : > { %v6841_v57 = vpop.permute.xlu0 %6840 }
 0xeb6   : > { %v6391_v38 = vpop.permute.xlu1 %6390 }
 0xeb7   : > { %6465 = vst.msk [vmem:[#allocation5 + $0x1f8] sm:$0xff] %vm2528_vm6, %v6391_v38 }
 0xeb9   : > { %v7033_v39 = vpop.permute.xlu0 %7032 }
 0xeba   : > { %v6651_v16 = vpop.permute.xlu1 %6650 }
 0xebb   : > { %6723 = vst.msk [vmem:[#allocation5 + $0x230] sm:$0xff] %vm1165_vm3, %v6651_v16 }
 0xebd   : > { %v6845_v0 = vpop.permute.xlu0 %6844 }
 0xebe   : > { %v6395_v49 = vpop.permute.xlu1 %6394  ;;  %6916 = vst.msk [vmem:[#allocation5 + $0x248] sm:$0xff] %vm1358_vm4, %v6845_v0  ;;  %v7243_v38 = vld [vmem:[#allocation5 + $0x1f8] sm:$0xff] }
 0xebf   : > { %6467 = vst.msk [vmem:[#allocation5 + $0x228] sm:$0xff] %vm2528_vm6, %v6395_v49 }
 0xec1   : > { %v7037_v26 = vpop.permute.xlu0 %7036 }
 0xec2   : > { %v6015_v20 = vpop.permute.xlu1 %6014  ;;  %7108 = vst.msk [vmem:[#allocation5 + $0x248] sm:$0xff] %vm2528_vm6, %v7037_v26 }
 0xec3   : > { %6085 = vst.msk [vmem:[#allocation5 + $0x258] sm:$0xff] %vm1165_vm3, %v6015_v20 }
 0xec5   : > { %v6401_v15 = vpop.permute.xlu0 %6400 }
 0xec6   : > { %v6207_v58 = vpop.permute.xlu1 %6206 }
 0xec7   : > { %6277 = vst.msk [vmem:[#allocation5 + $0x258] sm:$0xff] %vm1358_vm4, %v6207_v58 }
 0xec8   : > { %6469 = vst.msk [vmem:[#allocation5 + $0x258] sm:$0xff] %vm2528_vm6, %v12516_v53 }
 0xec9   : > { %v6405_v27 = vpop.permute.xlu0 %6404 }
 0xeca   : > { %v6019_v42 = vpop.permute.xlu1 %6018 }
 0xecb   : > { %6087 = vst.msk [vmem:[#allocation5 + $0x288] sm:$0xff] %vm1165_vm3, %v6019_v42 }
 0xecd   : > { %v6641_v59 = vpop.permute.xlu0 %6640 }
 0xece   : > { %v6211_v8 = vpop.permute.xlu1 %6210  ;;  %6718 = vst.msk [vmem:[#allocation5 + $0x1b8] sm:$0xff] %vm1165_vm3, %v6641_v59  ;;  %v12882_v59 = vld [vmem:[%s13109_s13] ss:$0 sm:$0xff] }
 0xecf   : > { %6279 = vst.msk [vmem:[#allocation5 + $0x288] sm:$0xff] %vm1358_vm4, %v6211_v8  ;;  %6910 = vst.msk [vmem:[#allocation5 + $0x1b8] sm:$0xff] %vm1358_vm4, %v12470_v48  ;;  %v7238_v48 = vld [vmem:[#allocation5 + $0x1d0] sm:$0xff]  ;;  %v7249_v8 = vld [vmem:[#allocation5 + $0x228] sm:$0xff] }
 0xed0   : > { %7102 = vst.msk [vmem:[#allocation5 + $0x1b8] sm:$0xff] %vm2528_vm6, %v12477_v21 }
 0xed1   : > { %v6025_v53 = vpop.permute.xlu0 %6024 }
 0xed2   : > { %v6023_v29 = vpop.permute.xlu1 %6022  ;;  %6090 = vst.msk [vmem:[#allocation5 + $0x2d0] sm:$0xff] %vm1165_vm3, %v6025_v53 }
 0xed3   : > { %6089 = vst.msk [vmem:[#allocation5 + $0x2b8] sm:$0xff] %vm1165_vm3, %v6023_v29 }
 0xed5   : > { %v6645_v17 = vpop.permute.xlu0 %6644 }
 0xed6   : > { %v6215_v63 = vpop.permute.xlu1 %6214  ;;  %6720 = vst.msk [vmem:[#allocation5 + $0x1e8] sm:$0xff] %vm1165_vm3, %v6645_v17 }
 0xed7   : > { %6281 = vst.msk [vmem:[#allocation5 + $0x2b8] sm:$0xff] %vm1358_vm4, %v6215_v63  ;;  %6912 = vst.msk [vmem:[#allocation5 + $0x1e8] sm:$0xff] %vm1358_vm4, %v6837_v37  ;;  %v7235_v40 = vld [vmem:[#allocation5 + $0x1b8] sm:$0xff] }
 0xed8   : > { %7104 = vst.msk [vmem:[#allocation5 + $0x1e8] sm:$0xff] %vm2528_vm6, %v7029_v12  ;;  %v7304_v10 = vpack.c.bf16 %v7238_v48, %v7235_v40 }
 0xed9   : > { %v12863_v44 = vpop.permute.xlu0 %6856 }
 0xeda   : > { %v6839_v21 = vpop.permute.xlu1 %6838  ;;  %7627 = vmatprep.mubr.bf16.mxu1 %v7304_v10 }
 0xedb   : > { %6913 = vst.msk [vmem:[#allocation5 + $0x200] sm:$0xff] %vm1358_vm4, %v6839_v21  ;;  %7628 = vmatmul.mubr.bf16.gmra.mrb[84].mxu1 %v7303_v54  ;;  %v7246_v21 = vld [vmem:[#allocation5 + $0x210] sm:$0xff] }
 0xedc   : > { %v7309_v10 = vpack.c.bf16 %v7249_v8, %v7246_v21 }
 0xedd   : > { %v6649_v7 = vpop.permute.xlu0 %6648 }
 0xede   : > { %v7031_v6 = vpop.permute.xlu1 %7030  ;;  %6722 = vst.msk [vmem:[#allocation5 + $0x218] sm:$0xff] %vm1165_vm3, %v6649_v7 }
 0xedf   : > { %7105 = vst.msk [vmem:[#allocation5 + $0x200] sm:$0xff] %vm2528_vm6, %v7031_v6  ;;  %v7241_v49 = vld [vmem:[#allocation5 + $0x1e8] sm:$0xff] }
 0xee0   : > { %6914 = vst.msk [vmem:[#allocation5 + $0x218] sm:$0xff] %vm1358_vm4, %v6841_v57  ;;  %v7240_v57 = vld [vmem:[#allocation5 + $0x1e0] sm:$0xff] }
 0xee1   : > { %7106 = vst.msk [vmem:[#allocation5 + $0x218] sm:$0xff] %vm2528_vm6, %v7033_v39  ;;  %v6205_v12 = vpop.permute.xlu0 %6204  ;;  %v7306_v39 = vpack.c.bf16 %v7243_v38, %v7240_v57 }
 0xee2   : > { %v6843_v37 = vpop.permute.xlu1 %6842  ;;  %6276 = vst.msk [vmem:[#allocation5 + $0x240] sm:$0xff] %vm1358_vm4, %v6205_v12 }
 0xee3   : > { %6915 = vst.msk [vmem:[#allocation5 + $0x230] sm:$0xff] %vm1358_vm4, %v6843_v37 }
 0xee4   : > { %6468 = vst.msk [vmem:[#allocation5 + $0x240] sm:$0xff] %vm2528_vm6, %v12484_v28 }
 0xee5   : > { %v6209_v20 = vpop.permute.xlu0 %6208 }
 0xee6   : > { %v7035_v16 = vpop.permute.xlu1 %7034  ;;  %v7244_v0 = vld [vmem:[#allocation5 + $0x200] sm:$0xff]  ;;  %6278 = vst.msk [vmem:[#allocation5 + $0x270] sm:$0xff] %vm1358_vm4, %v6209_v20 }
 0xee7   : > { %7107 = vst.msk [vmem:[#allocation5 + $0x230] sm:$0xff] %vm2528_vm6, %v7035_v16  ;;  %v7307_v26 = vpack.c.bf16 %v7244_v0, %v7241_v49  ;;  %6470 = vst.msk [vmem:[#allocation5 + $0x270] sm:$0xff] %vm2528_vm6, %v6401_v15  ;;  %v7253_v16 = vld [vmem:[#allocation5 + $0x248] sm:$0xff] }
 0xee8   : > { %v7247_v53 = vld [vmem:[#allocation5 + $0x218] sm:$0xff] }
 0xee9   : > { %7635 = vmatprep.mubr.bf16.mxu1 %v7307_v26  ;;  %v6213_v28 = vpop.permute.xlu0 %6212 }
 0xeea   : > { %7636 = vmatmul.mubr.bf16.gmra.mrb[88].mxu1 %v7306_v39  ;;  %v6847_v58 = vpop.permute.xlu1 %6846  ;;  %6280 = vst.msk [vmem:[#allocation5 + $0x2a0] sm:$0xff] %vm1358_vm4, %v6213_v28 }
 0xeeb   : > { %6917 = vst.msk [vmem:[#allocation5 + $0x260] sm:$0xff] %vm1358_vm4, %v6847_v58  ;;  %v7252_v12 = vld [vmem:[#allocation5 + $0x240] sm:$0xff] }
 0xeec   : > { %6472 = vst.msk [vmem:[#allocation5 + $0x2a0] sm:$0xff] %vm2528_vm6, %v6405_v27 }
 0xeed   : > { %v8660_v42 = vpop.f32.mrb[48].mxu1  ;;  %v6657_v2 = vpop.permute.xlu0 %6656 }
 0xeee   : > { %v8661_v29 = vpop.f32.mrb[49].mxu1  ;;  %v7039_v15 = vpop.permute.xlu1 %7038  ;;  %v7250_v63 = vld [vmem:[#allocation5 + $0x230] sm:$0xff]  ;;  %6726 = vst.msk [vmem:[#allocation5 + $0x278] sm:$0xff] %vm1165_vm3, %v6657_v2 }
 0xeef   : > { %v8662_v17 = vadd.f32 %v8661_v29, %v8660_v42  ;;  %7109 = vst.msk [vmem:[#allocation5 + $0x260] sm:$0xff] %vm2528_vm6, %v7039_v15  ;;  %v8663_v40 = vpop.f32.mrb[50].mxu1  ;;  %v7310_v48 = vpack.c.bf16 %v7250_v63, %v7247_v53  ;;  %v7258_v42 = vld [vmem:[#allocation5 + $0x270] sm:$0xff] }
 0xef0   : > { %v8664_v27 = vpop.f32.mrb[51].mxu1  ;;  %6918 = vst.msk [vmem:[#allocation5 + $0x278] sm:$0xff] %vm1358_vm4, %v12004_v1 }
 0xef1   : > { %v7558_v52 = vadd.f32 %v8662_v17, %v12882_v59  ;;  %v8665_v54 = vadd.f32 %v8664_v27, %v8663_v40  ;;  %7643 = vmatprep.mubr.bf16.mxu1 %v7310_v48  ;;  %7110 = vst.msk [vmem:[#allocation5 + $0x278] sm:$0xff] %vm2528_vm6, %v12016_v60  ;;  %v6217_v1 = vpop.permute.xlu0 %6216 }
 0xef2   : > { %7644 = vmatmul.mubr.bf16.gmra.mrb[92].mxu1 %v7309_v10  ;;  %v6219_v6 = vpop.permute.xlu1 %6218  ;;  %6282 = vst.msk [vmem:[#allocation5 + $0x2d0] sm:$0xff] %vm1358_vm4, %v6217_v1 }
 0xef3   : > { %v7719_v7 = vadd.f32 %v12724_v19, %v7558_v52  ;;  %v7561_v37 = vadd.f32 %v8665_v54, %v12882_v59  ;;  %6283 = vst.msk [vmem:[#allocation5 + $0x2e8] sm:$0xff] %vm1358_vm4, %v6219_v6  ;;  %v7255_v19 = vld [vmem:[#allocation5 + $0x258] sm:$0xff]  ;;  %v7264_v2 = vld [vmem:[#allocation5 + $0x2a0] sm:$0xff] }
 0xef4   : > { %v7312_v26 = vpack.c.bf16 %v7255_v19, %v7252_v12 }
 0xef5   : > { %v7722_v60 = vadd.f32 %v12735_v31, %v7561_v37  ;;  %7845 = vst.msk [vmem:[%s12895_s30] sm:$0xff] %vm483_vm0, %v7719_v7  ;;  %v6661_v0 = vpop.permute.xlu0 %6660 }
 0xef6   : > { %v6659_v38 = vpop.permute.xlu1 %6658  ;;  %v7256_v49 = vld [vmem:[#allocation5 + $0x260] sm:$0xff]  ;;  %6728 = vst.msk [vmem:[#allocation5 + $0x2a8] sm:$0xff] %vm1165_vm3, %v6661_v0 }
 0xef7   : > { %6727 = vst.msk [vmem:[#allocation5 + $0x290] sm:$0xff] %vm1165_vm3, %v6659_v38  ;;  %v7313_v20 = vpack.c.bf16 %v7256_v49, %v7253_v16 }
 0xef8   : > { %7846 = vst.msk [vmem:[%s12895_s30 + $0x20] sm:$0xff] %vm483_vm0, %v7722_v60  ;;  %v7259_v58 = vld [vmem:[#allocation5 + $0x278] sm:$0xff] }
 0xef9   : > { %6919 = vst.msk [vmem:[#allocation5 + $0x290] sm:$0xff] %vm1358_vm4, %v12006_v55  ;;  %6920 = vst.msk [vmem:[#allocation5 + $0x2a8] sm:$0xff] %vm1358_vm4, %v12024_v56  ;;  %7651 = vmatprep.mubr.bf16.mxu1 %v7313_v20  ;;  %v7049_v57 = vpop.permute.xlu0 %7048 }
 0xefa   : > { %7111 = vst.msk [vmem:[#allocation5 + $0x290] sm:$0xff] %vm2528_vm6, %v12018_v61  ;;  %7112 = vst.msk [vmem:[#allocation5 + $0x2a8] sm:$0xff] %vm2528_vm6, %v12034_v3  ;;  %7652 = vmatmul.mubr.bf16.gmra.mrb[96].mxu1 %v7312_v26  ;;  %v6403_v31 = vpop.permute.xlu1 %6402 }
 0xefb   : > { %6471 = vst.msk [vmem:[#allocation5 + $0x288] sm:$0xff] %vm2528_vm6, %v6403_v31 }
 0xefd   : > { %v6665_v55 = vpop.permute.xlu0 %6664 }
 0xefe   : > { %v7051_v39 = vpop.permute.xlu1 %7050  ;;  %6730 = vst.msk [vmem:[#allocation5 + $0x2d8] sm:$0xff] %vm1165_vm3, %v6665_v55 }
 0xeff   : > { %6922 = vst.msk [vmem:[#allocation5 + $0x2d8] sm:$0xff] %vm1358_vm4, %v12863_v44 }
 0xf00   : > { %7114 = vst.msk [vmem:[#allocation5 + $0x2d8] sm:$0xff] %vm2528_vm6, %v7049_v57 }
 0xf01   : > { %v7262_v28 = vld [vmem:[#allocation5 + $0x290] sm:$0xff]  ;;  %v6409_v8 = vpop.permute.xlu0 %6408  ;;  %v7265_v53 = vld [vmem:[#allocation5 + $0x2a8] sm:$0xff] }
 0xf02   : > { %v7316_v61 = vpack.c.bf16 %v7262_v28, %v7259_v58  ;;  %v6663_v56 = vpop.permute.xlu1 %6662  ;;  %v7261_v3 = vld [vmem:[#allocation5 + $0x288] sm:$0xff]  ;;  %6474 = vst.msk [vmem:[#allocation5 + $0x2d0] sm:$0xff] %vm2528_vm6, %v6409_v8 }
 0xf03   : > { %6729 = vst.msk [vmem:[#allocation5 + $0x2c0] sm:$0xff] %vm1165_vm3, %v6663_v56  ;;  %v7315_v29 = vpack.c.bf16 %v7261_v3, %v7258_v42 }
 0xf04   : > { %7659 = vmatprep.mubr.bf16.mxu1 %v7316_v61  ;;  %6921 = vst.msk [vmem:[#allocation5 + $0x2c0] sm:$0xff] %vm1358_vm4, %v12026_v62 }
 0xf05   : > { %7113 = vst.msk [vmem:[#allocation5 + $0x2c0] sm:$0xff] %vm2528_vm6, %v12036_v4  ;;  %7660 = vmatmul.mubr.bf16.gmra.mrb[100].mxu1 %v7315_v29 }
 0xf06   : > { %v6407_v44 = vpop.permute.xlu1 %6406 }
 0xf07   : > { %6473 = vst.msk [vmem:[#allocation5 + $0x2b8] sm:$0xff] %vm2528_vm6, %v6407_v44  ;;  %v7271_v48 = vld [vmem:[#allocation5 + $0x2d8] sm:$0xff] }
 0xf09   : > { %v7270_v10 = vld [vmem:[#allocation5 + $0x2d0] sm:$0xff] }
 0xf0a   : > { %v6667_v15 = vpop.permute.xlu1 %6666 }
 0xf0b   : > { %6731 = vst.msk [vmem:[#allocation5 + $0x2f0] sm:$0xff] %vm1165_vm3, %v6667_v15 }
 0xf0c   : > { %6923 = vst.msk [vmem:[#allocation5 + $0x2f0] sm:$0xff] %vm1358_vm4, %v12837_v43  ;;  %v7268_v63 = vld [vmem:[#allocation5 + $0x2c0] sm:$0xff] }
 0xf0d   : > { %7115 = vst.msk [vmem:[#allocation5 + $0x2f0] sm:$0xff] %vm2528_vm6, %v7051_v39  ;;  %v7319_v62 = vpack.c.bf16 %v7268_v63, %v7265_v53 }
 0xf0e   : > { %v6411_v17 = vpop.permute.xlu1 %6410  ;;  %v7267_v40 = vld [vmem:[#allocation5 + $0x2b8] sm:$0xff] }
 0xf0f   : > { %6475 = vst.msk [vmem:[#allocation5 + $0x2e8] sm:$0xff] %vm2528_vm6, %v6411_v17  ;;  %7667 = vmatprep.mubr.bf16.mxu1 %v7319_v62  ;;  %v7318_v4 = vpack.c.bf16 %v7267_v40, %v7264_v2 }
 0xf11   : > { %7668 = vmatmul.mubr.bf16.gmra.mrb[104].mxu1 %v7318_v4 }
 0xf14   : > { %v7274_v21 = vld [vmem:[#allocation5 + $0x2f0] sm:$0xff] }
 0xf15   : > { %v7322_v27 = vpack.c.bf16 %v7274_v21, %v7271_v48 }
 0xf16   : > { %v7273_v52 = vld [vmem:[#allocation5 + $0x2e8] sm:$0xff] }
 0xf17   : > { %7675 = vmatprep.mubr.bf16.mxu1 %v7322_v27  ;;  %v7321_v43 = vpack.c.bf16 %v7273_v52, %v7270_v10 }
 0xf19   : > { %7676 = vmatmul.mubr.bf16.gmra.mrb[108].mxu1 %v7321_v43 }
 0xf2f   : > { %v8666_v54 = vpop.f32.mrb[52].mxu1 }
 0xf30   : > { %v8667_v6 = vpop.f32.mrb[53].mxu1 }
 0xf31   : > { %v8668_v7 = vadd.f32 %v8667_v6, %v8666_v54  ;;  %v8669_v37 = vpop.f32.mrb[54].mxu1 }
 0xf32   : > { %v8670_v1 = vpop.f32.mrb[55].mxu1 }
 0xf33   : > { %v7566_v60 = vadd.f32 %v8668_v7, %v12882_v59  ;;  %v8671_v12 = vadd.f32 %v8670_v1, %v8669_v37 }
 0xf35   : > { %v7727_v38 = vadd.f32 %v12721_v5, %v7566_v60  ;;  %v7569_v16 = vadd.f32 %v8671_v12, %v12882_v59 }
 0xf37   : > { %v7730_v49 = vadd.f32 %v12731_v35, %v7569_v16  ;;  %v8672_v0 = vpop.f32.mrb[56].mxu1  ;;  %7849 = vrot.lane.b32.xlu0 %v7727_v38, %s9556_s23 }
 0xf38   : > { %v8673_v20 = vpop.f32.mrb[57].mxu1 }
 0xf39   : > { %v8674_v19 = vadd.f32 %v8673_v20, %v8672_v0  ;;  %v8675_v26 = vpop.f32.mrb[58].mxu1  ;;  %7851 = vrot.lane.b32.xlu1 %v7730_v49, %s9556_s23 }
 0xf3a   : > { %v8676_v31 = vpop.f32.mrb[59].mxu1 }
 0xf3b   : > { %v7574_v57 = vadd.f32 %v8674_v19, %v12882_v59  ;;  %v8677_v39 = vadd.f32 %v8676_v31, %v8675_v26 }
 0xf3d   : > { %v7735_v55 = vadd.f32 %v12748_v32, %v7574_v57  ;;  %v7577_v5 = vadd.f32 %v8677_v39, %v12882_v59 }
 0xf3f   : > { %v7738_v58 = vadd.f32 %v12754_v9, %v7577_v5  ;;  %v8678_v28 = vpop.f32.mrb[60].mxu1  ;;  %7859 = vrot.lane.b32.xlu0 %v7735_v55, %s9557_s26 }
 0xf40   : > { %v8679_v35 = vpop.f32.mrb[61].mxu1 }
 0xf41   : > { %v8680_v61 = vadd.f32 %v8679_v35, %v8678_v28  ;;  %v8681_v56 = vpop.f32.mrb[62].mxu1  ;;  %7861 = vrot.lane.b32.xlu1 %v7738_v58, %s9557_s26 }
 0xf42   : > { %v8682_v42 = vpop.f32.mrb[63].mxu1 }
 0xf43   : > { %v7582_v3 = vadd.f32 %v8680_v61, %v12882_v59  ;;  %v8683_v8 = vadd.f32 %v8682_v42, %v8681_v56 }
 0xf45   : > { %v7743_v29 = vadd.f32 %v12745_v45, %v7582_v3  ;;  %v7585_v32 = vadd.f32 %v8683_v8, %v12882_v59 }
 0xf47   : > { %v7746_v44 = vadd.f32 %v12751_v47, %v7585_v32  ;;  %v8684_v9 = vpop.f32.mrb[64].mxu1  ;;  %7869 = vrot.lane.b32.xlu0 %v7743_v29, %s9558_s21 }
 0xf48   : > { %v8685_v15 = vpop.f32.mrb[65].mxu1 }
 0xf49   : > { %v8686_v53 = vadd.f32 %v8685_v15, %v8684_v9  ;;  %v8687_v63 = vpop.f32.mrb[66].mxu1  ;;  %7871 = vrot.lane.b32.xlu1 %v7746_v44, %s9558_s21 }
 0xf4a   : > { %v8688_v62 = vpop.f32.mrb[67].mxu1 }
 0xf4b   : > { %v7590_v17 = vadd.f32 %v8686_v53, %v12882_v59  ;;  %v8689_v2 = vadd.f32 %v8688_v62, %v8687_v63 }
 0xf4d   : > { %v7751_v45 = vadd.f32 %v12765_v14, %v7590_v17  ;;  %v7593_v40 = vadd.f32 %v8689_v2, %v12882_v59  ;;  %v12962_v6 = vpop.f32.mrb[124].mxu0 }
 0xf4e   : > { %v12964_v7 = vpop.f32.mrb[125].mxu0 }
 0xf4f   : > { %v7754_v4 = vadd.f32 %v12772_v50, %v7593_v40  ;;  %v8690_v47 = vpop.f32.mrb[68].mxu1  ;;  %7877 = vst.msk [vmem:[%s12895_s30 + $0x8] sm:$0xff] %vm483_vm0, %v7751_v45  ;;  %v12968_v37 = vpop.f32.mrb[126].mxu0 }
 0xf50   : > { %v8691_v48 = vpop.f32.mrb[69].mxu1  ;;  %v12970_v1 = vpop.f32.mrb[127].mxu0 }
 0xf51   : > { %v8692_v21 = vadd.f32 %v8691_v48, %v8690_v47  ;;  %v8693_v27 = vpop.f32.mrb[70].mxu1  ;;  %7878 = vst.msk [vmem:[%s12895_s30 + $0x28] sm:$0xff] %vm483_vm0, %v7754_v4 }
 0xf52   : > { %v8694_v10 = vpop.f32.mrb[71].mxu1 }
 0xf53   : > { %v7598_v52 = vadd.f32 %v8692_v21, %v12882_v59  ;;  %v8695_v43 = vadd.f32 %v8694_v10, %v8693_v27 }
 0xf55   : > { %v7759_v54 = vadd.f32 %v12762_v24, %v7598_v52  ;;  %v7601_v14 = vadd.f32 %v8695_v43, %v12882_v59 }
 0xf57   : > { %v7762_v50 = vadd.f32 %v12768_v25, %v7601_v14  ;;  %7881 = vrot.lane.b32.xlu0 %v7759_v54, %s9556_s23 }
 0xf59   : > { %7883 = vrot.lane.b32.xlu1 %v7762_v50, %s9556_s23 }
 0xf67   : > { %v12973_v12 = vpop.f32.mrb[128].mxu0 }
 0xf68   : > { %v12975_v38 = vpop.f32.mrb[129].mxu0 }
 0xf69   : > { %v12977_v0 = vpop.f32.mrb[130].mxu0 }
 0xf6a   : > { %v12979_v25 = vpop.f32.mrb[131].mxu0 }
 0xf6d   : > { %v8696_v60 = vpop.f32.mrb[72].mxu1 }
 0xf6e   : > { %v8697_v24 = vpop.f32.mrb[73].mxu1 }
 0xf6f   : > { %v8698_v16 = vadd.f32 %v8697_v24, %v8696_v60  ;;  %v8699_v49 = vpop.f32.mrb[74].mxu1 }
 0xf70   : > { %v8700_v20 = vpop.f32.mrb[75].mxu1 }
 0xf71   : > { %v7606_v19 = vadd.f32 %v8698_v16, %v12882_v59  ;;  %v8701_v26 = vadd.f32 %v8700_v20, %v8699_v49 }
 0xf73   : > { %v7767_v31 = vadd.f32 %v12782_v30, %v7606_v19  ;;  %v7609_v57 = vadd.f32 %v8701_v26, %v12882_v59 }
 0xf75   : > { %v7770_v39 = vadd.f32 %v12792_v18, %v7609_v57  ;;  %v8702_v55 = vpop.f32.mrb[76].mxu1  ;;  %7891 = vrot.lane.b32.xlu0 %v7767_v31, %s9557_s26 }
 0xf76   : > { %v8703_v5 = vpop.f32.mrb[77].mxu1 }
 0xf77   : > { %v8704_v58 = vadd.f32 %v8703_v5, %v8702_v55  ;;  %v8705_v28 = vpop.f32.mrb[78].mxu1  ;;  %7893 = vrot.lane.b32.xlu1 %v7770_v39, %s9557_s26 }
 0xf78   : > { %v8706_v35 = vpop.f32.mrb[79].mxu1 }
 0xf79   : > { %v7614_v61 = vadd.f32 %v8704_v58, %v12882_v59  ;;  %v8707_v56 = vadd.f32 %v8706_v35, %v8705_v28 }
 0xf7b   : > { %v7775_v42 = vadd.f32 %v12779_v34, %v7614_v61  ;;  %v7617_v30 = vadd.f32 %v8707_v56, %v12882_v59 }
 0xf7d   : > { %v7778_v18 = vadd.f32 %v12787_v22, %v7617_v30  ;;  %v8708_v3 = vpop.f32.mrb[80].mxu1  ;;  %7901 = vrot.lane.b32.xlu0 %v7775_v42, %s9558_s21 }
 0xf7e   : > { %v8709_v8 = vpop.f32.mrb[81].mxu1 }
 0xf7f   : > { %v8710_v29 = vadd.f32 %v8709_v8, %v8708_v3  ;;  %v8711_v32 = vpop.f32.mrb[82].mxu1  ;;  %7903 = vrot.lane.b32.xlu1 %v7778_v18, %s9558_s21 }
 0xf80   : > { %v8712_v44 = vpop.f32.mrb[83].mxu1 }
 0xf81   : > { %v7622_v9 = vadd.f32 %v8710_v29, %v12882_v59  ;;  %v8713_v34 = vadd.f32 %v8712_v44, %v8711_v32 }
 0xf83   : > { %v7783_v15 = vadd.f32 %v12803_v51, %v7622_v9  ;;  %v7625_v53 = vadd.f32 %v8713_v34, %v12882_v59 }
 0xf85   : > { %v7786_v22 = vadd.f32 %v12809_v46, %v7625_v53  ;;  %7909 = vst.msk [vmem:[%s12895_s30 + $0x10] sm:$0xff] %vm483_vm0, %v7783_v15 }
 0xf87   : > { %7910 = vst.msk [vmem:[%s12895_s30 + $0x30] sm:$0xff] %vm483_vm0, %v7786_v22 }
 0xfa9   : > { %v7850_v63 = vpop.permute.xlu0 %7849 }
 0xfaa   : > { %7855 = vst.msk [vmem:[%s12895_s30] sm:$0xff] %vm1165_vm3, %v7850_v63 }
 0xfab   : > { %v7852_v62 = vpop.permute.xlu1 %7851 }
 0xfac   : > { %7856 = vst.msk [vmem:[%s12895_s30 + $0x20] sm:$0xff] %vm1165_vm3, %v7852_v62 }
 0xfae   : > { %v8714_v17 = vpop.f32.mrb[84].mxu1 }
 0xfaf   : > { %v8715_v2 = vpop.f32.mrb[85].mxu1 }
 0xfb0   : > { %v8716_v45 = vadd.f32 %v8715_v2, %v8714_v17  ;;  %v8717_v40 = vpop.f32.mrb[86].mxu1 }
 0xfb1   : > { %v7860_v51 = vpop.permute.xlu0 %7859  ;;  %v8718_v46 = vpop.f32.mrb[87].mxu1 }
 0xfb2   : > { %7865 = vst.msk [vmem:[%s12895_s30] sm:$0xff] %vm1358_vm4, %v7860_v51  ;;  %v7630_v4 = vadd.f32 %v8716_v45, %v12882_v59  ;;  %v8719_v47 = vadd.f32 %v8718_v46, %v8717_v40 }
 0xfb3   : > { %v7862_v48 = vpop.permute.xlu1 %7861 }
 0xfb4   : > { %7866 = vst.msk [vmem:[%s12895_s30 + $0x20] sm:$0xff] %vm1358_vm4, %v7862_v48  ;;  %v7791_v21 = vadd.f32 %v12800_v23, %v7630_v4  ;;  %v7633_v27 = vadd.f32 %v8719_v47, %v12882_v59 }
 0xfb6   : > { %v7794_v10 = vadd.f32 %v12806_v33, %v7633_v27  ;;  %7913 = vrot.lane.b32.xlu0 %v7791_v21, %s9556_s23 }
 0xfb8   : > { %7915 = vrot.lane.b32.xlu1 %v7794_v10, %s9556_s23 }
 0xfb9   : > { %v7870_v52 = vpop.permute.xlu0 %7869 }
 0xfba   : > { %7875 = vst.msk [vmem:[%s12895_s30] sm:$0xff] %vm2528_vm6, %v7870_v52 }
 0xfbb   : > { %v7872_v43 = vpop.permute.xlu1 %7871 }
 0xfbc   : > { %7876 = vst.msk [vmem:[%s12895_s30 + $0x20] sm:$0xff] %vm2528_vm6, %v7872_v43 }
 0xfbd   : > { %v8720_v54 = vpop.f32.mrb[88].mxu1 }
 0xfbe   : > { %v8721_v14 = vpop.f32.mrb[89].mxu1 }
 0xfbf   : > { %v8722_v50 = vadd.f32 %v8721_v14, %v8720_v54  ;;  %v8723_v60 = vpop.f32.mrb[90].mxu1 }
 0xfc0   : > { %v8724_v24 = vpop.f32.mrb[91].mxu1 }
 0xfc1   : > { %v7638_v23 = vadd.f32 %v8722_v50, %v12882_v59  ;;  %v8725_v16 = vadd.f32 %v8724_v24, %v8723_v60 }
 0xfc3   : > { %v7799_v33 = vadd.f32 %v12820_v36, %v7638_v23  ;;  %v7641_v49 = vadd.f32 %v8725_v16, %v12882_v59 }
 0xfc5   : > { %v7802_v20 = vadd.f32 %v12825_v13, %v7641_v49  ;;  %7923 = vrot.lane.b32.xlu0 %v7799_v33, %s9557_s26  ;;  %v8726_v19 = vpop.f32.mrb[92].mxu1 }
 0xfc6   : > { %v8727_v26 = vpop.f32.mrb[93].mxu1 }
 0xfc7   : > { %v8728_v31 = vadd.f32 %v8727_v26, %v8726_v19  ;;  %7925 = vrot.lane.b32.xlu1 %v7802_v20, %s9557_s26  ;;  %v8729_v57 = vpop.f32.mrb[94].mxu1 }
 0xfc8   : > { %v8730_v39 = vpop.f32.mrb[95].mxu1 }
 0xfc9   : > { %v7646_v55 = vadd.f32 %v8728_v31, %v12882_v59  ;;  %v8731_v5 = vadd.f32 %v8730_v39, %v8729_v57  ;;  %v7882_v58 = vpop.permute.xlu0 %7881 }
 0xfca   : > { %7887 = vst.msk [vmem:[%s12895_s30 + $0x8] sm:$0xff] %vm1165_vm3, %v7882_v58 }
 0xfcb   : > { %v7807_v36 = vadd.f32 %v12817_v11, %v7646_v55  ;;  %v7649_v28 = vadd.f32 %v8731_v5, %v12882_v59  ;;  %v7884_v13 = vpop.permute.xlu1 %7883 }
 0xfcc   : > { %7888 = vst.msk [vmem:[%s12895_s30 + $0x28] sm:$0xff] %vm1165_vm3, %v7884_v13 }
 0xfcd   : > { %v7810_v35 = vadd.f32 %v12823_v41, %v7649_v28  ;;  %7933 = vrot.lane.b32.xlu0 %v7807_v36, %s9558_s21  ;;  %v8732_v61 = vpop.f32.mrb[96].mxu1 }
 0xfce   : > { %v8733_v56 = vpop.f32.mrb[97].mxu1 }
 0xfcf   : > { %v8734_v42 = vadd.f32 %v8733_v56, %v8732_v61  ;;  %7935 = vrot.lane.b32.xlu1 %v7810_v35, %s9558_s21  ;;  %v8735_v30 = vpop.f32.mrb[98].mxu1 }
 0xfd0   : > { %v8736_v11 = vpop.f32.mrb[99].mxu1 }
 0xfd1   : > { %v8737_v18 = vadd.f32 %v8736_v11, %v8735_v30  ;;  %v7654_v3 = vadd.f32 %v8734_v42, %v12882_v59 }
 0xfd3   : > { %v7815_v8 = vadd.f32 %v12964_v7, %v7654_v3  ;;  %v7657_v29 = vadd.f32 %v8737_v18, %v12882_v59 }
 0xfd5   : > { %7941 = vst.msk [vmem:[%s12895_s30 + $0x18] sm:$0xff] %vm483_vm0, %v7815_v8  ;;  %v7818_v41 = vadd.f32 %v12970_v1, %v7657_v29 }
 0xfd7   : > { %7942 = vst.msk [vmem:[%s12895_s30 + $0x38] sm:$0xff] %vm483_vm0, %v7818_v41 }
 0xfd8   : > { %v8738_v32 = vpop.f32.mrb[100].mxu1 }
 0xfd9   : > { %v8739_v44 = vpop.f32.mrb[101].mxu1 }
 0xfda   : > { %v8740_v9 = vadd.f32 %v8739_v44, %v8738_v32  ;;  %v8741_v34 = vpop.f32.mrb[102].mxu1 }
 0xfdb   : > { %v8742_v15 = vpop.f32.mrb[103].mxu1 }
 0xfdc   : > { %v7662_v53 = vadd.f32 %v8740_v9, %v12882_v59  ;;  %v8743_v22 = vadd.f32 %v8742_v15, %v8741_v34 }
 0xfde   : > { %v7823_v63 = vadd.f32 %v12962_v6, %v7662_v53  ;;  %v7665_v7 = vadd.f32 %v8743_v22, %v12882_v59 }
 0xfe0   : > { %v7826_v62 = vadd.f32 %v12968_v37, %v7665_v7  ;;  %7945 = vrot.lane.b32.xlu0 %v7823_v63, %s9556_s23 }
 0xfe2   : > { %7947 = vrot.lane.b32.xlu1 %v7826_v62, %s9556_s23 }
 0xfe4   : > { %v8744_v1 = vpop.f32.mrb[104].mxu1 }
 0xfe5   : > { %v8745_v17 = vpop.f32.mrb[105].mxu1 }
 0xfe6   : > { %v8746_v2 = vadd.f32 %v8745_v17, %v8744_v1  ;;  %v8747_v45 = vpop.f32.mrb[106].mxu1 }
 0xfe7   : > { %v7892_v51 = vpop.permute.xlu0 %7891  ;;  %v8748_v40 = vpop.f32.mrb[107].mxu1 }
 0xfe8   : > { %7897 = vst.msk [vmem:[%s12895_s30 + $0x8] sm:$0xff] %vm1358_vm4, %v7892_v51  ;;  %v8749_v46 = vadd.f32 %v8748_v40, %v8747_v45  ;;  %v7670_v6 = vadd.f32 %v8746_v2, %v12882_v59 }
 0xfe9   : > { %v7894_v4 = vpop.permute.xlu1 %7893 }
 0xfea   : > { %v7831_v47 = vadd.f32 %v12975_v38, %v7670_v6  ;;  %7898 = vst.msk [vmem:[%s12895_s30 + $0x28] sm:$0xff] %vm1358_vm4, %v7894_v4  ;;  %v7673_v37 = vadd.f32 %v8749_v46, %v12882_v59 }
 0xfec   : > { %v7834_v48 = vadd.f32 %v12979_v25, %v7673_v37  ;;  %7955 = vrot.lane.b32.xlu0 %v7831_v47, %s9557_s26  ;;  %v8750_v21 = vpop.f32.mrb[108].mxu1 }
 0xfed   : > { %v8751_v27 = vpop.f32.mrb[109].mxu1 }
 0xfee   : > { %v8752_v10 = vadd.f32 %v8751_v27, %v8750_v21  ;;  %7957 = vrot.lane.b32.xlu1 %v7834_v48, %s9557_s26  ;;  %v8753_v52 = vpop.f32.mrb[110].mxu1 }
 0xfef   : > { %v7902_v43 = vpop.permute.xlu0 %7901  ;;  %v8754_v54 = vpop.f32.mrb[111].mxu1 }
 0xff0   : > { %v7678_v38 = vadd.f32 %v8752_v10, %v12882_v59  ;;  %7907 = vst.msk [vmem:[%s12895_s30 + $0x8] sm:$0xff] %vm2528_vm6, %v7902_v43  ;;  %v8755_v14 = vadd.f32 %v8754_v54, %v8753_v52 }
 0xff1   : > { %v7904_v25 = vpop.permute.xlu1 %7903 }
 0xff2   : > { %v7839_v50 = vadd.f32 %v12973_v12, %v7678_v38  ;;  %v7681_v60 = vadd.f32 %v8755_v14, %v12882_v59  ;;  %7908 = vst.msk [vmem:[%s12895_s30 + $0x28] sm:$0xff] %vm2528_vm6, %v7904_v25 }
 0xff4   : > { %v7842_v24 = vadd.f32 %v12977_v0, %v7681_v60  ;;  %7965 = vrot.lane.b32.xlu0 %v7839_v50, %s9558_s21 }
 0xff6   : > { %7967 = vrot.lane.b32.xlu1 %v7842_v24, %s9558_s21 }
0x1028   : > { %v7914_v23 = vpop.permute.xlu0 %7913 }
0x1029   : > { %7919 = vst.msk [vmem:[%s12895_s30 + $0x10] sm:$0xff] %vm1165_vm3, %v7914_v23 }
0x102a   : > { %v7916_v16 = vpop.permute.xlu1 %7915 }
0x102b   : > { %7920 = vst.msk [vmem:[%s12895_s30 + $0x30] sm:$0xff] %vm1165_vm3, %v7916_v16 }
0x1037   : > { %v7924_v59 = vpop.permute.xlu0 %7923 }
0x1038   : > { %7929 = vst.msk [vmem:[%s12895_s30 + $0x10] sm:$0xff] %vm1358_vm4, %v7924_v59 }
0x1039   : > { %v7926_v12 = vpop.permute.xlu1 %7925 }
0x103a   : > { %7930 = vst.msk [vmem:[%s12895_s30 + $0x30] sm:$0xff] %vm1358_vm4, %v7926_v12 }
0x103f   : > { %v7934_v0 = vpop.permute.xlu0 %7933 }
0x1040   : > { %7939 = vst.msk [vmem:[%s12895_s30 + $0x10] sm:$0xff] %vm2528_vm6, %v7934_v0 }
0x1041   : > { %v7936_v33 = vpop.permute.xlu1 %7935 }
0x1042   : > { %7940 = vst.msk [vmem:[%s12895_s30 + $0x30] sm:$0xff] %vm2528_vm6, %v7936_v33 }
0x1052   : > { %v7946_v49 = vpop.permute.xlu0 %7945 }
0x1053   : > { %7951 = vst.msk [vmem:[%s12895_s30 + $0x18] sm:$0xff] %vm1165_vm3, %v7946_v49 }
0x1054   : > { %v7948_v20 = vpop.permute.xlu1 %7947 }
0x1055   : > { %7952 = vst.msk [vmem:[%s12895_s30 + $0x38] sm:$0xff] %vm1165_vm3, %v7948_v20 }
0x105e   : > { %v7956_v19 = vpop.permute.xlu0 %7955 }
0x105f   : > { %7961 = vst.msk [vmem:[%s12895_s30 + $0x18] sm:$0xff] %vm1358_vm4, %v7956_v19 }
0x1060   : > { %v7958_v26 = vpop.permute.xlu1 %7957 }
0x1061   : > { %7962 = vst.msk [vmem:[%s12895_s30 + $0x38] sm:$0xff] %vm1358_vm4, %v7958_v26 }
0x1066   : > { %v7966_v31 = vpop.permute.xlu0 %7965 }
0x1067   : > { %7971 = vst.msk [vmem:[%s12895_s30 + $0x18] sm:$0xff] %vm2528_vm6, %v7966_v31 }
0x1068   : > { %v7968_v57 = vpop.permute.xlu1 %7967 }
0x1069   : > { %7972 = vst.msk [vmem:[%s12895_s30 + $0x38] sm:$0xff] %vm2528_vm6, %v7968_v57 }
0x106a PF: > { %s25_s29 = sadd.s32 1, %s9552_s29  }
0x106b   : > { %p22_p1 = scmp.ge.s32.totalorder %s25_s29, 4  }
0x106d   :  { %24 = sbr.rel (!%p22_p1) target bundleno = 1 (0x1), region = 129 }
0x1074   :  { %7994 = vsyncpa [#allocation8], 1 }
0x1075   :  { %7996 = vsyncpa [#allocation8 + $0x1], 1 }

</bundles_post_ra>
